<compile_context>
chip_gen: v5e
topology: v5e:2x2
jax: 0.10.0
libtpu: 0.0.40
codegen_flags: <defaults>
</compile_context>

<pallas_src>
import functools

import jax
import jax.numpy as jnp
from jax.experimental import pallas as pl
from jax.experimental.pallas import tpu as pltpu

_CHUNK = 64        # rows per in-kernel M-chunk (live values stay well < 64 vregs)
_SCRATCH_PAD = 16  # leading scratch rows so the j-shifted writes never go negative

_L1_NAMES = ("h1", "v1", "f1")
_L2_NAMES = ("h2", "v2", "f2")
_DIL_NAMES = ("hd", "vd", "fd")


def _ceil_to(a, b):
    return -(-a // b) * b


def _split_bf16(a):
    """f32 -> (hi, lo) bf16 pair with hi = rnd_bf16(a), lo = rnd_bf16(a - hi).

    lhs lanes [a_hi | a_lo | a_hi] against weight rows [w_hi ; w_hi ; w_lo]
    reproduce the f32 product to ~2^-16 using only native bf16 MXU passes.
    """
    hi = a.astype(jnp.bfloat16)
    lo = (a - hi.astype(jnp.float32)).astype(jnp.bfloat16)
    return hi, lo


def _dirfulldil_kernel(xcol1_ref, xcold_ref, w1_ref, b1_ref, wd_ref,
                       w2_ref, bout_ref, out_ref, ysp_ref, *, img_w, chunk):
    """Fused DirFullDil forward on flat pixel rows.

    xcol1_ref (L1P, 27C)      bf16  im2col of split x, dilation 1 (layer-1)
    xcold_ref (LOP, 27C)      bf16  im2col of split x, dilation 2 (dilated conv)
    w1_ref    (27C, c_mid)    bf16  fused layer-1 weights (tap-major, split rows)
    b1_ref    (1, c_mid)      f32
    wd_ref    (27C, c_dil)    bf16  fused dilated-conv weights
    w2_ref    (3, 9*c_mid, c_mid) bf16  layer-2 weights, one (144, c_mid) per i
    bout_ref  (1, c_dil+c_mid) f32  fused output bias [bd | b2]
    out_ref   (LOP, c_dil+c_mid) f32 flat output (wrapper crops/reshapes)
    ysp_ref   (L1P+16, 9*c_mid) f32 scratch: j-folded [hi|lo|hi] softplus(y)
    """
    CH, W, P0 = chunk, img_w, _SCRATCH_PAD
    L1P = xcol1_ref.shape[0]
    LOP = out_ref.shape[0]
    c_mid = b1_ref.shape[-1]
    cs = 3 * c_mid                        # one [hi|lo|hi] split block (48 lanes)
    assert L1P % CH == 0 and LOP % CH == 0

    # ---- phase 1: layer-1 conv (one 81-wide dot per chunk) -> softplus ->
    # hi/lo split -> write the three column(j)-shifted lane blocks to scratch.
    for c in range(L1P // CH):
        r = c * CH
        y = jnp.dot(xcol1_ref[r:r + CH, :], w1_ref[...],
                    preferred_element_type=jnp.float32) + b1_ref[...]
        y = jnp.maximum(y, 0.0) + jnp.log1p(jnp.exp(-jnp.abs(y)))   # softplus
        hi = y.astype(jnp.bfloat16).astype(jnp.float32)
        blk = jnp.concatenate([hi, y - hi, hi], axis=1)             # (CH, 48)
        for j in range(3):
            # scratch row p, lane block j holds split(y[p - P0 + j]); the +2/+1
            # shifted (static) stores are the only unaligned accesses left.
            ysp_ref[r + P0 - j:r + P0 - j + CH, j * cs:(j + 1) * cs] = blk

    # ---- phase 2: dilated conv (one dot) + layer-2 (3 aligned dots) per chunk,
    # register accumulation, single 32-lane store per chunk.
    for c in range(LOP // CH):
        r = c * CH
        r_dil = jnp.dot(xcold_ref[r:r + CH, :], wd_ref[...],
                        preferred_element_type=jnp.float32)
        acc = None
        for i in range(3):                # row shifts i*W: sublane-aligned loads
            lhs = ysp_ref[r + P0 + i * W:r + P0 + i * W + CH, :].astype(jnp.bfloat16)
            d = jnp.dot(lhs, w2_ref[i], preferred_element_type=jnp.float32)
            acc = d if acc is None else acc + d
        out_ref[r:r + CH, :] = (jnp.concatenate([r_dil, acc], axis=1)
                                + bout_ref[...])


def _pack_fused(params, names):
    """Zero-pad (1,3)/(3,1) kernels into a centered 3x3 (reproduces the module's
    [1:-1]/[2:-2] crops), fuse along cout and build the bf16 hi/lo-split per-tap
    weight tensor (9, 3*cin, cout), tap index t = 3*i + j."""
    ws, bs = [], []
    for name in names:
        w, b = params[name]                       # (kh, kw, cin, cout) HWIO
        kh, kw, cin, cout = w.shape
        r0, q0 = (3 - kh) // 2, (3 - kw) // 2
        full = jnp.zeros((3, 3, cin, cout), jnp.float32)
        full = full.at[r0:r0 + kh, q0:q0 + kw].set(w)
        ws.append(full)
        bs.append(b.astype(jnp.float32))
    w = jnp.concatenate(ws, axis=-1)              # (3, 3, cin, cout_total)
    cin, cout = w.shape[2], w.shape[3]
    w = w.reshape(9, cin, cout)
    hi, lo = _split_bf16(w)
    w_split = jnp.concatenate([hi, hi, lo], axis=1)   # (9, 3*cin, cout) bf16
    b = jnp.concatenate(bs, axis=-1)              # (1, cout_total)
    return w_split, b


@jax.jit
def dirfulldil_forward(x_nchw, params):
    """x_nchw: (N, C, H, W) f32 -> (N, C_out, H-4, W-4) f32 (PyTorch layout)."""
    N, C, H, W = x_nchw.shape
    assert H >= 5 and W >= 5

    w1s, b1 = _pack_fused(params, _L1_NAMES)      # (9, 3C,      c_mid)
    w2s, b2 = _pack_fused(params, _L2_NAMES)      # (9, 3*c_mid, c_mid)
    wds, bd = _pack_fused(params, _DIL_NAMES)     # (9, 3C,      c_dil)
    c_mid, c_dil = b1.shape[-1], bd.shape[-1]
    c_out = c_dil + c_mid

    W1 = w1s.reshape(27 * C, c_mid)               # rows: tap-major, split-ch minor
    Wd = wds.reshape(27 * C, c_dil)
    W2 = w2s.reshape(3, 9 * c_mid, c_mid)         # per-i: rows = j*48 + split-ch
    bout = jnp.concatenate([bd, b2], axis=-1)     # (1, c_out)

    CH = _CHUNK
    halo = 2 * W + 2                              # layer-1 rows layer-2 reads past L_out
    L_out = N * H * W
    LOP = _ceil_to(L_out, CH)                     # padded output rows
    L1P = _ceil_to(LOP + halo, CH)                # padded layer-1 rows
    n_flat = L1P + halo                           # flat rows incl. zero pad

    # Flat [hi|lo|hi] bf16 pixel buffer: anchor (n, h, w) -> row n*H*W + h*W + w.
    xf = jnp.transpose(x_nchw, (0, 2, 3, 1)).astype(jnp.float32).reshape(L_out, C)
    hi, lo = _split_bf16(xf)
    xs = jnp.concatenate([hi, lo, hi], axis=1)                    # (L_out, 3C) bf16
    xs = jnp.concatenate(
        [xs, jnp.zeros((n_flat - L_out, 3 * C), jnp.bfloat16)], axis=0)

    def im2col(nrows, dil):
        # A conv tap (i, j) at dilation d is the static row shift d*(i*W + j);
        # fold all 9 taps into lanes (27C = 81 <= 128, one K tile).
        views = [xs[dil * (i * W + j):dil * (i * W + j) + nrows]
                 for i in range(3) for j in range(3)]
        return jnp.concatenate(views, axis=1)                     # (nrows, 27C)

    xcol1 = im2col(L1P, 1)
    xcold = im2col(LOP, 2)

    vmem = pl.BlockSpec(memory_space=pltpu.MemorySpace.VMEM)
    out_flat = pl.pallas_call(
        functools.partial(_dirfulldil_kernel, img_w=W, chunk=CH),
        out_shape=jax.ShapeDtypeStruct((LOP, c_out), jnp.float32),
        in_specs=[vmem] * 7,                      # whole arrays, single grid step
        out_specs=vmem,
        scratch_shapes=[
            pltpu.VMEM((L1P + _SCRATCH_PAD, 9 * c_mid), jnp.float32)],
    )(xcol1, xcold, W1, b1, Wd, W2, bout)

    out = out_flat[:L_out].reshape(N, H, W, c_out)[:, :H - 4, :W - 4, :]
    return jnp.transpose(out, (0, 3, 1, 2))       # back to NCHW


def make_params(key, channels_in, n_dir, n_full, n_dir_dil, n_full_dil):
    """Deterministic synthetic weights, PyTorch Conv2d-style uniform init, HWIO."""
    c_mid = 2 * n_dir + n_full
    shapes = {
        "h1": (1, 3, channels_in, n_dir),
        "v1": (3, 1, channels_in, n_dir),
        "f1": (3, 3, channels_in, n_full),
        "h2": (1, 3, c_mid, n_dir),
        "v2": (3, 1, c_mid, n_dir),
        "f2": (3, 3, c_mid, n_full),
        "hd": (1, 3, channels_in, n_dir_dil),
        "vd": (3, 1, channels_in, n_dir_dil),
        "fd": (3, 3, channels_in, n_full_dil),
    }
    params = {}
    for name, (kh, kw, cin, cout) in shapes.items():
        key, k_w, k_b = jax.random.split(key, 3)
        bound = 1.0 / float(kh * kw * cin) ** 0.5
        w = jax.random.uniform(k_w, (kh, kw, cin, cout), jnp.float32, -bound, bound)
        b = jax.random.uniform(k_b, (1, cout), jnp.float32, -bound, bound)
        params[name] = (w, b)
    return params


def ref_forward(x_nchw, params):
    """Pure-JAX reference mirroring the PyTorch module (full-f32 convolutions)."""
    def conv(x, name, dil=1):
        w, b = params[name]
        out = jax.lax.conv_general_dilated(
            x, w, window_strides=(1, 1), padding="VALID",
            rhs_dilation=(dil, dil),
            dimension_numbers=("NCHW", "HWIO", "NCHW"),
            precision=jax.lax.Precision.HIGHEST)
        return out + b.reshape(1, -1, 1, 1)

    h_d = conv(x_nchw, "hd", 2)[:, :, 2:-2]
    v_d = conv(x_nchw, "vd", 2)[:, :, :, 2:-2]
    f_d = conv(x_nchw, "fd", 2)
    h = conv(x_nchw, "h1")[:, :, 1:-1]
    v = conv(x_nchw, "v1")[:, :, :, 1:-1]
    f = conv(x_nchw, "f1")
    y = jax.nn.softplus(jnp.concatenate((h, v, f), 1))
    h = conv(y, "h2")[:, :, 1:-1]
    v = conv(y, "v2")[:, :, :, 1:-1]
    f = conv(y, "f2")
    return jnp.concatenate((h_d, v_d, f_d, h, v, f), 1)


if __name__ == "__main__":
    key = jax.random.PRNGKey(0)
    kx, kp = jax.random.split(key)
    channels_in, n_dir, n_full, n_dir_dil, n_full_dil = 3, 4, 8, 4, 8
    params = make_params(kp, channels_in, n_dir, n_full, n_dir_dil, n_full_dil)
    x = jax.random.normal(kx, (2, channels_in, 16, 16), jnp.float32)

    out = jax.block_until_ready(dirfulldil_forward(x, params))

    ref = ref_forward(x, params)
    c_out = 2 * n_dir + n_full + 2 * n_dir_dil + n_full_dil
    assert out.shape == (2, c_out, 12, 12), out.shape
    max_err = float(jnp.max(jnp.abs(out - ref)))
    # hi/lo-compensated bf16 MXU path vs exact-f32 reference: typical deviation
    # ~1e-5 at these sizes.
    assert jnp.allclose(out, ref, atol=5e-4, rtol=5e-4), max_err
    print("KERNEL_OK")
</pallas_src>

<mosaic_0001>
module attributes {stable_mosaic.version = 11 : i64} {
  func.func @_dirfulldil_kernel(%arg0: memref<576x81xbf16, #tpu.memory_space<vmem>>, %arg1: memref<512x81xbf16, #tpu.memory_space<vmem>>, %arg2: memref<81x16xbf16, #tpu.memory_space<vmem>>, %arg3: memref<1x16xf32, #tpu.memory_space<vmem>>, %arg4: memref<81x16xbf16, #tpu.memory_space<vmem>>, %arg5: memref<3x144x16xbf16, #tpu.memory_space<vmem>>, %arg6: memref<1x32xf32, #tpu.memory_space<vmem>>, %arg7: memref<512x32xf32, #tpu.memory_space<vmem>>, %arg8: memref<592x144xf32, #tpu.memory_space<vmem>>) attributes {dimension_semantics = [], scalar_prefetch = 0 : i64, scratch_operands = 1 : i64, tpu.core_type = #tpu.core_type<tc>} {
    %c0 = arith.constant 0 : index
    %c0_0 = arith.constant 0 : index
    %0 = vector.load %arg0[%c0, %c0_0] : memref<576x81xbf16, #tpu.memory_space<vmem>>, vector<64x81xbf16>
    %c0_1 = arith.constant 0 : index
    %c0_2 = arith.constant 0 : index
    %1 = vector.load %arg2[%c0_1, %c0_2] : memref<81x16xbf16, #tpu.memory_space<vmem>>, vector<81x16xbf16>
    %cst = arith.constant dense<0.000000e+00> : vector<64x16xf32>
    %2 = tpu.matmul %0, %1, %cst {dimension_numbers = #tpu.dot_dimension_numbers<[1], [0], [0], [1], [0, 0, 1, 1], [], []>} : vector<64x81xbf16>, vector<81x16xbf16>, vector<64x16xf32> -> vector<64x16xf32>
    %c0_3 = arith.constant 0 : index
    %c0_4 = arith.constant 0 : index
    %3 = vector.load %arg3[%c0_3, %c0_4] : memref<1x16xf32, #tpu.memory_space<vmem>>, vector<1x16xf32>
    %4 = vector.broadcast %3 : vector<1x16xf32> to vector<64x16xf32>
    %5 = arith.addf %2, %4 : vector<64x16xf32>
    %cst_5 = arith.constant 0.000000e+00 : f32
    %6 = vector.broadcast %cst_5 : f32 to vector<64x16xf32>
    %7 = arith.maximumf %5, %6 : vector<64x16xf32>
    %8 = math.absf %5 : vector<64x16xf32>
    %cst_6 = arith.constant 0.000000e+00 : f32
    %9 = vector.broadcast %cst_6 : f32 to vector<64x16xf32>
    %10 = arith.subf %9, %8 : vector<64x16xf32>
    %11 = math.exp %10 : vector<64x16xf32>
    %12 = math.log1p %11 : vector<64x16xf32>
    %13 = arith.addf %7, %12 : vector<64x16xf32>
    %14 = arith.truncf %13 : vector<64x16xf32> to vector<64x16xbf16>
    %15 = arith.extf %14 : vector<64x16xbf16> to vector<64x16xf32>
    %16 = arith.subf %13, %15 : vector<64x16xf32>
    %17 = tpu.concatenate %15, %16, %15 in 1 : vector<64x16xf32>, vector<64x16xf32>, vector<64x16xf32> -> vector<64x48xf32>
    %c16 = arith.constant 16 : index
    %c0_7 = arith.constant 0 : index
    %18 = vector.load %arg8[%c16, %c0_7] : memref<592x144xf32, #tpu.memory_space<vmem>>, vector<64x48xf32>
    tpu.vector_store %arg8[%c16, %c0_7], %17 {strides = array<i32>} : memref<592x144xf32, #tpu.memory_space<vmem>>, vector<64x48xf32>,
    %c15 = arith.constant 15 : index
    %c48 = arith.constant 48 : index
    %19 = vector.load %arg8[%c15, %c48] : memref<592x144xf32, #tpu.memory_space<vmem>>, vector<64x48xf32>
    tpu.vector_store %arg8[%c15, %c48], %17 {strides = array<i32>} : memref<592x144xf32, #tpu.memory_space<vmem>>, vector<64x48xf32>,
    %c14 = arith.constant 14 : index
    %c96 = arith.constant 96 : index
    %20 = vector.load %arg8[%c14, %c96] : memref<592x144xf32, #tpu.memory_space<vmem>>, vector<64x48xf32>
    tpu.vector_store %arg8[%c14, %c96], %17 {strides = array<i32>} : memref<592x144xf32, #tpu.memory_space<vmem>>, vector<64x48xf32>,
    %c64 = arith.constant 64 : index
    %c0_8 = arith.constant 0 : index
    %21 = vector.load %arg0[%c64, %c0_8] : memref<576x81xbf16, #tpu.memory_space<vmem>>, vector<64x81xbf16>
    %c0_9 = arith.constant 0 : index
    %c0_10 = arith.constant 0 : index
    %22 = vector.load %arg2[%c0_9, %c0_10] : memref<81x16xbf16, #tpu.memory_space<vmem>>, vector<81x16xbf16>
    %cst_11 = arith.constant dense<0.000000e+00> : vector<64x16xf32>
    %23 = tpu.matmul %21, %22, %cst_11 {dimension_numbers = #tpu.dot_dimension_numbers<[1], [0], [0], [1], [0, 0, 1, 1], [], []>} : vector<64x81xbf16>, vector<81x16xbf16>, vector<64x16xf32> -> vector<64x16xf32>
    %c0_12 = arith.constant 0 : index
    %c0_13 = arith.constant 0 : index
    %24 = vector.load %arg3[%c0_12, %c0_13] : memref<1x16xf32, #tpu.memory_space<vmem>>, vector<1x16xf32>
    %25 = vector.broadcast %24 : vector<1x16xf32> to vector<64x16xf32>
    %26 = arith.addf %23, %25 : vector<64x16xf32>
    %cst_14 = arith.constant 0.000000e+00 : f32
    %27 = vector.broadcast %cst_14 : f32 to vector<64x16xf32>
    %28 = arith.maximumf %26, %27 : vector<64x16xf32>
    %29 = math.absf %26 : vector<64x16xf32>
    %cst_15 = arith.constant 0.000000e+00 : f32
    %30 = vector.broadcast %cst_15 : f32 to vector<64x16xf32>
    %31 = arith.subf %30, %29 : vector<64x16xf32>
    %32 = math.exp %31 : vector<64x16xf32>
    %33 = math.log1p %32 : vector<64x16xf32>
    %34 = arith.addf %28, %33 : vector<64x16xf32>
    %35 = arith.truncf %34 : vector<64x16xf32> to vector<64x16xbf16>
    %36 = arith.extf %35 : vector<64x16xbf16> to vector<64x16xf32>
    %37 = arith.subf %34, %36 : vector<64x16xf32>
    %38 = tpu.concatenate %36, %37, %36 in 1 : vector<64x16xf32>, vector<64x16xf32>, vector<64x16xf32> -> vector<64x48xf32>
    %c80 = arith.constant 80 : index
    %c0_16 = arith.constant 0 : index
    %39 = vector.load %arg8[%c80, %c0_16] : memref<592x144xf32, #tpu.memory_space<vmem>>, vector<64x48xf32>
    tpu.vector_store %arg8[%c80, %c0_16], %38 {strides = array<i32>} : memref<592x144xf32, #tpu.memory_space<vmem>>, vector<64x48xf32>,
    %c79 = arith.constant 79 : index
    %c48_17 = arith.constant 48 : index
    %40 = vector.load %arg8[%c79, %c48_17] : memref<592x144xf32, #tpu.memory_space<vmem>>, vector<64x48xf32>
    tpu.vector_store %arg8[%c79, %c48_17], %38 {strides = array<i32>} : memref<592x144xf32, #tpu.memory_space<vmem>>, vector<64x48xf32>,
    %c78 = arith.constant 78 : index
    %c96_18 = arith.constant 96 : index
    %41 = vector.load %arg8[%c78, %c96_18] : memref<592x144xf32, #tpu.memory_space<vmem>>, vector<64x48xf32>
    tpu.vector_store %arg8[%c78, %c96_18], %38 {strides = array<i32>} : memref<592x144xf32, #tpu.memory_space<vmem>>, vector<64x48xf32>,
    %c128 = arith.constant 128 : index
    %c0_19 = arith.constant 0 : index
    %42 = vector.load %arg0[%c128, %c0_19] : memref<576x81xbf16, #tpu.memory_space<vmem>>, vector<64x81xbf16>
    %c0_20 = arith.constant 0 : index
    %c0_21 = arith.constant 0 : index
    %43 = vector.load %arg2[%c0_20, %c0_21] : memref<81x16xbf16, #tpu.memory_space<vmem>>, vector<81x16xbf16>
    %cst_22 = arith.constant dense<0.000000e+00> : vector<64x16xf32>
    %44 = tpu.matmul %42, %43, %cst_22 {dimension_numbers = #tpu.dot_dimension_numbers<[1], [0], [0], [1], [0, 0, 1, 1], [], []>} : vector<64x81xbf16>, vector<81x16xbf16>, vector<64x16xf32> -> vector<64x16xf32>
    %c0_23 = arith.constant 0 : index
    %c0_24 = arith.constant 0 : index
    %45 = vector.load %arg3[%c0_23, %c0_24] : memref<1x16xf32, #tpu.memory_space<vmem>>, vector<1x16xf32>
    %46 = vector.broadcast %45 : vector<1x16xf32> to vector<64x16xf32>
    %47 = arith.addf %44, %46 : vector<64x16xf32>
    %cst_25 = arith.constant 0.000000e+00 : f32
    %48 = vector.broadcast %cst_25 : f32 to vector<64x16xf32>
    %49 = arith.maximumf %47, %48 : vector<64x16xf32>
    %50 = math.absf %47 : vector<64x16xf32>
    %cst_26 = arith.constant 0.000000e+00 : f32
    %51 = vector.broadcast %cst_26 : f32 to vector<64x16xf32>
    %52 = arith.subf %51, %50 : vector<64x16xf32>
    %53 = math.exp %52 : vector<64x16xf32>
    %54 = math.log1p %53 : vector<64x16xf32>
    %55 = arith.addf %49, %54 : vector<64x16xf32>
    %56 = arith.truncf %55 : vector<64x16xf32> to vector<64x16xbf16>
    %57 = arith.extf %56 : vector<64x16xbf16> to vector<64x16xf32>
    %58 = arith.subf %55, %57 : vector<64x16xf32>
    %59 = tpu.concatenate %57, %58, %57 in 1 : vector<64x16xf32>, vector<64x16xf32>, vector<64x16xf32> -> vector<64x48xf32>
    %c144 = arith.constant 144 : index
    %c0_27 = arith.constant 0 : index
    %60 = vector.load %arg8[%c144, %c0_27] : memref<592x144xf32, #tpu.memory_space<vmem>>, vector<64x48xf32>
    tpu.vector_store %arg8[%c144, %c0_27], %59 {strides = array<i32>} : memref<592x144xf32, #tpu.memory_space<vmem>>, vector<64x48xf32>,
    %c143 = arith.constant 143 : index
    %c48_28 = arith.constant 48 : index
    %61 = vector.load %arg8[%c143, %c48_28] : memref<592x144xf32, #tpu.memory_space<vmem>>, vector<64x48xf32>
    tpu.vector_store %arg8[%c143, %c48_28], %59 {strides = array<i32>} : memref<592x144xf32, #tpu.memory_space<vmem>>, vector<64x48xf32>,
    %c142 = arith.constant 142 : index
    %c96_29 = arith.constant 96 : index
    %62 = vector.load %arg8[%c142, %c96_29] : memref<592x144xf32, #tpu.memory_space<vmem>>, vector<64x48xf32>
    tpu.vector_store %arg8[%c142, %c96_29], %59 {strides = array<i32>} : memref<592x144xf32, #tpu.memory_space<vmem>>, vector<64x48xf32>,
    %c192 = arith.constant 192 : index
    %c0_30 = arith.constant 0 : index
    %63 = vector.load %arg0[%c192, %c0_30] : memref<576x81xbf16, #tpu.memory_space<vmem>>, vector<64x81xbf16>
    %c0_31 = arith.constant 0 : index
    %c0_32 = arith.constant 0 : index
    %64 = vector.load %arg2[%c0_31, %c0_32] : memref<81x16xbf16, #tpu.memory_space<vmem>>, vector<81x16xbf16>
    %cst_33 = arith.constant dense<0.000000e+00> : vector<64x16xf32>
    %65 = tpu.matmul %63, %64, %cst_33 {dimension_numbers = #tpu.dot_dimension_numbers<[1], [0], [0], [1], [0, 0, 1, 1], [], []>} : vector<64x81xbf16>, vector<81x16xbf16>, vector<64x16xf32> -> vector<64x16xf32>
    %c0_34 = arith.constant 0 : index
    %c0_35 = arith.constant 0 : index
    %66 = vector.load %arg3[%c0_34, %c0_35] : memref<1x16xf32, #tpu.memory_space<vmem>>, vector<1x16xf32>
    %67 = vector.broadcast %66 : vector<1x16xf32> to vector<64x16xf32>
    %68 = arith.addf %65, %67 : vector<64x16xf32>
    %cst_36 = arith.constant 0.000000e+00 : f32
    %69 = vector.broadcast %cst_36 : f32 to vector<64x16xf32>
    %70 = arith.maximumf %68, %69 : vector<64x16xf32>
    %71 = math.absf %68 : vector<64x16xf32>
    %cst_37 = arith.constant 0.000000e+00 : f32
    %72 = vector.broadcast %cst_37 : f32 to vector<64x16xf32>
    %73 = arith.subf %72, %71 : vector<64x16xf32>
    %74 = math.exp %73 : vector<64x16xf32>
    %75 = math.log1p %74 : vector<64x16xf32>
    %76 = arith.addf %70, %75 : vector<64x16xf32>
    %77 = arith.truncf %76 : vector<64x16xf32> to vector<64x16xbf16>
    %78 = arith.extf %77 : vector<64x16xbf16> to vector<64x16xf32>
    %79 = arith.subf %76, %78 : vector<64x16xf32>
    %80 = tpu.concatenate %78, %79, %78 in 1 : vector<64x16xf32>, vector<64x16xf32>, vector<64x16xf32> -> vector<64x48xf32>
    %c208 = arith.constant 208 : index
    %c0_38 = arith.constant 0 : index
    %81 = vector.load %arg8[%c208, %c0_38] : memref<592x144xf32, #tpu.memory_space<vmem>>, vector<64x48xf32>
    tpu.vector_store %arg8[%c208, %c0_38], %80 {strides = array<i32>} : memref<592x144xf32, #tpu.memory_space<vmem>>, vector<64x48xf32>,
    %c207 = arith.constant 207 : index
    %c48_39 = arith.constant 48 : index
    %82 = vector.load %arg8[%c207, %c48_39] : memref<592x144xf32, #tpu.memory_space<vmem>>, vector<64x48xf32>
    tpu.vector_store %arg8[%c207, %c48_39], %80 {strides = array<i32>} : memref<592x144xf32, #tpu.memory_space<vmem>>, vector<64x48xf32>,
    %c206 = arith.constant 206 : index
    %c96_40 = arith.constant 96 : index
    %83 = vector.load %arg8[%c206, %c96_40] : memref<592x144xf32, #tpu.memory_space<vmem>>, vector<64x48xf32>
    tpu.vector_store %arg8[%c206, %c96_40], %80 {strides = array<i32>} : memref<592x144xf32, #tpu.memory_space<vmem>>, vector<64x48xf32>,
    %c256 = arith.constant 256 : index
    %c0_41 = arith.constant 0 : index
    %84 = vector.load %arg0[%c256, %c0_41] : memref<576x81xbf16, #tpu.memory_space<vmem>>, vector<64x81xbf16>
    %c0_42 = arith.constant 0 : index
    %c0_43 = arith.constant 0 : index
    %85 = vector.load %arg2[%c0_42, %c0_43] : memref<81x16xbf16, #tpu.memory_space<vmem>>, vector<81x16xbf16>
    %cst_44 = arith.constant dense<0.000000e+00> : vector<64x16xf32>
    %86 = tpu.matmul %84, %85, %cst_44 {dimension_numbers = #tpu.dot_dimension_numbers<[1], [0], [0], [1], [0, 0, 1, 1], [], []>} : vector<64x81xbf16>, vector<81x16xbf16>, vector<64x16xf32> -> vector<64x16xf32>
    %c0_45 = arith.constant 0 : index
    %c0_46 = arith.constant 0 : index
    %87 = vector.load %arg3[%c0_45, %c0_46] : memref<1x16xf32, #tpu.memory_space<vmem>>, vector<1x16xf32>
    %88 = vector.broadcast %87 : vector<1x16xf32> to vector<64x16xf32>
    %89 = arith.addf %86, %88 : vector<64x16xf32>
    %cst_47 = arith.constant 0.000000e+00 : f32
    %90 = vector.broadcast %cst_47 : f32 to vector<64x16xf32>
    %91 = arith.maximumf %89, %90 : vector<64x16xf32>
    %92 = math.absf %89 : vector<64x16xf32>
    %cst_48 = arith.constant 0.000000e+00 : f32
    %93 = vector.broadcast %cst_48 : f32 to vector<64x16xf32>
    %94 = arith.subf %93, %92 : vector<64x16xf32>
    %95 = math.exp %94 : vector<64x16xf32>
    %96 = math.log1p %95 : vector<64x16xf32>
    %97 = arith.addf %91, %96 : vector<64x16xf32>
    %98 = arith.truncf %97 : vector<64x16xf32> to vector<64x16xbf16>
    %99 = arith.extf %98 : vector<64x16xbf16> to vector<64x16xf32>
    %100 = arith.subf %97, %99 : vector<64x16xf32>
    %101 = tpu.concatenate %99, %100, %99 in 1 : vector<64x16xf32>, vector<64x16xf32>, vector<64x16xf32> -> vector<64x48xf32>
    %c272 = arith.constant 272 : index
    %c0_49 = arith.constant 0 : index
    %102 = vector.load %arg8[%c272, %c0_49] : memref<592x144xf32, #tpu.memory_space<vmem>>, vector<64x48xf32>
    tpu.vector_store %arg8[%c272, %c0_49], %101 {strides = array<i32>} : memref<592x144xf32, #tpu.memory_space<vmem>>, vector<64x48xf32>,
    %c271 = arith.constant 271 : index
    %c48_50 = arith.constant 48 : index
    %103 = vector.load %arg8[%c271, %c48_50] : memref<592x144xf32, #tpu.memory_space<vmem>>, vector<64x48xf32>
    tpu.vector_store %arg8[%c271, %c48_50], %101 {strides = array<i32>} : memref<592x144xf32, #tpu.memory_space<vmem>>, vector<64x48xf32>,
    %c270 = arith.constant 270 : index
    %c96_51 = arith.constant 96 : index
    %104 = vector.load %arg8[%c270, %c96_51] : memref<592x144xf32, #tpu.memory_space<vmem>>, vector<64x48xf32>
    tpu.vector_store %arg8[%c270, %c96_51], %101 {strides = array<i32>} : memref<592x144xf32, #tpu.memory_space<vmem>>, vector<64x48xf32>,
    %c320 = arith.constant 320 : index
    %c0_52 = arith.constant 0 : index
    %105 = vector.load %arg0[%c320, %c0_52] : memref<576x81xbf16, #tpu.memory_space<vmem>>, vector<64x81xbf16>
    %c0_53 = arith.constant 0 : index
    %c0_54 = arith.constant 0 : index
    %106 = vector.load %arg2[%c0_53, %c0_54] : memref<81x16xbf16, #tpu.memory_space<vmem>>, vector<81x16xbf16>
    %cst_55 = arith.constant dense<0.000000e+00> : vector<64x16xf32>
    %107 = tpu.matmul %105, %106, %cst_55 {dimension_numbers = #tpu.dot_dimension_numbers<[1], [0], [0], [1], [0, 0, 1, 1], [], []>} : vector<64x81xbf16>, vector<81x16xbf16>, vector<64x16xf32> -> vector<64x16xf32>
    %c0_56 = arith.constant 0 : index
    %c0_57 = arith.constant 0 : index
    %108 = vector.load %arg3[%c0_56, %c0_57] : memref<1x16xf32, #tpu.memory_space<vmem>>, vector<1x16xf32>
    %109 = vector.broadcast %108 : vector<1x16xf32> to vector<64x16xf32>
    %110 = arith.addf %107, %109 : vector<64x16xf32>
    %cst_58 = arith.constant 0.000000e+00 : f32
    %111 = vector.broadcast %cst_58 : f32 to vector<64x16xf32>
    %112 = arith.maximumf %110, %111 : vector<64x16xf32>
    %113 = math.absf %110 : vector<64x16xf32>
    %cst_59 = arith.constant 0.000000e+00 : f32
    %114 = vector.broadcast %cst_59 : f32 to vector<64x16xf32>
    %115 = arith.subf %114, %113 : vector<64x16xf32>
    %116 = math.exp %115 : vector<64x16xf32>
    %117 = math.log1p %116 : vector<64x16xf32>
    %118 = arith.addf %112, %117 : vector<64x16xf32>
    %119 = arith.truncf %118 : vector<64x16xf32> to vector<64x16xbf16>
    %120 = arith.extf %119 : vector<64x16xbf16> to vector<64x16xf32>
    %121 = arith.subf %118, %120 : vector<64x16xf32>
    %122 = tpu.concatenate %120, %121, %120 in 1 : vector<64x16xf32>, vector<64x16xf32>, vector<64x16xf32> -> vector<64x48xf32>
    %c336 = arith.constant 336 : index
    %c0_60 = arith.constant 0 : index
    %123 = vector.load %arg8[%c336, %c0_60] : memref<592x144xf32, #tpu.memory_space<vmem>>, vector<64x48xf32>
    tpu.vector_store %arg8[%c336, %c0_60], %122 {strides = array<i32>} : memref<592x144xf32, #tpu.memory_space<vmem>>, vector<64x48xf32>,
    %c335 = arith.constant 335 : index
    %c48_61 = arith.constant 48 : index
    %124 = vector.load %arg8[%c335, %c48_61] : memref<592x144xf32, #tpu.memory_space<vmem>>, vector<64x48xf32>
    tpu.vector_store %arg8[%c335, %c48_61], %122 {strides = array<i32>} : memref<592x144xf32, #tpu.memory_space<vmem>>, vector<64x48xf32>,
    %c334 = arith.constant 334 : index
    %c96_62 = arith.constant 96 : index
    %125 = vector.load %arg8[%c334, %c96_62] : memref<592x144xf32, #tpu.memory_space<vmem>>, vector<64x48xf32>
    tpu.vector_store %arg8[%c334, %c96_62], %122 {strides = array<i32>} : memref<592x144xf32, #tpu.memory_space<vmem>>, vector<64x48xf32>,
    %c384 = arith.constant 384 : index
    %c0_63 = arith.constant 0 : index
    %126 = vector.load %arg0[%c384, %c0_63] : memref<576x81xbf16, #tpu.memory_space<vmem>>, vector<64x81xbf16>
    %c0_64 = arith.constant 0 : index
    %c0_65 = arith.constant 0 : index
    %127 = vector.load %arg2[%c0_64, %c0_65] : memref<81x16xbf16, #tpu.memory_space<vmem>>, vector<81x16xbf16>
    %cst_66 = arith.constant dense<0.000000e+00> : vector<64x16xf32>
    %128 = tpu.matmul %126, %127, %cst_66 {dimension_numbers = #tpu.dot_dimension_numbers<[1], [0], [0], [1], [0, 0, 1, 1], [], []>} : vector<64x81xbf16>, vector<81x16xbf16>, vector<64x16xf32> -> vector<64x16xf32>
    %c0_67 = arith.constant 0 : index
    %c0_68 = arith.constant 0 : index
    %129 = vector.load %arg3[%c0_67, %c0_68] : memref<1x16xf32, #tpu.memory_space<vmem>>, vector<1x16xf32>
    %130 = vector.broadcast %129 : vector<1x16xf32> to vector<64x16xf32>
    %131 = arith.addf %128, %130 : vector<64x16xf32>
    %cst_69 = arith.constant 0.000000e+00 : f32
    %132 = vector.broadcast %cst_69 : f32 to vector<64x16xf32>
    %133 = arith.maximumf %131, %132 : vector<64x16xf32>
    %134 = math.absf %131 : vector<64x16xf32>
    %cst_70 = arith.constant 0.000000e+00 : f32
    %135 = vector.broadcast %cst_70 : f32 to vector<64x16xf32>
    %136 = arith.subf %135, %134 : vector<64x16xf32>
    %137 = math.exp %136 : vector<64x16xf32>
    %138 = math.log1p %137 : vector<64x16xf32>
    %139 = arith.addf %133, %138 : vector<64x16xf32>
    %140 = arith.truncf %139 : vector<64x16xf32> to vector<64x16xbf16>
    %141 = arith.extf %140 : vector<64x16xbf16> to vector<64x16xf32>
    %142 = arith.subf %139, %141 : vector<64x16xf32>
    %143 = tpu.concatenate %141, %142, %141 in 1 : vector<64x16xf32>, vector<64x16xf32>, vector<64x16xf32> -> vector<64x48xf32>
    %c400 = arith.constant 400 : index
    %c0_71 = arith.constant 0 : index
    %144 = vector.load %arg8[%c400, %c0_71] : memref<592x144xf32, #tpu.memory_space<vmem>>, vector<64x48xf32>
    tpu.vector_store %arg8[%c400, %c0_71], %143 {strides = array<i32>} : memref<592x144xf32, #tpu.memory_space<vmem>>, vector<64x48xf32>,
    %c399 = arith.constant 399 : index
    %c48_72 = arith.constant 48 : index
    %145 = vector.load %arg8[%c399, %c48_72] : memref<592x144xf32, #tpu.memory_space<vmem>>, vector<64x48xf32>
    tpu.vector_store %arg8[%c399, %c48_72], %143 {strides = array<i32>} : memref<592x144xf32, #tpu.memory_space<vmem>>, vector<64x48xf32>,
    %c398 = arith.constant 398 : index
    %c96_73 = arith.constant 96 : index
    %146 = vector.load %arg8[%c398, %c96_73] : memref<592x144xf32, #tpu.memory_space<vmem>>, vector<64x48xf32>
    tpu.vector_store %arg8[%c398, %c96_73], %143 {strides = array<i32>} : memref<592x144xf32, #tpu.memory_space<vmem>>, vector<64x48xf32>,
    %c448 = arith.constant 448 : index
    %c0_74 = arith.constant 0 : index
    %147 = vector.load %arg0[%c448, %c0_74] : memref<576x81xbf16, #tpu.memory_space<vmem>>, vector<64x81xbf16>
    %c0_75 = arith.constant 0 : index
    %c0_76 = arith.constant 0 : index
    %148 = vector.load %arg2[%c0_75, %c0_76] : memref<81x16xbf16, #tpu.memory_space<vmem>>, vector<81x16xbf16>
    %cst_77 = arith.constant dense<0.000000e+00> : vector<64x16xf32>
    %149 = tpu.matmul %147, %148, %cst_77 {dimension_numbers = #tpu.dot_dimension_numbers<[1], [0], [0], [1], [0, 0, 1, 1], [], []>} : vector<64x81xbf16>, vector<81x16xbf16>, vector<64x16xf32> -> vector<64x16xf32>
    %c0_78 = arith.constant 0 : index
    %c0_79 = arith.constant 0 : index
    %150 = vector.load %arg3[%c0_78, %c0_79] : memref<1x16xf32, #tpu.memory_space<vmem>>, vector<1x16xf32>
    %151 = vector.broadcast %150 : vector<1x16xf32> to vector<64x16xf32>
    %152 = arith.addf %149, %151 : vector<64x16xf32>
    %cst_80 = arith.constant 0.000000e+00 : f32
    %153 = vector.broadcast %cst_80 : f32 to vector<64x16xf32>
    %154 = arith.maximumf %152, %153 : vector<64x16xf32>
    %155 = math.absf %152 : vector<64x16xf32>
    %cst_81 = arith.constant 0.000000e+00 : f32
    %156 = vector.broadcast %cst_81 : f32 to vector<64x16xf32>
    %157 = arith.subf %156, %155 : vector<64x16xf32>
    %158 = math.exp %157 : vector<64x16xf32>
    %159 = math.log1p %158 : vector<64x16xf32>
    %160 = arith.addf %154, %159 : vector<64x16xf32>
    %161 = arith.truncf %160 : vector<64x16xf32> to vector<64x16xbf16>
    %162 = arith.extf %161 : vector<64x16xbf16> to vector<64x16xf32>
    %163 = arith.subf %160, %162 : vector<64x16xf32>
    %164 = tpu.concatenate %162, %163, %162 in 1 : vector<64x16xf32>, vector<64x16xf32>, vector<64x16xf32> -> vector<64x48xf32>
    %c464 = arith.constant 464 : index
    %c0_82 = arith.constant 0 : index
    %165 = vector.load %arg8[%c464, %c0_82] : memref<592x144xf32, #tpu.memory_space<vmem>>, vector<64x48xf32>
    tpu.vector_store %arg8[%c464, %c0_82], %164 {strides = array<i32>} : memref<592x144xf32, #tpu.memory_space<vmem>>, vector<64x48xf32>,
    %c463 = arith.constant 463 : index
    %c48_83 = arith.constant 48 : index
    %166 = vector.load %arg8[%c463, %c48_83] : memref<592x144xf32, #tpu.memory_space<vmem>>, vector<64x48xf32>
    tpu.vector_store %arg8[%c463, %c48_83], %164 {strides = array<i32>} : memref<592x144xf32, #tpu.memory_space<vmem>>, vector<64x48xf32>,
    %c462 = arith.constant 462 : index
    %c96_84 = arith.constant 96 : index
    %167 = vector.load %arg8[%c462, %c96_84] : memref<592x144xf32, #tpu.memory_space<vmem>>, vector<64x48xf32>
    tpu.vector_store %arg8[%c462, %c96_84], %164 {strides = array<i32>} : memref<592x144xf32, #tpu.memory_space<vmem>>, vector<64x48xf32>,
    %c512 = arith.constant 512 : index
    %c0_85 = arith.constant 0 : index
    %168 = vector.load %arg0[%c512, %c0_85] : memref<576x81xbf16, #tpu.memory_space<vmem>>, vector<64x81xbf16>
    %c0_86 = arith.constant 0 : index
    %c0_87 = arith.constant 0 : index
    %169 = vector.load %arg2[%c0_86, %c0_87] : memref<81x16xbf16, #tpu.memory_space<vmem>>, vector<81x16xbf16>
    %cst_88 = arith.constant dense<0.000000e+00> : vector<64x16xf32>
    %170 = tpu.matmul %168, %169, %cst_88 {dimension_numbers = #tpu.dot_dimension_numbers<[1], [0], [0], [1], [0, 0, 1, 1], [], []>} : vector<64x81xbf16>, vector<81x16xbf16>, vector<64x16xf32> -> vector<64x16xf32>
    %c0_89 = arith.constant 0 : index
    %c0_90 = arith.constant 0 : index
    %171 = vector.load %arg3[%c0_89, %c0_90] : memref<1x16xf32, #tpu.memory_space<vmem>>, vector<1x16xf32>
    %172 = vector.broadcast %171 : vector<1x16xf32> to vector<64x16xf32>
    %173 = arith.addf %170, %172 : vector<64x16xf32>
    %cst_91 = arith.constant 0.000000e+00 : f32
    %174 = vector.broadcast %cst_91 : f32 to vector<64x16xf32>
    %175 = arith.maximumf %173, %174 : vector<64x16xf32>
    %176 = math.absf %173 : vector<64x16xf32>
    %cst_92 = arith.constant 0.000000e+00 : f32
    %177 = vector.broadcast %cst_92 : f32 to vector<64x16xf32>
    %178 = arith.subf %177, %176 : vector<64x16xf32>
    %179 = math.exp %178 : vector<64x16xf32>
    %180 = math.log1p %179 : vector<64x16xf32>
    %181 = arith.addf %175, %180 : vector<64x16xf32>
    %182 = arith.truncf %181 : vector<64x16xf32> to vector<64x16xbf16>
    %183 = arith.extf %182 : vector<64x16xbf16> to vector<64x16xf32>
    %184 = arith.subf %181, %183 : vector<64x16xf32>
    %185 = tpu.concatenate %183, %184, %183 in 1 : vector<64x16xf32>, vector<64x16xf32>, vector<64x16xf32> -> vector<64x48xf32>
    %c528 = arith.constant 528 : index
    %c0_93 = arith.constant 0 : index
    %186 = vector.load %arg8[%c528, %c0_93] : memref<592x144xf32, #tpu.memory_space<vmem>>, vector<64x48xf32>
    tpu.vector_store %arg8[%c528, %c0_93], %185 {strides = array<i32>} : memref<592x144xf32, #tpu.memory_space<vmem>>, vector<64x48xf32>,
    %c527 = arith.constant 527 : index
    %c48_94 = arith.constant 48 : index
    %187 = vector.load %arg8[%c527, %c48_94] : memref<592x144xf32, #tpu.memory_space<vmem>>, vector<64x48xf32>
    tpu.vector_store %arg8[%c527, %c48_94], %185 {strides = array<i32>} : memref<592x144xf32, #tpu.memory_space<vmem>>, vector<64x48xf32>,
    %c526 = arith.constant 526 : index
    %c96_95 = arith.constant 96 : index
    %188 = vector.load %arg8[%c526, %c96_95] : memref<592x144xf32, #tpu.memory_space<vmem>>, vector<64x48xf32>
    tpu.vector_store %arg8[%c526, %c96_95], %185 {strides = array<i32>} : memref<592x144xf32, #tpu.memory_space<vmem>>, vector<64x48xf32>,
    %c0_96 = arith.constant 0 : index
    %c0_97 = arith.constant 0 : index
    %189 = vector.load %arg1[%c0_96, %c0_97] : memref<512x81xbf16, #tpu.memory_space<vmem>>, vector<64x81xbf16>
    %c0_98 = arith.constant 0 : index
    %c0_99 = arith.constant 0 : index
    %190 = vector.load %arg4[%c0_98, %c0_99] : memref<81x16xbf16, #tpu.memory_space<vmem>>, vector<81x16xbf16>
    %cst_100 = arith.constant dense<0.000000e+00> : vector<64x16xf32>
    %191 = tpu.matmul %189, %190, %cst_100 {dimension_numbers = #tpu.dot_dimension_numbers<[1], [0], [0], [1], [0, 0, 1, 1], [], []>} : vector<64x81xbf16>, vector<81x16xbf16>, vector<64x16xf32> -> vector<64x16xf32>
    %c16_101 = arith.constant 16 : index
    %c0_102 = arith.constant 0 : index
    %192 = vector.load %arg8[%c16_101, %c0_102] : memref<592x144xf32, #tpu.memory_space<vmem>>, vector<64x144xf32>
    %193 = arith.truncf %192 : vector<64x144xf32> to vector<64x144xbf16>
    %c0_103 = arith.constant 0 : index
    %c0_104 = arith.constant 0 : index
    %c0_105 = arith.constant 0 : index
    %194 = vector.load %arg5[%c0_103, %c0_104, %c0_105] : memref<3x144x16xbf16, #tpu.memory_space<vmem>>, vector<1x144x16xbf16>
    %195 = vector.shape_cast %194 : vector<1x144x16xbf16> to vector<144x16xbf16>
    %cst_106 = arith.constant dense<0.000000e+00> : vector<64x16xf32>
    %196 = tpu.matmul %193, %195, %cst_106 {dimension_numbers = #tpu.dot_dimension_numbers<[1], [0], [0], [1], [0, 0, 1, 1], [], []>} : vector<64x144xbf16>, vector<144x16xbf16>, vector<64x16xf32> -> vector<64x16xf32>
    %c32 = arith.constant 32 : index
    %c0_107 = arith.constant 0 : index
    %197 = vector.load %arg8[%c32, %c0_107] : memref<592x144xf32, #tpu.memory_space<vmem>>, vector<64x144xf32>
    %198 = arith.truncf %197 : vector<64x144xf32> to vector<64x144xbf16>
    %c1 = arith.constant 1 : index
    %c0_108 = arith.constant 0 : index
    %c0_109 = arith.constant 0 : index
    %199 = vector.load %arg5[%c1, %c0_108, %c0_109] : memref<3x144x16xbf16, #tpu.memory_space<vmem>>, vector<1x144x16xbf16>
    %200 = vector.shape_cast %199 : vector<1x144x16xbf16> to vector<144x16xbf16>
    %cst_110 = arith.constant dense<0.000000e+00> : vector<64x16xf32>
    %201 = tpu.matmul %198, %200, %cst_110 {dimension_numbers = #tpu.dot_dimension_numbers<[1], [0], [0], [1], [0, 0, 1, 1], [], []>} : vector<64x144xbf16>, vector<144x16xbf16>, vector<64x16xf32> -> vector<64x16xf32>
    %202 = arith.addf %196, %201 : vector<64x16xf32>
    %c48_111 = arith.constant 48 : index
    %c0_112 = arith.constant 0 : index
    %203 = vector.load %arg8[%c48_111, %c0_112] : memref<592x144xf32, #tpu.memory_space<vmem>>, vector<64x144xf32>
    %204 = arith.truncf %203 : vector<64x144xf32> to vector<64x144xbf16>
    %c2 = arith.constant 2 : index
    %c0_113 = arith.constant 0 : index
    %c0_114 = arith.constant 0 : index
    %205 = vector.load %arg5[%c2, %c0_113, %c0_114] : memref<3x144x16xbf16, #tpu.memory_space<vmem>>, vector<1x144x16xbf16>
    %206 = vector.shape_cast %205 : vector<1x144x16xbf16> to vector<144x16xbf16>
    %cst_115 = arith.constant dense<0.000000e+00> : vector<64x16xf32>
    %207 = tpu.matmul %204, %206, %cst_115 {dimension_numbers = #tpu.dot_dimension_numbers<[1], [0], [0], [1], [0, 0, 1, 1], [], []>} : vector<64x144xbf16>, vector<144x16xbf16>, vector<64x16xf32> -> vector<64x16xf32>
    %208 = arith.addf %202, %207 : vector<64x16xf32>
    %209 = tpu.concatenate %191, %208 in 1 : vector<64x16xf32>, vector<64x16xf32> -> vector<64x32xf32>
    %c0_116 = arith.constant 0 : index
    %c0_117 = arith.constant 0 : index
    %210 = vector.load %arg6[%c0_116, %c0_117] : memref<1x32xf32, #tpu.memory_space<vmem>>, vector<1x32xf32>
    %211 = vector.broadcast %210 : vector<1x32xf32> to vector<64x32xf32>
    %212 = arith.addf %209, %211 : vector<64x32xf32>
    %c0_118 = arith.constant 0 : index
    %c0_119 = arith.constant 0 : index
    %213 = vector.load %arg7[%c0_118, %c0_119] : memref<512x32xf32, #tpu.memory_space<vmem>>, vector<64x32xf32>
    tpu.vector_store %arg7[%c0_118, %c0_119], %212 {strides = array<i32>} : memref<512x32xf32, #tpu.memory_space<vmem>>, vector<64x32xf32>,
    %c64_120 = arith.constant 64 : index
    %c0_121 = arith.constant 0 : index
    %214 = vector.load %arg1[%c64_120, %c0_121] : memref<512x81xbf16, #tpu.memory_space<vmem>>, vector<64x81xbf16>
    %c0_122 = arith.constant 0 : index
    %c0_123 = arith.constant 0 : index
    %215 = vector.load %arg4[%c0_122, %c0_123] : memref<81x16xbf16, #tpu.memory_space<vmem>>, vector<81x16xbf16>
    %cst_124 = arith.constant dense<0.000000e+00> : vector<64x16xf32>
    %216 = tpu.matmul %214, %215, %cst_124 {dimension_numbers = #tpu.dot_dimension_numbers<[1], [0], [0], [1], [0, 0, 1, 1], [], []>} : vector<64x81xbf16>, vector<81x16xbf16>, vector<64x16xf32> -> vector<64x16xf32>
    %c80_125 = arith.constant 80 : index
    %c0_126 = arith.constant 0 : index
    %217 = vector.load %arg8[%c80_125, %c0_126] : memref<592x144xf32, #tpu.memory_space<vmem>>, vector<64x144xf32>
    %218 = arith.truncf %217 : vector<64x144xf32> to vector<64x144xbf16>
    %c0_127 = arith.constant 0 : index
    %c0_128 = arith.constant 0 : index
    %c0_129 = arith.constant 0 : index
    %219 = vector.load %arg5[%c0_127, %c0_128, %c0_129] : memref<3x144x16xbf16, #tpu.memory_space<vmem>>, vector<1x144x16xbf16>
    %220 = vector.shape_cast %219 : vector<1x144x16xbf16> to vector<144x16xbf16>
    %cst_130 = arith.constant dense<0.000000e+00> : vector<64x16xf32>
    %221 = tpu.matmul %218, %220, %cst_130 {dimension_numbers = #tpu.dot_dimension_numbers<[1], [0], [0], [1], [0, 0, 1, 1], [], []>} : vector<64x144xbf16>, vector<144x16xbf16>, vector<64x16xf32> -> vector<64x16xf32>
    %c96_131 = arith.constant 96 : index
    %c0_132 = arith.constant 0 : index
    %222 = vector.load %arg8[%c96_131, %c0_132] : memref<592x144xf32, #tpu.memory_space<vmem>>, vector<64x144xf32>
    %223 = arith.truncf %222 : vector<64x144xf32> to vector<64x144xbf16>
    %c1_133 = arith.constant 1 : index
    %c0_134 = arith.constant 0 : index
    %c0_135 = arith.constant 0 : index
    %224 = vector.load %arg5[%c1_133, %c0_134, %c0_135] : memref<3x144x16xbf16, #tpu.memory_space<vmem>>, vector<1x144x16xbf16>
    %225 = vector.shape_cast %224 : vector<1x144x16xbf16> to vector<144x16xbf16>
    %cst_136 = arith.constant dense<0.000000e+00> : vector<64x16xf32>
    %226 = tpu.matmul %223, %225, %cst_136 {dimension_numbers = #tpu.dot_dimension_numbers<[1], [0], [0], [1], [0, 0, 1, 1], [], []>} : vector<64x144xbf16>, vector<144x16xbf16>, vector<64x16xf32> -> vector<64x16xf32>
    %227 = arith.addf %221, %226 : vector<64x16xf32>
    %c112 = arith.constant 112 : index
    %c0_137 = arith.constant 0 : index
    %228 = vector.load %arg8[%c112, %c0_137] : memref<592x144xf32, #tpu.memory_space<vmem>>, vector<64x144xf32>
    %229 = arith.truncf %228 : vector<64x144xf32> to vector<64x144xbf16>
    %c2_138 = arith.constant 2 : index
    %c0_139 = arith.constant 0 : index
    %c0_140 = arith.constant 0 : index
    %230 = vector.load %arg5[%c2_138, %c0_139, %c0_140] : memref<3x144x16xbf16, #tpu.memory_space<vmem>>, vector<1x144x16xbf16>
    %231 = vector.shape_cast %230 : vector<1x144x16xbf16> to vector<144x16xbf16>
    %cst_141 = arith.constant dense<0.000000e+00> : vector<64x16xf32>
    %232 = tpu.matmul %229, %231, %cst_141 {dimension_numbers = #tpu.dot_dimension_numbers<[1], [0], [0], [1], [0, 0, 1, 1], [], []>} : vector<64x144xbf16>, vector<144x16xbf16>, vector<64x16xf32> -> vector<64x16xf32>
    %233 = arith.addf %227, %232 : vector<64x16xf32>
    %234 = tpu.concatenate %216, %233 in 1 : vector<64x16xf32>, vector<64x16xf32> -> vector<64x32xf32>
    %c0_142 = arith.constant 0 : index
    %c0_143 = arith.constant 0 : index
    %235 = vector.load %arg6[%c0_142, %c0_143] : memref<1x32xf32, #tpu.memory_space<vmem>>, vector<1x32xf32>
    %236 = vector.broadcast %235 : vector<1x32xf32> to vector<64x32xf32>
    %237 = arith.addf %234, %236 : vector<64x32xf32>
    %c64_144 = arith.constant 64 : index
    %c0_145 = arith.constant 0 : index
    %238 = vector.load %arg7[%c64_144, %c0_145] : memref<512x32xf32, #tpu.memory_space<vmem>>, vector<64x32xf32>
    tpu.vector_store %arg7[%c64_144, %c0_145], %237 {strides = array<i32>} : memref<512x32xf32, #tpu.memory_space<vmem>>, vector<64x32xf32>,
    %c128_146 = arith.constant 128 : index
    %c0_147 = arith.constant 0 : index
    %239 = vector.load %arg1[%c128_146, %c0_147] : memref<512x81xbf16, #tpu.memory_space<vmem>>, vector<64x81xbf16>
    %c0_148 = arith.constant 0 : index
    %c0_149 = arith.constant 0 : index
    %240 = vector.load %arg4[%c0_148, %c0_149] : memref<81x16xbf16, #tpu.memory_space<vmem>>, vector<81x16xbf16>
    %cst_150 = arith.constant dense<0.000000e+00> : vector<64x16xf32>
    %241 = tpu.matmul %239, %240, %cst_150 {dimension_numbers = #tpu.dot_dimension_numbers<[1], [0], [0], [1], [0, 0, 1, 1], [], []>} : vector<64x81xbf16>, vector<81x16xbf16>, vector<64x16xf32> -> vector<64x16xf32>
    %c144_151 = arith.constant 144 : index
    %c0_152 = arith.constant 0 : index
    %242 = vector.load %arg8[%c144_151, %c0_152] : memref<592x144xf32, #tpu.memory_space<vmem>>, vector<64x144xf32>
    %243 = arith.truncf %242 : vector<64x144xf32> to vector<64x144xbf16>
    %c0_153 = arith.constant 0 : index
    %c0_154 = arith.constant 0 : index
    %c0_155 = arith.constant 0 : index
    %244 = vector.load %arg5[%c0_153, %c0_154, %c0_155] : memref<3x144x16xbf16, #tpu.memory_space<vmem>>, vector<1x144x16xbf16>
    %245 = vector.shape_cast %244 : vector<1x144x16xbf16> to vector<144x16xbf16>
    %cst_156 = arith.constant dense<0.000000e+00> : vector<64x16xf32>
    %246 = tpu.matmul %243, %245, %cst_156 {dimension_numbers = #tpu.dot_dimension_numbers<[1], [0], [0], [1], [0, 0, 1, 1], [], []>} : vector<64x144xbf16>, vector<144x16xbf16>, vector<64x16xf32> -> vector<64x16xf32>
    %c160 = arith.constant 160 : index
    %c0_157 = arith.constant 0 : index
    %247 = vector.load %arg8[%c160, %c0_157] : memref<592x144xf32, #tpu.memory_space<vmem>>, vector<64x144xf32>
    %248 = arith.truncf %247 : vector<64x144xf32> to vector<64x144xbf16>
    %c1_158 = arith.constant 1 : index
    %c0_159 = arith.constant 0 : index
    %c0_160 = arith.constant 0 : index
    %249 = vector.load %arg5[%c1_158, %c0_159, %c0_160] : memref<3x144x16xbf16, #tpu.memory_space<vmem>>, vector<1x144x16xbf16>
    %250 = vector.shape_cast %249 : vector<1x144x16xbf16> to vector<144x16xbf16>
    %cst_161 = arith.constant dense<0.000000e+00> : vector<64x16xf32>
    %251 = tpu.matmul %248, %250, %cst_161 {dimension_numbers = #tpu.dot_dimension_numbers<[1], [0], [0], [1], [0, 0, 1, 1], [], []>} : vector<64x144xbf16>, vector<144x16xbf16>, vector<64x16xf32> -> vector<64x16xf32>
    %252 = arith.addf %246, %251 : vector<64x16xf32>
    %c176 = arith.constant 176 : index
    %c0_162 = arith.constant 0 : index
    %253 = vector.load %arg8[%c176, %c0_162] : memref<592x144xf32, #tpu.memory_space<vmem>>, vector<64x144xf32>
    %254 = arith.truncf %253 : vector<64x144xf32> to vector<64x144xbf16>
    %c2_163 = arith.constant 2 : index
    %c0_164 = arith.constant 0 : index
    %c0_165 = arith.constant 0 : index
    %255 = vector.load %arg5[%c2_163, %c0_164, %c0_165] : memref<3x144x16xbf16, #tpu.memory_space<vmem>>, vector<1x144x16xbf16>
    %256 = vector.shape_cast %255 : vector<1x144x16xbf16> to vector<144x16xbf16>
    %cst_166 = arith.constant dense<0.000000e+00> : vector<64x16xf32>
    %257 = tpu.matmul %254, %256, %cst_166 {dimension_numbers = #tpu.dot_dimension_numbers<[1], [0], [0], [1], [0, 0, 1, 1], [], []>} : vector<64x144xbf16>, vector<144x16xbf16>, vector<64x16xf32> -> vector<64x16xf32>
    %258 = arith.addf %252, %257 : vector<64x16xf32>
    %259 = tpu.concatenate %241, %258 in 1 : vector<64x16xf32>, vector<64x16xf32> -> vector<64x32xf32>
    %c0_167 = arith.constant 0 : index
    %c0_168 = arith.constant 0 : index
    %260 = vector.load %arg6[%c0_167, %c0_168] : memref<1x32xf32, #tpu.memory_space<vmem>>, vector<1x32xf32>
    %261 = vector.broadcast %260 : vector<1x32xf32> to vector<64x32xf32>
    %262 = arith.addf %259, %261 : vector<64x32xf32>
    %c128_169 = arith.constant 128 : index
    %c0_170 = arith.constant 0 : index
    %263 = vector.load %arg7[%c128_169, %c0_170] : memref<512x32xf32, #tpu.memory_space<vmem>>, vector<64x32xf32>
    tpu.vector_store %arg7[%c128_169, %c0_170], %262 {strides = array<i32>} : memref<512x32xf32, #tpu.memory_space<vmem>>, vector<64x32xf32>,
    %c192_171 = arith.constant 192 : index
    %c0_172 = arith.constant 0 : index
    %264 = vector.load %arg1[%c192_171, %c0_172] : memref<512x81xbf16, #tpu.memory_space<vmem>>, vector<64x81xbf16>
    %c0_173 = arith.constant 0 : index
    %c0_174 = arith.constant 0 : index
    %265 = vector.load %arg4[%c0_173, %c0_174] : memref<81x16xbf16, #tpu.memory_space<vmem>>, vector<81x16xbf16>
    %cst_175 = arith.constant dense<0.000000e+00> : vector<64x16xf32>
    %266 = tpu.matmul %264, %265, %cst_175 {dimension_numbers = #tpu.dot_dimension_numbers<[1], [0], [0], [1], [0, 0, 1, 1], [], []>} : vector<64x81xbf16>, vector<81x16xbf16>, vector<64x16xf32> -> vector<64x16xf32>
    %c208_176 = arith.constant 208 : index
    %c0_177 = arith.constant 0 : index
    %267 = vector.load %arg8[%c208_176, %c0_177] : memref<592x144xf32, #tpu.memory_space<vmem>>, vector<64x144xf32>
    %268 = arith.truncf %267 : vector<64x144xf32> to vector<64x144xbf16>
    %c0_178 = arith.constant 0 : index
    %c0_179 = arith.constant 0 : index
    %c0_180 = arith.constant 0 : index
    %269 = vector.load %arg5[%c0_178, %c0_179, %c0_180] : memref<3x144x16xbf16, #tpu.memory_space<vmem>>, vector<1x144x16xbf16>
    %270 = vector.shape_cast %269 : vector<1x144x16xbf16> to vector<144x16xbf16>
    %cst_181 = arith.constant dense<0.000000e+00> : vector<64x16xf32>
    %271 = tpu.matmul %268, %270, %cst_181 {dimension_numbers = #tpu.dot_dimension_numbers<[1], [0], [0], [1], [0, 0, 1, 1], [], []>} : vector<64x144xbf16>, vector<144x16xbf16>, vector<64x16xf32> -> vector<64x16xf32>
    %c224 = arith.constant 224 : index
    %c0_182 = arith.constant 0 : index
    %272 = vector.load %arg8[%c224, %c0_182] : memref<592x144xf32, #tpu.memory_space<vmem>>, vector<64x144xf32>
    %273 = arith.truncf %272 : vector<64x144xf32> to vector<64x144xbf16>
    %c1_183 = arith.constant 1 : index
    %c0_184 = arith.constant 0 : index
    %c0_185 = arith.constant 0 : index
    %274 = vector.load %arg5[%c1_183, %c0_184, %c0_185] : memref<3x144x16xbf16, #tpu.memory_space<vmem>>, vector<1x144x16xbf16>
    %275 = vector.shape_cast %274 : vector<1x144x16xbf16> to vector<144x16xbf16>
    %cst_186 = arith.constant dense<0.000000e+00> : vector<64x16xf32>
    %276 = tpu.matmul %273, %275, %cst_186 {dimension_numbers = #tpu.dot_dimension_numbers<[1], [0], [0], [1], [0, 0, 1, 1], [], []>} : vector<64x144xbf16>, vector<144x16xbf16>, vector<64x16xf32> -> vector<64x16xf32>
    %277 = arith.addf %271, %276 : vector<64x16xf32>
    %c240 = arith.constant 240 : index
    %c0_187 = arith.constant 0 : index
    %278 = vector.load %arg8[%c240, %c0_187] : memref<592x144xf32, #tpu.memory_space<vmem>>, vector<64x144xf32>
    %279 = arith.truncf %278 : vector<64x144xf32> to vector<64x144xbf16>
    %c2_188 = arith.constant 2 : index
    %c0_189 = arith.constant 0 : index
    %c0_190 = arith.constant 0 : index
    %280 = vector.load %arg5[%c2_188, %c0_189, %c0_190] : memref<3x144x16xbf16, #tpu.memory_space<vmem>>, vector<1x144x16xbf16>
    %281 = vector.shape_cast %280 : vector<1x144x16xbf16> to vector<144x16xbf16>
    %cst_191 = arith.constant dense<0.000000e+00> : vector<64x16xf32>
    %282 = tpu.matmul %279, %281, %cst_191 {dimension_numbers = #tpu.dot_dimension_numbers<[1], [0], [0], [1], [0, 0, 1, 1], [], []>} : vector<64x144xbf16>, vector<144x16xbf16>, vector<64x16xf32> -> vector<64x16xf32>
    %283 = arith.addf %277, %282 : vector<64x16xf32>
    %284 = tpu.concatenate %266, %283 in 1 : vector<64x16xf32>, vector<64x16xf32> -> vector<64x32xf32>
    %c0_192 = arith.constant 0 : index
    %c0_193 = arith.constant 0 : index
    %285 = vector.load %arg6[%c0_192, %c0_193] : memref<1x32xf32, #tpu.memory_space<vmem>>, vector<1x32xf32>
    %286 = vector.broadcast %285 : vector<1x32xf32> to vector<64x32xf32>
    %287 = arith.addf %284, %286 : vector<64x32xf32>
    %c192_194 = arith.constant 192 : index
    %c0_195 = arith.constant 0 : index
    %288 = vector.load %arg7[%c192_194, %c0_195] : memref<512x32xf32, #tpu.memory_space<vmem>>, vector<64x32xf32>
    tpu.vector_store %arg7[%c192_194, %c0_195], %287 {strides = array<i32>} : memref<512x32xf32, #tpu.memory_space<vmem>>, vector<64x32xf32>,
    %c256_196 = arith.constant 256 : index
    %c0_197 = arith.constant 0 : index
    %289 = vector.load %arg1[%c256_196, %c0_197] : memref<512x81xbf16, #tpu.memory_space<vmem>>, vector<64x81xbf16>
    %c0_198 = arith.constant 0 : index
    %c0_199 = arith.constant 0 : index
    %290 = vector.load %arg4[%c0_198, %c0_199] : memref<81x16xbf16, #tpu.memory_space<vmem>>, vector<81x16xbf16>
    %cst_200 = arith.constant dense<0.000000e+00> : vector<64x16xf32>
    %291 = tpu.matmul %289, %290, %cst_200 {dimension_numbers = #tpu.dot_dimension_numbers<[1], [0], [0], [1], [0, 0, 1, 1], [], []>} : vector<64x81xbf16>, vector<81x16xbf16>, vector<64x16xf32> -> vector<64x16xf32>
    %c272_201 = arith.constant 272 : index
    %c0_202 = arith.constant 0 : index
    %292 = vector.load %arg8[%c272_201, %c0_202] : memref<592x144xf32, #tpu.memory_space<vmem>>, vector<64x144xf32>
    %293 = arith.truncf %292 : vector<64x144xf32> to vector<64x144xbf16>
    %c0_203 = arith.constant 0 : index
    %c0_204 = arith.constant 0 : index
    %c0_205 = arith.constant 0 : index
    %294 = vector.load %arg5[%c0_203, %c0_204, %c0_205] : memref<3x144x16xbf16, #tpu.memory_space<vmem>>, vector<1x144x16xbf16>
    %295 = vector.shape_cast %294 : vector<1x144x16xbf16> to vector<144x16xbf16>
    %cst_206 = arith.constant dense<0.000000e+00> : vector<64x16xf32>
    %296 = tpu.matmul %293, %295, %cst_206 {dimension_numbers = #tpu.dot_dimension_numbers<[1], [0], [0], [1], [0, 0, 1, 1], [], []>} : vector<64x144xbf16>, vector<144x16xbf16>, vector<64x16xf32> -> vector<64x16xf32>
    %c288 = arith.constant 288 : index
    %c0_207 = arith.constant 0 : index
    %297 = vector.load %arg8[%c288, %c0_207] : memref<592x144xf32, #tpu.memory_space<vmem>>, vector<64x144xf32>
    %298 = arith.truncf %297 : vector<64x144xf32> to vector<64x144xbf16>
    %c1_208 = arith.constant 1 : index
    %c0_209 = arith.constant 0 : index
    %c0_210 = arith.constant 0 : index
    %299 = vector.load %arg5[%c1_208, %c0_209, %c0_210] : memref<3x144x16xbf16, #tpu.memory_space<vmem>>, vector<1x144x16xbf16>
    %300 = vector.shape_cast %299 : vector<1x144x16xbf16> to vector<144x16xbf16>
    %cst_211 = arith.constant dense<0.000000e+00> : vector<64x16xf32>
    %301 = tpu.matmul %298, %300, %cst_211 {dimension_numbers = #tpu.dot_dimension_numbers<[1], [0], [0], [1], [0, 0, 1, 1], [], []>} : vector<64x144xbf16>, vector<144x16xbf16>, vector<64x16xf32> -> vector<64x16xf32>
    %302 = arith.addf %296, %301 : vector<64x16xf32>
    %c304 = arith.constant 304 : index
    %c0_212 = arith.constant 0 : index
    %303 = vector.load %arg8[%c304, %c0_212] : memref<592x144xf32, #tpu.memory_space<vmem>>, vector<64x144xf32>
    %304 = arith.truncf %303 : vector<64x144xf32> to vector<64x144xbf16>
    %c2_213 = arith.constant 2 : index
    %c0_214 = arith.constant 0 : index
    %c0_215 = arith.constant 0 : index
    %305 = vector.load %arg5[%c2_213, %c0_214, %c0_215] : memref<3x144x16xbf16, #tpu.memory_space<vmem>>, vector<1x144x16xbf16>
    %306 = vector.shape_cast %305 : vector<1x144x16xbf16> to vector<144x16xbf16>
    %cst_216 = arith.constant dense<0.000000e+00> : vector<64x16xf32>
    %307 = tpu.matmul %304, %306, %cst_216 {dimension_numbers = #tpu.dot_dimension_numbers<[1], [0], [0], [1], [0, 0, 1, 1], [], []>} : vector<64x144xbf16>, vector<144x16xbf16>, vector<64x16xf32> -> vector<64x16xf32>
    %308 = arith.addf %302, %307 : vector<64x16xf32>
    %309 = tpu.concatenate %291, %308 in 1 : vector<64x16xf32>, vector<64x16xf32> -> vector<64x32xf32>
    %c0_217 = arith.constant 0 : index
    %c0_218 = arith.constant 0 : index
    %310 = vector.load %arg6[%c0_217, %c0_218] : memref<1x32xf32, #tpu.memory_space<vmem>>, vector<1x32xf32>
    %311 = vector.broadcast %310 : vector<1x32xf32> to vector<64x32xf32>
    %312 = arith.addf %309, %311 : vector<64x32xf32>
    %c256_219 = arith.constant 256 : index
    %c0_220 = arith.constant 0 : index
    %313 = vector.load %arg7[%c256_219, %c0_220] : memref<512x32xf32, #tpu.memory_space<vmem>>, vector<64x32xf32>
    tpu.vector_store %arg7[%c256_219, %c0_220], %312 {strides = array<i32>} : memref<512x32xf32, #tpu.memory_space<vmem>>, vector<64x32xf32>,
    %c320_221 = arith.constant 320 : index
    %c0_222 = arith.constant 0 : index
    %314 = vector.load %arg1[%c320_221, %c0_222] : memref<512x81xbf16, #tpu.memory_space<vmem>>, vector<64x81xbf16>
    %c0_223 = arith.constant 0 : index
    %c0_224 = arith.constant 0 : index
    %315 = vector.load %arg4[%c0_223, %c0_224] : memref<81x16xbf16, #tpu.memory_space<vmem>>, vector<81x16xbf16>
    %cst_225 = arith.constant dense<0.000000e+00> : vector<64x16xf32>
    %316 = tpu.matmul %314, %315, %cst_225 {dimension_numbers = #tpu.dot_dimension_numbers<[1], [0], [0], [1], [0, 0, 1, 1], [], []>} : vector<64x81xbf16>, vector<81x16xbf16>, vector<64x16xf32> -> vector<64x16xf32>
    %c336_226 = arith.constant 336 : index
    %c0_227 = arith.constant 0 : index
    %317 = vector.load %arg8[%c336_226, %c0_227] : memref<592x144xf32, #tpu.memory_space<vmem>>, vector<64x144xf32>
    %318 = arith.truncf %317 : vector<64x144xf32> to vector<64x144xbf16>
    %c0_228 = arith.constant 0 : index
    %c0_229 = arith.constant 0 : index
    %c0_230 = arith.constant 0 : index
    %319 = vector.load %arg5[%c0_228, %c0_229, %c0_230] : memref<3x144x16xbf16, #tpu.memory_space<vmem>>, vector<1x144x16xbf16>
    %320 = vector.shape_cast %319 : vector<1x144x16xbf16> to vector<144x16xbf16>
    %cst_231 = arith.constant dense<0.000000e+00> : vector<64x16xf32>
    %321 = tpu.matmul %318, %320, %cst_231 {dimension_numbers = #tpu.dot_dimension_numbers<[1], [0], [0], [1], [0, 0, 1, 1], [], []>} : vector<64x144xbf16>, vector<144x16xbf16>, vector<64x16xf32> -> vector<64x16xf32>
    %c352 = arith.constant 352 : index
    %c0_232 = arith.constant 0 : index
    %322 = vector.load %arg8[%c352, %c0_232] : memref<592x144xf32, #tpu.memory_space<vmem>>, vector<64x144xf32>
    %323 = arith.truncf %322 : vector<64x144xf32> to vector<64x144xbf16>
    %c1_233 = arith.constant 1 : index
    %c0_234 = arith.constant 0 : index
    %c0_235 = arith.constant 0 : index
    %324 = vector.load %arg5[%c1_233, %c0_234, %c0_235] : memref<3x144x16xbf16, #tpu.memory_space<vmem>>, vector<1x144x16xbf16>
    %325 = vector.shape_cast %324 : vector<1x144x16xbf16> to vector<144x16xbf16>
    %cst_236 = arith.constant dense<0.000000e+00> : vector<64x16xf32>
    %326 = tpu.matmul %323, %325, %cst_236 {dimension_numbers = #tpu.dot_dimension_numbers<[1], [0], [0], [1], [0, 0, 1, 1], [], []>} : vector<64x144xbf16>, vector<144x16xbf16>, vector<64x16xf32> -> vector<64x16xf32>
    %327 = arith.addf %321, %326 : vector<64x16xf32>
    %c368 = arith.constant 368 : index
    %c0_237 = arith.constant 0 : index
    %328 = vector.load %arg8[%c368, %c0_237] : memref<592x144xf32, #tpu.memory_space<vmem>>, vector<64x144xf32>
    %329 = arith.truncf %328 : vector<64x144xf32> to vector<64x144xbf16>
    %c2_238 = arith.constant 2 : index
    %c0_239 = arith.constant 0 : index
    %c0_240 = arith.constant 0 : index
    %330 = vector.load %arg5[%c2_238, %c0_239, %c0_240] : memref<3x144x16xbf16, #tpu.memory_space<vmem>>, vector<1x144x16xbf16>
    %331 = vector.shape_cast %330 : vector<1x144x16xbf16> to vector<144x16xbf16>
    %cst_241 = arith.constant dense<0.000000e+00> : vector<64x16xf32>
    %332 = tpu.matmul %329, %331, %cst_241 {dimension_numbers = #tpu.dot_dimension_numbers<[1], [0], [0], [1], [0, 0, 1, 1], [], []>} : vector<64x144xbf16>, vector<144x16xbf16>, vector<64x16xf32> -> vector<64x16xf32>
    %333 = arith.addf %327, %332 : vector<64x16xf32>
    %334 = tpu.concatenate %316, %333 in 1 : vector<64x16xf32>, vector<64x16xf32> -> vector<64x32xf32>
    %c0_242 = arith.constant 0 : index
    %c0_243 = arith.constant 0 : index
    %335 = vector.load %arg6[%c0_242, %c0_243] : memref<1x32xf32, #tpu.memory_space<vmem>>, vector<1x32xf32>
    %336 = vector.broadcast %335 : vector<1x32xf32> to vector<64x32xf32>
    %337 = arith.addf %334, %336 : vector<64x32xf32>
    %c320_244 = arith.constant 320 : index
    %c0_245 = arith.constant 0 : index
    %338 = vector.load %arg7[%c320_244, %c0_245] : memref<512x32xf32, #tpu.memory_space<vmem>>, vector<64x32xf32>
    tpu.vector_store %arg7[%c320_244, %c0_245], %337 {strides = array<i32>} : memref<512x32xf32, #tpu.memory_space<vmem>>, vector<64x32xf32>,
    %c384_246 = arith.constant 384 : index
    %c0_247 = arith.constant 0 : index
    %339 = vector.load %arg1[%c384_246, %c0_247] : memref<512x81xbf16, #tpu.memory_space<vmem>>, vector<64x81xbf16>
    %c0_248 = arith.constant 0 : index
    %c0_249 = arith.constant 0 : index
    %340 = vector.load %arg4[%c0_248, %c0_249] : memref<81x16xbf16, #tpu.memory_space<vmem>>, vector<81x16xbf16>
    %cst_250 = arith.constant dense<0.000000e+00> : vector<64x16xf32>
    %341 = tpu.matmul %339, %340, %cst_250 {dimension_numbers = #tpu.dot_dimension_numbers<[1], [0], [0], [1], [0, 0, 1, 1], [], []>} : vector<64x81xbf16>, vector<81x16xbf16>, vector<64x16xf32> -> vector<64x16xf32>
    %c400_251 = arith.constant 400 : index
    %c0_252 = arith.constant 0 : index
    %342 = vector.load %arg8[%c400_251, %c0_252] : memref<592x144xf32, #tpu.memory_space<vmem>>, vector<64x144xf32>
    %343 = arith.truncf %342 : vector<64x144xf32> to vector<64x144xbf16>
    %c0_253 = arith.constant 0 : index
    %c0_254 = arith.constant 0 : index
    %c0_255 = arith.constant 0 : index
    %344 = vector.load %arg5[%c0_253, %c0_254, %c0_255] : memref<3x144x16xbf16, #tpu.memory_space<vmem>>, vector<1x144x16xbf16>
    %345 = vector.shape_cast %344 : vector<1x144x16xbf16> to vector<144x16xbf16>
    %cst_256 = arith.constant dense<0.000000e+00> : vector<64x16xf32>
    %346 = tpu.matmul %343, %345, %cst_256 {dimension_numbers = #tpu.dot_dimension_numbers<[1], [0], [0], [1], [0, 0, 1, 1], [], []>} : vector<64x144xbf16>, vector<144x16xbf16>, vector<64x16xf32> -> vector<64x16xf32>
    %c416 = arith.constant 416 : index
    %c0_257 = arith.constant 0 : index
    %347 = vector.load %arg8[%c416, %c0_257] : memref<592x144xf32, #tpu.memory_space<vmem>>, vector<64x144xf32>
    %348 = arith.truncf %347 : vector<64x144xf32> to vector<64x144xbf16>
    %c1_258 = arith.constant 1 : index
    %c0_259 = arith.constant 0 : index
    %c0_260 = arith.constant 0 : index
    %349 = vector.load %arg5[%c1_258, %c0_259, %c0_260] : memref<3x144x16xbf16, #tpu.memory_space<vmem>>, vector<1x144x16xbf16>
    %350 = vector.shape_cast %349 : vector<1x144x16xbf16> to vector<144x16xbf16>
    %cst_261 = arith.constant dense<0.000000e+00> : vector<64x16xf32>
    %351 = tpu.matmul %348, %350, %cst_261 {dimension_numbers = #tpu.dot_dimension_numbers<[1], [0], [0], [1], [0, 0, 1, 1], [], []>} : vector<64x144xbf16>, vector<144x16xbf16>, vector<64x16xf32> -> vector<64x16xf32>
    %352 = arith.addf %346, %351 : vector<64x16xf32>
    %c432 = arith.constant 432 : index
    %c0_262 = arith.constant 0 : index
    %353 = vector.load %arg8[%c432, %c0_262] : memref<592x144xf32, #tpu.memory_space<vmem>>, vector<64x144xf32>
    %354 = arith.truncf %353 : vector<64x144xf32> to vector<64x144xbf16>
    %c2_263 = arith.constant 2 : index
    %c0_264 = arith.constant 0 : index
    %c0_265 = arith.constant 0 : index
    %355 = vector.load %arg5[%c2_263, %c0_264, %c0_265] : memref<3x144x16xbf16, #tpu.memory_space<vmem>>, vector<1x144x16xbf16>
    %356 = vector.shape_cast %355 : vector<1x144x16xbf16> to vector<144x16xbf16>
    %cst_266 = arith.constant dense<0.000000e+00> : vector<64x16xf32>
    %357 = tpu.matmul %354, %356, %cst_266 {dimension_numbers = #tpu.dot_dimension_numbers<[1], [0], [0], [1], [0, 0, 1, 1], [], []>} : vector<64x144xbf16>, vector<144x16xbf16>, vector<64x16xf32> -> vector<64x16xf32>
    %358 = arith.addf %352, %357 : vector<64x16xf32>
    %359 = tpu.concatenate %341, %358 in 1 : vector<64x16xf32>, vector<64x16xf32> -> vector<64x32xf32>
    %c0_267 = arith.constant 0 : index
    %c0_268 = arith.constant 0 : index
    %360 = vector.load %arg6[%c0_267, %c0_268] : memref<1x32xf32, #tpu.memory_space<vmem>>, vector<1x32xf32>
    %361 = vector.broadcast %360 : vector<1x32xf32> to vector<64x32xf32>
    %362 = arith.addf %359, %361 : vector<64x32xf32>
    %c384_269 = arith.constant 384 : index
    %c0_270 = arith.constant 0 : index
    %363 = vector.load %arg7[%c384_269, %c0_270] : memref<512x32xf32, #tpu.memory_space<vmem>>, vector<64x32xf32>
    tpu.vector_store %arg7[%c384_269, %c0_270], %362 {strides = array<i32>} : memref<512x32xf32, #tpu.memory_space<vmem>>, vector<64x32xf32>,
    %c448_271 = arith.constant 448 : index
    %c0_272 = arith.constant 0 : index
    %364 = vector.load %arg1[%c448_271, %c0_272] : memref<512x81xbf16, #tpu.memory_space<vmem>>, vector<64x81xbf16>
    %c0_273 = arith.constant 0 : index
    %c0_274 = arith.constant 0 : index
    %365 = vector.load %arg4[%c0_273, %c0_274] : memref<81x16xbf16, #tpu.memory_space<vmem>>, vector<81x16xbf16>
    %cst_275 = arith.constant dense<0.000000e+00> : vector<64x16xf32>
    %366 = tpu.matmul %364, %365, %cst_275 {dimension_numbers = #tpu.dot_dimension_numbers<[1], [0], [0], [1], [0, 0, 1, 1], [], []>} : vector<64x81xbf16>, vector<81x16xbf16>, vector<64x16xf32> -> vector<64x16xf32>
    %c464_276 = arith.constant 464 : index
    %c0_277 = arith.constant 0 : index
    %367 = vector.load %arg8[%c464_276, %c0_277] : memref<592x144xf32, #tpu.memory_space<vmem>>, vector<64x144xf32>
    %368 = arith.truncf %367 : vector<64x144xf32> to vector<64x144xbf16>
    %c0_278 = arith.constant 0 : index
    %c0_279 = arith.constant 0 : index
    %c0_280 = arith.constant 0 : index
    %369 = vector.load %arg5[%c0_278, %c0_279, %c0_280] : memref<3x144x16xbf16, #tpu.memory_space<vmem>>, vector<1x144x16xbf16>
    %370 = vector.shape_cast %369 : vector<1x144x16xbf16> to vector<144x16xbf16>
    %cst_281 = arith.constant dense<0.000000e+00> : vector<64x16xf32>
    %371 = tpu.matmul %368, %370, %cst_281 {dimension_numbers = #tpu.dot_dimension_numbers<[1], [0], [0], [1], [0, 0, 1, 1], [], []>} : vector<64x144xbf16>, vector<144x16xbf16>, vector<64x16xf32> -> vector<64x16xf32>
    %c480 = arith.constant 480 : index
    %c0_282 = arith.constant 0 : index
    %372 = vector.load %arg8[%c480, %c0_282] : memref<592x144xf32, #tpu.memory_space<vmem>>, vector<64x144xf32>
    %373 = arith.truncf %372 : vector<64x144xf32> to vector<64x144xbf16>
    %c1_283 = arith.constant 1 : index
    %c0_284 = arith.constant 0 : index
    %c0_285 = arith.constant 0 : index
    %374 = vector.load %arg5[%c1_283, %c0_284, %c0_285] : memref<3x144x16xbf16, #tpu.memory_space<vmem>>, vector<1x144x16xbf16>
    %375 = vector.shape_cast %374 : vector<1x144x16xbf16> to vector<144x16xbf16>
    %cst_286 = arith.constant dense<0.000000e+00> : vector<64x16xf32>
    %376 = tpu.matmul %373, %375, %cst_286 {dimension_numbers = #tpu.dot_dimension_numbers<[1], [0], [0], [1], [0, 0, 1, 1], [], []>} : vector<64x144xbf16>, vector<144x16xbf16>, vector<64x16xf32> -> vector<64x16xf32>
    %377 = arith.addf %371, %376 : vector<64x16xf32>
    %c496 = arith.constant 496 : index
    %c0_287 = arith.constant 0 : index
    %378 = vector.load %arg8[%c496, %c0_287] : memref<592x144xf32, #tpu.memory_space<vmem>>, vector<64x144xf32>
    %379 = arith.truncf %378 : vector<64x144xf32> to vector<64x144xbf16>
    %c2_288 = arith.constant 2 : index
    %c0_289 = arith.constant 0 : index
    %c0_290 = arith.constant 0 : index
    %380 = vector.load %arg5[%c2_288, %c0_289, %c0_290] : memref<3x144x16xbf16, #tpu.memory_space<vmem>>, vector<1x144x16xbf16>
    %381 = vector.shape_cast %380 : vector<1x144x16xbf16> to vector<144x16xbf16>
    %cst_291 = arith.constant dense<0.000000e+00> : vector<64x16xf32>
    %382 = tpu.matmul %379, %381, %cst_291 {dimension_numbers = #tpu.dot_dimension_numbers<[1], [0], [0], [1], [0, 0, 1, 1], [], []>} : vector<64x144xbf16>, vector<144x16xbf16>, vector<64x16xf32> -> vector<64x16xf32>
    %383 = arith.addf %377, %382 : vector<64x16xf32>
    %384 = tpu.concatenate %366, %383 in 1 : vector<64x16xf32>, vector<64x16xf32> -> vector<64x32xf32>
    %c0_292 = arith.constant 0 : index
    %c0_293 = arith.constant 0 : index
    %385 = vector.load %arg6[%c0_292, %c0_293] : memref<1x32xf32, #tpu.memory_space<vmem>>, vector<1x32xf32>
    %386 = vector.broadcast %385 : vector<1x32xf32> to vector<64x32xf32>
    %387 = arith.addf %384, %386 : vector<64x32xf32>
    %c448_294 = arith.constant 448 : index
    %c0_295 = arith.constant 0 : index
    %388 = vector.load %arg7[%c448_294, %c0_295] : memref<512x32xf32, #tpu.memory_space<vmem>>, vector<64x32xf32>
    tpu.vector_store %arg7[%c448_294, %c0_295], %387 {strides = array<i32>} : memref<512x32xf32, #tpu.memory_space<vmem>>, vector<64x32xf32>,
    return
  }
}

</mosaic_0001>

<bundles_post_ra>
// kernel: dirfulldil_forward.1
= control target key start
LH: loop header
LB: loop body
LE: loop exit
PB: predicated region body
PF: predicated region fallthrough
CT: control target
= control target key end

     0   :  { %vm116_vm0 = vcmask 1040384   ;;  %v12334_v2 = vmov 0   ;;  %vm103_vm1 = vcmask 662528   ;;  %s12335_s22 = smov 16   ;;  %s12336_s23 = smov 32   ;;  %vm359_vm13 = vcmask 130048   ;;  %s18556_s2 = inlined_call_operand.vmem [shape: bf16[81,16], index: 2, kind: input, shape index: {}]   ;;  %s18557_s3 = inlined_call_operand.vmem [shape: f32[1,16], index: 3, kind: input, shape index: {}]   ;;  %s18558_s0 = inlined_call_operand.vmem [shape: bf16[576,81], index: 0, kind: input, shape index: {}]   ;;  %s18559_s4 = inlined_call_operand.vmem [shape: bf16[81,16], index: 4, kind: input, shape index: {}]   ;;  %s18560_s5 = inlined_call_operand.vmem [shape: bf16[3,144,16], index: 5, kind: input, shape index: {}]   ;;  %s18561_s1 = inlined_call_operand.vmem [shape: bf16[512,81], index: 1, kind: input, shape index: {}]   ;;  %s18562_s6 = inlined_call_operand.vmem [shape: f32[1,32], index: 6, kind: input, shape index: {}]   ;;  %s18563_s7 = inlined_call_operand.vmem [shape: f32[512,32], index: 7, kind: output, shape index: {}]  }
   0x1   :  { %v45_v0 = vld [vmem:[%s18556_s2 + $0x28] sm:$0x1]  ;;  %v12382_v3 = vsel %vm116_vm0, 65535, %v12334_v2  ;;  %v11465_v6 = vld [vmem:[%s18556_s2 + $0x20] sm:$0xff]  ;;  %v11464_v7 = vld [vmem:[%s18556_s2 + $0x18] sm:$0xff]  ;;  %vm368_vm14 = vcmask 261120  }
   0x2   :  { %v91_v1 = vunpack.c.l.b16 %v45_v0  ;;  %v533_v8 = vld [vmem:[%s18556_s2 + $0x28] sm:$0x1]  ;;  %v11463_v9 = vld [vmem:[%s18556_s2 + $0x10] sm:$0xff]  ;;  %v11461_v13 = vld [vmem:[%s18556_s2] sm:$0xff]  ;;  %vm377_vm15 = vcmask 392192   ;;  %vm394_vm0 = vcmask 1046528  }
   0x3   :  { %v579_v10 = vunpack.c.l.b16 %v533_v8  ;;  %v11462_v11 = vld [vmem:[%s18556_s2 + $0x8] sm:$0xff]  ;;  %v11457_v15 = vld [vmem:[%s18558_s0] sm:$0xff]  ;;  %v11459_v16 = vld [vmem:[%s18558_s0 + $0x10] sm:$0xff]  ;;  %s12337_s30 = smov 48   ;;  %s12338_s8 = smov 96  }
   0x4   :  { %v97_v4 = vpack.c.b16 %v91_v1, %v91_v1  ;;  %v11474_v17 = vld [vmem:[%s18556_s2 + $0x20] sm:$0xff]  ;;  %v11473_v18 = vld [vmem:[%s18556_s2 + $0x18] sm:$0xff]  ;;  %v11472_v19 = vld [vmem:[%s18556_s2 + $0x10] sm:$0xff] }
   0x5   :  { %v585_v12 = vpack.c.b16 %v579_v10, %v579_v10  ;;  %v11471_v20 = vld [vmem:[%s18556_s2 + $0x8] sm:$0xff]  ;;  %v11460_v22 = vld [vmem:[%s18558_s0 + $0x18] sm:$0xff]  ;;  %v11470_v23 = vld [vmem:[%s18556_s2] sm:$0xff] }
   0x6   :  { %v120_v5 = vand.u32 %v12382_v3, %v97_v4  ;;  %v11458_v21 = vld [vmem:[%s18558_s0 + $0x8] sm:$0xff]  ;;  %v11466_v24 = vld [vmem:[%s18558_s0 + $0x20] sm:$0xff]  ;;  %v11468_v26 = vld [vmem:[%s18558_s0 + $0x30] sm:$0xff] }
   0x7   :  { %v604_v14 = vand.u32 %v585_v12, %v12382_v3  ;;  %v11467_v25 = vld [vmem:[%s18558_s0 + $0x28] sm:$0xff]  ;;  %v12024_v27 = vld [vmem:[%s18557_s3] ss:$0 sm:$0xff] }
   0x8   :  { %124 = vmatpush.bf16.msra.mxu0 %v120_v5  ;;  %11826 = vmatpush.bf16.msra.mxu1 %v120_v5 }
   0xc   :  { %125 = vmatpush.bf16.msra.mxu0 %v11465_v6  ;;  %11827 = vmatpush.bf16.msra.mxu1 %v11465_v6 }
  0x10   :  { %126 = vmatpush.bf16.msra.mxu0 %v11464_v7  ;;  %11828 = vmatpush.bf16.msra.mxu1 %v11464_v7 }
  0x14   :  { %127 = vmatpush.bf16.msra.mxu0 %v11463_v9  ;;  %11829 = vmatpush.bf16.msra.mxu1 %v11463_v9 }
  0x18   :  { %128 = vmatpush.bf16.msra.mxu0 %v11462_v11  ;;  %11830 = vmatpush.bf16.msra.mxu1 %v11462_v11 }
  0x1c   :  { %129 = vmatpush.bf16.msra.mxu0 %v11461_v13  ;;  %11831 = vmatpush.bf16.msra.mxu1 %v11461_v13  ;;  %v12480_v13 = vld [vmem:[%s18557_s3] ss:$0 sm:$0xff] }
  0x1f   :  { %9565 = vmatmul.msk.bf16.vlgmr.msra.gmra.mxu0 %vm103_vm1, %v11457_v15  ;;  %9567 = vmatmul.msk.bf16.vlgmr.msra.gmra.mxu1 %vm103_vm1, %v11459_v16 }
  0x20   :  { %608 = vmatpush.bf16.msrb.mxu1 %v604_v14 }
  0x24   :  { %609 = vmatpush.bf16.msrb.mxu1 %v11474_v17 }
  0x28   :  { %610 = vmatpush.bf16.msrb.mxu1 %v11473_v18 }
  0x2c   :  { %611 = vmatpush.bf16.msrb.mxu1 %v11472_v19 }
  0x2f   :  { %9566 = vmatmul.msk.bf16.gmra.mxu0 %vm103_vm1, %v11458_v21  ;;  %9568 = vmatmul.msk.bf16.gmra.mxu1 %vm103_vm1, %v11460_v22 }
  0x30   :  { %612 = vmatpush.bf16.msrb.mxu1 %v11471_v20 }
  0x34   :  { %613 = vmatpush.bf16.msrb.mxu1 %v11470_v23 }
  0x3f   :  { %9605 = vmatmul.msk.bf16.vlgmr.msrb.gmra.mxu1 %vm103_vm1, %v11466_v24 }
  0x4f   :  { %9606 = vmatmul.msk.bf16.gmra.mxu1 %vm103_vm1, %v11467_v25 }
  0x5f   :  { %9607 = vmatmul.msk.bf16.gmra.mxu1 %vm103_vm1, %v11468_v26 }
  0x9c   :  { %v131_v28 = vpop.f32.mrf.mxu0  ;;  %v141_v29 = vpop.f32.mrf.mxu1 }
  0x9d   :  { %v12450_v30 = vadd.f32 %v12024_v27, %v131_v28  ;;  %v12452_v31 = vadd.f32 %v12024_v27, %v141_v29 }
  0x9f   :  { %v159_v32 = vand.u32 2147483647, %v12450_v30  ;;  %v163_v33 = vand.u32 2147483647, %v12452_v31  ;;  %v155_v18 = vmax.f32 %v12452_v31, 0.0 }
  0xa1   :  { %v167_v34 = vsub.f32 0.0, %v159_v32  ;;  %v171_v35 = vsub.f32 0.0, %v163_v33 }
  0xa3   :  { %v183_v36 = vmul.f32 1.442695, %v171_v35  ;;  %v175_v37 = vmul.f32 1.442695, %v167_v34 }
  0xa4   :  { %v133_v38 = vpop.f32.mrf.mxu0  ;;  %v143_v39 = vpop.f32.mrf.mxu1 }
  0xa5   :  { %v12456_v40 = vadd.f32 %v12024_v27, %v143_v39  ;;  %12041 = vpow2.f32 %v183_v36  ;;  %v12459_v42 = vadd.f32 %v12024_v27, %v133_v38 }
  0xa6   :  { %12043 = vpow2.f32 %v175_v37 }
  0xa7   :  { %v164_v41 = vand.u32 2147483647, %v12456_v40  ;;  %v160_v48 = vand.u32 2147483647, %v12459_v42 }
  0xa9   :  { %v172_v43 = vsub.f32 0.0, %v164_v41  ;;  %v168_v57 = vsub.f32 0.0, %v160_v48  ;;  %v151_v48 = vmax.f32 %v12450_v30, 0.0 }
  0xab   :  { %v185_v44 = vmul.f32 1.442695, %v172_v43  ;;  %v12042_v45 = vpop.eup %12041  ;;  %v177_v2 = vmul.f32 1.442695, %v168_v57  ;;  %v156_v43 = vmax.f32 %v12456_v40, 0.0 }
  0xac   :  { %v136_v46 = vpop.f32.mrf.mxu0  ;;  %v146_v47 = vpop.f32.mrf.mxu1  ;;  %v227_v51 = vadd.f32 1.0, %v12042_v45  ;;  %v230_v55 = vmul.f32 -0.5, %v12042_v45  ;;  %v233_v5 = vand.u32 2147483647, %v12042_v45 }
  0xad   :  { %v12462_v49 = vadd.f32 %v12024_v27, %v136_v46  ;;  %v12464_v50 = vadd.f32 %v12024_v27, %v146_v47  ;;  %v12466_v52 = vpop.eup %12043  ;;  %12045 = vpow2.f32 %v185_v44 }
  0xae   :  { %v191_v56 = vadd.f32 1.0, %v12466_v52  ;;  %12047 = vlog2.f32 %v227_v51  ;;  %v231_v0 = vadd.f32 1.0, %v230_v55  ;;  %v194_v10 = vmul.f32 -0.5, %v12466_v52 }
  0xaf   :  { %v161_v53 = vand.u32 2147483647, %v12462_v49  ;;  %v165_v54 = vand.u32 2147483647, %v12464_v50  ;;  %vm12482_vm2 = vcmp.lt.f32.partialorder %v233_v5, 0.0004427343 }
  0xb0   :  { %12049 = vlog2.f32 %v191_v56  ;;  %v232_v11 = vmul.f32 %v12042_v45, %v231_v0  ;;  %v195_v22 = vadd.f32 1.0, %v194_v10  ;;  %v197_v34 = vand.u32 2147483647, %v12466_v52  ;;  %v11469_v0 = vld [vmem:[%s18558_s0 + $0x38] sm:$0xff] }
  0xb1   :  { %v169_v58 = vsub.f32 0.0, %v161_v53  ;;  %v173_v59 = vsub.f32 0.0, %v165_v54  ;;  %v153_v56 = vmax.f32 %v12462_v49, 0.0  ;;  %9608 = vmatmul.msk.bf16.gmra.mxu1 %vm103_vm1, %v11469_v0 }
  0xb2   :  { %v196_v41 = vmul.f32 %v12466_v52, %v195_v22  ;;  %vm12506_vm4 = vcmp.lt.f32.partialorder %v197_v34, 0.0004427343 }
  0xb3   :  { %v179_v60 = vmul.f32 1.442695, %v169_v58  ;;  %v187_v61 = vmul.f32 1.442695, %v173_v59  ;;  %v12046_v1 = vpop.eup %12045 }
  0xb4   :  { %v138_v62 = vpop.f32.mrf.mxu0  ;;  %v148_v63 = vpop.f32.mrf.mxu1  ;;  %v236_v6 = vadd.f32 1.0, %v12046_v1  ;;  %v239_v9 = vmul.f32 -0.5, %v12046_v1  ;;  %v242_v23 = vand.u32 2147483647, %v12046_v1 }
  0xb5   :  { %v12471_v4 = vadd.f32 %v12024_v27, %v138_v62  ;;  %12051 = vpow2.f32 %v179_v60  ;;  %v12473_v7 = vadd.f32 %v12024_v27, %v148_v63  ;;  %v12048_v8 = vpop.eup %12047 }
  0xb6   :  { %12053 = vpow2.f32 %v187_v61  ;;  %v229_v16 = vmul.f32 0.6931472, %v12048_v8  ;;  %v12050_v17 = vpop.eup %12049  ;;  %v240_v19 = vadd.f32 1.0, %v239_v9  ;;  %vm243_vm3 = vcmp.lt.f32.partialorder %v242_v23, 0.0004427343 }
  0xb7   :  { %12055 = vlog2.f32 %v236_v6  ;;  %v162_v12 = vand.u32 2147483647, %v12471_v4  ;;  %v166_v15 = vand.u32 2147483647, %v12473_v7  ;;  %v193_v31 = vmul.f32 0.6931472, %v12050_v17 }
  0xb8   :  { %12057 = vpow2.f32 %v177_v2  ;;  %v235_v26 = vsel %vm12482_vm2, %v232_v11, %v229_v16  ;;  %v241_v38 = vmul.f32 %v12046_v1, %v240_v19  ;;  %v158_v16 = vmax.f32 %v12473_v7, 0.0 }
  0xb9   :  { %v170_v20 = vsub.f32 0.0, %v162_v12  ;;  %v174_v24 = vsub.f32 0.0, %v166_v15  ;;  %v267_v32 = vadd.f32 %v235_v26, %v155_v18  ;;  %v199_v40 = vsel %vm12506_vm4, %v196_v41, %v193_v31 }
  0xba   :  { %v12529_v1 = vadd.f32 %v199_v40, %v151_v48  ;;  %v154_v12 = vmax.f32 %v12471_v4, 0.0  ;;  %vm449_vm2 = vcmask 1045504  }
  0xbb   :  { %v12488_v21 = vpop.eup %12051  ;;  %v181_v28 = vmul.f32 1.442695, %v170_v20  ;;  %v189_v35 = vmul.f32 1.442695, %v174_v24  ;;  %v275_v47 = vpack.c.bf16 %v267_v32, %v267_v32 }
  0xbc   :  { %v615_v25 = vpop.f32.mrf.mxu1  ;;  %v12492_v27 = vpop.eup %12053  ;;  %v209_v39 = vadd.f32 1.0, %v12488_v21  ;;  %v212_v63 = vmul.f32 -0.5, %v12488_v21  ;;  %v215_v24 = vand.u32 2147483647, %v12488_v21 }
  0xbd   :  { %v12495_v29 = vadd.f32 %v12480_v13, %v615_v25  ;;  %v12056_v33 = vpop.eup %12055  ;;  %12059 = vpow2.f32 %v181_v28  ;;  %v245_v44 = vadd.f32 1.0, %v12492_v27  ;;  %v12515_v55 = vunpack.c.l.bf16 %v275_v47 }
  0xbe   :  { %v12498_v36 = vpop.eup %12057  ;;  %v238_v37 = vmul.f32 0.6931472, %v12056_v33  ;;  %12061 = vpow2.f32 %v189_v35  ;;  %v248_v30 = vmul.f32 -0.5, %v12492_v27  ;;  %v251_v8 = vand.u32 2147483647, %v12492_v27 }
  0xbf   :  { %v643_v46 = vand.u32 2147483647, %v12495_v29  ;;  %v200_v53 = vadd.f32 1.0, %v12498_v36  ;;  %12063 = vlog2.f32 %v209_v39  ;;  %v291_v61 = vsub.f32 %v267_v32, %v12515_v55 }
  0xc0   :  { %v244_v45 = vsel %vm243_vm3, %v241_v38, %v238_v37  ;;  %12065 = vlog2.f32 %v245_v44  ;;  %v249_v11 = vadd.f32 1.0, %v248_v30  ;;  %v213_v19 = vadd.f32 1.0, %v212_v63 }
  0xc1   :  { %v12511_v54 = vadd.f32 %v244_v45, %v156_v43  ;;  %v651_v52 = vsub.f32 0.0, %v643_v46  ;;  %12067 = vlog2.f32 %v200_v53  ;;  %311 = vrot.lane.b32.xlu1 %v291_v61, %s12335_s22  ;;  %v271_v25 = vpack.c.bf16 %v12529_v1, %v12529_v1 }
  0xc2   :  { %vm12544_vm5 = vcmp.lt.f32.partialorder %v251_v8, 0.0004427343  ;;  %v250_v32 = vmul.f32 %v12492_v27, %v249_v11  ;;  %v214_v41 = vmul.f32 %v12488_v21, %v213_v19  ;;  %vm216_vm7 = vcmp.lt.f32.partialorder %v215_v24, 0.0004427343 }
  0xc3   :  { %v276_v58 = vpack.c.bf16 %v12511_v54, %v12511_v54  ;;  %v12060_v59 = vpop.eup %12059  ;;  %v659_v60 = vmul.f32 1.442695, %v651_v52  ;;  %v152_v52 = vmax.f32 %v12459_v42, 0.0 }
  0xc4   :  { %v617_v57 = vpop.f32.mrf.mxu1  ;;  %v218_v2 = vadd.f32 1.0, %v12060_v59  ;;  %v12062_v6 = vpop.eup %12061  ;;  %v221_v9 = vmul.f32 -0.5, %v12060_v59  ;;  %v224_v22 = vand.u32 2147483647, %v12060_v59 }
  0xc5   :  { %v12523_v62 = vadd.f32 %v12480_v13, %v617_v57  ;;  %v12531_v5 = vunpack.c.l.bf16 %v276_v58  ;;  %12069 = vpow2.f32 %v659_v60  ;;  %v254_v14 = vadd.f32 1.0, %v12062_v6  ;;  %v12064_v15 = vpop.eup %12063 }
  0xc6   :  { %12071 = vlog2.f32 %v218_v2  ;;  %v257_v17 = vmul.f32 -0.5, %v12062_v6  ;;  %v12066_v20 = vpop.eup %12065  ;;  %v222_v26 = vadd.f32 1.0, %v221_v9  ;;  %v260_v31 = vand.u32 2147483647, %v12062_v6 }
  0xc7   :  { %v644_v10 = vand.u32 2147483647, %v12523_v62  ;;  %12073 = vlog2.f32 %v254_v14  ;;  %v11854_v23 = vpack.i.bf16 %v12531_v5, %v12515_v55  ;;  %v12548_v28 = vpop.eup %12067  ;;  %v211_v35 = vmul.f32 0.6931472, %v12064_v15 }
  0xc8   :  { %v258_v33 = vadd.f32 1.0, %v257_v17  ;;  %v247_v38 = vmul.f32 0.6931472, %v12066_v20  ;;  %vm12556_vm6 = vcmp.lt.f32.partialorder %v224_v22, 0.0004427343  ;;  %v223_v47 = vmul.f32 %v12060_v59, %v222_v26 }
  0xc9   :  { %v652_v18 = vsub.f32 0.0, %v644_v10  ;;  %11855 = vrot.lane.b32.xlu2 %v11854_v23, %s12336_s23  ;;  %v217_v51 = vsel %vm216_vm7, %v214_v41, %v211_v35  ;;  %vm12561_vm8 = vcmp.lt.f32.partialorder %v260_v31, 0.0004427343  ;;  %v292_v63 = vsub.f32 %v12511_v54, %v12531_v5 }
  0xca   :  { %v259_v40 = vmul.f32 %v12062_v6, %v258_v33  ;;  %v265_v21 = vadd.f32 %v217_v51, %v153_v56  ;;  %v157_v6 = vmax.f32 %v12464_v50, 0.0  ;;  %v253_v8 = vsel %vm12544_vm5, %v250_v32, %v247_v38 }
  0xcb   :  { %v661_v7 = vmul.f32 1.442695, %v652_v18  ;;  %v12070_v37 = vpop.eup %12069  ;;  %v203_v9 = vmul.f32 -0.5, %v12498_v36  ;;  %v12578_v14 = vunpack.c.l.bf16 %v271_v25  ;;  %v206_v26 = vand.u32 2147483647, %v12498_v36 }
  0xcc   :  { %v620_v34 = vpop.f32.mrf.mxu1  ;;  %v12072_v43 = vpop.eup %12071  ;;  %v675_v27 = vadd.f32 1.0, %v12070_v37  ;;  %v678_v45 = vmul.f32 -0.5, %v12070_v37  ;;  %v681_v61 = vand.u32 2147483647, %v12070_v37  ;;  %v273_v0 = vpack.c.bf16 %v265_v21, %v265_v21 }
  0xcd   :  { %12075 = vpow2.f32 %v661_v7  ;;  %v12553_v39 = vadd.f32 %v12480_v13, %v620_v34  ;;  %v220_v46 = vmul.f32 0.6931472, %v12072_v43  ;;  %v12074_v53 = vpop.eup %12073  ;;  %v269_v17 = vadd.f32 %v253_v8, %v157_v6 }
  0xce   :  { %12077 = vlog2.f32 %v675_v27  ;;  %v256_v57 = vmul.f32 0.6931472, %v12074_v53  ;;  %v679_v58 = vadd.f32 1.0, %v678_v45  ;;  %v12580_v15 = vunpack.c.l.bf16 %v273_v0 }
  0xcf   :  { %v645_v48 = vand.u32 2147483647, %v12553_v39  ;;  %v226_v30 = vsel %vm12556_vm6, %v223_v47, %v220_v46  ;;  %vm12584_vm9 = vcmp.lt.f32.partialorder %v681_v61, 0.0004427343  ;;  %v204_v25 = vadd.f32 1.0, %v203_v9 }
  0xd0   :  { %v266_v59 = vadd.f32 %v226_v30, %v154_v12  ;;  %v262_v49 = vsel %vm12561_vm8, %v259_v40, %v256_v57  ;;  %v680_v54 = vmul.f32 %v12070_v37, %v679_v58  ;;  %v289_v22 = vsub.f32 %v265_v21, %v12580_v15 }
  0xd1   :  { %v653_v60 = vsub.f32 0.0, %v645_v48  ;;  %v270_v11 = vadd.f32 %v262_v49, %v158_v16  ;;  %313 = vrot.lane.b32.xlu2 %v292_v63, %s12335_s22  ;;  %v277_v7 = vpack.c.bf16 %v269_v17, %v269_v17  ;;  %v635_v32 = vmax.f32 %v12495_v29, 0.0 }
  0xd2   :  { %v274_v10 = vpack.c.bf16 %v266_v59, %v266_v59  ;;  %307 = vrot.lane.b32.xlu0 %v289_v22, %s12335_s22  ;;  %v287_v33 = vsub.f32 %v12529_v1, %v12578_v14  ;;  %v202_v34 = vmul.f32 0.6931472, %v12548_v28  ;;  %v205_v29 = vmul.f32 %v12498_v36, %v204_v25  ;;  %v11491_v25 = vld [vmem:[%s18556_s2 + $0x18] sm:$0xff] }
  0xd3   :  { %v12076_v2 = vpop.eup %12075  ;;  %v663_v56 = vmul.f32 1.442695, %v653_v60  ;;  %v278_v23 = vpack.c.bf16 %v270_v11, %v270_v11  ;;  %vm12605_vm10 = vcmp.lt.f32.partialorder %v206_v26, 0.0004427343  ;;  %v12609_v28 = vunpack.c.l.bf16 %v277_v7  ;;  %v1004_v26 = vld [vmem:[%s18556_s2 + $0x28] sm:$0x1] }
  0xd4   :  { %v684_v12 = vadd.f32 1.0, %v12076_v2  ;;  %v12078_v50 = vpop.eup %12077  ;;  %v12582_v18 = vunpack.c.l.bf16 %v274_v10  ;;  %v687_v16 = vmul.f32 -0.5, %v12076_v2  ;;  %v690_v37 = vand.u32 2147483647, %v12076_v2 }
  0xd5   :  { %12079 = vpow2.f32 %v663_v56  ;;  %v677_v20 = vmul.f32 0.6931472, %v12078_v50  ;;  %v12600_v41 = vunpack.c.l.bf16 %v278_v23  ;;  %v208_v47 = vsel %vm12605_vm10, %v205_v29, %v202_v34  ;;  %v11488_v34 = vld [vmem:[%s18556_s2] sm:$0xff] }
  0xd6   :  { %12081 = vlog2.f32 %v684_v12  ;;  %v11849_v24 = vpack.i.bf16 %v12582_v18, %v12580_v15  ;;  %v688_v35 = vadd.f32 1.0, %v687_v16  ;;  %v290_v46 = vsub.f32 %v266_v59, %v12582_v18 }
  0xd7   :  { %v683_v4 = vsel %vm12584_vm9, %v680_v54, %v677_v20  ;;  %vm691_vm11 = vcmp.lt.f32.partialorder %v690_v37, 0.0004427343  ;;  %v11859_v36 = vpack.i.bf16 %v12600_v41, %v12609_v28  ;;  %v636_v30 = vmax.f32 %v12523_v62, 0.0  ;;  %v1475_v20 = vld [vmem:[%s18556_s2 + $0x28] sm:$0x1]  ;;  %v11484_v37 = vld [vmem:[%s18558_s0 + $0x60] sm:$0xff] }
  0xd8   :  { %11850 = vrot.lane.b32.xlu1 %v11849_v24, %s12336_s23  ;;  %v747_v43 = vadd.f32 %v683_v4, %v635_v32  ;;  %v689_v48 = vmul.f32 %v12076_v2, %v688_v35  ;;  %v294_v57 = vsub.f32 %v270_v11, %v12600_v41  ;;  %v264_v58 = vadd.f32 %v208_v47, %v152_v52  ;;  %v11492_v24 = vld [vmem:[%s18556_s2 + $0x20] sm:$0xff]  ;;  %v11490_v4 = vld [vmem:[%s18556_s2 + $0x10] sm:$0xff]  ;;  %v11489_v32 = vld [vmem:[%s18556_s2 + $0x8] sm:$0xff] }
  0xd9   :  { %303 = vrot.lane.b32.xlu2 %v287_v33, %s12335_s22  ;;  %v637_v0 = vmax.f32 %v12553_v39, 0.0  ;;  %v293_v62 = vsub.f32 %v269_v17, %v12609_v28  ;;  %v1521_v16 = vunpack.c.l.b16 %v1475_v20  ;;  %v1050_v7 = vunpack.c.l.b16 %v1004_v26  ;;  %v11483_v35 = vld [vmem:[%s18556_s2 + $0x20] sm:$0xff]  ;;  %v11486_v52 = vld [vmem:[%s18558_s0 + $0x70] sm:$0xff] }
  0xda   :  { %v755_v53 = vpack.c.bf16 %v747_v43, %v747_v43  ;;  %309 = vrot.lane.b32.xlu0 %v290_v46, %s12335_s22  ;;  %v272_v2 = vpack.c.bf16 %v264_v58, %v264_v58  ;;  %v11479_v47 = vld [vmem:[%s18556_s2] sm:$0xff]  ;;  %vm439_vm5 = vcmask 785792   ;;  %vm496_vm6 = vcmask 1048320  }
  0xdb   :  { %v12080_v31 = vpop.eup %12079  ;;  %v1527_v22 = vpack.c.b16 %v1521_v16, %v1521_v16  ;;  %v1056_v33 = vpack.c.b16 %v1050_v7, %v1050_v7  ;;  %vm447_vm7 = vcmask 784768   ;;  %vm511_vm8 = vcmask 1046272  }
  0xdc   :  { %v12082_v38 = vpop.eup %12081  ;;  %v693_v44 = vadd.f32 1.0, %v12080_v31  ;;  %v696_v27 = vmul.f32 -0.5, %v12080_v31  ;;  %v699_v40 = vand.u32 2147483647, %v12080_v31  ;;  %v12620_v61 = vunpack.c.l.bf16 %v755_v53 }
  0xdd   :  { %v686_v45 = vmul.f32 0.6931472, %v12082_v38  ;;  %v12629_v10 = vunpack.c.l.bf16 %v272_v2  ;;  %v1546_v23 = vand.u32 %v1527_v22, %v12382_v3  ;;  %vm513_vm9 = vcmask 128000  }
  0xde   :  { %12083 = vlog2.f32 %v693_v44  ;;  %v697_v51 = vadd.f32 1.0, %v696_v27  ;;  %vm700_vm12 = vcmp.lt.f32.partialorder %v699_v40, 0.0004427343  ;;  %v11864_v56 = vpack.i.bf16 %v12578_v14, %v12620_v61  ;;  %v11481_v44 = vld [vmem:[%s18556_s2 + $0x10] sm:$0xff] }
  0xdf   :  { %v692_v21 = vsel %vm691_vm11, %v689_v48, %v686_v45  ;;  %v288_v12 = vsub.f32 %v264_v58, %v12629_v10  ;;  %v771_v50 = vsub.f32 %v747_v43, %v12620_v61  ;;  %1550 = vmatpush.bf16.msra.mxu3 %v1546_v23  ;;  %v11482_v43 = vld [vmem:[%s18556_s2 + $0x18] sm:$0xff]  ;;  %v11480_v45 = vld [vmem:[%s18556_s2 + $0x8] sm:$0xff]  ;;  %v11501_v23 = vld [vmem:[%s18556_s2 + $0x20] sm:$0xff]  ;;  %vm437_vm10 = vcmask 785799  }
  0xe0   :  { %11860 = vrot.lane.b32.xlu1 %v11859_v36, %s12336_s23  ;;  %v698_v60 = vmul.f32 %v12080_v31, %v697_v51  ;;  %v748_v63 = vadd.f32 %v692_v21, %v636_v30  ;;  %v1075_v31 = vand.u32 %v1056_v33, %v12382_v3  ;;  %v11485_v48 = vld [vmem:[%s18558_s0 + $0x68] sm:$0xff]  ;;  %v11475_v51 = vld [vmem:[%s18558_s0 + $0x40] sm:$0xff]  ;;  %vm18564_vm11 = vcmask 1048326  }
  0xe1   :  { %317 = vrot.lane.b32.xlu2 %v294_v57, %s12335_s22  ;;  %v11476_v21 = vld [vmem:[%s18558_s0 + $0x48] sm:$0xff]  ;;  %v622_v57 = vpop.f32.mrf.mxu1 }
  0xe2   :  { %v756_v8 = vpack.c.bf16 %v748_v63, %v748_v63  ;;  %315 = vrot.lane.b32.xlu0 %v293_v62, %s12335_s22  ;;  %1079 = vmatpush.bf16.msra.mxu2 %v1075_v31  ;;  %v11477_v31 = vld [vmem:[%s18558_s0 + $0x50] sm:$0xff] }
  0xe3   :  { %1551 = vmatpush.bf16.msra.mxu3 %v11492_v24  ;;  %v11487_v24 = vld [vmem:[%s18558_s0 + $0x78] sm:$0xff] }
  0xe4   :  { %v12084_v59 = vpop.eup %12083  ;;  %v12631_v39 = vunpack.c.l.bf16 %v756_v8 }
  0xe5   :  { %v695_v42 = vmul.f32 0.6931472, %v12084_v59  ;;  %v1946_v59 = vld [vmem:[%s18556_s2 + $0x28] sm:$0x1] }
  0xe6   :  { %v11869_v54 = vpack.i.bf16 %v12631_v39, %v12629_v10  ;;  %v772_v19 = vsub.f32 %v748_v63, %v12631_v39  ;;  %1080 = vmatpush.bf16.msra.mxu2 %v11483_v35  ;;  %v3359_v63 = vld [vmem:[%s18556_s2 + $0x28] sm:$0x1] }
  0xe7   :  { %v701_v6 = vsel %vm700_vm12, %v698_v60, %v695_v42  ;;  %1552 = vmatpush.bf16.msra.mxu3 %v11491_v25  ;;  %v1992_v42 = vunpack.c.l.b16 %v1946_v59  ;;  %v3405_v2 = vunpack.c.l.b16 %v3359_v63  ;;  %vm494_vm12 = vcmask 130054  }
  0xe8   :  { %v749_v49 = vadd.f32 %v701_v6, %v637_v0  ;;  %11865 = vrot.lane.b32.xlu1 %v11864_v56, %s12336_s23 }
  0xe9   :  { %v1998_v62 = vpack.c.b16 %v1992_v42, %v1992_v42 }
  0xea   :  { %v757_v9 = vpack.c.bf16 %v749_v49, %v749_v49  ;;  %305 = vrot.lane.b32.xlu0 %v288_v12, %s12335_s22  ;;  %1081 = vmatpush.bf16.msra.mxu2 %v11482_v43 }
  0xeb   :  { %1553 = vmatpush.bf16.msra.mxu3 %v11490_v4  ;;  %v2017_v56 = vand.u32 %v1998_v62, %v12382_v3 }
  0xec   :  { %v12633_v11 = vunpack.c.l.bf16 %v757_v9 }
  0xed   :  { %2021 = vmatpush.bf16.msrb.mxu0 %v2017_v56  ;;  %v11525_v56 = vld [vmem:[%s18556_s2 + $0x8] sm:$0xff] }
  0xee   :  { %823 = vrot.lane.b32.xlu2 %v12633_v11, %s12336_s23  ;;  %v773_v17 = vsub.f32 %v749_v49, %v12633_v11  ;;  %1082 = vmatpush.bf16.msra.mxu2 %v11481_v44  ;;  %v3411_v49 = vpack.c.b16 %v3405_v2, %v3405_v2 }
  0xef   :  { %1554 = vmatpush.bf16.msra.mxu3 %v11489_v32  ;;  %v11528_v32 = vld [vmem:[%s18556_s2 + $0x20] sm:$0xff] }
  0xf0   :  { %11870 = vrot.lane.b32.xlu1 %v11869_v54, %s12336_s23  ;;  %v3430_v54 = vand.u32 %v3411_v49, %v12382_v3 }
  0xf1   :  { %2022 = vmatpush.bf16.msrb.mxu0 %v11501_v23 }
  0xf2   :  { %787 = vrot.lane.b32.xlu0 %v771_v50, %s12335_s22  ;;  %1083 = vmatpush.bf16.msra.mxu2 %v11480_v45  ;;  %v12738_v50 = vadd.f32 %v12480_v13, %v622_v57  ;;  %v2888_v45 = vld [vmem:[%s18556_s2 + $0x28] sm:$0x1] }
  0xf3   :  { %1555 = vmatpush.bf16.msra.mxu3 %v11488_v34 }
  0xf6   :  { %9685 = vmatmul.msk.bf16.vlgmr.msra.gmra.mxu3 %vm103_vm1, %v11484_v37  ;;  %1084 = vmatpush.bf16.msra.mxu2 %v11479_v47 }
  0xf7   :  { %3434 = vmatpush.bf16.msrb.mxu3 %v3430_v54  ;;  %v11519_v54 = vld [vmem:[%s18556_s2 + $0x20] sm:$0xff] }
  0xf8   :  { %791 = vrot.lane.b32.xlu1 %v773_v17, %s12335_s22 }
  0xf9   :  { %9645 = vmatmul.msk.bf16.vlgmr.msra.gmra.mxu2 %vm103_vm1, %v11475_v51  ;;  %v11499_v51 = vld [vmem:[%s18556_s2 + $0x10] sm:$0xff] }
  0xfa   :  { %789 = vrot.lane.b32.xlu0 %v772_v19, %s12335_s22 }
  0xfb   :  { %3435 = vmatpush.bf16.msrb.mxu3 %v11528_v32  ;;  %v11478_v32 = vld [vmem:[%s18558_s0 + $0x58] sm:$0xff] }
 0x106   :  { %9686 = vmatmul.msk.bf16.gmra.mxu3 %vm103_vm1, %v11485_v48 }
 0x109   :  { %9646 = vmatmul.msk.bf16.gmra.mxu2 %vm103_vm1, %v11476_v21 }
 0x116   :  { %9687 = vmatmul.msk.bf16.gmra.mxu3 %vm103_vm1, %v11486_v52 }
 0x119   :  { %9647 = vmatmul.msk.bf16.gmra.mxu2 %vm103_vm1, %v11477_v31  ;;  %v11509_v31 = vld [vmem:[%s18556_s2 + $0x18] sm:$0xff] }
 0x123   :  { %v11856_v38 = vpop.permute.xlu2 %11855 }
 0x124   :  { %v11858_v27 = vunpack.i.h.bf16 %v11856_v38 }
 0x126   :  { %9688 = vmatmul.msk.bf16.gmra.mxu3 %vm103_vm1, %v11487_v24 }
 0x129   :  { %9648 = vmatmul.msk.bf16.gmra.mxu2 %vm103_vm1, %v11478_v32 }
 0x12b   :  { %v314_v29 = vpop.permute.xlu2 %313 }
 0x12c   :  { %v365_v46 = vsel %vm359_vm13, %v12531_v5, %v314_v29  ;;  %v11857_v5 = vunpack.i.l.bf16 %v11856_v38  ;;  %v11500_v38 = vld [vmem:[%s18556_s2 + $0x18] sm:$0xff] }
 0x12d   :  { %v12690_v1 = vsel %vm368_vm14, %v365_v46, %v11858_v27  ;;  %v11527_v27 = vld [vmem:[%s18556_s2 + $0x18] sm:$0xff]  ;;  %2023 = vmatpush.bf16.msrb.mxu0 %v11500_v38 }
 0x12e   :  { %383 = vst.msk [vmem:[#allocation2 + $0x70] sm:$0xff] %vm377_vm15, %v12690_v1  ;;  %v404_v21 = vrot.slane %v12690_v1, 1  ;;  %3436 = vmatpush.bf16.msrb.mxu3 %v11527_v27 }
 0x131   :  { %2024 = vmatpush.bf16.msrb.mxu0 %v11499_v51 }
 0x133   :  { %v312_v53 = vpop.permute.xlu1 %311  ;;  %v12719_v30 = vpop.permute.xlu2 %303 }
 0x134   :  { %v364_v40 = vsel %vm359_vm13, %v12515_v55, %v312_v53  ;;  %v2934_v53 = vunpack.c.l.b16 %v2888_v45  ;;  %v11508_v45 = vld [vmem:[%s18556_s2 + $0x10] sm:$0xff] }
 0x135   :  { %v12708_v36 = vsel %vm368_vm14, %v364_v40, %v11857_v5 }
 0x136   :  { %382 = vst.msk [vmem:[#allocation2 + $0x60] sm:$0xff] %vm377_vm15, %v12708_v36  ;;  %v402_v26 = vrot.slane %v12708_v36, 1  ;;  %v2940_v59 = vpack.c.b16 %v2934_v53, %v2934_v53  ;;  %v457_v63 = vrot.slane %v12708_v36, 2 }
 0x138   :  { %v405_v42 = vsel %vm394_vm0, %v402_v26, %v404_v21 }
 0x13b   :  { %v318_v9 = vpop.permute.xlu2 %317 }
 0x13c   :  { %v367_v25 = vsel %vm359_vm13, %v12600_v41, %v318_v9  ;;  %v646_v41 = vand.u32 2147483647, %v12738_v50 }
 0x13e   :  { %v654_v46 = vsub.f32 0.0, %v646_v41 }
 0x140   :  { %v665_v2 = vmul.f32 1.442695, %v654_v46 }
 0x142   :  { %12085 = vpow2.f32 %v665_v2 }
 0x144   :  { %v308_v55 = vpop.permute.xlu0 %307 }
 0x145   :  { %v362_v0 = vsel %vm359_vm13, %v12580_v15, %v308_v55 }
 0x148   :  { %v12895_v38 = vpop.eup %12085  ;;  %v824_v46 = vpop.permute.xlu2 %823 }
 0x149   :  { %v702_v51 = vadd.f32 1.0, %v12895_v38 }
 0x14a   :  { %v11851_v58 = vpop.permute.xlu1 %11850 }
 0x14b   :  { %v11852_v60 = vunpack.i.l.bf16 %v11851_v58  ;;  %v11853_v8 = vunpack.i.h.bf16 %v11851_v58  ;;  %v11526_v58 = vld [vmem:[%s18556_s2 + $0x10] sm:$0xff] }
 0x14c   :  { %v310_v12 = vpop.permute.xlu0 %309  ;;  %3437 = vmatpush.bf16.msrb.mxu3 %v11526_v58  ;;  %v705_v58 = vmul.f32 -0.5, %v12895_v38 }
 0x14d   :  { %v12731_v6 = vsel %vm368_vm14, %v362_v0, %v11852_v60  ;;  %v363_v15 = vsel %vm359_vm13, %v12582_v18, %v310_v12  ;;  %v625_v18 = vpop.f32.mrf.mxu1  ;;  %v11510_v12 = vld [vmem:[%s18556_s2 + $0x20] sm:$0xff] }
 0x14e   :  { %380 = vst.msk [vmem:[#allocation2 + $0x40] sm:$0xff] %vm377_vm15, %v12731_v6  ;;  %v453_v17 = vrot.slane %v12731_v6, 2  ;;  %v398_v19 = vrot.slane %v12731_v6, 1  ;;  %v12745_v16 = vsel %vm368_vm14, %v363_v15, %v11853_v8  ;;  %v12782_v43 = vadd.f32 %v12480_v13, %v625_v18  ;;  %v2417_v13 = vld [vmem:[%s18556_s2 + $0x28] sm:$0x1] }
 0x14f   :  { %v400_v4 = vrot.slane %v12745_v16, 1  ;;  %v455_v7 = vrot.slane %v12745_v16, 2  ;;  %381 = vst.msk [vmem:[#allocation2 + $0x50] sm:$0xff] %vm377_vm15, %v12745_v16  ;;  %v2463_v5 = vunpack.c.l.b16 %v2417_v13  ;;  %v2959_v8 = vand.u32 %v2940_v59, %v12382_v3  ;;  %v11497_v16 = vld [vmem:[%s18556_s2] sm:$0xff] }
 0x150   :  { %v647_v40 = vand.u32 2147483647, %v12782_v43  ;;  %v459_v18 = vrot.slane %v12690_v1, 2  ;;  %3438 = vmatpush.bf16.msrb.mxu3 %v11525_v56  ;;  %v708_v56 = vand.u32 2147483647, %v12895_v38 }
 0x151   :  { %v403_v34 = vsel %vm394_vm0, %v400_v4, %v402_v26  ;;  %v456_v35 = vsel %vm449_vm2, %v453_v17, %v455_v7  ;;  %v401_v37 = vsel %vm394_vm0, %v398_v19, %v400_v4  ;;  %v2469_v60 = vpack.c.b16 %v2463_v5, %v2463_v5  ;;  %2963 = vmatpush.bf16.msrb.mxu2 %v2959_v8  ;;  %v11493_v26 = vld [vmem:[%s18558_s0 + $0x80] sm:$0xff]  ;;  %v11494_v8 = vld [vmem:[%s18558_s0 + $0x88] sm:$0xff] }
 0x152   :  { %v11861_v20 = vpop.permute.xlu1 %11860  ;;  %418 = vrot.lane.b32.xlu0 %v403_v34, %s12337_s30  ;;  %471 = vrot.lane.b32.xlu1 %v456_v35, %s12338_s8  ;;  %v458_v36 = vsel %vm449_vm2, %v455_v7, %v457_v63  ;;  %v655_v49 = vsub.f32 0.0, %v647_v40  ;;  %v460_v41 = vsel %vm449_vm2, %v457_v63, %v459_v18  ;;  %v11520_v34 = vld [vmem:[%s18558_s0 + $0xe0] sm:$0xff]  ;;  %v11518_v35 = vld [vmem:[%s18556_s2 + $0x18] sm:$0xff]  ;;  %vm12989_vm3 = vcmp.lt.f32.partialorder %v708_v56, 0.0004427343 }
 0x153   :  { %v11863_v22 = vunpack.i.h.bf16 %v11861_v20  ;;  %v11862_v44 = vunpack.i.l.bf16 %v11861_v20  ;;  %416 = vrot.lane.b32.xlu2 %v401_v37, %s12337_s30  ;;  %v2488_v62 = vand.u32 %v2469_v60, %v12382_v3  ;;  %v11523_v56 = vld [vmem:[%s18558_s0 + $0xf8] sm:$0xff] }
 0x154   :  { %v316_v29 = vpop.permute.xlu0 %315  ;;  %v667_v23 = vmul.f32 1.442695, %v655_v49 }
 0x155   :  { %v12762_v33 = vsel %vm368_vm14, %v367_v25, %v11863_v22  ;;  %v366_v47 = vsel %vm359_vm13, %v12609_v28, %v316_v29  ;;  %v360_v28 = vsel %vm359_vm13, %v12578_v14, %v12719_v30  ;;  %v11498_v30 = vld [vmem:[%s18556_s2 + $0x8] sm:$0xff]  ;;  %2492 = vmatpush.bf16.msra.mxu1 %v2488_v62  ;;  %v11524_v25 = vld [vmem:[%s18556_s2] sm:$0xff]  ;;  %2964 = vmatpush.bf16.msrb.mxu2 %v11519_v54 }
 0x156   :  { %385 = vst.msk [vmem:[#allocation2 + $0x90] sm:$0xff] %vm377_vm15, %v12762_v33  ;;  %v12808_v52 = vsel %vm368_vm14, %v366_v47, %v11862_v44  ;;  %2025 = vmatpush.bf16.msrb.mxu0 %v11498_v30  ;;  %12087 = vpow2.f32 %v667_v23  ;;  %3439 = vmatpush.bf16.msrb.mxu3 %v11524_v25  ;;  %v408_v5 = vrot.slane %v12762_v33, 1  ;;  %v3830_v23 = vld [vmem:[%s18556_s2 + $0x28] sm:$0x1] }
 0x157   :  { %v406_v57 = vrot.slane %v12808_v52, 1  ;;  %384 = vst.msk [vmem:[#allocation2 + $0x80] sm:$0xff] %vm377_vm15, %v12808_v52  ;;  %v461_v15 = vrot.slane %v12808_v52, 2  ;;  %12089 = vlog2.f32 %v702_v51 }
 0x159   :  { %v407_v14 = vsel %vm394_vm0, %v404_v21, %v406_v57  ;;  %2493 = vmatpush.bf16.msra.mxu1 %v11510_v12  ;;  %9845 = vmatmul.msk.bf16.vlgmr.msrb.gmra.mxu3 %vm103_vm1, %v11520_v34  ;;  %v11507_v21 = vld [vmem:[%s18556_s2 + $0x8] sm:$0xff] }
 0x15a   :  { %v12801_v48 = vpop.permute.xlu1 %11865  ;;  %420 = vrot.lane.b32.xlu0 %v405_v42, %s12337_s30  ;;  %422 = vrot.lane.b32.xlu1 %v407_v14, %s12337_s30  ;;  %v11506_v14 = vld [vmem:[%s18556_s2] sm:$0xff]  ;;  %v11521_v12 = vld [vmem:[%s18558_s0 + $0xe8] sm:$0xff] }
 0x15b   :  { %v11868_v55 = vunpack.i.h.bf16 %v12801_v48  ;;  %473 = vrot.lane.b32.xlu2 %v458_v36, %s12338_s8  ;;  %2026 = vmatpush.bf16.msrb.mxu0 %v11497_v16  ;;  %v11867_v44 = vunpack.i.l.bf16 %v12801_v48  ;;  %v463_v36 = vrot.slane %v12762_v33, 2  ;;  %v11511_v33 = vld [vmem:[%s18558_s0 + $0xc0] sm:$0xff] }
 0x15c   :  { %v306_v9 = vpop.permute.xlu0 %305  ;;  %2965 = vmatpush.bf16.msrb.mxu2 %v11518_v35 }
 0x15d   :  { %v12823_v0 = vsel %vm368_vm14, %v360_v28, %v11868_v55  ;;  %v361_v24 = vsel %vm359_vm13, %v12629_v10, %v306_v9  ;;  %v462_v10 = vsel %vm449_vm2, %v459_v18, %v461_v15  ;;  %2494 = vmatpush.bf16.msra.mxu1 %v11509_v31  ;;  %v11516_v55 = vld [vmem:[%s18556_s2 + $0x8] sm:$0xff]  ;;  %v409_v28 = vsel %vm394_vm0, %v406_v57, %v408_v5  ;;  %v11515_v57 = vld [vmem:[%s18556_s2] sm:$0xff] }
 0x15e   :  { %18622 = vst [vmem:[#allocation3_spill] sm:$0xff] %v12823_v0  ;;  %v18565_v1 = vrot.slane %v12823_v0, 1  ;;  %9725 = vmatmul.msk.bf16.vlgmr.msrb.gmra.mxu0 %vm103_vm1, %v11493_v26  ;;  %v11502_v9 = vld [vmem:[%s18558_s0 + $0xa0] sm:$0xff]  ;;  %v18566_v32 = vrot.slane %v12823_v0, 2 }
 0x15f   :  { %378 = vst.msk [vmem:[#allocation2 + $0x20] sm:$0xff] %vm377_vm15, %v12823_v0  ;;  %v11529_v18 = vld [vmem:[%s18558_s0 + $0x100] sm:$0xff] }
 0x161   :  { %2495 = vmatpush.bf16.msra.mxu1 %v11508_v45 }
 0x162   :  { %v12850_v20 = vpop.permute.xlu1 %11870  ;;  %477 = vrot.lane.b32.xlu0 %v462_v10, %s12338_s8 }
 0x163   :  { %v11872_v22 = vunpack.i.l.bf16 %v12850_v20  ;;  %475 = vrot.lane.b32.xlu2 %v460_v41, %s12338_s8  ;;  %v11873_v59 = vunpack.i.h.bf16 %v12850_v20  ;;  %v464_v20 = vsel %vm449_vm2, %v461_v15, %v463_v36  ;;  %v3876_v15 = vunpack.c.l.b16 %v3830_v23  ;;  %v11542_v23 = vld [vmem:[%s18559_s4] sm:$0xff] }
 0x164   :  { %v788_v27 = vpop.permute.xlu0 %787 }
 0x165   :  { %v12863_v4 = vsel %vm368_vm14, %v361_v24, %v11872_v22  ;;  %v843_v29 = vsel %vm359_vm13, %v12620_v61, %v788_v27  ;;  %v11517_v61 = vld [vmem:[%s18556_s2 + $0x10] sm:$0xff]  ;;  %2496 = vmatpush.bf16.msra.mxu1 %v11507_v21  ;;  %v4301_v24 = vld [vmem:[%s18559_s4 + $0x28] sm:$0x1]  ;;  %v3882_v31 = vpack.c.b16 %v3876_v15, %v3876_v15  ;;  %v11505_v15 = vld [vmem:[%s18558_s0 + $0xb8] sm:$0xff] }
 0x166   :  { %v396_v7 = vrot.slane %v12863_v4, 1  ;;  %379 = vst.msk [vmem:[#allocation2 + $0x30] sm:$0xff] %vm377_vm15, %v12863_v4  ;;  %v12907_v47 = vsel %vm368_vm14, %v843_v29, %v11867_v44  ;;  %2966 = vmatpush.bf16.msrb.mxu2 %v11517_v61  ;;  %v451_v52 = vrot.slane %v12863_v4, 2  ;;  %v4343_v25 = vunpack.c.l.b16 %v4301_v24  ;;  %v11503_v21 = vld [vmem:[%s18558_s0 + $0xa8] sm:$0xff] }
 0x167   :  { %859 = vst.msk [vmem:[#allocation2 + $0xa0] sm:$0xff] %vm377_vm15, %v12907_v47  ;;  %v875_v40 = vrot.slane %v12907_v47, 1  ;;  %v926_v62 = vrot.slane %v12907_v47, 2  ;;  %v3901_v44 = vand.u32 %v3882_v31, %v12382_v3  ;;  %v638_v29 = vmax.f32 %v12738_v50, 0.0  ;;  %v11537_v50 = vld [vmem:[%s18556_s2 + $0x20] sm:$0xff]  ;;  %v11560_v24 = vld [vmem:[%s18560_s5 + $0x68] sm:$0xff] }
 0x168   :  { %v397_v37 = vsel %vm394_vm0, %v18565_v1, %v396_v7  ;;  %v4349_v41 = vpack.c.b16 %v4343_v25, %v4343_v25  ;;  %v399_v45 = vsel %vm394_vm0, %v396_v7, %v398_v19  ;;  %v639_v61 = vmax.f32 %v12782_v43, 0.0  ;;  %v11546_v19 = vld [vmem:[%s18559_s4 + $0x20] sm:$0xff]  ;;  %v11514_v25 = vld [vmem:[%s18558_s0 + $0xd8] sm:$0xff] }
 0x169   :  { %412 = vrot.lane.b32.xlu1 %v397_v37, %s12337_s30  ;;  %2497 = vmatpush.bf16.msra.mxu1 %v11506_v14  ;;  %v11558_v31 = vld [vmem:[%s18560_s5 + $0x58] sm:$0xff] }
 0x16a   :  { %v792_v13 = vpop.permute.xlu1 %791  ;;  %890 = vrot.lane.b32.xlu0 %v875_v40, %s12337_s30  ;;  %2967 = vmatpush.bf16.msrb.mxu2 %v11516_v55  ;;  %v4368_v27 = vand.u32 %v4349_v41, %v12382_v3  ;;  %v11512_v55 = vld [vmem:[%s18558_s0 + $0xc8] sm:$0xff]  ;;  %v11557_v41 = vld [vmem:[%s18560_s5 + $0x50] sm:$0xff] }
 0x16b   :  { %v845_v48 = vsel %vm359_vm13, %v12633_v11, %v792_v13  ;;  %v12925_v11 = vpop.eup %12087  ;;  %426 = vrot.lane.b32.xlu2 %v408_v5, %s12337_s30  ;;  %9846 = vmatmul.msk.bf16.gmra.mxu3 %vm103_vm1, %v11521_v12  ;;  %v11495_v5 = vld [vmem:[%s18558_s0 + $0x90] sm:$0xff]  ;;  %v11562_v12 = vld [vmem:[%s18560_s5 + $0x78] sm:$0xff] }
 0x16c   :  { %v12918_v53 = vsel %vm368_vm14, %v845_v48, %v824_v46  ;;  %v711_v60 = vadd.f32 1.0, %v12925_v11  ;;  %v790_v63 = vpop.permute.xlu0 %789  ;;  %v714_v2 = vmul.f32 -0.5, %v12925_v11  ;;  %v12090_v49 = vpop.eup %12089  ;;  %9765 = vmatmul.msk.bf16.vlgmr.msra.gmra.mxu1 %vm103_vm1, %v11502_v9  ;;  %v717_v10 = vand.u32 2147483647, %v12925_v11  ;;  %3905 = vmatpush.bf16.msra.mxu0 %v3901_v44  ;;  %v11535_v9 = vld [vmem:[%s18556_s2 + $0x10] sm:$0xff]  ;;  %v11530_v44 = vld [vmem:[%s18558_s0 + $0x108] sm:$0xff] }
 0x16d   :  { %861 = vst.msk [vmem:[#allocation2 + $0xc0] sm:$0xff] %vm377_vm15, %v12918_v53  ;;  %v844_v42 = vsel %vm359_vm13, %v12631_v39, %v790_v63  ;;  %v706_v39 = vadd.f32 1.0, %v705_v58  ;;  %v704_v16 = vmul.f32 0.6931472, %v12090_v49  ;;  %v454_v46 = vsel %vm449_vm2, %v451_v52, %v453_v17  ;;  %11832 = vmatpush.bf16.msra.mxu3 %v4368_v27  ;;  %4372 = vmatpush.bf16.msrb.mxu1 %v4368_v27  ;;  %v11522_v58 = vld [vmem:[%s18558_s0 + $0xf0] sm:$0xff]  ;;  %v11538_v27 = vld [vmem:[%s18561_s1] sm:$0xff] }
 0x16e   :  { %v12950_v30 = vsel %vm368_vm14, %v844_v42, %v11873_v59  ;;  %12091 = vlog2.f32 %v711_v60  ;;  %2968 = vmatpush.bf16.msrb.mxu2 %v11515_v57  ;;  %v715_v54 = vadd.f32 1.0, %v714_v2  ;;  %9726 = vmatmul.msk.bf16.gmra.mxu0 %vm103_vm1, %v11494_v8  ;;  %vm13008_vm4 = vcmp.lt.f32.partialorder %v717_v10, 0.0004427343  ;;  %v11536_v57 = vld [vmem:[%s18556_s2 + $0x18] sm:$0xff]  ;;  %v11504_v8 = vld [vmem:[%s18558_s0 + $0xb0] sm:$0xff] }
 0x16f   :  { %860 = vst.msk [vmem:[#allocation2 + $0xb0] sm:$0xff] %vm377_vm15, %v12950_v30  ;;  %v707_v22 = vmul.f32 %v12895_v38, %v706_v39  ;;  %v452_v38 = vsel %vm449_vm2, %v18566_v32, %v451_v52  ;;  %v876_v17 = vrot.slane %v12950_v30, 1  ;;  %v878_v4 = vrot.slane %v12918_v53, 1  ;;  %v11545_v2 = vld [vmem:[%s18559_s4 + $0x18] sm:$0xff]  ;;  %v11563_v39 = vld [vmem:[%s18560_s5 + $0x80] sm:$0xff]  ;;  %v11513_v49 = vld [vmem:[%s18558_s0 + $0xd0] sm:$0xff] }
 0x170   :  { %v716_v35 = vmul.f32 %v12925_v11, %v715_v54  ;;  %v927_v7 = vrot.slane %v12950_v30, 2  ;;  %3906 = vmatpush.bf16.msra.mxu0 %v11537_v50  ;;  %v11534_v54 = vld [vmem:[%s18556_s2 + $0x8] sm:$0xff]  ;;  %v11559_v52 = vld [vmem:[%s18560_s5 + $0x60] sm:$0xff]  ;;  %v13181_v50 = vpop.f32.mrf.mxu1 }
 0x171   :  { %424 = vrot.lane.b32.xlu1 %v409_v28, %s12337_s30  ;;  %9805 = vmatmul.msk.bf16.vlgmr.msrb.gmra.mxu2 %vm103_vm1, %v11511_v33  ;;  %v710_v34 = vsel %vm12989_vm3, %v707_v22, %v704_v16  ;;  %v879_v11 = vsel %vm394_vm0, %v876_v17, %v878_v4  ;;  %v877_v28 = vsel %vm394_vm0, %v875_v40, %v876_v17  ;;  %v929_v40 = vrot.slane %v12918_v53, 2  ;;  %v11544_v33 = vld [vmem:[%s18559_s4 + $0x10] sm:$0xff]  ;;  %v11533_v22 = vld [vmem:[%s18556_s2] sm:$0xff] }
 0x172   :  { %941 = vrot.lane.b32.xlu0 %v926_v62, %s12338_s8  ;;  %v750_v48 = vadd.f32 %v710_v34, %v638_v29  ;;  %11833 = vmatpush.bf16.msra.mxu3 %v11546_v19  ;;  %v928_v60 = vsel %vm449_vm2, %v926_v62, %v927_v7  ;;  %v11561_v16 = vld [vmem:[%s18560_s5 + $0x70] sm:$0xff] }
 0x173   :  { %481 = vrot.lane.b32.xlu2 %v463_v36, %s12338_s8  ;;  %4373 = vmatpush.bf16.msrb.mxu1 %v11546_v19  ;;  %v930_v14 = vsel %vm449_vm2, %v927_v7, %v929_v40  ;;  %v11496_v36 = vld [vmem:[%s18558_s0 + $0x98] sm:$0xff]  ;;  %v11539_v19 = vld [vmem:[%s18561_s1 + $0x8] sm:$0xff] }
 0x174   :  { %v12092_v26 = vpop.eup %12091  ;;  %v758_v51 = vpack.c.bf16 %v750_v48, %v750_v48  ;;  %3907 = vmatpush.bf16.msra.mxu0 %v11536_v57  ;;  %4532 = vmatpush.bf16.msra.mxu2 %v11563_v39  ;;  %v11554_v7 = vld [vmem:[%s18560_s5 + $0x38] sm:$0xff] }
 0x175   :  { %v713_v37 = vmul.f32 0.6931472, %v12092_v26  ;;  %v11541_v26 = vld [vmem:[%s18561_s1 + $0x18] sm:$0xff] }
 0x176   :  { %v13058_v59 = vunpack.c.l.bf16 %v758_v51  ;;  %11834 = vmatpush.bf16.msra.mxu3 %v11545_v2 }
 0x177   :  { %v719_v6 = vsel %vm13008_vm4, %v716_v35, %v713_v37  ;;  %4374 = vmatpush.bf16.msrb.mxu1 %v11545_v2  ;;  %v11564_v35 = vld [vmem:[%s18560_s5 + $0x88] sm:$0xff] }
 0x178   :  { %v751_v43 = vadd.f32 %v719_v6, %v639_v61  ;;  %v774_v47 = vsub.f32 %v750_v48, %v13058_v59  ;;  %3908 = vmatpush.bf16.msra.mxu0 %v11535_v9  ;;  %4533 = vmatpush.bf16.msra.mxu2 %v11562_v12  ;;  %v11531_v61 = vld [vmem:[%s18558_s0 + $0x110] sm:$0xff]  ;;  %v11551_v9 = vld [vmem:[%s18560_s5 + $0x20] sm:$0xff] }
 0x179   :  { %479 = vrot.lane.b32.xlu1 %v464_v20, %s12338_s8  ;;  %v11543_v20 = vld [vmem:[%s18559_s4 + $0x8] sm:$0xff]  ;;  %v13147_v10 = vpop.f32.mrf.mxu3  ;;  %v13240_v12 = vld [vmem:[%s18557_s3] ss:$0 sm:$0xff] }
 0x17a   :  { %467 = vrot.lane.b32.xlu0 %v452_v38, %s12338_s8  ;;  %v759_v63 = vpack.c.bf16 %v751_v43, %v751_v43  ;;  %11835 = vmatpush.bf16.msra.mxu3 %v11544_v33  ;;  %v11556_v38 = vld [vmem:[%s18560_s5 + $0x48] sm:$0xff] }
 0x17b   :  { %414 = vrot.lane.b32.xlu2 %v399_v45, %s12337_s30  ;;  %9847 = vmatmul.msk.bf16.gmra.mxu3 %vm103_vm1, %v11522_v58 }
 0x17c   :  { %9766 = vmatmul.msk.bf16.gmra.mxu1 %vm103_vm1, %v11503_v21  ;;  %v13066_v42 = vunpack.c.l.bf16 %v759_v63  ;;  %3909 = vmatpush.bf16.msra.mxu0 %v11534_v54  ;;  %v13183_v48 = vpop.f32.mrf.mxu2  ;;  %v11552_v63 = vld [vmem:[%s18560_s5 + $0x28] sm:$0xff]  ;;  %v11532_v54 = vld [vmem:[%s18558_s0 + $0x118] sm:$0xff] }
 0x17d   :  { %4375 = vmatpush.bf16.msrb.mxu1 %v11544_v33  ;;  %4534 = vmatpush.bf16.msra.mxu2 %v11561_v16 }
 0x17e   :  { %9727 = vmatmul.msk.bf16.gmra.mxu0 %vm103_vm1, %v11495_v5  ;;  %v775_v30 = vsub.f32 %v751_v43, %v13066_v42  ;;  %v11874_v62 = vpack.i.bf16 %v13066_v42, %v13058_v59  ;;  %11836 = vmatpush.bf16.msra.mxu3 %v11543_v20  ;;  %v12026_v5 = vld [vmem:[%s18557_s3] ss:$0 sm:$0xff] }
 0x180   :  { %3910 = vmatpush.bf16.msra.mxu0 %v11533_v22 }
 0x181   :  { %469 = vrot.lane.b32.xlu1 %v454_v46, %s12338_s8  ;;  %9806 = vmatmul.msk.bf16.gmra.mxu2 %vm103_vm1, %v11512_v55  ;;  %v13158_v34 = vpop.f32.mrf.mxu3  ;;  %v630_v55 = vpop.f32.mrf.mxu1 }
 0x182   :  { %894 = vrot.lane.b32.xlu0 %v879_v11, %s12337_s30  ;;  %4376 = vmatpush.bf16.msrb.mxu1 %v11543_v20  ;;  %v11553_v11 = vld [vmem:[%s18560_s5 + $0x30] sm:$0xff] }
 0x183   :  { %892 = vrot.lane.b32.xlu2 %v877_v28, %s12337_s30  ;;  %11837 = vmatpush.bf16.msra.mxu3 %v11542_v23  ;;  %v11540_v20 = vld [vmem:[%s18561_s1 + $0x10] sm:$0xff] }
 0x184   :  { %4535 = vmatpush.bf16.msra.mxu2 %v11560_v24  ;;  %4647 = vmatpush.bf16.msrb.mxu0 %v11554_v7  ;;  %v13209_v28 = vpop.f32.mrf.mxu2 }
 0x186   :  { %4377 = vmatpush.bf16.msrb.mxu1 %v11542_v23  ;;  %v11550_v23 = vld [vmem:[%s18560_s5 + $0x18] sm:$0xff] }
 0x187   :  { %4568 = vmatpush.bf16.msrb.mxu3 %v11564_v35 }
 0x188   :  { %4536 = vmatpush.bf16.msra.mxu2 %v11559_v52  ;;  %4648 = vmatpush.bf16.msrb.mxu0 %v11553_v11 }
 0x189   :  { %943 = vrot.lane.b32.xlu1 %v928_v60, %s12338_s8  ;;  %v13174_v29 = vpop.f32.mrf.mxu3  ;;  %v632_v33 = vpop.f32.mrf.mxu1 }
 0x18a   :  { %793 = vrot.lane.b32.xlu0 %v774_v47, %s12335_s22  ;;  %v12329_v47 = vld [vmem:[%s18557_s3] ss:$0 sm:$0xff] }
 0x18b   :  { %945 = vrot.lane.b32.xlu2 %v930_v14, %s12338_s8  ;;  %9848 = vmatmul.msk.bf16.gmra.mxu3 %vm103_vm1, %v11523_v56  ;;  %v13217_v14 = vadd.f32 %v12329_v47, %v630_v55  ;;  %v13254_v52 = vadd.f32 %v12329_v47, %v632_v33 }
 0x18c   :  { %9767 = vmatmul.msk.bf16.gmra.mxu1 %vm103_vm1, %v11504_v8  ;;  %4537 = vmatpush.bf16.msra.mxu2 %v11558_v31  ;;  %v1091_v22 = vpop.f32.mrf.mxu2  ;;  %v11549_v31 = vld [vmem:[%s18560_s5 + $0x10] sm:$0xff] }
 0x18d   :  { %4649 = vmatpush.bf16.msrb.mxu0 %v11552_v63  ;;  %v649_v56 = vand.u32 2147483647, %v13217_v14  ;;  %v11571_v63 = vld [vmem:[%s18560_s5 + $0xc0] sm:$0xff] }
 0x18e   :  { %9728 = vmatmul.msk.bf16.gmra.mxu0 %vm103_vm1, %v11496_v36 }
 0x18f   :  { %v657_v24 = vsub.f32 0.0, %v649_v56  ;;  %v11570_v56 = vld [vmem:[%s18560_s5 + $0xb8] sm:$0xff] }
 0x190   :  { %4538 = vmatpush.bf16.msra.mxu2 %v11557_v41  ;;  %v13267_v41 = vadd.f32 %v12329_v47, %v13181_v50  ;;  %v11572_v50 = vld [vmem:[%s18560_s5 + $0xc8] sm:$0xff] }
 0x191   :  { %795 = vrot.lane.b32.xlu1 %v775_v30, %s12335_s22  ;;  %9807 = vmatmul.msk.bf16.gmra.mxu2 %vm103_vm1, %v11513_v49  ;;  %v13178_v45 = vpop.f32.mrf.mxu3  ;;  %v671_v35 = vmul.f32 1.442695, %v657_v24  ;;  %v11569_v24 = vld [vmem:[%s18560_s5 + $0xb0] sm:$0xff] }
 0x192   :  { %4650 = vmatpush.bf16.msrb.mxu0 %v11551_v9 }
 0x193   :  { %11875 = vrot.lane.b32.xlu2 %v11874_v62, %s12336_s23  ;;  %12093 = vpow2.f32 %v671_v35  ;;  %v13329_v35 = vadd.f32 %v13240_v12, %v13209_v28 }
 0x194   :  { %4539 = vmatpush.bf16.msra.mxu2 %v11556_v38  ;;  %v650_v38 = vand.u32 2147483647, %v13254_v52  ;;  %v1093_v11 = vpop.f32.mrf.mxu2 }
 0x196   :  { %4651 = vmatpush.bf16.msrb.mxu0 %v11550_v23 }
 0x198   :  { %4814 = vmatpush.bf16.msrb.mxu2 %v11572_v50 }
 0x199   :  { %v1567_v43 = vpop.f32.mrf.mxu3 }
 0x19a   :  { %v13207_v21 = vadd.f32 %v12026_v5, %v1567_v43  ;;  %4652 = vmatpush.bf16.msrb.mxu0 %v11549_v31 }
 0x19b   :  { %9928 = vmatmul.msk.bf16.vlgmr.msra.gmra.mxu3 %vm103_vm1, %v11541_v26 }
 0x19c   :  { %9768 = vmatmul.msk.bf16.gmra.mxu1 %vm103_vm1, %v11505_v15  ;;  %4815 = vmatpush.bf16.msrb.mxu2 %v11571_v63  ;;  %v1096_v23 = vpop.f32.mrf.mxu2 }
 0x19e   :  { %9885 = vmatmul.msk.bf16.vlgmr.msra.gmra.mxu0 %vm103_vm1, %v11529_v18 }
 0x1a0   :  { %4816 = vmatpush.bf16.msrb.mxu2 %v11570_v56 }
 0x1a1   :  { %9808 = vmatmul.msk.bf16.gmra.mxu2 %vm103_vm1, %v11514_v25  ;;  %v13224_v8 = vpop.f32.mrf.mxu3  ;;  %v13259_v25 = vadd.f32 %v13240_v12, %v13183_v48  ;;  %v11548_v48 = vld [vmem:[%s18560_s5 + $0x8] sm:$0xff] }
 0x1a2   :  { %4653 = vmatpush.bf16.msrb.mxu0 %v11548_v48 }
 0x1a4   :  { %4817 = vmatpush.bf16.msrb.mxu2 %v11569_v24 }
 0x1a9   :  { %v1572_v26 = vpop.f32.mrf.mxu3 }
 0x1ac   :  { %9925 = vmatmul.msk.bf16.vlgmr.msrb.gmra.mxu1 %vm103_vm1, %v11538_v27 }
 0x1ad   :  { %v417_v37 = vpop.permute.xlu2 %416 }
 0x1ae   :  { %442 = vst.msk [vmem:[#allocation2 + $0x40] sm:$0xff] %vm439_vm5, %v417_v37  ;;  %9886 = vmatmul.msk.bf16.gmra.mxu0 %vm103_vm1, %v11530_v44  ;;  %v13269_v37 = vadd.f32 %v12026_v5, %v1572_v26  ;;  %v1114_v44 = vand.u32 2147483647, %v13259_v25 }
 0x1b0   :  { %v1122_v55 = vsub.f32 0.0, %v1114_v44 }
 0x1b5   :  { %v474_v13 = vpop.permute.xlu2 %473 }
 0x1b6   :  { %504 = vst.msk [vmem:[#allocation2 + $0x58] sm:$0xff] %vm359_vm13, %v474_v13 }
 0x1bc   :  { %9926 = vmatmul.msk.bf16.gmra.mxu1 %vm103_vm1, %v11539_v19 }
 0x1bd   :  { %v476_v46 = vpop.permute.xlu2 %475  ;;  %v4406_v39 = vld [vmem:[#allocation2 + $0x58] sm:$0xff] }
 0x1be   :  { %506 = vst.msk [vmem:[#allocation2 + $0x68] sm:$0xff] %vm359_vm13, %v476_v46  ;;  %9887 = vmatmul.msk.bf16.gmra.mxu0 %vm103_vm1, %v11531_v61  ;;  %v648_v61 = vand.u32 2147483647, %v13267_v41 }
 0x1c0   :  { %v656_v47 = vsub.f32 0.0, %v648_v61 }
 0x1c2   :  { %v669_v9 = vmul.f32 1.442695, %v656_v47  ;;  %v13350_v47 = vpop.f32.mrf.mxu3 }
 0x1c4   :  { %v419_v6 = vpop.permute.xlu0 %418  ;;  %v472_v17 = vpop.permute.xlu1 %471 }
 0x1c5   :  { %443 = vst.msk [vmem:[#allocation2 + $0x50] sm:$0xff] %vm439_vm5, %v419_v6  ;;  %v427_v51 = vpop.permute.xlu2 %426  ;;  %v4408_v6 = vld [vmem:[#allocation2 + $0x68] sm:$0xff] }
 0x1c6   :  { %503 = vst.msk [vmem:[#allocation2 + $0x50] sm:$0xff] %vm496_vm6, %v474_v13 }
 0x1c7   :  { %501 = vst.msk [vmem:[#allocation2 + $0x40] sm:$0xff] %vm496_vm6, %v472_v17 }
 0x1c8   :  { %502 = vst.msk [vmem:[#allocation2 + $0x48] sm:$0xff] %vm359_vm13, %v472_v17 }
 0x1c9   :  { %448 = vst.msk [vmem:[#allocation2 + $0x90] sm:$0x7f] %vm447_vm7, %v427_v51  ;;  %v658_v51 = vsub.f32 0.0, %v650_v38 }
 0x1cc   :  { %v421_v58 = vpop.permute.xlu0 %420  ;;  %v423_v60 = vpop.permute.xlu1 %422  ;;  %9927 = vmatmul.msk.bf16.gmra.mxu1 %vm103_vm1, %v11540_v20 }
 0x1cd   :  { %444 = vst.msk [vmem:[#allocation2 + $0x60] sm:$0xff] %vm439_vm5, %v421_v58  ;;  %v482_v30 = vpop.permute.xlu2 %481  ;;  %v4405_v57 = vld [vmem:[#allocation2 + $0x50] sm:$0xff]  ;;  %v11547_v58 = vld [vmem:[%s18560_s5] sm:$0xff] }
 0x1ce   :  { %505 = vst.msk [vmem:[#allocation2 + $0x60] sm:$0xff] %vm496_vm6, %v476_v46  ;;  %v4403_v2 = vld [vmem:[#allocation2 + $0x40] sm:$0xff]  ;;  %9888 = vmatmul.msk.bf16.gmra.mxu0 %vm103_vm1, %v11532_v54 }
 0x1cf   :  { %445 = vst.msk [vmem:[#allocation2 + $0x70] sm:$0xff] %vm439_vm5, %v423_v60  ;;  %v4404_v36 = vld [vmem:[#allocation2 + $0x48] sm:$0xff]  ;;  %v13222_v62 = vpack.c.bf16 %v4405_v57, %v4403_v2  ;;  %v11555_v60 = vld [vmem:[%s18560_s5 + $0x40] sm:$0xff]  ;;  %v673_v57 = vmul.f32 1.442695, %v658_v51  ;;  %v13302_v2 = vpop.eup %12093  ;;  %4654 = vmatpush.bf16.msrb.mxu0 %v11547_v58 }
 0x1d0   :  { %512 = vst.msk [vmem:[#allocation2 + $0x90] sm:$0x3f] %vm511_vm8, %v482_v30  ;;  %v13227_v49 = vpack.c.bf16 %v4406_v39, %v4404_v36  ;;  %4683 = vmatpush.bf16.msra.mxu1 %v11555_v60  ;;  %v1130_v36 = vmul.f32 1.442695, %v1122_v55  ;;  %v729_v20 = vadd.f32 1.0, %v13302_v2 }
 0x1d1   :  { %514 = vst.msk [vmem:[#allocation2 + $0x98] sm:$0x3f] %vm513_vm9, %v482_v30  ;;  %4540 = vmatmul.bf16.vlgmr.msra.gmra.mxu2 %v13222_v62  ;;  %v13298_v30 = vadd.f32 %v13240_v12, %v1091_v22  ;;  %12095 = vpow2.f32 %v673_v57  ;;  %v13316_v22 = vadd.f32 %v13240_v12, %v1093_v11  ;;  %v735_v48 = vand.u32 2147483647, %v13302_v2  ;;  %v11567_v57 = vld [vmem:[%s18560_s5 + $0xa0] sm:$0xff] }
 0x1d2   :  { %9983 = vmatmul.msk.bf16.vlgmr.msrb.gmra.mxu3 %vm359_vm13, %v13227_v49  ;;  %12097 = vpow2.f32 %v1130_v36  ;;  %v1115_v11 = vand.u32 2147483647, %v13329_v35 }
 0x1d3   :  { %v1116_v33 = vand.u32 2147483647, %v13298_v30  ;;  %12099 = vpow2.f32 %v669_v9  ;;  %v1117_v26 = vand.u32 2147483647, %v13316_v22  ;;  %v13359_v9 = vpop.f32.mrf.mxu2  ;;  %vm13368_vm3 = vcmp.lt.f32.partialorder %v735_v48, 0.0004427343 }
 0x1d4   :  { %v478_v16 = vpop.permute.xlu0 %477  ;;  %12101 = vlog2.f32 %v729_v20 }
 0x1d5   :  { %507 = vst.msk [vmem:[#allocation2 + $0x70] sm:$0xff] %vm496_vm6, %v478_v16  ;;  %v415_v18 = vpop.permute.xlu2 %414  ;;  %v4407_v27 = vld [vmem:[#allocation2 + $0x60] sm:$0xff] }
 0x1d6   :  { %508 = vst.msk [vmem:[#allocation2 + $0x78] sm:$0xff] %vm359_vm13, %v478_v16 }
 0x1d7   :  { %441 = vst.msk [vmem:[#allocation2 + $0x30] sm:$0xff] %vm439_vm5, %v415_v18  ;;  %v1124_v18 = vsub.f32 0.0, %v1116_v33  ;;  %v13325_v31 = vpop.eup %12095 }
 0x1d8   :  { %v13331_v44 = vpop.eup %12097  ;;  %v738_v28 = vadd.f32 1.0, %v13325_v31  ;;  %v741_v56 = vmul.f32 -0.5, %v13325_v31 }
 0x1d9   :  { %v13339_v61 = vpop.eup %12099 }
 0x1da   :  { %v12102_v51 = vpop.eup %12101  ;;  %v720_v36 = vadd.f32 1.0, %v13339_v61 }
 0x1db   :  { %v413_v15 = vpop.permute.xlu1 %412  ;;  %v731_v33 = vmul.f32 0.6931472, %v12102_v51  ;;  %v13366_v24 = vpop.f32.mrf.mxu0 }
 0x1dc   :  { %440 = vst.msk [vmem:[#allocation2 + $0x20] sm:$0xff] %vm439_vm5, %v413_v15  ;;  %v891_v13 = vpop.permute.xlu0 %890  ;;  %v4409_v46 = vld [vmem:[#allocation2 + $0x70] sm:$0xff]  ;;  %v732_v15 = vmul.f32 -0.5, %v13302_v2 }
 0x1dd   :  { %917 = vst.msk [vmem:[#allocation2 + $0x90] sm:$0x80] %vm437_vm10, %v891_v13  ;;  %v893_v19 = vpop.permute.xlu2 %892  ;;  %v4410_v17 = vld [vmem:[#allocation2 + $0x78] sm:$0xff]  ;;  %v13281_v7 = vpack.c.bf16 %v4409_v46, %v4407_v27  ;;  %v1134_v27 = vmul.f32 1.442695, %v1124_v18  ;;  %v11568_v13 = vld [vmem:[%s18560_s5 + $0xa8] sm:$0xff] }
 0x1de   :  { %918 = vst.msk [vmem:[#allocation2 + $0xa0] sm:$0xff] %vm439_vm5, %v893_v19  ;;  %v13284_v43 = vpack.c.bf16 %v4410_v17, %v4408_v6  ;;  %v733_v46 = vadd.f32 1.0, %v732_v15  ;;  %v1125_v19 = vsub.f32 0.0, %v1117_v26  ;;  %4818 = vmatpush.bf16.msrb.mxu2 %v11568_v13  ;;  %v1149_v18 = vmul.f32 -0.5, %v13331_v44 }
 0x1df   :  { %12103 = vpow2.f32 %v1134_v27  ;;  %v1123_v15 = vsub.f32 0.0, %v1115_v11  ;;  %v641_v27 = vmax.f32 %v13217_v14, 0.0  ;;  %v742_v13 = vadd.f32 1.0, %v741_v56 }
 0x1e0   :  { %12105 = vlog2.f32 %v738_v28  ;;  %v1136_v20 = vmul.f32 1.442695, %v1125_v19 }
 0x1e1   :  { %4545 = vmatmul.bf16.gmra.mxu2 %v13281_v7  ;;  %v1132_v11 = vmul.f32 1.442695, %v1123_v15 }
 0x1e2   :  { %9984 = vmatmul.msk.bf16.gmra.mxu3 %vm359_vm13, %v13284_v43  ;;  %4819 = vmatpush.bf16.msrb.mxu2 %v11567_v57  ;;  %v11573_v57 = vld [vmem:[%s18560_s5 + $0xd0] sm:$0xff] }
 0x1e3   :  { %v425_v5 = vpop.permute.xlu1 %424  ;;  %4850 = vmatpush.bf16.msra.mxu3 %v11573_v57 }
 0x1e4   :  { %446 = vst.msk [vmem:[#allocation2 + $0x80] sm:$0xff] %vm439_vm5, %v425_v5  ;;  %v942_v39 = vpop.permute.xlu0 %941  ;;  %v1146_v5 = vadd.f32 1.0, %v13331_v44 }
 0x1e5   :  { %968 = vst.msk [vmem:[#allocation2 + $0x90] sm:$0xc0] %vm18564_vm11, %v942_v39  ;;  %v13309_v54 = vpop.permute.xlu2 %945  ;;  %v13382_v28 = vpop.eup %12103 }
 0x1e6   :  { %969 = vst.msk [vmem:[#allocation2 + $0x98] sm:$0xc0] %vm494_vm12, %v942_v39  ;;  %v734_v39 = vmul.f32 %v13302_v2, %v733_v46  ;;  %12107 = vlog2.f32 %v1146_v5  ;;  %v744_v46 = vand.u32 2147483647, %v13325_v31  ;;  %v1150_v5 = vadd.f32 1.0, %v1149_v18 }
 0x1e7   :  { %973 = vst.msk [vmem:[#allocation2 + $0xb8] sm:$0xff] %vm359_vm13, %v13309_v54  ;;  %12109 = vlog2.f32 %v720_v36  ;;  %v12106_v36 = vpop.eup %12105  ;;  %v1164_v2 = vadd.f32 1.0, %v13382_v28 }
 0x1e8   :  { %v737_v19 = vsel %vm13368_vm3, %v734_v39, %v731_v33  ;;  %12111 = vpow2.f32 %v1136_v20  ;;  %v1152_v39 = vand.u32 2147483647, %v13331_v44  ;;  %v726_v20 = vand.u32 2147483647, %v13339_v61 }
 0x1e9   :  { %v13399_v15 = vadd.f32 %v737_v19, %v641_v27  ;;  %vm13401_vm4 = vcmp.lt.f32.partialorder %v744_v46, 0.0004427343  ;;  %12113 = vpow2.f32 %v1132_v11  ;;  %v740_v46 = vmul.f32 0.6931472, %v12106_v36 }
 0x1ea   :  { %vm13413_vm3 = vcmp.lt.f32.partialorder %v1152_v39, 0.0004427343  ;;  %12115 = vlog2.f32 %v1164_v2  ;;  %vm13449_vm11 = vcmp.lt.f32.partialorder %v726_v20, 0.0004427343 }
 0x1eb   :  { %v480_v16 = vpop.permute.xlu1 %479 }
 0x1ec   :  { %509 = vst.msk [vmem:[#allocation2 + $0x80] sm:$0xff] %vm496_vm6, %v480_v16  ;;  %v468_v38 = vpop.permute.xlu0 %467  ;;  %v4413_v17 = vld [vmem:[#allocation2 + $0x90] sm:$0xff]  ;;  %v12108_v33 = vpop.eup %12107 }
 0x1ed   :  { %510 = vst.msk [vmem:[#allocation2 + $0x88] sm:$0xff] %vm359_vm13, %v480_v16  ;;  %v4414_v60 = vld [vmem:[#allocation2 + $0x98] sm:$0xff]  ;;  %v13362_v16 = vadd.f32 %v13240_v12, %v1096_v23  ;;  %v11876_v56 = vpop.permute.xlu2 %11875  ;;  %v1148_v19 = vmul.f32 0.6931472, %v12108_v33  ;;  %v1106_v33 = vmax.f32 %v13259_v25, 0.0 }
 0x1ee   :  { %497 = vst.msk [vmem:[#allocation2 + $0x20] sm:$0xff] %vm496_vm6, %v468_v38  ;;  %v11566_v23 = vld [vmem:[%s18560_s5 + $0x98] sm:$0xff] }
 0x1ef   :  { %498 = vst.msk [vmem:[#allocation2 + $0x28] sm:$0xff] %vm359_vm13, %v468_v38  ;;  %v723_v38 = vmul.f32 -0.5, %v13339_v61  ;;  %4820 = vmatpush.bf16.msrb.mxu2 %v11566_v23 }
 0x1f1   :  { %v724_v18 = vadd.f32 1.0, %v723_v38  ;;  %v13409_v38 = vpop.f32.mrf.mxu2 }
 0x1f3   :  { %v470_v50 = vpop.permute.xlu1 %469  ;;  %v4411_v6 = vld [vmem:[#allocation2 + $0x80] sm:$0xff]  ;;  %v725_v39 = vmul.f32 %v13339_v61, %v724_v18  ;;  %v1109_v61 = vmax.f32 %v13316_v22, 0.0 }
 0x1f4   :  { %499 = vst.msk [vmem:[#allocation2 + $0x30] sm:$0xff] %vm496_vm6, %v470_v50  ;;  %v13346_v55 = vpack.c.bf16 %v4413_v17, %v4411_v6  ;;  %v4412_v58 = vld [vmem:[#allocation2 + $0x88] sm:$0xff]  ;;  %v895_v26 = vpop.permute.xlu0 %894  ;;  %v1118_v6 = vand.u32 2147483647, %v13362_v16 }
 0x1f5   :  { %500 = vst.msk [vmem:[#allocation2 + $0x38] sm:$0xff] %vm359_vm13, %v470_v50  ;;  %v13348_v63 = vpack.c.bf16 %v4414_v60, %v4412_v58  ;;  %v4399_v17 = vld [vmem:[#allocation2 + $0x20] sm:$0xff]  ;;  %v11565_v60 = vld [vmem:[%s18560_s5 + $0x90] sm:$0xff] }
 0x1f6   :  { %4550 = vmatmul.bf16.gmra.mxu2 %v13346_v55  ;;  %919 = vst.msk [vmem:[#allocation2 + $0xb0] sm:$0xff] %vm439_vm5, %v895_v26  ;;  %v4400_v14 = vld [vmem:[#allocation2 + $0x28] sm:$0xff]  ;;  %v1126_v23 = vsub.f32 0.0, %v1118_v6  ;;  %v640_v6 = vmax.f32 %v13267_v41, 0.0  ;;  %v1170_v26 = vand.u32 2147483647, %v13382_v28 }
 0x1f7   :  { %9985 = vmatmul.msk.bf16.gmra.mxu3 %vm359_vm13, %v13348_v63  ;;  %972 = vst.msk [vmem:[#allocation2 + $0xb0] sm:$0xff] %vm496_vm6, %v13309_v54  ;;  %4821 = vmatpush.bf16.msrb.mxu2 %v11565_v60  ;;  %v13419_v60 = vpop.f32.mrf.mxu0 }
 0x1f8   :  { %v1138_v11 = vmul.f32 1.442695, %v1126_v23 }
 0x1fa   :  { %12117 = vpow2.f32 %v1138_v11 }
 0x1fb   :  { %v944_v48 = vpop.permute.xlu1 %943  ;;  %v4401_v50 = vld [vmem:[#allocation2 + $0x30] sm:$0xff] }
 0x1fc   :  { %970 = vst.msk [vmem:[#allocation2 + $0xa0] sm:$0xff] %vm496_vm6, %v944_v48  ;;  %v4402_v51 = vld [vmem:[#allocation2 + $0x38] sm:$0xff]  ;;  %v4415_v54 = vpack.c.bf16 %v4401_v50, %v4399_v17  ;;  %v12110_v50 = vpop.eup %12109  ;;  %v743_v17 = vmul.f32 %v13325_v31, %v742_v13  ;;  %v1167_v31 = vmul.f32 -0.5, %v13382_v28 }
 0x1fd   :  { %971 = vst.msk [vmem:[#allocation2 + $0xa8] sm:$0xff] %vm359_vm13, %v944_v48  ;;  %v4416_v58 = vpack.c.bf16 %v4402_v51, %v4400_v14  ;;  %v13405_v48 = vpop.f32.mrf.mxu3  ;;  %v1151_v14 = vmul.f32 %v13331_v44, %v1150_v5  ;;  %v11877_v51 = vunpack.i.l.bf16 %v11876_v56  ;;  %v13411_v27 = vpop.eup %12111  ;;  %v11878_v44 = vunpack.i.h.bf16 %v11876_v56 }
 0x1fe   :  { %4655 = vmatmul.bf16.vlgmr.msrb.gmra.mxu0 %v4415_v54  ;;  %18631 = vst [vmem:[#allocation4_spill] sm:$0xff] %v13405_v48  ;;  %v794_v54 = vpop.permute.xlu0 %793  ;;  %v1173_v56 = vadd.f32 1.0, %v13411_v27  ;;  %v722_v23 = vmul.f32 0.6931472, %v12110_v50  ;;  %v13447_v25 = vpop.eup %12113  ;;  %v746_v18 = vsel %vm13401_vm4, %v743_v17, %v740_v46  ;;  %v1168_v50 = vadd.f32 1.0, %v1167_v31  ;;  %v4443_v31 = vld [vmem:[#allocation2 + $0xb0] sm:$0xff] }
 0x1ff   :  { %10023 = vmatmul.msk.bf16.vlgmr.msra.gmra.mxu1 %vm359_vm13, %v4416_v58  ;;  %v846_v58 = vsel %vm359_vm13, %v13058_v59, %v794_v54  ;;  %v1154_v54 = vsel %vm13413_vm3, %v1151_v14, %v1148_v19  ;;  %v12116_v19 = vpop.eup %12115  ;;  %v1176_v46 = vmul.f32 -0.5, %v13411_v27 }
 0x200   :  { %v13423_v13 = vsel %vm368_vm14, %v846_v58, %v11877_v51  ;;  %v642_v51 = vmax.f32 %v13254_v52, 0.0  ;;  %v761_v52 = vpack.c.bf16 %v13399_v15, %v13399_v15  ;;  %v13465_v58 = vadd.f32 %v1154_v54, %v1106_v33  ;;  %v13478_v33 = vpop.f32.mrf.mxu2 }
 0x201   :  { %862 = vst.msk [vmem:[#allocation2 + $0xd0] sm:$0xff] %vm377_vm15, %v13423_v13  ;;  %v931_v57 = vrot.slane %v13423_v13, 2  ;;  %v880_v36 = vrot.slane %v13423_v13, 1  ;;  %12119 = vlog2.f32 %v1173_v56  ;;  %v728_v17 = vsel %vm13449_vm11, %v725_v39, %v722_v23  ;;  %v13481_v39 = vpop.f32.mrf.mxu0  ;;  %v13483_v23 = vpop.f32.mrf.mxu1 }
 0x202   :  { %v13470_v53 = vadd.f32 %v746_v18, %v642_v51  ;;  %v13476_v11 = vunpack.c.l.bf16 %v761_v52  ;;  %v1166_v56 = vmul.f32 0.6931472, %v12116_v19  ;;  %v1169_v54 = vmul.f32 %v13382_v28, %v1168_v50  ;;  %v13496_v28 = vpop.eup %12117 }
 0x203   :  { %v796_v5 = vpop.permute.xlu1 %795  ;;  %v4441_v20 = vld [vmem:[#allocation2 + $0xa0] sm:$0xff]  ;;  %v13485_v51 = vadd.f32 %v728_v17, %v640_v6  ;;  %vm13489_vm11 = vcmp.lt.f32.partialorder %v1170_v26, 0.0004427343  ;;  %v1179_v19 = vand.u32 2147483647, %v13411_v27 }
 0x204   :  { %v847_v59 = vsel %vm359_vm13, %v13066_v42, %v796_v5  ;;  %v932_v42 = vsel %vm449_vm2, %v929_v40, %v931_v57  ;;  %v881_v40 = vsel %vm394_vm0, %v878_v4, %v880_v36  ;;  %v4442_v14 = vld [vmem:[#allocation2 + $0xa8] sm:$0xff]  ;;  %v1155_v4 = vadd.f32 1.0, %v13447_v25 }
 0x205   :  { %v13435_v2 = vsel %vm368_vm14, %v847_v59, %v11878_v44  ;;  %947 = vrot.lane.b32.xlu2 %v932_v42, %s12338_s8  ;;  %896 = vrot.lane.b32.xlu0 %v881_v40, %s12337_s30  ;;  %v4444_v44 = vld [vmem:[#allocation2 + $0xb8] sm:$0xff]  ;;  %v13474_v5 = vpop.f32.mrf.mxu3  ;;  %v4445_v41 = vpack.c.bf16 %v4443_v31, %v4441_v20  ;;  %v1226_v42 = vpack.c.bf16 %v13465_v58, %v13465_v58  ;;  %v1177_v40 = vadd.f32 1.0, %v1176_v46 }
 0x206   :  { %863 = vst.msk [vmem:[#allocation2 + $0xe0] sm:$0xff] %vm377_vm15, %v13435_v2  ;;  %v4446_v59 = vpack.c.bf16 %v4444_v44, %v4442_v14  ;;  %v777_v52 = vsub.f32 %v13399_v15, %v13476_v11  ;;  %v762_v18 = vpack.c.bf16 %v13470_v53, %v13470_v53  ;;  %12121 = vlog2.f32 %v1155_v4 }
 0x207   :  { %18636 = vst [vmem:[#allocation5_spill] sm:$0xff] %v13474_v5  ;;  %4555 = vmatmul.bf16.gmra.mxu2 %v4445_v41  ;;  %v12120_v50 = vpop.eup %12119  ;;  %v1158_v20 = vmul.f32 -0.5, %v13447_v25  ;;  %v1108_v14 = vmax.f32 %v13298_v30, 0.0  ;;  %v18567_v6 = vrot.slane %v13435_v2, 1  ;;  %v1172_v15 = vsel %vm13489_vm11, %v1169_v54, %v1166_v56 }
 0x208   :  { %9986 = vmatmul.msk.bf16.gmra.mxu3 %vm359_vm13, %v4446_v59  ;;  %v18568_v26 = vrot.slane %v13435_v2, 2  ;;  %v760_v17 = vpack.c.bf16 %v13485_v51, %v13485_v51  ;;  %v13513_v30 = vunpack.c.l.bf16 %v1226_v42  ;;  %v13515_v4 = vunpack.c.l.bf16 %v762_v18 }
 0x209   :  { %v1175_v46 = vmul.f32 0.6931472, %v12120_v50  ;;  %v1178_v31 = vmul.f32 %v13411_v27, %v1177_v40  ;;  %v1159_v44 = vadd.f32 1.0, %v1158_v20  ;;  %v1220_v41 = vadd.f32 %v1172_v15, %v1108_v14  ;;  %v13547_v13 = vpop.f32.mrf.mxu0  ;;  %v4707_v15 = vld [vmem:[#allocation2 + $0x70] sm:$0xff] }
 0x20a   :  { %vm13519_vm4 = vcmp.lt.f32.partialorder %v1179_v19, 0.0004427343  ;;  %v1161_v54 = vand.u32 2147483647, %v13447_v25  ;;  %v934_v27 = vsel %vm449_vm2, %v931_v57, %v18568_v26  ;;  %v13543_v18 = vunpack.c.l.bf16 %v760_v17  ;;  %v13549_v57 = vpop.f32.mrf.mxu1 }
 0x20b   :  { %v1181_v40 = vsel %vm13519_vm4, %v1178_v31, %v1175_v46  ;;  %v1160_v22 = vmul.f32 %v13447_v25, %v1159_v44  ;;  %v1228_v20 = vpack.c.bf16 %v1220_v41, %v1220_v41  ;;  %v1185_v14 = vmul.f32 -0.5, %v13496_v28  ;;  %v4708_v46 = vld [vmem:[#allocation2 + $0x78] sm:$0xff]  ;;  %v4705_v44 = vld [vmem:[#allocation2 + $0x60] sm:$0xff] }
 0x20c   :  { %v12122_v56 = vpop.eup %12121  ;;  %vm13554_vm3 = vcmp.lt.f32.partialorder %v1161_v54, 0.0004427343  ;;  %v1221_v17 = vadd.f32 %v1181_v40, %v1109_v61  ;;  %v1107_v31 = vmax.f32 %v13329_v35, 0.0  ;;  %v11879_v25 = vpack.i.bf16 %v13476_v11, %v13543_v18 }
 0x20d   :  { %799 = vrot.lane.b32.xlu2 %v777_v52, %s12335_s22  ;;  %v13535_v42 = vpop.f32.mrf.mxu3  ;;  %949 = vrot.lane.b32.xlu0 %v934_v27, %s12338_s8  ;;  %v13541_v52 = vpop.f32.mrf.mxu2  ;;  %v1157_v50 = vmul.f32 0.6931472, %v12122_v56  ;;  %v1186_v56 = vadd.f32 1.0, %v1185_v14  ;;  %v4721_v54 = vpack.c.bf16 %v4707_v15, %v4705_v44  ;;  %v4706_v27 = vld [vmem:[#allocation2 + $0x68] sm:$0xff]  ;;  %v1188_v61 = vand.u32 2147483647, %v13496_v28 }
 0x20e   :  { %4660 = vmatmul.bf16.gmra.mxu0 %v13222_v62  ;;  %v1182_v62 = vadd.f32 1.0, %v13496_v28  ;;  %18641 = vst [vmem:[#allocation6_spill] sm:$0xff] %v13535_v42  ;;  %v4722_v35 = vpack.c.bf16 %v4708_v46, %v4706_v27  ;;  %v1229_v40 = vpack.c.bf16 %v1221_v17, %v1221_v17  ;;  %v13792_v5 = vadd.f32 %v13240_v12, %v13409_v38 }
 0x20f   :  { %10024 = vmatmul.msk.bf16.gmra.mxu1 %vm359_vm13, %v13227_v49  ;;  %v883_v49 = vsel %vm394_vm0, %v880_v36, %v18567_v6  ;;  %v11884_v36 = vpack.i.bf16 %v13513_v30, %v13515_v4  ;;  %18642 = vst [vmem:[#allocation7_spill] sm:$0xff] %v13541_v52  ;;  %v1163_v59 = vsel %vm13554_vm3, %v1160_v22, %v1157_v50  ;;  %vm1189_vm11 = vcmp.lt.f32.partialorder %v1188_v61, 0.0004427343  ;;  %v4711_v61 = vld [vmem:[#allocation2 + $0x90] sm:$0xff] }
 0x210   :  { %898 = vrot.lane.b32.xlu1 %v883_v49, %s12337_s30  ;;  %12123 = vlog2.f32 %v1182_v62  ;;  %v776_v62 = vsub.f32 %v13485_v51, %v13543_v18  ;;  %v13565_v49 = vunpack.c.l.bf16 %v1228_v20  ;;  %v1219_v1 = vadd.f32 %v1163_v59, %v1107_v31 }
 0x211   :  { %v1187_v20 = vmul.f32 %v13496_v28, %v1186_v56  ;;  %v13579_v19 = vpop.f32.mrf.mxu0  ;;  %v1110_v31 = vmax.f32 %v13362_v16, 0.0  ;;  %v778_v28 = vsub.f32 %v13470_v53, %v13515_v4  ;;  %v4709_v16 = vld [vmem:[#allocation2 + $0x80] sm:$0xff]  ;;  %v4710_v53 = vld [vmem:[#allocation2 + $0x88] sm:$0xff]  ;;  %v1120_v48 = vand.u32 2147483647, %v13792_v5 }
 0x212   :  { %v1244_v51 = vsub.f32 %v1220_v41, %v13565_v49  ;;  %v13581_v15 = vpop.f32.mrf.mxu1  ;;  %v13585_v41 = vunpack.c.l.bf16 %v1229_v40  ;;  %v1227_v46 = vpack.c.bf16 %v1219_v1, %v1219_v1  ;;  %v4712_v40 = vld [vmem:[#allocation2 + $0x98] sm:$0xff] }
 0x214   :  { %v13595_v44 = vunpack.c.l.bf16 %v1227_v46 }
 0x215   :  { %11885 = vrot.lane.b32.xlu2 %v11884_v36, %s12336_s23  ;;  %11880 = vrot.lane.b32.xlu0 %v11879_v25, %s12336_s23  ;;  %v13572_v50 = vpop.f32.mrf.mxu3  ;;  %v13576_v14 = vpop.f32.mrf.mxu2  ;;  %v1245_v25 = vsub.f32 %v1221_v17, %v13585_v41 }
 0x216   :  { %v12124_v36 = vpop.eup %12123  ;;  %18645 = vst [vmem:[#allocation8_spill] sm:$0xff] %v13572_v50  ;;  %v11889_v17 = vpack.i.bf16 %v13565_v49, %v13595_v44 }
 0x217   :  { %4822 = vmatmul.bf16.vlgmr.msrb.gmra.mxu2 %v4721_v54  ;;  %v1184_v22 = vmul.f32 0.6931472, %v12124_v36  ;;  %18646 = vst [vmem:[#allocation9_spill] sm:$0xff] %v13576_v14 }
 0x218   :  { %797 = vrot.lane.b32.xlu1 %v776_v62, %s12335_s22  ;;  %10081 = vmatmul.msk.bf16.vlgmr.msra.gmra.mxu3 %vm359_vm13, %v4722_v35  ;;  %v4723_v35 = vpack.c.bf16 %v4711_v61, %v4709_v16 }
 0x219   :  { %v1190_v62 = vsel %vm1189_vm11, %v1187_v20, %v1184_v22  ;;  %v13603_v27 = vpop.f32.mrf.mxu0 }
 0x21a   :  { %v13605_v36 = vpop.f32.mrf.mxu1 }
 0x21d   :  { %1262 = vrot.lane.b32.xlu2 %v1244_v51, %s12335_s22  ;;  %v13598_v59 = vpop.f32.mrf.mxu3  ;;  %v13600_v56 = vpop.f32.mrf.mxu2  ;;  %v4724_v51 = vpack.c.bf16 %v4712_v40, %v4710_v53  ;;  %v4716_v53 = vld [vmem:[#allocation2 + $0xb8] sm:$0xff] }
 0x21e   :  { %4665 = vmatmul.bf16.gmra.mxu0 %v13281_v7  ;;  %v1242_v7 = vsub.f32 %v13465_v58, %v13513_v30  ;;  %18647 = vst [vmem:[#allocation10_spill] sm:$0xff] %v13598_v59  ;;  %v1243_v58 = vsub.f32 %v1219_v1, %v13595_v44 }
 0x21f   :  { %10025 = vmatmul.msk.bf16.gmra.mxu1 %vm359_vm13, %v13284_v43  ;;  %v1222_v43 = vadd.f32 %v1190_v62, %v1110_v31  ;;  %18648 = vst [vmem:[#allocation11_spill] sm:$0xff] %v13600_v56  ;;  %v4713_v62 = vld [vmem:[#allocation2 + $0xa0] sm:$0xff] }
 0x220   :  { %801 = vrot.lane.b32.xlu1 %v778_v28, %s12335_s22  ;;  %1258 = vrot.lane.b32.xlu0 %v1242_v7, %s12335_s22  ;;  %v4714_v7 = vld [vmem:[#allocation2 + $0xa8] sm:$0xff] }
 0x221   :  { %v1230_v54 = vpack.c.bf16 %v1222_v43, %v1222_v43  ;;  %v13624_v31 = vpop.f32.mrf.mxu0  ;;  %v13638_v61 = vpack.c.bf16 %v4716_v53, %v4714_v7 }
 0x222   :  { %v13626_v28 = vpop.f32.mrf.mxu1 }
 0x223   :  { %v13611_v22 = vunpack.c.l.bf16 %v1230_v54 }
 0x225   :  { %1264 = vrot.lane.b32.xlu2 %v1245_v25, %s12335_s22  ;;  %v13617_v1 = vpop.f32.mrf.mxu3  ;;  %v11894_v20 = vpack.i.bf16 %v13611_v22, %v13585_v41  ;;  %v13621_v46 = vpop.f32.mrf.mxu2 }
 0x226   :  { %18649 = vst [vmem:[#allocation12_spill] sm:$0xff] %v13617_v1 }
 0x227   :  { %4827 = vmatmul.bf16.gmra.mxu2 %v4723_v35  ;;  %18650 = vst [vmem:[#allocation13_spill] sm:$0xff] %v13621_v46  ;;  %v4958_v35 = vld [vmem:[%s18559_s4 + $0x28] sm:$0x1] }
 0x228   :  { %1260 = vrot.lane.b32.xlu1 %v1243_v58, %s12335_s22  ;;  %11890 = vrot.lane.b32.xlu0 %v11889_v17, %s12336_s23  ;;  %v1246_v17 = vsub.f32 %v1222_v43, %v13611_v22 }
 0x229   :  { %10082 = vmatmul.msk.bf16.gmra.mxu3 %vm359_vm13, %v4724_v51  ;;  %v13634_v54 = vpop.f32.mrf.mxu0 }
 0x22a   :  { %v13636_v58 = vpop.f32.mrf.mxu1 }
 0x22b   :  { %18653 = vst [vmem:[#allocation16_spill] sm:$0xff] %v13636_v58 }
 0x22d   :  { %v13628_v25 = vpop.f32.mrf.mxu3  ;;  %v13630_v16 = vpop.f32.mrf.mxu2 }
 0x22e   :  { %4670 = vmatmul.bf16.gmra.mxu0 %v13346_v55  ;;  %18651 = vst [vmem:[#allocation14_spill] sm:$0xff] %v13628_v25  ;;  %v4715_v55 = vld [vmem:[#allocation2 + $0xb0] sm:$0xff] }
 0x22f   :  { %10026 = vmatmul.msk.bf16.gmra.mxu1 %vm359_vm13, %v13348_v63  ;;  %18652 = vst [vmem:[#allocation15_spill] sm:$0xff] %v13630_v16  ;;  %v13632_v63 = vpack.c.bf16 %v4715_v55, %v4713_v62 }
 0x230   :  { %11895 = vrot.lane.b32.xlu1 %v11894_v20, %s12336_s23  ;;  %1266 = vrot.lane.b32.xlu0 %v1246_v17, %s12335_s22  ;;  %v5000_v20 = vunpack.c.l.b16 %v4958_v35  ;;  %v11582_v17 = vld [vmem:[%s18559_s4 + $0x20] sm:$0xff]  ;;  %v11581_v35 = vld [vmem:[%s18559_s4 + $0x18] sm:$0xff] }
 0x231   :  { %v13654_v7 = vpop.f32.mrf.mxu0 }
 0x232   :  { %v13652_v62 = vpop.f32.mrf.mxu1  ;;  %18657 = vst [vmem:[#allocation20_spill] sm:$0xff] %v13654_v7  ;;  %v5006_v55 = vpack.c.b16 %v5000_v20, %v5000_v20 }
 0x233   :  { %18656 = vst [vmem:[#allocation19_spill] sm:$0xff] %v13652_v62 }
 0x234   :  { %v5025_v43 = vand.u32 %v5006_v55, %v12382_v3 }
 0x235   :  { %v13648_v40 = vpop.f32.mrf.mxu3  ;;  %v13650_v51 = vpop.f32.mrf.mxu2 }
 0x236   :  { %18654 = vst [vmem:[#allocation17_spill] sm:$0xff] %v13648_v40  ;;  %5029 = vmatpush.bf16.msra.mxu0 %v5025_v43  ;;  %11838 = vmatpush.bf16.msra.mxu2 %v5025_v43  ;;  %v11579_v43 = vld [vmem:[%s18559_s4 + $0x8] sm:$0xff] }
 0x237   :  { %4832 = vmatmul.bf16.gmra.mxu2 %v13632_v63  ;;  %18655 = vst [vmem:[#allocation18_spill] sm:$0xff] %v13650_v51 }
 0x239   :  { %10083 = vmatmul.msk.bf16.gmra.mxu3 %vm359_vm13, %v13638_v61  ;;  %v13663_v26 = vpop.f32.mrf.mxu0 }
 0x23a   :  { %v13661_v6 = vpop.f32.mrf.mxu1  ;;  %18661 = vst [vmem:[#allocation24_spill] sm:$0xff] %v13663_v26  ;;  %5030 = vmatpush.bf16.msra.mxu0 %v11582_v17  ;;  %11839 = vmatpush.bf16.msra.mxu2 %v11582_v17  ;;  %v11580_v26 = vld [vmem:[%s18559_s4 + $0x10] sm:$0xff] }
 0x23b   :  { %18660 = vst [vmem:[#allocation23_spill] sm:$0xff] %v13661_v6 }
 0x23d   :  { %v13656_v53 = vpop.f32.mrf.mxu3  ;;  %v13658_v32 = vpop.f32.mrf.mxu2 }
 0x23e   :  { %18658 = vst [vmem:[#allocation21_spill] sm:$0xff] %v13656_v53  ;;  %5031 = vmatpush.bf16.msra.mxu0 %v11581_v35  ;;  %11840 = vmatpush.bf16.msra.mxu2 %v11581_v35  ;;  %v11574_v35 = vld [vmem:[%s18561_s1 + $0x20] sm:$0xff] }
 0x23f   :  { %18659 = vst [vmem:[#allocation22_spill] sm:$0xff] %v13658_v32 }
 0x241   :  { %v13675_v55 = vpop.f32.mrf.mxu0 }
 0x242   :  { %18664 = vst [vmem:[#allocation27_spill] sm:$0xff] %v13675_v55  ;;  %v13677_v0 = vpop.f32.mrf.mxu1  ;;  %5032 = vmatpush.bf16.msra.mxu0 %v11580_v26  ;;  %11841 = vmatpush.bf16.msra.mxu2 %v11580_v26 }
 0x243   :  { %18665 = vst [vmem:[#allocation28_spill] sm:$0xff] %v13677_v0  ;;  %v11578_v0 = vld [vmem:[%s18559_s4] sm:$0xff] }
 0x245   :  { %v13671_v20 = vpop.f32.mrf.mxu3  ;;  %v13673_v53 = vpop.f32.mrf.mxu2 }
 0x246   :  { %18662 = vst [vmem:[#allocation25_spill] sm:$0xff] %v13671_v20  ;;  %5033 = vmatpush.bf16.msra.mxu0 %v11579_v43  ;;  %11842 = vmatpush.bf16.msra.mxu2 %v11579_v43 }
 0x247   :  { %18663 = vst [vmem:[#allocation26_spill] sm:$0xff] %v13673_v53 }
 0x249   :  { %v13687_v17 = vpop.f32.mrf.mxu0 }
 0x24a   :  { %18666 = vst [vmem:[#allocation29_spill] sm:$0xff] %v13687_v17  ;;  %v13692_v55 = vpop.f32.mrf.mxu1  ;;  %5034 = vmatpush.bf16.msra.mxu0 %v11578_v0  ;;  %11843 = vmatpush.bf16.msra.mxu2 %v11578_v0  ;;  %v11575_v0 = vld [vmem:[%s18561_s1 + $0x28] sm:$0xff] }
 0x24b   :  { %18667 = vst [vmem:[#allocation30_spill] sm:$0xff] %v13692_v55  ;;  %v11599_v55 = vld [vmem:[%s18560_s5 + $0x80] sm:$0xff] }
 0x24c   :  { %5188 = vmatpush.bf16.msrb.mxu1 %v11599_v55  ;;  %v11597_v55 = vld [vmem:[%s18560_s5 + $0x70] sm:$0xff] }
 0x24d   :  { %10121 = vmatmul.msk.bf16.vlgmr.msra.gmra.mxu0 %vm103_vm1, %v11574_v35  ;;  %v11591_v35 = vld [vmem:[%s18560_s5 + $0x40] sm:$0xff] }
 0x24e   :  { %5339 = vmatpush.bf16.msrb.mxu0 %v11591_v35 }
 0x251   :  { %v13698_v26 = vpop.f32.mrf.mxu0 }
 0x252   :  { %18668 = vst [vmem:[#allocation31_spill] sm:$0xff] %v13698_v26 }
 0x254   :  { %v4541_v20 = vpop.f32.mrf.mxu2 }
 0x255   :  { %v4570_v7 = vpop.f32.mrf.mxu3 }
 0x256   :  { %v13685_v40 = vadd.f32 %v4570_v7, %v4541_v20  ;;  %v13701_v20 = vpop.f32.mrf.mxu1 }
 0x257   :  { %18669 = vst [vmem:[#allocation32_spill] sm:$0xff] %v13701_v20 }
 0x259   :  { %v13707_v43 = vpop.f32.mrf.mxu0 }
 0x25a   :  { %18672 = vst [vmem:[#allocation35_spill] sm:$0xff] %v13707_v43 }
 0x25c   :  { %v13705_v25 = vpop.f32.mrf.mxu2 }
 0x25d   :  { %v13703_v17 = vpop.f32.mrf.mxu3  ;;  %18671 = vst [vmem:[#allocation34_spill] sm:$0xff] %v13705_v25  ;;  %10122 = vmatmul.msk.bf16.gmra.mxu0 %vm103_vm1, %v11575_v0 }
 0x25e   :  { %18670 = vst [vmem:[#allocation33_spill] sm:$0xff] %v13703_v17  ;;  %v13718_v20 = vpop.f32.mrf.mxu1  ;;  %v11598_v17 = vld [vmem:[%s18560_s5 + $0x78] sm:$0xff] }
 0x25f   :  { %v948_v7 = vpop.permute.xlu2 %947  ;;  %18673 = vst [vmem:[#allocation36_spill] sm:$0xff] %v13718_v20  ;;  %5189 = vmatpush.bf16.msrb.mxu1 %v11598_v17  ;;  %v11596_v20 = vld [vmem:[%s18560_s5 + $0x68] sm:$0xff]  ;;  %v11590_v17 = vld [vmem:[%s18560_s5 + $0x38] sm:$0xff] }
 0x260   :  { %975 = vst.msk [vmem:[#allocation2 + $0xc8] sm:$0xff] %vm359_vm13, %v948_v7  ;;  %5303 = vmatpush.bf16.msrb.mxu3 %v11590_v17  ;;  %v11588_v17 = vld [vmem:[%s18560_s5 + $0x28] sm:$0xff] }
 0x261   :  { %v13729_v1 = vpop.f32.mrf.mxu0 }
 0x262   :  { %18674 = vst [vmem:[#allocation37_spill] sm:$0xff] %v13729_v1 }
 0x263   :  { %5190 = vmatpush.bf16.msrb.mxu1 %v11597_v55  ;;  %v11594_v55 = vld [vmem:[%s18560_s5 + $0x58] sm:$0xff] }
 0x264   :  { %v4546_v43 = vpop.f32.mrf.mxu2 }
 0x265   :  { %v4575_v25 = vpop.f32.mrf.mxu3 }
 0x266   :  { %v13727_v26 = vadd.f32 %v4575_v25, %v4546_v43  ;;  %v13734_v59 = vpop.f32.mrf.mxu1  ;;  %v11595_v25 = vld [vmem:[%s18560_s5 + $0x60] sm:$0xff]  ;;  %v11576_v43 = vld [vmem:[%s18561_s1 + $0x30] sm:$0xff] }
 0x267   :  { %18675 = vst [vmem:[#allocation38_spill] sm:$0xff] %v13734_v59  ;;  %5191 = vmatpush.bf16.msrb.mxu1 %v11596_v20  ;;  %v11589_v20 = vld [vmem:[%s18560_s5 + $0x30] sm:$0xff] }
 0x268   :  { %5304 = vmatpush.bf16.msrb.mxu3 %v11589_v20  ;;  %v11587_v20 = vld [vmem:[%s18560_s5 + $0x20] sm:$0xff] }
 0x269   :  { %v13750_v0 = vpop.f32.mrf.mxu0 }
 0x26a   :  { %18676 = vst [vmem:[#allocation39_spill] sm:$0xff] %v13750_v0 }
 0x26b   :  { %5192 = vmatpush.bf16.msrb.mxu1 %v11595_v25 }
 0x26c   :  { %v13757_v59 = vpop.f32.mrf.mxu2  ;;  %5305 = vmatpush.bf16.msrb.mxu3 %v11588_v17 }
 0x26d   :  { %18678 = vst [vmem:[#allocation41_spill] sm:$0xff] %v13757_v59  ;;  %10123 = vmatmul.msk.bf16.gmra.mxu0 %vm103_vm1, %v11576_v43  ;;  %v13773_v43 = vadd.f32 %v13240_v12, %v13359_v9  ;;  %v11586_v9 = vld [vmem:[%s18560_s5 + $0x18] sm:$0xff] }
 0x26e   :  { %v13763_v25 = vpop.f32.mrf.mxu1 }
 0x26f   :  { %5193 = vmatpush.bf16.msrb.mxu1 %v11594_v55  ;;  %18679 = vst [vmem:[#allocation42_spill] sm:$0xff] %v13763_v25  ;;  %v11592_v55 = vld [vmem:[%s18560_s5 + $0x48] sm:$0xff] }
 0x270   :  { %5306 = vmatpush.bf16.msrb.mxu3 %v11587_v20 }
 0x274   :  { %5307 = vmatpush.bf16.msrb.mxu3 %v11586_v9 }
 0x277   :  { %v897_v35 = vpop.permute.xlu0 %896 }
 0x278   :  { %920 = vst.msk [vmem:[#allocation2 + $0xc0] sm:$0xff] %vm439_vm5, %v897_v35  ;;  %v13755_v35 = vpop.f32.mrf.mxu3 }
 0x279   :  { %974 = vst.msk [vmem:[#allocation2 + $0xc0] sm:$0xff] %vm496_vm6, %v948_v7 }
 0x27a   :  { %18677 = vst [vmem:[#allocation40_spill] sm:$0xff] %v13755_v35  ;;  %v11593_v35 = vld [vmem:[%s18560_s5 + $0x50] sm:$0xff] }
 0x27b   :  { %5194 = vmatpush.bf16.msrb.mxu1 %v11593_v35  ;;  %v4656_v59 = vpop.f32.mrf.mxu0 }
 0x27c   :  { %v4657_v17 = vadd.f32 %v4656_v59, %v13685_v40  ;;  %v4685_v1 = vpop.f32.mrf.mxu1  ;;  %v1128_v40 = vsub.f32 0.0, %v1120_v48 }
 0x27d   :  { %10219 = vmatmul.msk.bf16.vlgmr.msrb.gmra.mxu0 %vm359_vm13, %v13638_v61 }
 0x27e   :  { %v13788_v42 = vadd.f32 %v4685_v1, %v4657_v17  ;;  %v1142_v38 = vmul.f32 1.442695, %v1128_v40  ;;  %v11584_v40 = vld [vmem:[%s18560_s5 + $0x8] sm:$0xff] }
 0x27f   :  { %v950_v0 = vpop.permute.xlu0 %949  ;;  %5195 = vmatpush.bf16.msrb.mxu1 %v11592_v55 }
 0x280   :  { %977 = vst.msk [vmem:[#allocation2 + $0xd8] sm:$0xff] %vm359_vm13, %v950_v0  ;;  %v4580_v25 = vpop.f32.mrf.mxu3 }
 0x282   :  { %v899_v7 = vpop.permute.xlu1 %898 }
 0x283   :  { %921 = vst.msk [vmem:[#allocation2 + $0xd0] sm:$0xff] %vm439_vm5, %v899_v7  ;;  %v4551_v7 = vpop.f32.mrf.mxu2 }
 0x284   :  { %976 = vst.msk [vmem:[#allocation2 + $0xd0] sm:$0xff] %vm496_vm6, %v950_v0  ;;  %v1119_v0 = vand.u32 2147483647, %v13773_v43  ;;  %v13785_v35 = vadd.f32 %v4580_v25, %v4551_v7  ;;  %v800_v25 = vpop.permute.xlu2 %799 }
 0x285   :  { %v849_v59 = vsel %vm359_vm13, %v13476_v11, %v800_v25  ;;  %v11585_v25 = vld [vmem:[%s18560_s5 + $0x10] sm:$0xff] }
 0x286   :  { %v1127_v50 = vsub.f32 0.0, %v1119_v0  ;;  %v4718_v0 = vld [vmem:[#allocation2 + $0xc8] sm:$0xff]  ;;  %5308 = vmatpush.bf16.msrb.mxu3 %v11585_v25  ;;  %v13829_v25 = vpop.f32.mrf.mxu0 }
 0x287   :  { %v11881_v55 = vpop.permute.xlu0 %11880  ;;  %18682 = vst [vmem:[#allocation45_spill] sm:$0xff] %v13829_v25 }
 0x288   :  { %v1140_v20 = vmul.f32 1.442695, %v1127_v50  ;;  %v11883_v7 = vunpack.i.h.bf16 %v11881_v55  ;;  %v4720_v50 = vld [vmem:[#allocation2 + $0xd8] sm:$0xff]  ;;  %v13806_v53 = vpop.f32.mrf.mxu3  ;;  %v11882_v48 = vunpack.i.l.bf16 %v11881_v55 }
 0x289   :  { %18681 = vst [vmem:[#allocation44_spill] sm:$0xff] %v13806_v53 }
 0x28a   :  { %12125 = vpow2.f32 %v1140_v20  ;;  %v13800_v1 = vsel %vm368_vm14, %v849_v59, %v11883_v7  ;;  %v798_v61 = vpop.permute.xlu1 %797  ;;  %v13810_v20 = vpack.c.bf16 %v4720_v50, %v4718_v0  ;;  %5309 = vmatpush.bf16.msrb.mxu3 %v11584_v40 }
 0x28b   :  { %865 = vst.msk [vmem:[#allocation2 + $0x100] sm:$0xff] %vm377_vm15, %v13800_v1  ;;  %v13804_v17 = vpop.f32.mrf.mxu2  ;;  %v848_v11 = vsel %vm359_vm13, %v13543_v18, %v798_v61  ;;  %12127 = vpow2.f32 %v1142_v38  ;;  %v4719_v59 = vld [vmem:[#allocation2 + $0xd0] sm:$0xff]  ;;  %v4717_v61 = vld [vmem:[#allocation2 + $0xc0] sm:$0xff] }
 0x28c   :  { %18680 = vst [vmem:[#allocation43_spill] sm:$0xff] %v13804_v17  ;;  %10084 = vmatmul.msk.bf16.gmra.mxu3 %vm359_vm13, %v13810_v20  ;;  %v13820_v7 = vsel %vm368_vm14, %v848_v11, %v11882_v48  ;;  %v13827_v11 = vpack.c.bf16 %v4719_v59, %v4717_v61  ;;  %v13831_v17 = vpop.f32.mrf.mxu1  ;;  %v12330_v59 = vld [vmem:[%s18557_s3] ss:$0 sm:$0xff] }
 0x28d   :  { %10220 = vmatmul.msk.bf16.gmra.mxu0 %vm359_vm13, %v13810_v20  ;;  %864 = vst.msk [vmem:[#allocation2 + $0xf0] sm:$0xff] %vm377_vm15, %v13820_v7  ;;  %v13841_v61 = vadd.f32 %v12330_v59, %v13478_v33  ;;  %v935_v33 = vrot.slane %v13820_v7, 2  ;;  %v884_v62 = vrot.slane %v13820_v7, 1  ;;  %v11600_v7 = vld [vmem:[%s18560_s5 + $0x88] sm:$0xff] }
 0x28e   :  { %18683 = vst [vmem:[#allocation46_spill] sm:$0xff] %v13831_v17  ;;  %4837 = vmatmul.bf16.gmra.mxu2 %v13827_v11  ;;  %5196 = vmatmul.bf16.vlgmr.msrb.gmra.mxu1 %v13827_v11  ;;  %v1111_v17 = vmax.f32 %v13773_v43, 0.0 }
 0x28f   :  { %v1121_v46 = vand.u32 2147483647, %v13841_v61  ;;  %5224 = vmatpush.bf16.msrb.mxu2 %v11600_v7 }
 0x290   :  { %v12126_v12 = vpop.eup %12125 }
 0x291   :  { %v1191_v9 = vadd.f32 1.0, %v12126_v12  ;;  %v1194_v18 = vmul.f32 -0.5, %v12126_v12  ;;  %v12128_v55 = vpop.eup %12127  ;;  %v1197_v0 = vand.u32 2147483647, %v12126_v12 }
 0x292   :  { %v1200_v53 = vadd.f32 1.0, %v12128_v55  ;;  %v1203_v40 = vmul.f32 -0.5, %v12128_v55 }
 0x293   :  { %12129 = vlog2.f32 %v1191_v9  ;;  %v1195_v38 = vadd.f32 1.0, %v1194_v18  ;;  %v4556_v48 = vpop.f32.mrf.mxu2  ;;  %v4585_v9 = vpop.f32.mrf.mxu3  ;;  %vm1198_vm4 = vcmp.lt.f32.partialorder %v1197_v0, 0.0004427343 }
 0x294   :  { %v13835_v18 = vadd.f32 %v4585_v9, %v4556_v48  ;;  %12131 = vlog2.f32 %v1200_v53  ;;  %v1204_v16 = vadd.f32 1.0, %v1203_v40  ;;  %v13848_v53 = vld [vmem:[%s18557_s3] ss:$0 sm:$0xff]  ;;  %v4661_v48 = vpop.f32.mrf.mxu0  ;;  %v4690_v43 = vpop.f32.mrf.mxu1  ;;  %v1129_v9 = vsub.f32 0.0, %v1121_v46 }
 0x295   :  { %v1196_v51 = vmul.f32 %v12126_v12, %v1195_v38  ;;  %v1206_v38 = vand.u32 2147483647, %v12128_v55  ;;  %v13852_v0 = vadd.f32 %v13848_v53, %v13147_v10  ;;  %v18571_v40 = vrot.slane %v13800_v1, 2 }
 0x297   :  { %vm13856_vm3 = vcmp.lt.f32.partialorder %v1206_v38, 0.0004427343  ;;  %v1585_v10 = vand.u32 2147483647, %v13852_v0  ;;  %v938_v56 = vsel %vm449_vm2, %v935_v33, %v18571_v40  ;;  %v11886_v40 = vpop.permute.xlu2 %11885 }
 0x298   :  { %953 = vrot.lane.b32.xlu2 %v938_v56, %s12338_s8 }
 0x299   :  { %v12130_v50 = vpop.eup %12129  ;;  %v1593_v52 = vsub.f32 0.0, %v1585_v10 }
 0x29a   :  { %v1193_v32 = vmul.f32 0.6931472, %v12130_v50  ;;  %v12132_v50 = vpop.eup %12131 }
 0x29b   :  { %v13860_v59 = vpop.f32.mrf.mxu2  ;;  %v13862_v14 = vpop.f32.mrf.mxu3 }
 0x29c   :  { %v1199_v25 = vsel %vm1198_vm4, %v1196_v51, %v1193_v32  ;;  %v1202_v32 = vmul.f32 0.6931472, %v12132_v50  ;;  %v1205_v51 = vmul.f32 %v12128_v55, %v1204_v16  ;;  %18686 = vst [vmem:[#allocation47_spill] sm:$0xff] %v13860_v59  ;;  %v18688_v16 = vrot.slane %v13435_v2, 2  ;;  %v802_v50 = vpop.permute.xlu1 %801  ;;  %v1259_v59 = vpop.permute.xlu0 %1258 }
 0x29d   :  { %v1223_v12 = vadd.f32 %v1199_v25, %v1111_v17  ;;  %18687 = vst [vmem:[#allocation48_spill] sm:$0xff] %v13862_v14  ;;  %v1112_v55 = vmax.f32 %v13792_v5, 0.0  ;;  %v1144_v14 = vmul.f32 1.442695, %v1129_v9  ;;  %v13882_v56 = vpop.f32.mrf.mxu1  ;;  %v1601_v9 = vmul.f32 1.442695, %v1593_v52 }
 0x29e   :  { %v936_v46 = vsel %vm449_vm2, %v18688_v16, %v935_v33  ;;  %v1208_v38 = vsel %vm13856_vm3, %v1205_v51, %v1202_v32  ;;  %v13880_v33 = vpop.f32.mrf.mxu0  ;;  %18690 = vst [vmem:[#allocation50_spill] sm:$0xff] %v13882_v56  ;;  %v11583_v32 = vld [vmem:[%s18560_s5] sm:$0xff]  ;;  %v11577_v51 = vld [vmem:[%s18561_s1 + $0x38] sm:$0xff]  ;;  %v4662_v25 = vadd.f32 %v4661_v48, %v13727_v26  ;;  %v1314_v52 = vsel %vm359_vm13, %v13513_v30, %v1259_v59 }
 0x29f   :  { %v1231_v17 = vpack.c.bf16 %v1223_v12, %v1223_v12  ;;  %951 = vrot.lane.b32.xlu1 %v936_v46, %s12338_s8  ;;  %v1224_v58 = vadd.f32 %v1208_v38, %v1112_v55  ;;  %12133 = vpow2.f32 %v1144_v14  ;;  %18689 = vst [vmem:[#allocation49_spill] sm:$0xff] %v13880_v33  ;;  %v18691_v14 = vrot.slane %v13435_v2, 1  ;;  %5310 = vmatpush.bf16.msrb.mxu3 %v11583_v32 }
 0x2a0   :  { %v11888_v46 = vunpack.i.h.bf16 %v11886_v40  ;;  %v11887_v55 = vunpack.i.l.bf16 %v11886_v40  ;;  %v850_v38 = vsel %vm359_vm13, %v13515_v4, %v802_v50  ;;  %10124 = vmatmul.msk.bf16.vlgmr.msra.gmra.mxu2 %vm103_vm1, %v11577_v51  ;;  %v13904_v2 = vadd.f32 %v4690_v43, %v4662_v25 }
 0x2a1   :  { %v13876_v6 = vunpack.c.l.bf16 %v1231_v17  ;;  %v1232_v17 = vpack.c.bf16 %v1224_v58, %v1224_v58  ;;  %12135 = vpow2.f32 %v1601_v9  ;;  %v18572_v4 = vrot.slane %v13800_v1, 1 }
 0x2a2   :  { %v13909_v48 = vsel %vm368_vm14, %v850_v38, %v11887_v55  ;;  %v13912_v40 = vsel %vm368_vm14, %v1314_v52, %v11888_v46  ;;  %v13917_v30 = vadd.f32 %v13848_v53, %v13158_v34  ;;  %5311 = vmatmul.bf16.vlgmr.msrb.gmra.mxu3 %v13632_v63  ;;  %v13924_v59 = vadd.f32 %v13848_v53, %v13174_v29 }
 0x2a3   :  { %v1247_v5 = vsub.f32 %v1223_v12, %v13876_v6  ;;  %v885_v12 = vsel %vm394_vm0, %v18691_v14, %v884_v62  ;;  %v4823_v10 = vpop.f32.mrf.mxu2  ;;  %v4852_v16 = vpop.f32.mrf.mxu3  ;;  %v13919_v43 = vunpack.c.l.bf16 %v1232_v17  ;;  %866 = vst.msk [vmem:[#allocation2 + $0x110] sm:$0xff] %vm377_vm15, %v13909_v48  ;;  %v887_v32 = vsel %vm394_vm0, %v884_v62, %v18572_v4 }
 0x2a4   :  { %900 = vrot.lane.b32.xlu0 %v885_v12, %s12337_s30  ;;  %v1261_v14 = vpop.permute.xlu1 %1260  ;;  %v11891_v50 = vpop.permute.xlu0 %11890  ;;  %1330 = vst.msk [vmem:[#allocation2 + $0x120] sm:$0xff] %vm377_vm15, %v13912_v40  ;;  %v1586_v9 = vand.u32 2147483647, %v13917_v30  ;;  %v1587_v46 = vand.u32 2147483647, %v13924_v59  ;;  %v4853_v4 = vadd.f32 %v4852_v16, %v4823_v10 }
 0x2a5   :  { %1268 = vrot.lane.b32.xlu2 %v1247_v5, %s12335_s22  ;;  %v13906_v26 = vpop.eup %12133  ;;  %v1263_v5 = vpop.permute.xlu2 %1262  ;;  %v1248_v34 = vsub.f32 %v1224_v58, %v13919_v43  ;;  %v11893_v63 = vunpack.i.h.bf16 %v11891_v50  ;;  %v11892_v12 = vunpack.i.l.bf16 %v11891_v50  ;;  %v1315_v58 = vsel %vm359_vm13, %v13595_v44, %v1261_v14 }
 0x2a6   :  { %v1209_v51 = vadd.f32 1.0, %v13906_v26  ;;  %v4666_v29 = vpop.f32.mrf.mxu0  ;;  %v4695_v7 = vpop.f32.mrf.mxu1  ;;  %v1316_v55 = vsel %vm359_vm13, %v13565_v49, %v1263_v5  ;;  %v1212_v52 = vmul.f32 -0.5, %v13906_v26  ;;  %v1595_v5 = vsub.f32 0.0, %v1587_v46 }
 0x2a7   :  { %902 = vrot.lane.b32.xlu1 %v887_v32, %s12337_s30  ;;  %v13942_v25 = vpop.eup %12135  ;;  %v13950_v38 = vsel %vm368_vm14, %v1316_v55, %v11893_v63  ;;  %v1594_v32 = vsub.f32 0.0, %v1586_v9  ;;  %v939_v44 = vrot.slane %v13909_v48, 2  ;;  %v18573_v14 = vrot.slane %v13912_v40, 2 }
 0x2a8   :  { %12137 = vlog2.f32 %v1209_v51  ;;  %1332 = vst.msk [vmem:[#allocation2 + $0x140] sm:$0xff] %vm377_vm15, %v13950_v38  ;;  %v1617_v50 = vadd.f32 1.0, %v13942_v25  ;;  %v13964_v51 = vadd.f32 %v4853_v4, %v13788_v42  ;;  %v1213_v9 = vadd.f32 1.0, %v1212_v52 }
 0x2a9   :  { %v4667_v16 = vadd.f32 %v4666_v29, %v13785_v35  ;;  %v1603_v4 = vmul.f32 1.442695, %v1594_v32  ;;  %v1605_v33 = vmul.f32 1.442695, %v1595_v5  ;;  %v1620_v29 = vmul.f32 -0.5, %v13942_v25 }
 0x2aa   :  { %18693 = vst [vmem:[#allocation52_spill] sm:$0xff] %v13964_v51  ;;  %12139 = vlog2.f32 %v1617_v50  ;;  %v1215_v51 = vand.u32 2147483647, %v13906_v26  ;;  %v1214_v5 = vmul.f32 %v13906_v26, %v1213_v9  ;;  %v18697_v9 = vrot.slane %v13800_v1, 1 }
 0x2ab   :  { %v13938_v17 = vpop.f32.mrf.mxu2  ;;  %v13940_v62 = vpop.f32.mrf.mxu3  ;;  %12141 = vpow2.f32 %v1603_v4  ;;  %v1621_v26 = vadd.f32 1.0, %v1620_v29 }
 0x2ac   :  { %1270 = vrot.lane.b32.xlu0 %v1248_v34, %s12335_s22  ;;  %18692 = vst [vmem:[#allocation51_spill] sm:$0xff] %v13940_v62  ;;  %v13957_v34 = vsel %vm368_vm14, %v1315_v58, %v11892_v12  ;;  %v11896_v49 = vpop.permute.xlu1 %11895  ;;  %v1267_v63 = vpop.permute.xlu0 %1266  ;;  %v18694_v12 = vrot.slane %v13800_v1, 2  ;;  %v13980_v62 = vadd.f32 %v4695_v7, %v4667_v16  ;;  %vm13999_vm11 = vcmp.lt.f32.partialorder %v1215_v51, 0.0004427343 }
 0x2ad   :  { %1331 = vst.msk [vmem:[#allocation2 + $0x130] sm:$0xff] %vm377_vm15, %v13957_v34  ;;  %v1265_v56 = vpop.permute.xlu2 %1264  ;;  %v11898_v46 = vunpack.i.h.bf16 %v11896_v49  ;;  %v1318_v35 = vsel %vm359_vm13, %v13611_v22, %v1267_v63  ;;  %v888_v22 = vrot.slane %v13909_v48, 1  ;;  %12143 = vpow2.f32 %v1605_v33 }
 0x2ae   :  { %v13966_v55 = vpop.f32.mrf.mxu0  ;;  %v940_v10 = vsel %vm449_vm2, %v18694_v12, %v939_v44  ;;  %v13975_v58 = vpop.f32.mrf.mxu1  ;;  %v1317_v50 = vsel %vm359_vm13, %v13585_v41, %v1265_v56  ;;  %v1346_v41 = vrot.slane %v13912_v40, 1  ;;  %v1623_v48 = vand.u32 2147483647, %v13942_v25 }
 0x2af   :  { %1412 = vrot.lane.b32.xlu1 %v18573_v14, %s12338_s8  ;;  %v12138_v42 = vpop.eup %12137  ;;  %955 = vrot.lane.b32.xlu2 %v940_v10, %s12338_s8  ;;  %v11897_v14 = vunpack.i.l.bf16 %v11896_v49  ;;  %v13990_v32 = vsel %vm368_vm14, %v1318_v35, %v11898_v46  ;;  %v1113_v49 = vmax.f32 %v13841_v61, 0.0  ;;  %v889_v10 = vsel %vm394_vm0, %v18697_v9, %v888_v22 }
 0x2b0   :  { %10179 = vmatmul.msk.bf16.vlgmr.msrb.gmra.mxu2 %vm359_vm13, %v13810_v20  ;;  %1334 = vst.msk [vmem:[#allocation2 + $0x160] sm:$0xff] %vm377_vm15, %v13990_v32  ;;  %v12140_v56 = vpop.eup %12139  ;;  %v1622_v4 = vmul.f32 %v13942_v25, %v1621_v26  ;;  %vm14028_vm4 = vcmp.lt.f32.partialorder %v1623_v48, 0.0004427343  ;;  %v1347_v9 = vrot.slane %v13957_v34, 1 }
 0x2b1   :  { %v13994_v7 = vsel %vm368_vm14, %v1317_v50, %v11897_v14  ;;  %v1619_v1 = vmul.f32 0.6931472, %v12140_v56  ;;  %v1577_v50 = vmax.f32 %v13852_v0, 0.0  ;;  %v18701_v56 = vrot.slane %v13912_v40, 2 }
 0x2b2   :  { %1333 = vst.msk [vmem:[#allocation2 + $0x150] sm:$0xff] %vm377_vm15, %v13994_v7  ;;  %5316 = vmatmul.bf16.gmra.mxu3 %v13827_v11  ;;  %v1348_v29 = vsel %vm394_vm0, %v1346_v41, %v1347_v9 }
 0x2b3   :  { %v4828_v52 = vpop.f32.mrf.mxu2  ;;  %v4857_v12 = vpop.f32.mrf.mxu3  ;;  %v1625_v25 = vsel %vm14028_vm4, %v1622_v4, %v1619_v1  ;;  %vm18709_vm4 = vcmask 1048326  }
 0x2b4   :  { %957 = vrot.lane.b32.xlu0 %v939_v44, %s12338_s8  ;;  %v1211_v44 = vmul.f32 0.6931472, %v12138_v42  ;;  %v4858_v14 = vadd.f32 %v4857_v12, %v4828_v52  ;;  %v12142_v42 = vpop.eup %12141 }
 0x2b5   :  { %v12144_v35 = vpop.eup %12143 }
 0x2b6   :  { %v4671_v63 = vpop.f32.mrf.mxu0  ;;  %v1217_v51 = vsel %vm13999_vm11, %v1214_v5, %v1211_v44  ;;  %v14018_v11 = vadd.f32 %v4858_v14, %v13904_v2  ;;  %v4700_v46 = vpop.f32.mrf.mxu1  ;;  %v1398_v2 = vrot.slane %v13957_v34, 2  ;;  %v1626_v44 = vadd.f32 1.0, %v12142_v42 }
 0x2b7   :  { %1361 = vrot.lane.b32.xlu1 %v1346_v41, %s12337_s30  ;;  %904 = vrot.lane.b32.xlu2 %v889_v10, %s12337_s30  ;;  %v4672_v61 = vadd.f32 %v4671_v63, %v13835_v18  ;;  %v1225_v52 = vadd.f32 %v1217_v51, %v1113_v49  ;;  %v1400_v18 = vrot.slane %v13950_v38, 2  ;;  %v11899_v5 = vpack.i.bf16 %v13919_v43, %v13876_v6 }
 0x2b8   :  { %v1399_v26 = vsel %vm449_vm2, %v18701_v56, %v1398_v2  ;;  %v1689_v63 = vadd.f32 %v1625_v25, %v1577_v50  ;;  %12145 = vlog2.f32 %v1626_v44  ;;  %v1629_v51 = vmul.f32 -0.5, %v12142_v42 }
 0x2b9   :  { %v14026_v12 = vadd.f32 %v4700_v46, %v4672_v61  ;;  %v1233_v20 = vpack.c.bf16 %v1225_v52, %v1225_v52  ;;  %v1401_v49 = vsel %vm449_vm2, %v1398_v2, %v1400_v18  ;;  %v1638_v10 = vmul.f32 -0.5, %v12144_v35 }
 0x2ba   :  { %v1349_v61 = vrot.slane %v13950_v38, 1  ;;  %v1697_v1 = vpack.c.bf16 %v1689_v63, %v1689_v63  ;;  %v1630_v4 = vadd.f32 1.0, %v1629_v51  ;;  %v1632_v44 = vand.u32 2147483647, %v12142_v42 }
 0x2bb   :  { %v14021_v33 = vpop.f32.mrf.mxu2  ;;  %v14023_v16 = vpop.f32.mrf.mxu3  ;;  %v14048_v40 = vunpack.c.l.bf16 %v1233_v20 }
 0x2bc   :  { %906 = vrot.lane.b32.xlu0 %v888_v22, %s12337_s30  ;;  %18698 = vst [vmem:[#allocation53_spill] sm:$0xff] %v14023_v16  ;;  %v1635_v22 = vadd.f32 1.0, %v12144_v35  ;;  %v1350_v25 = vsel %vm394_vm0, %v1347_v9, %v1349_v61  ;;  %v1631_v56 = vmul.f32 %v12142_v42, %v1630_v4  ;;  %vm1633_vm3 = vcmp.lt.f32.partialorder %v1632_v44, 0.0004427343 }
 0x2bd   :  { %v1249_v2 = vsub.f32 %v1225_v52, %v14048_v40  ;;  %v18574_v4 = vrot.slane %v13990_v32, 2 }
 0x2be   :  { %12147 = vlog2.f32 %v1635_v22  ;;  %v12146_v50 = vpop.eup %12145  ;;  %v1641_v22 = vand.u32 2147483647, %v12144_v35 }
 0x2bf   :  { %11900 = vrot.lane.b32.xlu1 %v11899_v5, %s12336_s23  ;;  %1414 = vrot.lane.b32.xlu2 %v1399_v26, %s12338_s8  ;;  %v1639_v5 = vadd.f32 1.0, %v1638_v10  ;;  %v1628_v20 = vmul.f32 0.6931472, %v12146_v50  ;;  %v1351_v26 = vrot.slane %v13994_v7, 1 }
 0x2c0   :  { %vm1642_vm11 = vcmp.lt.f32.partialorder %v1641_v22, 0.0004427343 }
 0x2c1   :  { %v1640_v52 = vmul.f32 %v12144_v35, %v1639_v5  ;;  %v1352_v42 = vsel %vm394_vm0, %v1349_v61, %v1351_v26 }
 0x2c3   :  { %v4833_v0 = vpop.f32.mrf.mxu2  ;;  %v4862_v14 = vpop.f32.mrf.mxu3 }
 0x2c4   :  { %1416 = vrot.lane.b32.xlu0 %v1401_v49, %s12338_s8  ;;  %v4863_v48 = vadd.f32 %v4862_v14, %v4833_v0  ;;  %v12148_v34 = vpop.eup %12147  ;;  %v1578_v49 = vmax.f32 %v13917_v30, 0.0  ;;  %v1634_v14 = vsel %vm1633_vm3, %v1631_v56, %v1628_v20  ;;  %v18575_v30 = vrot.slane %v13990_v32, 1 }
 0x2c5   :  { %v1637_v41 = vmul.f32 0.6931472, %v12148_v34 }
 0x2c6   :  { %v14053_v46 = vadd.f32 %v4863_v48, %v13980_v62  ;;  %v14061_v62 = vunpack.c.l.bf16 %v1697_v1  ;;  %v1579_v48 = vmax.f32 %v13924_v59, 0.0  ;;  %v1690_v35 = vadd.f32 %v1634_v14, %v1578_v49  ;;  %v5613_v49 = vld [vmem:[%s18559_s4 + $0x28] sm:$0x1] }
 0x2c7   :  { %1363 = vrot.lane.b32.xlu1 %v1348_v29, %s12337_s30  ;;  %1365 = vrot.lane.b32.xlu2 %v1350_v25, %s12337_s30  ;;  %v1643_v9 = vsel %vm1642_vm11, %v1640_v52, %v1637_v41  ;;  %v1402_v1 = vrot.slane %v13994_v7, 2 }
 0x2c8   :  { %18702 = vst [vmem:[#allocation54_spill] sm:$0xff] %v14053_v46  ;;  %v11904_v0 = vpack.i.bf16 %v14061_v62, %v14048_v40  ;;  %v1713_v51 = vsub.f32 %v1689_v63, %v14061_v62  ;;  %v1691_v10 = vadd.f32 %v1643_v9, %v1579_v48  ;;  %v1698_v59 = vpack.c.bf16 %v1690_v35, %v1690_v35 }
 0x2c9   :  { %v1354_v63 = vsel %vm394_vm0, %v1351_v26, %v18575_v30  ;;  %v1403_v61 = vsel %vm449_vm2, %v1400_v18, %v1402_v1 }
 0x2ca   :  { %v1699_v29 = vpack.c.bf16 %v1691_v10, %v1691_v10  ;;  %v14088_v7 = vunpack.c.l.bf16 %v1698_v59  ;;  %v11608_v59 = vld [vmem:[%s18560_s5 + $0xc8] sm:$0xff] }
 0x2cb   :  { %v14102_v34 = vpop.f32.mrf.mxu3  ;;  %v14104_v22 = vpop.f32.mrf.mxu2  ;;  %5469 = vmatpush.bf16.msra.mxu1 %v11608_v59 }
 0x2cc   :  { %1272 = vrot.lane.b32.xlu0 %v1249_v2, %s12335_s22  ;;  %v1405_v2 = vsel %vm449_vm2, %v1402_v1, %v18574_v4  ;;  %v14090_v50 = vunpack.c.l.bf16 %v1699_v29  ;;  %v1714_v44 = vsub.f32 %v1690_v35, %v14088_v7 }
 0x2ce   :  { %v1715_v38 = vsub.f32 %v1691_v10, %v14090_v50  ;;  %v11909_v18 = vpack.i.bf16 %v14090_v50, %v14088_v7 }
 0x2cf   :  { %11905 = vrot.lane.b32.xlu1 %v11904_v0, %s12336_s23  ;;  %1729 = vrot.lane.b32.xlu2 %v1713_v51, %s12335_s22  ;;  %v5655_v0 = vunpack.c.l.b16 %v5613_v49  ;;  %v11615_v49 = vld [vmem:[%s18559_s4 + $0x8] sm:$0xff] }
 0x2d1   :  { %v5661_v48 = vpack.c.b16 %v5655_v0, %v5655_v0 }
 0x2d3   :  { %v5680_v10 = vand.u32 %v5661_v48, %v12382_v3 }
 0x2d4   :  { %1367 = vrot.lane.b32.xlu0 %v1352_v42, %s12337_s30 }
 0x2d5   :  { %5684 = vmatpush.bf16.msra.mxu3 %v5680_v10  ;;  %v11605_v10 = vld [vmem:[%s18560_s5 + $0xb0] sm:$0xff] }
 0x2d7   :  { %1369 = vrot.lane.b32.xlu1 %v1354_v63, %s12337_s30  ;;  %1418 = vrot.lane.b32.xlu2 %v1403_v61, %s12338_s8  ;;  %v11635_v63 = vld [vmem:[%s18560_s5 + $0x80] sm:$0xff] }
 0x2d8   :  { %5843 = vmatpush.bf16.msra.mxu0 %v11635_v63  ;;  %v1589_v63 = vand.u32 2147483647, %v13207_v21 }
 0x2dc   :  { %1420 = vrot.lane.b32.xlu0 %v1405_v2, %s12338_s8  ;;  %v11617_v2 = vld [vmem:[%s18559_s4 + $0x18] sm:$0xff] }
 0x2df   :  { %1731 = vrot.lane.b32.xlu1 %v1714_v44, %s12335_s22  ;;  %1733 = vrot.lane.b32.xlu2 %v1715_v38, %s12335_s22 }
 0x2e4   :  { %11910 = vrot.lane.b32.xlu0 %v11909_v18, %s12336_s23  ;;  %v11607_v18 = vld [vmem:[%s18560_s5 + $0xc0] sm:$0xff] }
 0x2e5   :  { %5470 = vmatpush.bf16.msra.mxu1 %v11607_v18  ;;  %v11631_v18 = vld [vmem:[%s18560_s5 + $0x60] sm:$0xff] }
 0x2f2   :  { %v954_v5 = vpop.permute.xlu2 %953 }
 0x2f3   :  { %981 = vst.msk [vmem:[#allocation2 + $0xf8] sm:$0xff] %vm359_vm13, %v954_v5 }
 0x2fa   :  { %v5067_v35 = vld [vmem:[#allocation2 + $0xf8] sm:$0xff] }
 0x2ff   :  { %v14100_v25 = vpop.permute.xlu2 %1268 }
 0x309   :  { %v956_v20 = vpop.permute.xlu2 %955 }
 0x30a   :  { %983 = vst.msk [vmem:[#allocation2 + $0x108] sm:$0xff] %vm359_vm13, %v956_v20 }
 0x30f   :  { %v4867_v41 = vpop.f32.mrf.mxu3 }
 0x311   :  { %v952_v56 = vpop.permute.xlu1 %951  ;;  %v4838_v52 = vpop.f32.mrf.mxu2 }
 0x312   :  { %979 = vst.msk [vmem:[#allocation2 + $0xe8] sm:$0xff] %vm359_vm13, %v952_v56  ;;  %v4868_v26 = vadd.f32 %v4867_v41, %v4838_v52  ;;  %v905_v51 = vpop.permute.xlu2 %904 }
 0x313   :  { %924 = vst.msk [vmem:[#allocation2 + $0x100] sm:$0xff] %vm439_vm5, %v905_v51 }
 0x314   :  { %v14112_v14 = vadd.f32 %v4868_v26, %v14026_v12  ;;  %982 = vst.msk [vmem:[#allocation2 + $0x100] sm:$0xff] %vm496_vm6, %v956_v20  ;;  %v11618_v12 = vld [vmem:[%s18559_s4 + $0x20] sm:$0xff]  ;;  %v11634_v20 = vld [vmem:[%s18560_s5 + $0x78] sm:$0xff] }
 0x315   :  { %5685 = vmatpush.bf16.msra.mxu3 %v11618_v12  ;;  %5844 = vmatpush.bf16.msra.mxu0 %v11634_v20  ;;  %v11606_v26 = vld [vmem:[%s18560_s5 + $0xb8] sm:$0xff]  ;;  %v11632_v12 = vld [vmem:[%s18560_s5 + $0x68] sm:$0xff] }
 0x316   :  { %18703 = vst [vmem:[#allocation55_spill] sm:$0xff] %v14112_v14  ;;  %v901_v9 = vpop.permute.xlu0 %900  ;;  %5471 = vmatpush.bf16.msra.mxu1 %v11606_v26 }
 0x317   :  { %922 = vst.msk [vmem:[#allocation2 + $0xe0] sm:$0xff] %vm439_vm5, %v901_v9  ;;  %v11633_v9 = vld [vmem:[%s18560_s5 + $0x70] sm:$0xff] }
 0x318   :  { %978 = vst.msk [vmem:[#allocation2 + $0xe0] sm:$0xff] %vm496_vm6, %v952_v56 }
 0x319   :  { %v5065_v42 = vld [vmem:[#allocation2 + $0xe8] sm:$0xff]  ;;  %v903_v29 = vpop.permute.xlu1 %902  ;;  %v14135_v61 = vpop.f32.mrf.mxu2  ;;  %5686 = vmatpush.bf16.msra.mxu3 %v11617_v2  ;;  %5845 = vmatpush.bf16.msra.mxu0 %v11633_v9 }
 0x31a   :  { %v14117_v1 = vpack.c.bf16 %v5067_v35, %v5065_v42  ;;  %923 = vst.msk [vmem:[#allocation2 + $0xf0] sm:$0xff] %vm439_vm5, %v903_v29  ;;  %v14140_v44 = vpop.permute.xlu2 %1414  ;;  %v14170_v42 = vadd.f32 %v13848_v53, %v13178_v45  ;;  %v11614_v45 = vld [vmem:[%s18559_s4] sm:$0xff]  ;;  %5472 = vmatpush.bf16.msra.mxu1 %v11605_v10  ;;  %v11604_v29 = vld [vmem:[%s18560_s5 + $0xa8] sm:$0xff]  ;;  %v11609_v10 = vld [vmem:[%s18560_s5 + $0xd0] sm:$0xff] }
 0x31b   :  { %18704 = vst [vmem:[#allocation56_spill] sm:$0xff] %v14135_v61  ;;  %5505 = vmatpush.bf16.msra.mxu2 %v11609_v10 }
 0x31c   :  { %10180 = vmatmul.msk.bf16.gmra.mxu2 %vm359_vm13, %v14117_v1  ;;  %10221 = vmatmul.msk.bf16.gmra.mxu0 %vm359_vm13, %v14117_v1  ;;  %980 = vst.msk [vmem:[#allocation2 + $0xf0] sm:$0xff] %vm496_vm6, %v954_v5  ;;  %v11616_v5 = vld [vmem:[%s18559_s4 + $0x10] sm:$0xff]  ;;  %v1588_v59 = vand.u32 2147483647, %v14170_v42 }
 0x31d   :  { %1442 = vst.msk [vmem:[#allocation2 + $0x128] sm:$0xff] %vm359_vm13, %v14140_v44  ;;  %5687 = vmatpush.bf16.msra.mxu3 %v11616_v5  ;;  %5846 = vmatpush.bf16.msra.mxu0 %v11632_v12  ;;  %v14212_v12 = vadd.f32 %v13848_v53, %v13224_v8 }
 0x31e   :  { %v14143_v38 = vpop.permute.xlu0 %1270  ;;  %5473 = vmatpush.bf16.msra.mxu1 %v11604_v29  ;;  %v14216_v29 = vpop.f32.mrf.mxu3 }
 0x31f   :  { %v5064_v56 = vld [vmem:[#allocation2 + $0xe0] sm:$0xff]  ;;  %18708 = vst [vmem:[#allocation60_spill] sm:$0xff] %v14216_v29  ;;  %v1320_v30 = vsel %vm359_vm13, %v13919_v43, %v14143_v38 }
 0x321   :  { %v1413_v41 = vpop.permute.xlu1 %1412  ;;  %5688 = vmatpush.bf16.msra.mxu3 %v11615_v49  ;;  %v1597_v49 = vsub.f32 0.0, %v1589_v63  ;;  %5847 = vmatpush.bf16.msra.mxu0 %v11631_v18 }
 0x322   :  { %v1366_v0 = vpop.permute.xlu2 %1365  ;;  %1440 = vst.msk [vmem:[#allocation2 + $0x118] sm:$0xc0] %vm494_vm12, %v1413_v41 }
 0x323   :  { %v5066_v52 = vld [vmem:[#allocation2 + $0xf0] sm:$0xff]  ;;  %1390 = vst.msk [vmem:[#allocation2 + $0x130] sm:$0xff] %vm439_vm5, %v1366_v0  ;;  %v14176_v35 = vpop.f32.mrf.mxu2  ;;  %v1609_v8 = vmul.f32 1.442695, %v1597_v49 }
 0x324   :  { %v14163_v51 = vpack.c.bf16 %v5066_v52, %v5064_v56  ;;  %18705 = vst [vmem:[#allocation57_spill] sm:$0xff] %v14176_v35  ;;  %v1596_v56 = vsub.f32 0.0, %v1588_v59  ;;  %v5069_v52 = vld [vmem:[#allocation2 + $0x108] sm:$0xff]  ;;  %v14214_v59 = vpop.f32.mrf.mxu1 }
 0x325   :  { %5689 = vmatpush.bf16.msra.mxu3 %v11614_v45  ;;  %v11603_v45 = vld [vmem:[%s18560_s5 + $0xa0] sm:$0xff]  ;;  %18707 = vst [vmem:[#allocation59_spill] sm:$0xff] %v14214_v59 }
 0x326   :  { %v958_v48 = vpop.permute.xlu0 %957  ;;  %5201 = vmatmul.bf16.gmra.mxu1 %v14163_v51  ;;  %5321 = vmatmul.bf16.gmra.mxu3 %v14163_v51  ;;  %v1607_v63 = vmul.f32 1.442695, %v1596_v56  ;;  %v11629_v56 = vld [vmem:[%s18560_s5 + $0x50] sm:$0xff] }
 0x327   :  { %985 = vst.msk [vmem:[#allocation2 + $0x118] sm:$0x3f] %vm513_vm9, %v958_v48  ;;  %5474 = vmatpush.bf16.msra.mxu1 %v11603_v45 }
 0x328   :  { %12149 = vpow2.f32 %v1607_v63 }
 0x329   :  { %v1362_v2 = vpop.permute.xlu1 %1361  ;;  %12151 = vpow2.f32 %v1609_v8 }
 0x32a   :  { %v14195_v20 = vpop.permute.xlu2 %1729  ;;  %1388 = vst.msk [vmem:[#allocation2 + $0x110] sm:$0x80] %vm437_vm10, %v1362_v2  ;;  %v14229_v2 = vld [vmem:[%s18557_s3] ss:$0 sm:$0xff] }
 0x32b   :  { %v14202_v9 = vpop.f32.mrf.mxu2 }
 0x32c   :  { %18706 = vst [vmem:[#allocation58_spill] sm:$0xff] %v14202_v9  ;;  %v5197_v43 = vpop.f32.mrf.mxu1 }
 0x32e   :  { %v907_v5 = vpop.permute.xlu0 %906  ;;  %v5071_v26 = vld [vmem:[#allocation2 + $0x118] sm:$0xff] }
 0x32f   :  { %925 = vst.msk [vmem:[#allocation2 + $0x110] sm:$0x7f] %vm447_vm7, %v907_v5  ;;  %v14200_v0 = vpack.c.bf16 %v5071_v26, %v5069_v52  ;;  %v11602_v5 = vld [vmem:[%s18560_s5 + $0x98] sm:$0xff]  ;;  %v1591_v52 = vand.u32 2147483647, %v13269_v37  ;;  %v14241_v26 = vadd.f32 %v13848_v53, %v13350_v47  ;;  %v14255_v47 = vadd.f32 %v14229_v2, %v13366_v24 }
 0x330   :  { %984 = vst.msk [vmem:[#allocation2 + $0x110] sm:$0x3f] %vm511_vm8, %v958_v48  ;;  %v11630_v48 = vld [vmem:[%s18560_s5 + $0x58] sm:$0xff]  ;;  %5475 = vmatpush.bf16.msra.mxu1 %v11602_v5 }
 0x331   :  { %1439 = vst.msk [vmem:[#allocation2 + $0x110] sm:$0xc0] %vm18709_vm4, %v1413_v41  ;;  %10181 = vmatmul.msk.bf16.gmra.mxu2 %vm359_vm13, %v14200_v0  ;;  %10222 = vmatmul.msk.bf16.gmra.mxu0 %vm359_vm13, %v14200_v0  ;;  %v1590_v41 = vand.u32 2147483647, %v14212_v12  ;;  %v11901_v18 = vpop.permute.xlu1 %11900 }
 0x332   :  { %5848 = vmatpush.bf16.msra.mxu0 %v11630_v48  ;;  %v14243_v49 = vpop.permute.xlu2 %1418  ;;  %v11903_v10 = vunpack.i.h.bf16 %v11901_v18  ;;  %v11902_v45 = vunpack.i.l.bf16 %v11901_v18  ;;  %v1319_v48 = vsel %vm359_vm13, %v13876_v6, %v14100_v25  ;;  %v5068_v6 = vld [vmem:[#allocation2 + $0x100] sm:$0xff] }
 0x333   :  { %1446 = vst.msk [vmem:[#allocation2 + $0x148] sm:$0xff] %vm359_vm13, %v14243_v49  ;;  %v5226_v18 = vpop.f32.mrf.mxu2  ;;  %v1598_v9 = vsub.f32 0.0, %v1590_v41  ;;  %v18711_v41 = vrot.slane %v13990_v32, 2 }
 0x334   :  { %v1327_v53 = vsel %vm368_vm14, %v1319_v48, %v11902_v45  ;;  %v14259_v63 = vsel %vm368_vm14, %v1320_v30, %v11903_v10  ;;  %v1599_v45 = vsub.f32 0.0, %v1591_v52  ;;  %v1592_v30 = vand.u32 2147483647, %v14241_v26  ;;  %v5312_v48 = vpop.f32.mrf.mxu3 }
 0x335   :  { %1335 = vst.msk [vmem:[#allocation2 + $0x170] sm:$0xff] %vm377_vm15, %v1327_v53  ;;  %v1355_v8 = vrot.slane %v1327_v53, 1  ;;  %v1406_v5 = vrot.slane %v1327_v53, 2  ;;  %v18576_v24 = vrot.slane %v14259_v63, 1  ;;  %v5227_v10 = vadd.f32 %v5226_v18, %v5197_v43  ;;  %v14292_v43 = vpop.eup %12149 }
 0x336   :  { %v1417_v4 = vpop.permute.xlu0 %1416  ;;  %5849 = vmatpush.bf16.msra.mxu0 %v11629_v56  ;;  %1336 = vst.msk [vmem:[#allocation2 + $0x180] sm:$0xff] %vm377_vm15, %v14259_v63  ;;  %v18710_v53 = vrot.slane %v13990_v32, 1  ;;  %v2056_v18 = vand.u32 2147483647, %v14255_v47  ;;  %v1611_v35 = vmul.f32 1.442695, %v1598_v9 }
 0x337   :  { %1443 = vst.msk [vmem:[#allocation2 + $0x130] sm:$0xff] %vm496_vm6, %v1417_v4  ;;  %v1407_v56 = vsel %vm449_vm2, %v18711_v41, %v1406_v5  ;;  %v1358_v52 = vsel %vm394_vm0, %v1355_v8, %v18576_v24  ;;  %v14290_v32 = vadd.f32 %v5312_v48, %v5227_v10  ;;  %v1613_v41 = vmul.f32 1.442695, %v1599_v45 }
 0x338   :  { %v5070_v25 = vld [vmem:[#allocation2 + $0x110] sm:$0xff]  ;;  %1444 = vst.msk [vmem:[#allocation2 + $0x138] sm:$0xff] %vm359_vm13, %v1417_v4  ;;  %1422 = vrot.lane.b32.xlu0 %v1407_v56, %s12338_s8  ;;  %1373 = vrot.lane.b32.xlu2 %v1358_v52, %s12337_s30  ;;  %v1600_v14 = vsub.f32 0.0, %v1592_v30  ;;  %v18577_v10 = vrot.slane %v14259_v63, 2  ;;  %v2064_v48 = vsub.f32 0.0, %v2056_v18  ;;  %v5099_v52 = vld [vmem:[#allocation2 + $0x128] sm:$0xff] }
 0x339   :  { %v14263_v38 = vpack.c.bf16 %v5070_v25, %v5068_v6  ;;  %v1356_v6 = vsel %vm394_vm0, %v18710_v53, %v1355_v8  ;;  %v11601_v4 = vld [vmem:[%s18560_s5 + $0x90] sm:$0xff]  ;;  %v11628_v25 = vld [vmem:[%s18560_s5 + $0x48] sm:$0xff]  ;;  %v1364_v8 = vpop.permute.xlu1 %1363  ;;  %v14295_v53 = vpop.eup %12151  ;;  %12153 = vpow2.f32 %v1613_v41 }
 0x33a   :  { %1371 = vrot.lane.b32.xlu1 %v1356_v6, %s12337_s30  ;;  %5476 = vmatpush.bf16.msra.mxu1 %v11601_v4  ;;  %1389 = vst.msk [vmem:[#allocation2 + $0x120] sm:$0xff] %vm439_vm5, %v1364_v8  ;;  %v1644_v6 = vadd.f32 1.0, %v14292_v43  ;;  %v1653_v56 = vadd.f32 1.0, %v14295_v53  ;;  %12155 = vpow2.f32 %v1611_v35  ;;  %v1615_v45 = vmul.f32 1.442695, %v1600_v14 }
 0x33b   :  { %5206 = vmatmul.bf16.gmra.mxu1 %v14263_v38  ;;  %5326 = vmatmul.bf16.gmra.mxu3 %v14263_v38  ;;  %1441 = vst.msk [vmem:[#allocation2 + $0x120] sm:$0xff] %vm496_vm6, %v14140_v44  ;;  %v1409_v9 = vsel %vm449_vm2, %v1406_v5, %v18577_v10  ;;  %v2072_v30 = vmul.f32 1.442695, %v2064_v48  ;;  %v1647_v44 = vmul.f32 -0.5, %v14292_v43  ;;  %v1656_v35 = vmul.f32 -0.5, %v14295_v53 }
 0x33c   :  { %5850 = vmatpush.bf16.msra.mxu0 %v11628_v25  ;;  %12157 = vlog2.f32 %v1644_v6  ;;  %v1785_v5 = vsel %vm359_vm13, %v14061_v62, %v14195_v20  ;;  %v1650_v20 = vand.u32 2147483647, %v14292_v43 }
 0x33d   :  { %12159 = vlog2.f32 %v1653_v56  ;;  %v11610_v56 = vld [vmem:[%s18561_s1 + $0x40] sm:$0xff] }
 0x33e   :  { %v1273_v24 = vpop.permute.xlu0 %1272  ;;  %12161 = vpow2.f32 %v1615_v45  ;;  %vm14353_vm3 = vcmp.lt.f32.partialorder %v1650_v20, 0.0004427343 }
 0x33f   :  { %v5101_v4 = vld [vmem:[#allocation2 + $0x138] sm:$0xff]  ;;  %v1321_v48 = vsel %vm359_vm13, %v14048_v40, %v1273_v24  ;;  %12163 = vpow2.f32 %v2072_v30  ;;  %v1659_v30 = vand.u32 2147483647, %v14295_v53 }
 0x340   :  { %v14303_v8 = vpack.c.bf16 %v5101_v4, %v5099_v52  ;;  %v5100_v4 = vld [vmem:[#allocation2 + $0x130] sm:$0xff] }
 0x341   :  { %v11906_v25 = vpop.permute.xlu1 %11905  ;;  %vm14361_vm11 = vcmp.lt.f32.partialorder %v1659_v30, 0.0004427343  ;;  %v1580_v30 = vmax.f32 %v14170_v42, 0.0  ;;  %v18717_v42 = vrot.slane %v14259_v63, 2 }
 0x342   :  { %1424 = vrot.lane.b32.xlu1 %v1409_v9, %s12338_s8  ;;  %10182 = vmatmul.msk.bf16.gmra.mxu2 %vm359_vm13, %v14303_v8  ;;  %v11908_v14 = vunpack.i.h.bf16 %v11906_v25  ;;  %v11907_v18 = vunpack.i.l.bf16 %v11906_v25  ;;  %v5098_v52 = vld [vmem:[#allocation2 + $0x120] sm:$0xff]  ;;  %v14324_v9 = vpop.eup %12153 }
 0x343   :  { %v14319_v6 = vpack.c.bf16 %v5100_v4, %v5098_v52  ;;  %v14332_v40 = vpop.eup %12155  ;;  %v18712_v52 = vrot.slane %v14259_v63, 1  ;;  %v11626_v63 = vld [vmem:[%s18560_s5 + $0x38] sm:$0xff] }
 0x344   :  { %v1329_v45 = vsel %vm368_vm14, %v1321_v48, %v11907_v18  ;;  %v14330_v62 = vsel %vm368_vm14, %v1785_v5, %v11908_v14  ;;  %v1657_v18 = vadd.f32 1.0, %v1656_v35  ;;  %v1671_v14 = vadd.f32 1.0, %v14324_v9  ;;  %5958 = vmatpush.bf16.msrb.mxu2 %v11626_v63 }
 0x345   :  { %v1359_v24 = vrot.slane %v1329_v45, 1  ;;  %1337 = vst.msk [vmem:[#allocation2 + $0x190] sm:$0xff] %vm377_vm15, %v1329_v45  ;;  %v18578_v25 = vrot.slane %v14330_v62, 1  ;;  %v1665_v61 = vmul.f32 -0.5, %v14332_v40 }
 0x346   :  { %v1368_v41 = vpop.permute.xlu0 %1367  ;;  %1801 = vst.msk [vmem:[#allocation2 + $0x1a0] sm:$0xff] %vm377_vm15, %v14330_v62  ;;  %v1658_v20 = vmul.f32 %v14295_v53, %v1657_v18  ;;  %12165 = vlog2.f32 %v1671_v14  ;;  %v1581_v18 = vmax.f32 %v13207_v21, 0.0  ;;  %v1668_v14 = vand.u32 2147483647, %v14332_v40 }
 0x347   :  { %1391 = vst.msk [vmem:[#allocation2 + $0x140] sm:$0xff] %vm439_vm5, %v1368_v41  ;;  %v1648_v41 = vadd.f32 1.0, %v1647_v44  ;;  %v1360_v4 = vsel %vm394_vm0, %v18712_v52, %v1359_v24  ;;  %v1662_v44 = vadd.f32 1.0, %v14332_v40  ;;  %1377 = vrot.lane.b32.xlu0 %v1359_v24, %s12337_s30 }
 0x348   :  { %1445 = vst.msk [vmem:[#allocation2 + $0x140] sm:$0xff] %vm496_vm6, %v14243_v49  ;;  %v12158_v49 = vpop.eup %12157  ;;  %1375 = vrot.lane.b32.xlu2 %v1360_v4, %s12337_s30  ;;  %vm14399_vm4 = vcmp.lt.f32.partialorder %v1668_v14, 0.0004427343 }
 0x349   :  { %v12160_v5 = vpop.eup %12159  ;;  %v1646_v52 = vmul.f32 0.6931472, %v12158_v49  ;;  %v1649_v59 = vmul.f32 %v14292_v43, %v1648_v41  ;;  %12167 = vlog2.f32 %v1662_v44  ;;  %v1674_v49 = vmul.f32 -0.5, %v14324_v9 }
 0x34a   :  { %1832 = vrot.lane.b32.xlu1 %v18578_v25, %s12337_s30  ;;  %v14351_v35 = vpop.eup %12161  ;;  %v1655_v29 = vmul.f32 0.6931472, %v12160_v5  ;;  %v1410_v41 = vrot.slane %v1329_v45, 2  ;;  %v1868_v5 = vrot.slane %v14330_v62, 2  ;;  %v1677_v45 = vand.u32 2147483647, %v14324_v9 }
 0x34b   :  { %5211 = vmatmul.bf16.gmra.mxu1 %v14319_v6  ;;  %10317 = vmatmul.msk.bf16.vlgmr.msra.gmra.mxu3 %vm103_vm1, %v11610_v56  ;;  %v1370_v56 = vpop.permute.xlu1 %1369  ;;  %v14358_v10 = vpop.eup %12163  ;;  %v1680_v43 = vadd.f32 1.0, %v14351_v35  ;;  %v1652_v53 = vsel %vm14353_vm3, %v1649_v59, %v1646_v52  ;;  %v1675_v46 = vadd.f32 1.0, %v1674_v49 }
 0x34c   :  { %1392 = vst.msk [vmem:[#allocation2 + $0x150] sm:$0xff] %vm439_vm5, %v1370_v56  ;;  %v2088_v4 = vadd.f32 1.0, %v14358_v10  ;;  %v1661_v44 = vsel %vm14361_vm11, %v1658_v20, %v1655_v29  ;;  %v1666_v56 = vadd.f32 1.0, %v1665_v61  ;;  %v1411_v21 = vsel %vm449_vm2, %v18717_v42, %v1410_v41  ;;  %v12166_v59 = vpop.eup %12165  ;;  %v1734_v61 = vpop.permute.xlu2 %1733 }
 0x34d   :  { %12169 = vlog2.f32 %v1680_v43  ;;  %v1683_v29 = vmul.f32 -0.5, %v14351_v35  ;;  %v14397_v20 = vadd.f32 %v1661_v44, %v1581_v18  ;;  %v2091_v43 = vmul.f32 -0.5, %v14358_v10  ;;  %v11611_v18 = vld [vmem:[%s18561_s1 + $0x48] sm:$0xff] }
 0x34e   :  { %v1421_v25 = vpop.permute.xlu0 %1420  ;;  %12171 = vlog2.f32 %v2088_v4  ;;  %v1673_v44 = vmul.f32 0.6931472, %v12166_v59  ;;  %v1676_v48 = vmul.f32 %v14324_v9, %v1675_v46  ;;  %vm14413_vm3 = vcmp.lt.f32.partialorder %v1677_v45, 0.0004427343  ;;  %v14427_v45 = vpop.f32.mrf.mxu0 }
 0x34f   :  { %1447 = vst.msk [vmem:[#allocation2 + $0x150] sm:$0xff] %vm496_vm6, %v1421_v25  ;;  %1428 = vrot.lane.b32.xlu0 %v1410_v41, %s12338_s8  ;;  %v12168_v24 = vpop.eup %12167  ;;  %v2092_v9 = vadd.f32 1.0, %v2091_v43 }
 0x350   :  { %1448 = vst.msk [vmem:[#allocation2 + $0x158] sm:$0xff] %vm359_vm13, %v1421_v25  ;;  %v14387_v25 = vadd.f32 %v1652_v53, %v1580_v30  ;;  %1426 = vrot.lane.b32.xlu2 %v1411_v21, %s12338_s8  ;;  %v5715_v30 = vld [vmem:[#allocation2 + $0x140] sm:$0xff]  ;;  %v1667_v53 = vmul.f32 %v14332_v40, %v1666_v56  ;;  %v11625_v40 = vld [vmem:[%s18560_s5 + $0x30] sm:$0xff]  ;;  %v1664_v56 = vmul.f32 0.6931472, %v12168_v24  ;;  %v1583_v24 = vmax.f32 %v13269_v37, 0.0 }
 0x351   :  { %v1679_v43 = vsel %vm14413_vm3, %v1676_v48, %v1673_v44  ;;  %5959 = vmatpush.bf16.msrb.mxu2 %v11625_v40  ;;  %v2093_v44 = vmul.f32 %v14358_v10, %v2092_v9  ;;  %v2048_v9 = vmax.f32 %v14255_v47, 0.0 }
 0x352   :  { %1883 = vrot.lane.b32.xlu1 %v1868_v5, %s12338_s8  ;;  %10277 = vmatmul.msk.bf16.vlgmr.msra.gmra.mxu2 %vm359_vm13, %v14117_v1  ;;  %v1670_v16 = vsel %vm14399_vm4, %v1667_v53, %v1664_v56  ;;  %v1695_v40 = vadd.f32 %v1679_v43, %v1583_v24  ;;  %v18727_v56 = vmax.f32 %v14212_v12, 0.0  ;;  %vm18742_vm4 = vcmask 1048326  }
 0x353   :  { %v1732_v52 = vpop.permute.xlu1 %1731  ;;  %v12170_v46 = vpop.eup %12169 }
 0x354   :  { %v1786_v41 = vsel %vm359_vm13, %v14088_v7, %v1732_v52  ;;  %v1787_v7 = vsel %vm359_vm13, %v14090_v50, %v1734_v61  ;;  %v1684_v52 = vadd.f32 1.0, %v1683_v29  ;;  %v1700_v29 = vpack.c.bf16 %v14387_v25, %v14387_v25 }
 0x356   :  { %v11911_v1 = vpop.permute.xlu0 %11910  ;;  %v5717_v4 = vld [vmem:[#allocation2 + $0x150] sm:$0xff]  ;;  %v14469_v53 = vunpack.c.l.bf16 %v1700_v29  ;;  %v1703_v29 = vpack.c.bf16 %v1695_v40, %v1695_v40 }
 0x357   :  { %v11913_v42 = vunpack.i.h.bf16 %v11911_v1  ;;  %v11912_v21 = vunpack.i.l.bf16 %v11911_v1  ;;  %v14410_v14 = vpack.c.bf16 %v5717_v4, %v5715_v30  ;;  %v12172_v30 = vpop.eup %12171  ;;  %v2094_v4 = vand.u32 2147483647, %v14358_v10  ;;  %v11623_v10 = vld [vmem:[%s18560_s5 + $0x20] sm:$0xff] }
 0x358   :  { %v2090_v48 = vmul.f32 0.6931472, %v12172_v30 }
 0x359   :  { %v14423_v1 = vsel %vm368_vm14, %v1787_v7, %v11913_v42  ;;  %v1794_v59 = vsel %vm368_vm14, %v1786_v41, %v11912_v21  ;;  %5851 = vmatmul.bf16.vlgmr.msra.gmra.mxu0 %v14410_v14  ;;  %v1686_v41 = vand.u32 2147483647, %v14351_v35  ;;  %v18722_v21 = vrot.slane %v14330_v62, 1 }
 0x35a   :  { %1802 = vst.msk [vmem:[#allocation2 + $0x1b0] sm:$0xff] %vm377_vm15, %v1794_v59  ;;  %v1869_v50 = vrot.slane %v1794_v59, 2  ;;  %v1818_v61 = vrot.slane %v1794_v59, 1  ;;  %v18579_v63 = vrot.slane %v14423_v1, 1  ;;  %v1685_v62 = vmul.f32 %v14351_v35, %v1684_v52 }
 0x35b   :  { %1803 = vst.msk [vmem:[#allocation2 + $0x1c0] sm:$0xff] %vm377_vm15, %v14423_v1  ;;  %5477 = vmatmul.bf16.vlgmr.msra.gmra.mxu1 %v14163_v51  ;;  %10318 = vmatmul.msk.bf16.gmra.mxu3 %vm103_vm1, %v11611_v18  ;;  %v11624_v51 = vld [vmem:[%s18560_s5 + $0x28] sm:$0xff]  ;;  %v1701_v18 = vpack.c.bf16 %v14397_v20, %v14397_v20  ;;  %vm14461_vm11 = vcmp.lt.f32.partialorder %v1686_v41, 0.0004427343  ;;  %vm14465_vm3 = vcmp.lt.f32.partialorder %v2094_v4, 0.0004427343  ;;  %v14487_v4 = vpop.f32.mrf.mxu0 }
 0x35c   :  { %v1870_v42 = vsel %vm449_vm2, %v1868_v5, %v1869_v50  ;;  %v1821_v37 = vsel %vm394_vm0, %v1818_v61, %v18579_v63  ;;  %v1819_v7 = vsel %vm394_vm0, %v18722_v21, %v1818_v61  ;;  %v1682_v5 = vmul.f32 0.6931472, %v12170_v46  ;;  %5960 = vmatpush.bf16.msrb.mxu2 %v11624_v51  ;;  %18728 = vst [vmem:[#allocation61_spill] sm:$0xff] %v14487_v4  ;;  %v11621_v21 = vld [vmem:[%s18560_s5 + $0x10] sm:$0xff] }
 0x35d   :  { %1885 = vrot.lane.b32.xlu1 %v1870_v42, %s12338_s8  ;;  %1836 = vrot.lane.b32.xlu0 %v1821_v37, %s12337_s30  ;;  %v1694_v46 = vadd.f32 %v1670_v16, %v18727_v56  ;;  %v14476_v35 = vunpack.c.l.bf16 %v1701_v18  ;;  %v1584_v52 = vmax.f32 %v14241_v26, 0.0  ;;  %v18580_v61 = vrot.slane %v14423_v1, 2 }
 0x35e   :  { %1834 = vrot.lane.b32.xlu2 %v1819_v7, %s12337_s30  ;;  %v1688_v30 = vsel %vm14461_vm11, %v1685_v62, %v1682_v5  ;;  %v2096_v12 = vsel %vm14465_vm3, %v2093_v44, %v2090_v48  ;;  %v1716_v26 = vsub.f32 %v14387_v25, %v14469_v53  ;;  %v11627_v25 = vld [vmem:[%s18560_s5 + $0x40] sm:$0xff]  ;;  %v14505_v37 = vunpack.c.l.bf16 %v1703_v29  ;;  %v11620_v62 = vld [vmem:[%s18560_s5 + $0x8] sm:$0xff] }
 0x35f   :  { %v1717_v24 = vsub.f32 %v14397_v20, %v14476_v35  ;;  %v1702_v41 = vpack.c.bf16 %v1694_v46, %v1694_v46  ;;  %v1696_v47 = vadd.f32 %v1688_v30, %v1584_v52  ;;  %v2160_v43 = vadd.f32 %v2096_v12, %v2048_v9  ;;  %v11622_v20 = vld [vmem:[%s18560_s5 + $0x18] sm:$0xff]  ;;  %5994 = vmatpush.bf16.msrb.mxu3 %v11627_v25  ;;  %v11636_v52 = vld [vmem:[%s18560_s5 + $0x88] sm:$0xff] }
 0x360   :  { %5961 = vmatpush.bf16.msrb.mxu2 %v11623_v10  ;;  %v1872_v42 = vsel %vm449_vm2, %v1869_v50, %v18580_v61  ;;  %v1719_v18 = vsub.f32 %v1695_v40, %v14505_v37  ;;  %v11914_v5 = vpack.i.bf16 %v14476_v35, %v14469_v53  ;;  %5879 = vmatpush.bf16.msrb.mxu1 %v11636_v52  ;;  %v5376_v30 = vld [vmem:[#allocation2 + $0x158] sm:$0xff]  ;;  %v5374_v29 = vld [vmem:[#allocation2 + $0x148] sm:$0xff] }
 0x361   :  { %v14510_v50 = vunpack.c.l.bf16 %v1702_v41  ;;  %v1704_v7 = vpack.c.bf16 %v1696_v47, %v1696_v47  ;;  %v2168_v51 = vpack.c.bf16 %v2160_v43, %v2160_v43 }
 0x362   :  { %10278 = vmatmul.msk.bf16.gmra.mxu2 %vm359_vm13, %v14200_v0  ;;  %v11612_v0 = vld [vmem:[%s18561_s1 + $0x50] sm:$0xff] }
 0x363   :  { %v1718_v16 = vsub.f32 %v1694_v46, %v14510_v50  ;;  %v14524_v48 = vunpack.c.l.bf16 %v1704_v7  ;;  %v14526_v44 = vunpack.c.l.bf16 %v2168_v51  ;;  %v14529_v40 = vpop.f32.mrf.mxu0  ;;  %v11919_v56 = vpack.i.bf16 %v14505_v37, %v14510_v50  ;;  %v11613_v46 = vld [vmem:[%s18561_s1 + $0x58] sm:$0xff] }
 0x364   :  { %5962 = vmatpush.bf16.msrb.mxu2 %v11622_v20  ;;  %18729 = vst [vmem:[#allocation62_spill] sm:$0xff] %v14529_v40  ;;  %v14576_v20 = vpop.f32.mrf.mxu1 }
 0x365   :  { %1737 = vrot.lane.b32.xlu1 %v1717_v24, %s12335_s22  ;;  %1735 = vrot.lane.b32.xlu0 %v1716_v26, %s12335_s22  ;;  %v11924_v59 = vpack.i.bf16 %v14526_v44, %v14524_v48  ;;  %v1720_v49 = vsub.f32 %v1696_v47, %v14524_v48  ;;  %v2184_v9 = vsub.f32 %v2160_v43, %v14526_v44  ;;  %v14569_v47 = vpop.f32.mrf.mxu3 }
 0x366   :  { %1887 = vrot.lane.b32.xlu2 %v1872_v42, %s12338_s8  ;;  %v5384_v24 = vpack.c.bf16 %v5376_v30, %v5374_v29  ;;  %18734 = vst [vmem:[#allocation67_spill] sm:$0xff] %v14569_v47  ;;  %v14572_v42 = vpop.f32.mrf.mxu2 }
 0x367   :  { %18735 = vst [vmem:[#allocation68_spill] sm:$0xff] %v14572_v42 }
 0x368   :  { %5963 = vmatpush.bf16.msrb.mxu2 %v11621_v21  ;;  %18736 = vst [vmem:[#allocation69_spill] sm:$0xff] %v14576_v20 }
 0x36b   :  { %5482 = vmatmul.bf16.gmra.mxu1 %v14263_v38  ;;  %10319 = vmatmul.msk.bf16.gmra.mxu3 %vm103_vm1, %v11612_v0  ;;  %v11619_v38 = vld [vmem:[%s18560_s5] sm:$0xff]  ;;  %v14549_v10 = vpop.f32.mrf.mxu0 }
 0x36c   :  { %5964 = vmatpush.bf16.msrb.mxu2 %v11620_v62  ;;  %18730 = vst [vmem:[#allocation63_spill] sm:$0xff] %v14549_v10  ;;  %v14598_v62 = vadd.f32 %v14229_v2, %v13481_v39 }
 0x36d   :  { %1741 = vrot.lane.b32.xlu1 %v1719_v18, %s12335_s22  ;;  %1739 = vrot.lane.b32.xlu0 %v1718_v16, %s12335_s22  ;;  %v14580_v25 = vpop.f32.mrf.mxu3  ;;  %v14590_v18 = vadd.f32 %v14229_v2, %v13419_v60 }
 0x36e   :  { %11915 = vrot.lane.b32.xlu2 %v11914_v5, %s12336_s23 }
 0x370   :  { %5965 = vmatpush.bf16.msrb.mxu2 %v11619_v38 }
 0x372   :  { %10279 = vmatmul.msk.bf16.gmra.mxu2 %vm359_vm13, %v14303_v8 }
 0x373   :  { %v14558_v12 = vpop.f32.mrf.mxu0 }
 0x374   :  { %18731 = vst [vmem:[#allocation64_spill] sm:$0xff] %v14558_v12 }
 0x375   :  { %11925 = vrot.lane.b32.xlu1 %v11924_v59, %s12336_s23  ;;  %1743 = vrot.lane.b32.xlu0 %v1720_v49, %s12335_s22  ;;  %v14592_v16 = vpop.f32.mrf.mxu3 }
 0x376   :  { %11920 = vrot.lane.b32.xlu2 %v11919_v56, %s12336_s23  ;;  %v2057_v56 = vand.u32 2147483647, %v14590_v18 }
 0x378   :  { %v2065_v2 = vsub.f32 0.0, %v2057_v56 }
 0x37b   :  { %5487 = vmatmul.bf16.gmra.mxu1 %v14319_v6  ;;  %10320 = vmatmul.msk.bf16.gmra.mxu3 %vm103_vm1, %v11613_v46  ;;  %v14564_v41 = vpop.f32.mrf.mxu0 }
 0x37c   :  { %18732 = vst [vmem:[#allocation65_spill] sm:$0xff] %v14564_v41 }
 0x37e   :  { %2200 = vrot.lane.b32.xlu2 %v2184_v9, %s12335_s22  ;;  %v2058_v9 = vand.u32 2147483647, %v14598_v62 }
 0x382   :  { %10280 = vmatmul.msk.bf16.gmra.mxu2 %vm359_vm13, %v5384_v24 }
 0x383   :  { %v14567_v26 = vpop.f32.mrf.mxu0 }
 0x384   :  { %18733 = vst [vmem:[#allocation66_spill] sm:$0xff] %v14567_v26 }
 0x38b   :  { %5492 = vmatmul.bf16.gmra.mxu1 %v14410_v14  ;;  %10415 = vmatmul.msk.bf16.vlgmr.msrb.gmra.mxu3 %vm359_vm13, %v14303_v8  ;;  %v14578_v8 = vpop.f32.mrf.mxu0 }
 0x392   :  { %5966 = vmatmul.bf16.vlgmr.msrb.gmra.mxu2 %v14319_v6  ;;  %v1374_v43 = vpop.permute.xlu2 %1373 }
 0x393   :  { %1394 = vst.msk [vmem:[#allocation2 + $0x170] sm:$0xff] %vm439_vm5, %v1374_v43  ;;  %v14586_v51 = vpop.f32.mrf.mxu0  ;;  %v11654_v43 = vld [vmem:[%s18559_s4 + $0x20] sm:$0xff] }
 0x394   :  { %18737 = vst [vmem:[#allocation70_spill] sm:$0xff] %v14586_v51 }
 0x39b   :  { %10375 = vmatmul.msk.bf16.vlgmr.msrb.gmra.mxu1 %vm359_vm13, %v5384_v24  ;;  %10416 = vmatmul.msk.bf16.gmra.mxu3 %vm359_vm13, %v5384_v24  ;;  %v14612_v30 = vpop.f32.mrf.mxu0  ;;  %v2066_v24 = vsub.f32 0.0, %v2058_v9 }
 0x39f   :  { %v5231_v6 = vpop.f32.mrf.mxu2 }
 0x3a2   :  { %5971 = vmatmul.bf16.gmra.mxu2 %v14410_v14  ;;  %v1376_v7 = vpop.permute.xlu2 %1375  ;;  %v6268_v14 = vld [vmem:[%s18559_s4 + $0x28] sm:$0x1] }
 0x3a3   :  { %v5202_v0 = vpop.f32.mrf.mxu1  ;;  %1395 = vst.msk [vmem:[#allocation2 + $0x180] sm:$0xff] %vm439_vm5, %v1376_v7  ;;  %v6310_v38 = vunpack.c.l.b16 %v6268_v14  ;;  %v2074_v14 = vmul.f32 1.442695, %v2065_v2  ;;  %v11642_v2 = vld [vmem:[%s18560_s5 + $0xb8] sm:$0xff] }
 0x3a4   :  { %v14583_v21 = vadd.f32 %v5231_v6, %v5202_v0  ;;  %v11644_v6 = vld [vmem:[%s18560_s5 + $0xc8] sm:$0xff] }
 0x3a5   :  { %v6316_v52 = vpack.c.b16 %v6310_v38, %v6310_v38  ;;  %6124 = vmatpush.bf16.msrb.mxu0 %v11644_v6  ;;  %v11653_v38 = vld [vmem:[%s18559_s4 + $0x18] sm:$0xff]  ;;  %12173 = vpow2.f32 %v2074_v14 }
 0x3a7   :  { %v14594_v5 = vpop.f32.mrf.mxu2  ;;  %v6335_v39 = vand.u32 %v6316_v52, %v12382_v3 }
 0x3a9   :  { %v5322_v29 = vpop.f32.mrf.mxu3  ;;  %6339 = vmatpush.bf16.msra.mxu2 %v6335_v39  ;;  %v11652_v39 = vld [vmem:[%s18559_s4 + $0x10] sm:$0xff] }
 0x3aa   :  { %v1427_v60 = vpop.permute.xlu2 %1426  ;;  %v1423_v46 = vpop.permute.xlu0 %1422 }
 0x3ab   :  { %v14603_v49 = vpop.f32.mrf.mxu1  ;;  %1453 = vst.msk [vmem:[#allocation2 + $0x180] sm:$0xff] %vm496_vm6, %v1427_v60 }
 0x3ac   :  { %v1372_v59 = vpop.permute.xlu1 %1371  ;;  %1454 = vst.msk [vmem:[#allocation2 + $0x188] sm:$0xff] %vm359_vm13, %v1427_v60 }
 0x3ad   :  { %1393 = vst.msk [vmem:[#allocation2 + $0x160] sm:$0xff] %vm439_vm5, %v1372_v59  ;;  %6340 = vmatpush.bf16.msra.mxu2 %v11654_v43  ;;  %v2076_v59 = vmul.f32 1.442695, %v2066_v24  ;;  %v14636_v24 = vpop.f32.mrf.mxu0 }
 0x3ae   :  { %1449 = vst.msk [vmem:[#allocation2 + $0x160] sm:$0xff] %vm496_vm6, %v1423_v46 }
 0x3af   :  { %1450 = vst.msk [vmem:[#allocation2 + $0x168] sm:$0xff] %vm359_vm13, %v1423_v46  ;;  %v11643_v46 = vld [vmem:[%s18560_s5 + $0xc0] sm:$0xff]  ;;  %12175 = vpow2.f32 %v2076_v59 }
 0x3b0   :  { %6125 = vmatpush.bf16.msrb.mxu0 %v11643_v46  ;;  %18738 = vst [vmem:[#allocation71_spill] sm:$0xff] %v14636_v24 }
 0x3b1   :  { %6341 = vmatpush.bf16.msra.mxu2 %v11653_v38  ;;  %v14638_v43 = vpop.f32.mrf.mxu3 }
 0x3b2   :  { %18739 = vst [vmem:[#allocation72_spill] sm:$0xff] %v14638_v43 }
 0x3b4   :  { %v5236_v0 = vpop.f32.mrf.mxu2  ;;  %v1425_v7 = vpop.permute.xlu1 %1424  ;;  %6126 = vmatpush.bf16.msrb.mxu0 %v11642_v2  ;;  %v11641_v2 = vld [vmem:[%s18560_s5 + $0xb0] sm:$0xff] }
 0x3b5   :  { %1451 = vst.msk [vmem:[#allocation2 + $0x170] sm:$0xff] %vm496_vm6, %v1425_v7  ;;  %6342 = vmatpush.bf16.msra.mxu2 %v11652_v39 }
 0x3b6   :  { %1452 = vst.msk [vmem:[#allocation2 + $0x178] sm:$0xff] %vm359_vm13, %v1425_v7  ;;  %v5719_v7 = vld [vmem:[#allocation2 + $0x160] sm:$0xff]  ;;  %v5720_v59 = vld [vmem:[#allocation2 + $0x168] sm:$0xff] }
 0x3b8   :  { %v1835_v56 = vpop.permute.xlu2 %1834  ;;  %v5207_v60 = vpop.f32.mrf.mxu1  ;;  %6127 = vmatpush.bf16.msrb.mxu0 %v11641_v2  ;;  %v11639_v2 = vld [vmem:[%s18560_s5 + $0xa0] sm:$0xff] }
 0x3b9   :  { %1860 = vst.msk [vmem:[#allocation2 + $0x1a0] sm:$0xff] %vm439_vm5, %v1835_v56  ;;  %v5237_v52 = vadd.f32 %v5236_v0, %v5207_v60  ;;  %v1378_v0 = vpop.permute.xlu0 %1377  ;;  %v11651_v60 = vld [vmem:[%s18559_s4 + $0x8] sm:$0xff] }
 0x3ba   :  { %1396 = vst.msk [vmem:[#allocation2 + $0x190] sm:$0x7f] %vm447_vm7, %v1378_v0  ;;  %v12174_v0 = vpop.eup %12173  ;;  %6343 = vmatpush.bf16.msra.mxu2 %v11651_v60 }
 0x3bb   :  { %v5323_v9 = vadd.f32 %v5322_v29, %v5237_v52  ;;  %v12176_v39 = vpop.eup %12175  ;;  %v2100_v12 = vmul.f32 -0.5, %v12174_v0  ;;  %v2103_v51 = vand.u32 2147483647, %v12174_v0 }
 0x3bc   :  { %v14640_v6 = vpop.f32.mrf.mxu2  ;;  %v5721_v14 = vld [vmem:[#allocation2 + $0x170] sm:$0xff]  ;;  %v1833_v29 = vpop.permute.xlu1 %1832  ;;  %v2109_v4 = vmul.f32 -0.5, %v12176_v39 }
 0x3bd   :  { %18740 = vst [vmem:[#allocation73_spill] sm:$0xff] %v14640_v6  ;;  %v14643_v38 = vpack.c.bf16 %v5721_v14, %v5719_v7  ;;  %v5722_v56 = vld [vmem:[#allocation2 + $0x178] sm:$0xff]  ;;  %v2097_v7 = vadd.f32 1.0, %v12174_v0  ;;  %v11650_v14 = vld [vmem:[%s18559_s4] sm:$0xff]  ;;  %vm14698_vm11 = vcmp.lt.f32.partialorder %v2103_v51, 0.0004427343 }
 0x3be   :  { %1859 = vst.msk [vmem:[#allocation2 + $0x190] sm:$0x80] %vm437_vm10, %v1833_v29  ;;  %v14653_v63 = vpack.c.bf16 %v5722_v56, %v5720_v59  ;;  %v11640_v29 = vld [vmem:[%s18560_s5 + $0xa8] sm:$0xff]  ;;  %v2106_v59 = vadd.f32 1.0, %v12176_v39  ;;  %v5351_v56 = vpop.f32.mrf.mxu0  ;;  %v5327_v41 = vpop.f32.mrf.mxu3  ;;  %6344 = vmatpush.bf16.msra.mxu2 %v11650_v14  ;;  %v11645_v51 = vld [vmem:[%s18560_s5 + $0xd0] sm:$0xff] }
 0x3bf   :  { %5856 = vmatmul.bf16.gmra.mxu0 %v14643_v38  ;;  %5976 = vmatmul.bf16.gmra.mxu2 %v14643_v38  ;;  %12177 = vlog2.f32 %v2097_v7  ;;  %v14684_v7 = vadd.f32 %v5351_v56, %v5323_v9 }
 0x3c0   :  { %v14649_v46 = vpop.permute.xlu2 %1887  ;;  %v14651_v52 = vpop.f32.mrf.mxu1  ;;  %10376 = vmatmul.msk.bf16.gmra.mxu1 %vm359_vm13, %v14653_v63  ;;  %10417 = vmatmul.msk.bf16.gmra.mxu3 %vm359_vm13, %v14653_v63  ;;  %12179 = vlog2.f32 %v2106_v59  ;;  %v2110_v59 = vadd.f32 1.0, %v2109_v4 }
 0x3c1   :  { %18741 = vst [vmem:[#allocation74_spill] sm:$0xff] %v14651_v52  ;;  %v1429_v61 = vpop.permute.xlu0 %1428  ;;  %6128 = vmatpush.bf16.msrb.mxu0 %v11640_v29  ;;  %v2101_v29 = vadd.f32 1.0, %v2100_v12  ;;  %v2112_v52 = vand.u32 2147483647, %v12176_v39  ;;  %6160 = vmatpush.bf16.msra.mxu1 %v11645_v51 }
 0x3c2   :  { %1915 = vst.msk [vmem:[#allocation2 + $0x1b8] sm:$0xff] %vm359_vm13, %v14649_v46  ;;  %v2111_v20 = vmul.f32 %v12176_v39, %v2110_v59 }
 0x3c3   :  { %1455 = vst.msk [vmem:[#allocation2 + $0x190] sm:$0x3f] %vm511_vm8, %v1429_v61  ;;  %v2102_v9 = vmul.f32 %v12174_v0, %v2101_v29  ;;  %vm14705_vm3 = vcmp.lt.f32.partialorder %v2112_v52, 0.0004427343 }
 0x3c4   :  { %v1884_v40 = vpop.permute.xlu1 %1883  ;;  %1456 = vst.msk [vmem:[#allocation2 + $0x198] sm:$0x3f] %vm513_vm9, %v1429_v61  ;;  %v11638_v61 = vld [vmem:[%s18560_s5 + $0x98] sm:$0xff] }
 0x3c5   :  { %v5241_v60 = vpop.f32.mrf.mxu2  ;;  %1910 = vst.msk [vmem:[#allocation2 + $0x190] sm:$0xc0] %vm18742_vm4, %v1884_v40  ;;  %6129 = vmatpush.bf16.msrb.mxu0 %v11639_v2  ;;  %v12178_v43 = vpop.eup %12177  ;;  %v5724_v2 = vld [vmem:[#allocation2 + $0x188] sm:$0xff] }
 0x3c6   :  { %1911 = vst.msk [vmem:[#allocation2 + $0x198] sm:$0xc0] %vm494_vm12, %v1884_v40  ;;  %v12180_v6 = vpop.eup %12179  ;;  %v14686_v40 = vpop.f32.mrf.mxu0 }
 0x3c7   :  { %18743 = vst [vmem:[#allocation75_spill] sm:$0xff] %v14686_v40  ;;  %v14691_v56 = vpop.f32.mrf.mxu3 }
 0x3c8   :  { %v5212_v26 = vpop.f32.mrf.mxu1  ;;  %18745 = vst [vmem:[#allocation77_spill] sm:$0xff] %v14691_v56  ;;  %v11916_v24 = vpop.permute.xlu2 %11915 }
 0x3c9   :  { %v5242_v10 = vadd.f32 %v5241_v60, %v5212_v26  ;;  %6130 = vmatpush.bf16.msrb.mxu0 %v11638_v61  ;;  %v2099_v60 = vmul.f32 0.6931472, %v12178_v43  ;;  %v11918_v52 = vunpack.i.h.bf16 %v11916_v24  ;;  %v11917_v59 = vunpack.i.l.bf16 %v11916_v24 }
 0x3ca   :  { %v5342_v24 = vadd.f32 %v14578_v8, %v14290_v32 }
 0x3cb   :  { %v14679_v14 = vadd.f32 %v5327_v41, %v5242_v10  ;;  %v5723_v10 = vld [vmem:[#allocation2 + $0x180] sm:$0xff] }
 0x3cc   :  { %v5725_v41 = vld [vmem:[#allocation2 + $0x190] sm:$0xff] }
 0x3cd   :  { %v14688_v26 = vpop.f32.mrf.mxu2  ;;  %v14696_v12 = vpack.c.bf16 %v5725_v41, %v5723_v10  ;;  %v5726_v61 = vld [vmem:[#allocation2 + $0x198] sm:$0xff] }
 0x3ce   :  { %18744 = vst [vmem:[#allocation76_spill] sm:$0xff] %v14688_v26  ;;  %v2108_v26 = vmul.f32 0.6931472, %v12180_v6  ;;  %v14703_v43 = vpack.c.bf16 %v5726_v61, %v5724_v2  ;;  %v2105_v6 = vsel %vm14698_vm11, %v2102_v9, %v2099_v60  ;;  %v5356_v9 = vpop.f32.mrf.mxu0 }
 0x3cf   :  { %v1886_v47 = vpop.permute.xlu1 %1885  ;;  %v1837_v42 = vpop.permute.xlu0 %1836  ;;  %5861 = vmatmul.bf16.gmra.mxu0 %v14696_v12  ;;  %5981 = vmatmul.bf16.gmra.mxu2 %v14696_v12 }
 0x3d0   :  { %1912 = vst.msk [vmem:[#allocation2 + $0x1a0] sm:$0xff] %vm496_vm6, %v1886_v47  ;;  %v14694_v4 = vpop.f32.mrf.mxu1  ;;  %10377 = vmatmul.msk.bf16.gmra.mxu1 %vm359_vm13, %v14703_v43  ;;  %10418 = vmatmul.msk.bf16.gmra.mxu3 %vm359_vm13, %v14703_v43  ;;  %v14742_v0 = vpop.f32.mrf.mxu3 }
 0x3d1   :  { %1913 = vst.msk [vmem:[#allocation2 + $0x1a8] sm:$0xff] %vm359_vm13, %v1886_v47  ;;  %v2049_v47 = vmax.f32 %v14590_v18, 0.0  ;;  %v2114_v18 = vsel %vm14705_vm3, %v2111_v20, %v2108_v26  ;;  %v11921_v51 = vpop.permute.xlu2 %11920 }
 0x3d2   :  { %18746 = vst [vmem:[#allocation78_spill] sm:$0xff] %v14694_v4 }
 0x3d3   :  { %1861 = vst.msk [vmem:[#allocation2 + $0x1b0] sm:$0xff] %vm439_vm5, %v1837_v42  ;;  %v11637_v42 = vld [vmem:[%s18560_s5 + $0x90] sm:$0xff]  ;;  %v2161_v29 = vadd.f32 %v2105_v6, %v2049_v47 }
 0x3d4   :  { %1914 = vst.msk [vmem:[#allocation2 + $0x1b0] sm:$0xff] %vm496_vm6, %v14649_v46  ;;  %v2050_v46 = vmax.f32 %v14598_v62, 0.0  ;;  %6131 = vmatpush.bf16.msrb.mxu0 %v11637_v42 }
 0x3d5   :  { %v5507_v10 = vpop.f32.mrf.mxu2  ;;  %18751 = vst [vmem:[#allocation79_spill] sm:$0xff] %v14742_v0  ;;  %v11664_v0 = vld [vmem:[%s18560_s5 + $0x48] sm:$0xff] }
 0x3d6   :  { %v2162_v61 = vadd.f32 %v2114_v18, %v2050_v46  ;;  %v14748_v46 = vadd.f32 %v5356_v9, %v14679_v14  ;;  %v18752_v18 = vrot.slane %v14423_v1, 2 }
 0x3d7   :  { %v1738_v39 = vpop.permute.xlu1 %1737  ;;  %v1736_v2 = vpop.permute.xlu0 %1735 }
 0x3d8   :  { %v1789_v41 = vsel %vm359_vm13, %v14476_v35, %v1738_v39  ;;  %v1788_v62 = vsel %vm359_vm13, %v14469_v53, %v1736_v2  ;;  %v5478_v60 = vpop.f32.mrf.mxu1  ;;  %v2169_v53 = vpack.c.bf16 %v2161_v29, %v2161_v29 }
 0x3d9   :  { %v14732_v40 = vsel %vm368_vm14, %v1789_v41, %v11918_v52  ;;  %v1796_v20 = vsel %vm368_vm14, %v1788_v62, %v11917_v59  ;;  %v5508_v26 = vadd.f32 %v5507_v10, %v5478_v60  ;;  %v18753_v52 = vrot.slane %v14423_v1, 1  ;;  %v5753_v10 = vld [vmem:[#allocation2 + $0x1a0] sm:$0xff]  ;;  %v5754_v62 = vld [vmem:[#allocation2 + $0x1a8] sm:$0xff] }
 0x3da   :  { %1805 = vst.msk [vmem:[#allocation2 + $0x1e0] sm:$0xff] %vm377_vm15, %v14732_v40  ;;  %v1824_v35 = vrot.slane %v14732_v40, 1  ;;  %v1873_v47 = vrot.slane %v1796_v20, 2  ;;  %v1822_v42 = vrot.slane %v1796_v20, 1  ;;  %v2170_v59 = vpack.c.bf16 %v2162_v61, %v2162_v61  ;;  %v11646_v60 = vld [vmem:[%s18561_s1 + $0x60] sm:$0xff] }
 0x3db   :  { %1804 = vst.msk [vmem:[#allocation2 + $0x1d0] sm:$0xff] %vm377_vm15, %v1796_v20  ;;  %v14745_v6 = vadd.f32 %v5508_v26, %v5342_v24  ;;  %v5755_v14 = vld [vmem:[#allocation2 + $0x1b0] sm:$0xff]  ;;  %v11923_v41 = vunpack.i.h.bf16 %v11921_v51  ;;  %v14765_v20 = vunpack.c.l.bf16 %v2169_v53  ;;  %v11922_v1 = vunpack.i.l.bf16 %v11921_v51 }
 0x3dc   :  { %v1874_v32 = vsel %vm449_vm2, %v18752_v18, %v1873_v47  ;;  %v1825_v8 = vsel %vm394_vm0, %v1822_v42, %v1824_v35  ;;  %v1823_v39 = vsel %vm394_vm0, %v18753_v52, %v1822_v42  ;;  %v5756_v52 = vld [vmem:[#allocation2 + $0x1b8] sm:$0xff]  ;;  %v14780_v53 = vunpack.c.l.bf16 %v2170_v59 }
 0x3dd   :  { %1889 = vrot.lane.b32.xlu2 %v1874_v32, %s12338_s8  ;;  %1840 = vrot.lane.b32.xlu1 %v1825_v8, %s12337_s30  ;;  %v14767_v24 = vpop.f32.mrf.mxu2  ;;  %v14778_v8 = vpack.c.bf16 %v5755_v14, %v5753_v10  ;;  %v2185_v59 = vsub.f32 %v2161_v29, %v14765_v20  ;;  %v14795_v10 = vpop.f32.mrf.mxu3  ;;  %v5318_v14 = vadd.f32 %v14580_v25, %v14583_v21 }
 0x3de   :  { %1838 = vrot.lane.b32.xlu0 %v1823_v39, %s12337_s30  ;;  %v1875_v39 = vrot.slane %v14732_v40, 2  ;;  %18754 = vst [vmem:[#allocation80_spill] sm:$0xff] %v14795_v10 }
 0x3df   :  { %v1742_v2 = vpop.permute.xlu1 %1741  ;;  %v1740_v9 = vpop.permute.xlu0 %1739  ;;  %5866 = vmatmul.bf16.gmra.mxu0 %v14778_v8  ;;  %10513 = vmatmul.msk.bf16.vlgmr.msra.gmra.mxu2 %vm103_vm1, %v11646_v60 }
 0x3e0   :  { %v1791_v26 = vsel %vm359_vm13, %v14505_v37, %v1742_v2  ;;  %v1790_v18 = vsel %vm359_vm13, %v14510_v50, %v1740_v9  ;;  %v14776_v32 = vpop.f32.mrf.mxu1  ;;  %v14785_v37 = vpack.c.bf16 %v5756_v52, %v5754_v62  ;;  %v2186_v50 = vsub.f32 %v2162_v61, %v14780_v53 }
 0x3e1   :  { %v14772_v42 = vsel %vm368_vm14, %v1791_v26, %v11923_v41  ;;  %v1798_v51 = vsel %vm368_vm14, %v1790_v18, %v11922_v1  ;;  %v2201_v41 = vpop.permute.xlu2 %2200  ;;  %v1876_v2 = vsel %vm449_vm2, %v1873_v47, %v1875_v39  ;;  %v5347_v47 = vadd.f32 %v14612_v30, %v5318_v14 }
 0x3e2   :  { %1807 = vst.msk [vmem:[#allocation2 + $0x200] sm:$0xff] %vm377_vm15, %v14772_v42  ;;  %10378 = vmatmul.msk.bf16.gmra.mxu1 %vm359_vm13, %v14785_v37  ;;  %v2256_v29 = vsel %vm359_vm13, %v14526_v44, %v2201_v41  ;;  %v1826_v9 = vrot.slane %v1798_v51, 1  ;;  %v1828_v18 = vrot.slane %v14772_v42, 1  ;;  %v11929_v30 = vpack.i.bf16 %v14780_v53, %v14765_v20  ;;  %v11647_v41 = vld [vmem:[%s18561_s1 + $0x68] sm:$0xff] }
 0x3e3   :  { %1806 = vst.msk [vmem:[#allocation2 + $0x1f0] sm:$0xff] %vm377_vm15, %v1798_v51 }
 0x3e4   :  { %v1827_v44 = vsel %vm394_vm0, %v1824_v35, %v1826_v9 }
 0x3e5   :  { %2204 = vrot.lane.b32.xlu2 %v2186_v50, %s12335_s22  ;;  %2202 = vrot.lane.b32.xlu1 %v2185_v59, %s12335_s22  ;;  %v5512_v60 = vpop.f32.mrf.mxu2  ;;  %v14826_v14 = vpop.f32.mrf.mxu3 }
 0x3e6   :  { %1891 = vrot.lane.b32.xlu0 %v1876_v2, %s12338_s8  ;;  %18756 = vst [vmem:[#allocation82_spill] sm:$0xff] %v14826_v14 }
 0x3e7   :  { %v11926_v62 = vpop.permute.xlu1 %11925  ;;  %v1744_v26 = vpop.permute.xlu0 %1743 }
 0x3e8   :  { %v11928_v1 = vunpack.i.h.bf16 %v11926_v62  ;;  %v11927_v61 = vunpack.i.l.bf16 %v11926_v62  ;;  %v1792_v25 = vsel %vm359_vm13, %v14524_v48, %v1744_v26  ;;  %v5483_v21 = vpop.f32.mrf.mxu1  ;;  %v1829_v48 = vsel %vm394_vm0, %v1826_v9, %v1828_v18 }
 0x3e9   :  { %v5513_v50 = vadd.f32 %v5512_v60, %v5483_v21  ;;  %v1877_v60 = vrot.slane %v1798_v51, 2 }
 0x3ea   :  { %v1800_v52 = vsel %vm368_vm14, %v1792_v25, %v11927_v61  ;;  %v14811_v59 = vsel %vm368_vm14, %v2256_v29, %v11928_v1  ;;  %v1879_v1 = vrot.slane %v14772_v42, 2 }
 0x3eb   :  { %1808 = vst.msk [vmem:[#allocation2 + $0x210] sm:$0xff] %vm377_vm15, %v1800_v52  ;;  %v14814_v2 = vadd.f32 %v5513_v50, %v5347_v47  ;;  %v1830_v35 = vrot.slane %v1800_v52, 1  ;;  %v1878_v29 = vsel %vm449_vm2, %v1875_v39, %v1877_v60  ;;  %v1881_v25 = vrot.slane %v1800_v52, 2  ;;  %v11648_v39 = vld [vmem:[%s18561_s1 + $0x70] sm:$0xff] }
 0x3ec   :  { %2272 = vst.msk [vmem:[#allocation2 + $0x220] sm:$0xff] %vm377_vm15, %v14811_v59  ;;  %v1880_v26 = vsel %vm449_vm2, %v1877_v60, %v1879_v1  ;;  %v18581_v9 = vrot.slane %v14811_v59, 1  ;;  %v18582_v50 = vrot.slane %v14811_v59, 2  ;;  %v14888_v60 = vpop.f32.mrf.mxu0 }
 0x3ed   :  { %18755 = vst [vmem:[#allocation81_spill] sm:$0xff] %v14814_v2  ;;  %1844 = vrot.lane.b32.xlu2 %v1829_v48, %s12337_s30  ;;  %1842 = vrot.lane.b32.xlu1 %v1827_v44, %s12337_s30  ;;  %v14832_v62 = vpop.f32.mrf.mxu2  ;;  %v1831_v61 = vsel %vm394_vm0, %v1828_v18, %v1830_v35  ;;  %v14847_v51 = vpop.f32.mrf.mxu3  ;;  %v1882_v18 = vsel %vm449_vm2, %v1879_v1, %v1881_v25  ;;  %v11663_v48 = vld [vmem:[%s18560_s5 + $0x40] sm:$0xff] }
 0x3ee   :  { %11930 = vrot.lane.b32.xlu0 %v11929_v30, %s12336_s23  ;;  %18757 = vst [vmem:[#allocation83_spill] sm:$0xff] %v14847_v51  ;;  %6649 = vmatpush.bf16.msrb.mxu2 %v11663_v48 }
 0x3ef   :  { %6132 = vmatmul.bf16.vlgmr.msrb.gmra.mxu0 %v14643_v38  ;;  %10514 = vmatmul.msk.bf16.gmra.mxu2 %vm103_vm1, %v11647_v41  ;;  %18764 = vst [vmem:[#allocation90_spill] sm:$0xff] %v14888_v60  ;;  %v11659_v60 = vld [vmem:[%s18560_s5 + $0x20] sm:$0xff] }
 0x3f0   :  { %v14834_v40 = vpop.f32.mrf.mxu1 }
 0x3f2   :  { %10473 = vmatmul.msk.bf16.vlgmr.msra.gmra.mxu1 %vm359_vm13, %v14653_v63 }
 0x3f5   :  { %1846 = vrot.lane.b32.xlu2 %v1831_v61, %s12337_s30  ;;  %1895 = vrot.lane.b32.xlu1 %v1880_v26, %s12338_s8  ;;  %v5517_v42 = vpop.f32.mrf.mxu2  ;;  %v14866_v47 = vpop.f32.mrf.mxu3 }
 0x3f6   :  { %1893 = vrot.lane.b32.xlu0 %v1878_v29, %s12338_s8  ;;  %18761 = vst [vmem:[#allocation87_spill] sm:$0xff] %v14866_v47  ;;  %v5852_v26 = vpop.f32.mrf.mxu0 }
 0x3f8   :  { %v5488_v38 = vpop.f32.mrf.mxu1 }
 0x3f9   :  { %v5518_v21 = vadd.f32 %v5517_v42, %v5488_v38 }
 0x3fb   :  { %v14850_v63 = vadd.f32 %v5518_v21, %v14684_v7 }
 0x3fd   :  { %18758 = vst [vmem:[#allocation84_spill] sm:$0xff] %v14850_v63  ;;  %1897 = vrot.lane.b32.xlu2 %v1882_v18, %s12338_s8  ;;  %2303 = vrot.lane.b32.xlu1 %v18581_v9, %s12337_s30  ;;  %v14862_v52 = vpop.f32.mrf.mxu2  ;;  %v11671_v18 = vld [vmem:[%s18560_s5 + $0x80] sm:$0xff] }
 0x3fe   :  { %1848 = vrot.lane.b32.xlu0 %v1830_v35, %s12337_s30  ;;  %18759 = vst [vmem:[#allocation85_spill] sm:$0xff] %v14862_v52  ;;  %v11649_v35 = vld [vmem:[%s18561_s1 + $0x78] sm:$0xff]  ;;  %6498 = vmatpush.bf16.msra.mxu3 %v11671_v18 }
 0x3ff   :  { %6137 = vmatmul.bf16.gmra.mxu0 %v14696_v12  ;;  %10515 = vmatmul.msk.bf16.gmra.mxu2 %vm103_vm1, %v11648_v39  ;;  %v11670_v39 = vld [vmem:[%s18560_s5 + $0x78] sm:$0xff] }
 0x400   :  { %v14864_v7 = vpop.f32.mrf.mxu1 }
 0x401   :  { %18760 = vst [vmem:[#allocation86_spill] sm:$0xff] %v14864_v7 }
 0x402   :  { %10474 = vmatmul.msk.bf16.gmra.mxu1 %vm359_vm13, %v14703_v43  ;;  %v14883_v43 = vpop.f32.mrf.mxu3  ;;  %6499 = vmatpush.bf16.msra.mxu3 %v11670_v39 }
 0x403   :  { %18763 = vst [vmem:[#allocation89_spill] sm:$0xff] %v14883_v43  ;;  %v11661_v43 = vld [vmem:[%s18560_s5 + $0x30] sm:$0xff] }
 0x405   :  { %2354 = vrot.lane.b32.xlu1 %v18582_v50, %s12338_s8  ;;  %v5522_v44 = vpop.f32.mrf.mxu2 }
 0x406   :  { %1899 = vrot.lane.b32.xlu0 %v1881_v25, %s12338_s8 }
 0x408   :  { %v5493_v12 = vpop.f32.mrf.mxu1 }
 0x409   :  { %v5523_v30 = vadd.f32 %v5522_v44, %v5493_v12  ;;  %v11669_v44 = vld [vmem:[%s18560_s5 + $0x70] sm:$0xff] }
 0x40a   :  { %6500 = vmatpush.bf16.msra.mxu3 %v11669_v44 }
 0x40b   :  { %v14881_v41 = vadd.f32 %v5523_v30, %v14748_v46  ;;  %v14898_v46 = vpop.f32.mrf.mxu3  ;;  %v14918_v30 = vld [vmem:[%s18557_s3] ss:$0 sm:$0xff] }
 0x40c   :  { %18767 = vst [vmem:[#allocation93_spill] sm:$0xff] %v14898_v46  ;;  %v14951_v9 = vadd.f32 %v14918_v30, %v13603_v27 }
 0x40d   :  { %18762 = vst [vmem:[#allocation88_spill] sm:$0xff] %v14881_v41  ;;  %v14890_v1 = vpop.f32.mrf.mxu2 }
 0x40e   :  { %18765 = vst [vmem:[#allocation91_spill] sm:$0xff] %v14890_v1  ;;  %v2061_v27 = vand.u32 2147483647, %v14951_v9 }
 0x40f   :  { %6142 = vmatmul.bf16.gmra.mxu0 %v14778_v8  ;;  %10516 = vmatmul.msk.bf16.gmra.mxu2 %vm103_vm1, %v11649_v35  ;;  %v14926_v35 = vadd.f32 %v14918_v30, %v13579_v19  ;;  %v11667_v19 = vld [vmem:[%s18560_s5 + $0x60] sm:$0xff] }
 0x410   :  { %v14892_v61 = vpop.f32.mrf.mxu1 }
 0x411   :  { %18766 = vst [vmem:[#allocation92_spill] sm:$0xff] %v14892_v61 }
 0x412   :  { %10475 = vmatmul.msk.bf16.gmra.mxu1 %vm359_vm13, %v14785_v37 }
 0x413   :  { %v14900_v21 = vpop.f32.mrf.mxu3 }
 0x414   :  { %18768 = vst [vmem:[#allocation94_spill] sm:$0xff] %v14900_v21 }
 0x415   :  { %v5967_v38 = vpop.f32.mrf.mxu2 }
 0x418   :  { %v5881_v29 = vpop.f32.mrf.mxu1 }
 0x419   :  { %v5882_v42 = vadd.f32 %v5881_v29, %v5852_v26  ;;  %v11668_v29 = vld [vmem:[%s18560_s5 + $0x68] sm:$0xff] }
 0x41a   :  { %6501 = vmatpush.bf16.msra.mxu3 %v11668_v29  ;;  %v14955_v29 = vadd.f32 %v14918_v30, %v13624_v31  ;;  %v11665_v31 = vld [vmem:[%s18560_s5 + $0x50] sm:$0xff] }
 0x41b   :  { %v5968_v25 = vadd.f32 %v5967_v38, %v5882_v42  ;;  %v5996_v48 = vpop.f32.mrf.mxu3  ;;  %v11662_v42 = vld [vmem:[%s18560_s5 + $0x38] sm:$0xff] }
 0x41c   :  { %6613 = vmatpush.bf16.msrb.mxu1 %v11662_v42  ;;  %v11666_v42 = vld [vmem:[%s18560_s5 + $0x58] sm:$0xff]  ;;  %v2062_v47 = vand.u32 2147483647, %v14955_v29 }
 0x41d   :  { %v14913_v12 = vadd.f32 %v5996_v48, %v5968_v25  ;;  %v14928_v26 = vpop.f32.mrf.mxu2  ;;  %v14937_v25 = vpop.f32.mrf.mxu0 }
 0x41e   :  { %18769 = vst [vmem:[#allocation95_spill] sm:$0xff] %v14928_v26  ;;  %6502 = vmatpush.bf16.msra.mxu3 %v11667_v19  ;;  %v11660_v19 = vld [vmem:[%s18560_s5 + $0x28] sm:$0xff] }
 0x41f   :  { %10611 = vmatmul.msk.bf16.vlgmr.msrb.gmra.mxu2 %vm359_vm13, %v14785_v37  ;;  %v14922_v37 = vadd.f32 %v14918_v30, %v13547_v13  ;;  %18770 = vst [vmem:[#allocation96_spill] sm:$0xff] %v14937_v25  ;;  %v2060_v13 = vand.u32 2147483647, %v14926_v35 }
 0x420   :  { %v14940_v18 = vpop.f32.mrf.mxu1  ;;  %6614 = vmatpush.bf16.msrb.mxu1 %v11661_v43  ;;  %v2070_v43 = vsub.f32 0.0, %v2062_v47  ;;  %v11658_v47 = vld [vmem:[%s18560_s5 + $0x18] sm:$0xff] }
 0x421   :  { %v2059_v38 = vand.u32 2147483647, %v14922_v37  ;;  %18771 = vst [vmem:[#allocation97_spill] sm:$0xff] %v14940_v18  ;;  %v2068_v44 = vsub.f32 0.0, %v2060_v13 }
 0x422   :  { %6503 = vmatpush.bf16.msra.mxu3 %v11666_v42  ;;  %v2069_v42 = vsub.f32 0.0, %v2061_v27 }
 0x423   :  { %v2067_v48 = vsub.f32 0.0, %v2059_v38  ;;  %v2080_v14 = vmul.f32 1.442695, %v2068_v44  ;;  %v14973_v44 = vpop.f32.mrf.mxu3 }
 0x424   :  { %18772 = vst [vmem:[#allocation98_spill] sm:$0xff] %v14973_v44  ;;  %6615 = vmatpush.bf16.msrb.mxu1 %v11660_v19 }
 0x425   :  { %v5972_v50 = vpop.f32.mrf.mxu2  ;;  %v2078_v38 = vmul.f32 1.442695, %v2067_v48 }
 0x426   :  { %6504 = vmatpush.bf16.msra.mxu3 %v11665_v31 }
 0x427   :  { %12181 = vpow2.f32 %v2078_v38 }
 0x428   :  { %12183 = vpow2.f32 %v2080_v14  ;;  %6616 = vmatpush.bf16.msrb.mxu1 %v11659_v60 }
 0x42a   :  { %6505 = vmatpush.bf16.msra.mxu3 %v11664_v0 }
 0x42c   :  { %6617 = vmatpush.bf16.msrb.mxu1 %v11658_v47 }
 0x42d   :  { %v14983_v38 = vpop.f32.mrf.mxu2 }
 0x42e   :  { %18774 = vst [vmem:[#allocation100_spill] sm:$0xff] %v14983_v38 }
 0x437   :  { %v14945_v39 = vpop.permute.xlu2 %1889 }
 0x438   :  { %1917 = vst.msk [vmem:[#allocation2 + $0x1c8] sm:$0xff] %vm359_vm13, %v14945_v39 }
 0x43c   :  { %v5857_v13 = vpop.f32.mrf.mxu0 }
 0x43d   :  { %v5886_v21 = vpop.f32.mrf.mxu1 }
 0x43e   :  { %v5887_v48 = vadd.f32 %v5886_v21, %v5857_v13  ;;  %v2082_v21 = vmul.f32 1.442695, %v2069_v42  ;;  %v12182_v13 = vpop.eup %12181  ;;  %v6001_v42 = vpop.f32.mrf.mxu3 }
 0x43f   :  { %v14971_v46 = vpop.permute.xlu2 %2204  ;;  %v12184_v31 = vpop.eup %12183  ;;  %v2115_v19 = vadd.f32 1.0, %v12182_v13  ;;  %v2118_v60 = vmul.f32 -0.5, %v12182_v13  ;;  %v2121_v63 = vand.u32 2147483647, %v12182_v13 }
 0x440   :  { %v5973_v10 = vadd.f32 %v5972_v50, %v5887_v48  ;;  %v2084_v50 = vmul.f32 1.442695, %v2070_v43  ;;  %12185 = vpow2.f32 %v2082_v21  ;;  %v2124_v48 = vadd.f32 1.0, %v12184_v31  ;;  %v11657_v43 = vld [vmem:[%s18560_s5 + $0x10] sm:$0xff] }
 0x441   :  { %6618 = vmatpush.bf16.msrb.mxu1 %v11657_v43  ;;  %v2119_v61 = vadd.f32 1.0, %v2118_v60  ;;  %v2130_v60 = vand.u32 2147483647, %v12184_v31  ;;  %vm15017_vm4 = vcmp.lt.f32.partialorder %v2121_v63, 0.0004427343 }
 0x442   :  { %12187 = vpow2.f32 %v2084_v50  ;;  %v5977_v0 = vpop.f32.mrf.mxu2  ;;  %v2127_v50 = vmul.f32 -0.5, %v12184_v31 }
 0x443   :  { %12189 = vlog2.f32 %v2115_v19  ;;  %v11672_v19 = vld [vmem:[%s18560_s5 + $0x88] sm:$0xff]  ;;  %vm15025_vm11 = vcmp.lt.f32.partialorder %v2130_v60, 0.0004427343 }
 0x444   :  { %v14975_v51 = vpop.f32.mrf.mxu0  ;;  %12191 = vlog2.f32 %v2124_v48  ;;  %6534 = vmatpush.bf16.msra.mxu0 %v11672_v19  ;;  %v2128_v44 = vadd.f32 1.0, %v2127_v50 }
 0x445   :  { %18773 = vst [vmem:[#allocation99_spill] sm:$0xff] %v14975_v51  ;;  %v14985_v27 = vpop.f32.mrf.mxu1 }
 0x446   :  { %18775 = vst [vmem:[#allocation101_spill] sm:$0xff] %v14985_v27  ;;  %v14997_v21 = vpop.eup %12185 }
 0x447   :  { %v1845_v14 = vpop.permute.xlu2 %1844  ;;  %v2133_v56 = vadd.f32 1.0, %v14997_v21  ;;  %v2136_v50 = vmul.f32 -0.5, %v14997_v21 }
 0x448   :  { %1865 = vst.msk [vmem:[#allocation2 + $0x1f0] sm:$0xff] %vm439_vm5, %v1845_v14  ;;  %v11656_v14 = vld [vmem:[%s18560_s5 + $0x8] sm:$0xff]  ;;  %v12188_v1 = vpop.eup %12187 }
 0x449   :  { %6619 = vmatpush.bf16.msrb.mxu1 %v11656_v14  ;;  %v12190_v4 = vpop.eup %12189  ;;  %v2142_v52 = vadd.f32 1.0, %v12188_v1  ;;  %12193 = vlog2.f32 %v2133_v56  ;;  %v2129_v14 = vmul.f32 %v12184_v31, %v2128_v44  ;;  %v2145_v63 = vmul.f32 -0.5, %v12188_v1 }
 0x44a   :  { %v2117_v19 = vmul.f32 0.6931472, %v12190_v4  ;;  %v2051_v44 = vmax.f32 %v14922_v37, 0.0  ;;  %v2148_v60 = vand.u32 2147483647, %v12188_v1 }
 0x44b   :  { %12195 = vlog2.f32 %v2142_v52 }
 0x44c   :  { %v5862_v38 = vpop.f32.mrf.mxu0 }
 0x44d   :  { %v5891_v48 = vpop.f32.mrf.mxu1 }
 0x44e   :  { %v5892_v43 = vadd.f32 %v5891_v48, %v5862_v38  ;;  %v12192_v38 = vpop.eup %12191  ;;  %v2120_v48 = vmul.f32 %v12182_v13, %v2119_v61  ;;  %v15029_v61 = vpop.f32.mrf.mxu2  ;;  %v2052_v13 = vmax.f32 %v14926_v35, 0.0 }
 0x44f   :  { %v1847_v27 = vpop.permute.xlu2 %1846  ;;  %v1841_v47 = vpop.permute.xlu1 %1840  ;;  %18782 = vst [vmem:[#allocation104_spill] sm:$0xff] %v15029_v61  ;;  %v2146_v61 = vadd.f32 1.0, %v2145_v63 }
 0x450   :  { %1866 = vst.msk [vmem:[#allocation2 + $0x200] sm:$0xff] %vm439_vm5, %v1847_v27  ;;  %v1839_v51 = vpop.permute.xlu0 %1838  ;;  %v15008_v27 = vadd.f32 %v6001_v42, %v5973_v10  ;;  %v15010_v7 = vadd.f32 %v5977_v0, %v5892_v43  ;;  %v2126_v0 = vmul.f32 0.6931472, %v12192_v38  ;;  %v2123_v52 = vsel %vm15017_vm4, %v2120_v48, %v2117_v19 }
 0x451   :  { %1863 = vst.msk [vmem:[#allocation2 + $0x1d0] sm:$0xff] %vm439_vm5, %v1841_v47  ;;  %v15015_v47 = vpop.f32.mrf.mxu3  ;;  %v2139_v38 = vand.u32 2147483647, %v14997_v21  ;;  %v15043_v2 = vadd.f32 %v2123_v52, %v2051_v44  ;;  %vm15052_vm4 = vcmp.lt.f32.partialorder %v2148_v60, 0.0004427343  ;;  %v2147_v4 = vmul.f32 %v12188_v1, %v2146_v61 }
 0x452   :  { %1862 = vst.msk [vmem:[#allocation2 + $0x1c0] sm:$0xff] %vm439_vm5, %v1839_v51  ;;  %v11655_v51 = vld [vmem:[%s18560_s5] sm:$0xff]  ;;  %v2132_v31 = vsel %vm15025_vm11, %v2129_v14, %v2126_v0  ;;  %vm18795_vm11 = vcmask 1048326  }
 0x453   :  { %1916 = vst.msk [vmem:[#allocation2 + $0x1c0] sm:$0xff] %vm496_vm6, %v14945_v39  ;;  %6620 = vmatpush.bf16.msrb.mxu1 %v11655_v51  ;;  %v2137_v51 = vadd.f32 1.0, %v2136_v50  ;;  %v15045_v37 = vadd.f32 %v2132_v31, %v2052_v13  ;;  %vm15048_vm3 = vcmp.lt.f32.partialorder %v2139_v38, 0.0004427343 }
 0x454   :  { %18776 = vst [vmem:[#allocation102_spill] sm:$0xff] %v15015_v47  ;;  %v15021_v10 = vpop.f32.mrf.mxu0 }
 0x455   :  { %18779 = vst [vmem:[#allocation103_spill] sm:$0xff] %v15021_v10  ;;  %v15032_v56 = vpop.f32.mrf.mxu1  ;;  %v2138_v35 = vmul.f32 %v14997_v21, %v2137_v51  ;;  %v2258_v21 = vsel %vm359_vm13, %v14780_v53, %v14971_v46 }
 0x456   :  { %18783 = vst [vmem:[#allocation105_spill] sm:$0xff] %v15032_v56  ;;  %v5982_v1 = vpop.f32.mrf.mxu2 }
 0x457   :  { %v1898_v42 = vpop.permute.xlu2 %1897  ;;  %v2203_v43 = vpop.permute.xlu1 %2202 }
 0x458   :  { %1924 = vst.msk [vmem:[#allocation2 + $0x200] sm:$0xff] %vm496_vm6, %v1898_v42  ;;  %v1892_v47 = vpop.permute.xlu0 %1891  ;;  %v2257_v51 = vsel %vm359_vm13, %v14765_v20, %v2203_v43 }
 0x459   :  { %1925 = vst.msk [vmem:[#allocation2 + $0x208] sm:$0xff] %vm359_vm13, %v1898_v42  ;;  %v12194_v42 = vpop.eup %12193  ;;  %v6006_v56 = vpop.f32.mrf.mxu3 }
 0x45a   :  { %1918 = vst.msk [vmem:[#allocation2 + $0x1d0] sm:$0xff] %vm496_vm6, %v1892_v47  ;;  %v12196_v10 = vpop.eup %12195  ;;  %v2135_v48 = vmul.f32 0.6931472, %v12194_v42  ;;  %v6028_v13 = vld [vmem:[#allocation2 + $0x1c0] sm:$0xff]  ;;  %v6029_v42 = vld [vmem:[#allocation2 + $0x1c8] sm:$0xff]  ;;  %v15071_v41 = vadd.f32 %v6006_v56, %v15010_v7  ;;  %v2054_v56 = vmax.f32 %v14955_v29, 0.0 }
 0x45b   :  { %1919 = vst.msk [vmem:[#allocation2 + $0x1d8] sm:$0xff] %vm359_vm13, %v1892_v47  ;;  %v2144_v50 = vmul.f32 0.6931472, %v12196_v10  ;;  %v2172_v47 = vpack.c.bf16 %v15045_v37, %v15045_v37 }
 0x45c   :  { %v5867_v19 = vpop.f32.mrf.mxu0  ;;  %v2141_v7 = vsel %vm15048_vm3, %v2138_v35, %v2135_v48  ;;  %v18789_v48 = vrot.slane %v14811_v59, 1 }
 0x45f   :  { %v1843_v0 = vpop.permute.xlu1 %1842  ;;  %v5896_v52 = vpop.f32.mrf.mxu1 }
 0x460   :  { %v11931_v14 = vpop.permute.xlu0 %11930  ;;  %1864 = vst.msk [vmem:[#allocation2 + $0x1e0] sm:$0xff] %vm439_vm5, %v1843_v0  ;;  %v5897_v38 = vadd.f32 %v5896_v52, %v5867_v19  ;;  %v2171_v19 = vpack.c.bf16 %v15043_v2, %v15043_v2  ;;  %v18788_v52 = vrot.slane %v14811_v59, 2 }
 0x461   :  { %v11933_v63 = vunpack.i.h.bf16 %v11931_v14  ;;  %v11932_v44 = vunpack.i.l.bf16 %v11931_v14  ;;  %v6030_v31 = vld [vmem:[#allocation2 + $0x1d0] sm:$0xff] }
 0x462   :  { %v15062_v60 = vpack.c.bf16 %v6030_v31, %v6028_v13  ;;  %v6031_v10 = vld [vmem:[#allocation2 + $0x1d8] sm:$0xff]  ;;  %v5983_v53 = vadd.f32 %v5982_v1, %v5897_v38  ;;  %v15102_v13 = vpop.f32.mrf.mxu3  ;;  %v15109_v31 = vunpack.c.l.bf16 %v2171_v19  ;;  %v15115_v38 = vunpack.c.l.bf16 %v2172_v47 }
 0x463   :  { %v15065_v61 = vsel %vm368_vm14, %v2258_v21, %v11933_v63  ;;  %v2265_v0 = vsel %vm368_vm14, %v2257_v51, %v11932_v44  ;;  %v15068_v14 = vpack.c.bf16 %v6031_v10, %v6029_v42  ;;  %v2053_v63 = vmax.f32 %v14951_v9, 0.0  ;;  %18790 = vst [vmem:[#allocation106_spill] sm:$0xff] %v15102_v13 }
 0x464   :  { %2273 = vst.msk [vmem:[#allocation2 + $0x230] sm:$0xff] %vm377_vm15, %v2265_v0  ;;  %6147 = vmatmul.bf16.gmra.mxu0 %v15062_v60  ;;  %6506 = vmatmul.bf16.vlgmr.msra.gmra.mxu3 %v15062_v60  ;;  %v2340_v20 = vrot.slane %v2265_v0, 2  ;;  %v2289_v46 = vrot.slane %v2265_v0, 1  ;;  %v18583_v43 = vrot.slane %v15065_v61, 1  ;;  %v2150_v44 = vsel %vm15052_vm4, %v2147_v4, %v2144_v50  ;;  %v15106_v39 = vpop.f32.mrf.mxu0 }
 0x465   :  { %2274 = vst.msk [vmem:[#allocation2 + $0x240] sm:$0xff] %vm377_vm15, %v15065_v61  ;;  %10476 = vmatmul.msk.bf16.gmra.mxu1 %vm359_vm13, %v15068_v14  ;;  %10612 = vmatmul.msk.bf16.gmra.mxu2 %vm359_vm13, %v15068_v14  ;;  %v2165_v59 = vadd.f32 %v2141_v7, %v2053_v63  ;;  %v2166_v21 = vadd.f32 %v2150_v44, %v2054_v56  ;;  %v18584_v42 = vrot.slane %v15065_v61, 2 }
 0x466   :  { %v2341_v9 = vsel %vm449_vm2, %v18788_v52, %v2340_v20  ;;  %v2292_v29 = vsel %vm394_vm0, %v2289_v46, %v18583_v43  ;;  %v2290_v35 = vsel %vm394_vm0, %v18789_v48, %v2289_v46  ;;  %18791 = vst [vmem:[#allocation107_spill] sm:$0xff] %v15106_v39  ;;  %v2188_v0 = vsub.f32 %v15045_v37, %v15115_v38 }
 0x467   :  { %2356 = vrot.lane.b32.xlu1 %v2341_v9, %s12338_s8  ;;  %2307 = vrot.lane.b32.xlu0 %v2292_v29, %s12337_s30  ;;  %v1896_v50 = vpop.permute.xlu1 %1895  ;;  %v15112_v51 = vpop.f32.mrf.mxu1  ;;  %v2173_v10 = vpack.c.bf16 %v2165_v59, %v2165_v59  ;;  %v2174_v1 = vpack.c.bf16 %v2166_v21, %v2166_v21  ;;  %v2187_v46 = vsub.f32 %v15043_v2, %v15109_v31 }
 0x468   :  { %2305 = vrot.lane.b32.xlu2 %v2290_v35, %s12337_s30  ;;  %v1894_v4 = vpop.permute.xlu0 %1893  ;;  %1922 = vst.msk [vmem:[#allocation2 + $0x1f0] sm:$0xff] %vm496_vm6, %v1896_v50  ;;  %v2343_v19 = vsel %vm449_vm2, %v2340_v20, %v18584_v42 }
 0x469   :  { %18792 = vst [vmem:[#allocation108_spill] sm:$0xff] %v15112_v51  ;;  %v15130_v52 = vunpack.c.l.bf16 %v2173_v10  ;;  %v15132_v37 = vunpack.c.l.bf16 %v2174_v1 }
 0x46a   :  { %1923 = vst.msk [vmem:[#allocation2 + $0x1f8] sm:$0xff] %vm359_vm13, %v1896_v50  ;;  %v6011_v29 = vpop.f32.mrf.mxu3 }
 0x46b   :  { %1920 = vst.msk [vmem:[#allocation2 + $0x1e0] sm:$0xff] %vm496_vm6, %v1894_v4  ;;  %v2190_v50 = vsub.f32 %v2166_v21, %v15132_v37 }
 0x46c   :  { %1921 = vst.msk [vmem:[#allocation2 + $0x1e8] sm:$0xff] %vm359_vm13, %v1894_v4  ;;  %v6133_v63 = vpop.f32.mrf.mxu0  ;;  %v15139_v4 = vadd.f32 %v6011_v29, %v5983_v53  ;;  %v11934_v53 = vpack.i.bf16 %v15115_v38, %v15109_v31 }
 0x46f   :  { %2208 = vrot.lane.b32.xlu1 %v2188_v0, %s12335_s22  ;;  %2206 = vrot.lane.b32.xlu0 %v2187_v46, %s12335_s22  ;;  %v2304_v7 = vpop.permute.xlu1 %2303  ;;  %v6376_v44 = vld [vmem:[#allocation2 + $0x1f0] sm:$0xff]  ;;  %v6162_v2 = vpop.f32.mrf.mxu1  ;;  %v2189_v0 = vsub.f32 %v2165_v59, %v15130_v52  ;;  %v6923_v59 = vld [vmem:[%s18559_s4 + $0x28] sm:$0x1] }
 0x470   :  { %2358 = vrot.lane.b32.xlu2 %v2343_v19, %s12338_s8  ;;  %v1849_v56 = vpop.permute.xlu0 %1848  ;;  %2330 = vst.msk [vmem:[#allocation2 + $0x210] sm:$0x80] %vm437_vm10, %v2304_v7  ;;  %v6163_v48 = vadd.f32 %v6162_v2, %v6133_v63  ;;  %v6965_v46 = vunpack.c.l.b16 %v6923_v59  ;;  %v11939_v19 = vpack.i.bf16 %v15132_v37, %v15130_v52  ;;  %v11688_v59 = vld [vmem:[%s18559_s4 + $0x10] sm:$0xff] }
 0x471   :  { %v6377_v9 = vld [vmem:[#allocation2 + $0x1f8] sm:$0xff]  ;;  %1867 = vst.msk [vmem:[#allocation2 + $0x210] sm:$0x7f] %vm447_vm7, %v1849_v56 }
 0x472   :  { %v6374_v35 = vld [vmem:[#allocation2 + $0x1e0] sm:$0xff]  ;;  %v15142_v10 = vadd.f32 %v6163_v48, %v14913_v12  ;;  %v6971_v7 = vpack.c.b16 %v6965_v46, %v6965_v46 }
 0x473   :  { %v15136_v20 = vpack.c.bf16 %v6376_v44, %v6374_v35  ;;  %v6375_v47 = vld [vmem:[#allocation2 + $0x1e8] sm:$0xff] }
 0x474   :  { %18793 = vst [vmem:[#allocation109_spill] sm:$0xff] %v15142_v10  ;;  %10571 = vmatmul.msk.bf16.vlgmr.msra.gmra.mxu0 %vm359_vm13, %v15068_v14  ;;  %v15146_v1 = vpack.c.bf16 %v6377_v9, %v6375_v47  ;;  %v15157_v12 = vpop.f32.mrf.mxu0  ;;  %v6990_v44 = vand.u32 %v6971_v7, %v12382_v3  ;;  %v6378_v9 = vld [vmem:[#allocation2 + $0x200] sm:$0xff]  ;;  %v6379_v35 = vld [vmem:[#allocation2 + $0x208] sm:$0xff] }
 0x475   :  { %6511 = vmatmul.bf16.gmra.mxu3 %v15136_v20  ;;  %6621 = vmatmul.bf16.vlgmr.msrb.gmra.mxu1 %v14778_v8  ;;  %18794 = vst [vmem:[#allocation110_spill] sm:$0xff] %v15157_v12  ;;  %v11686_v7 = vld [vmem:[%s18559_s4] sm:$0xff] }
 0x476   :  { %10613 = vmatmul.msk.bf16.gmra.mxu2 %vm359_vm13, %v15146_v1  ;;  %6994 = vmatpush.bf16.msra.mxu1 %v6990_v44  ;;  %v15210_v44 = vpop.f32.mrf.mxu2 }
 0x477   :  { %2212 = vrot.lane.b32.xlu1 %v2190_v50, %s12335_s22  ;;  %2210 = vrot.lane.b32.xlu0 %v2189_v0, %s12335_s22  ;;  %v2355_v14 = vpop.permute.xlu1 %2354  ;;  %v15161_v8 = vpop.f32.mrf.mxu1  ;;  %v11690_v50 = vld [vmem:[%s18559_s4 + $0x20] sm:$0xff]  ;;  %18801 = vst [vmem:[#allocation116_spill] sm:$0xff] %v15210_v44 }
 0x478   :  { %11935 = vrot.lane.b32.xlu2 %v11934_v53, %s12336_s23  ;;  %v1900_v21 = vpop.permute.xlu0 %1899  ;;  %2381 = vst.msk [vmem:[#allocation2 + $0x210] sm:$0xc0] %vm18795_vm11, %v2355_v14 }
 0x479   :  { %18796 = vst [vmem:[#allocation111_spill] sm:$0xff] %v15161_v8 }
 0x47a   :  { %2382 = vst.msk [vmem:[#allocation2 + $0x218] sm:$0xc0] %vm494_vm12, %v2355_v14  ;;  %6995 = vmatpush.bf16.msra.mxu1 %v11690_v50 }
 0x47b   :  { %1926 = vst.msk [vmem:[#allocation2 + $0x210] sm:$0x3f] %vm511_vm8, %v1900_v21 }
 0x47c   :  { %1927 = vst.msk [vmem:[#allocation2 + $0x218] sm:$0x3f] %vm513_vm9, %v1900_v21  ;;  %v6138_v63 = vpop.f32.mrf.mxu0 }
 0x47f   :  { %v6167_v56 = vpop.f32.mrf.mxu1 }
 0x480   :  { %11940 = vrot.lane.b32.xlu2 %v11939_v19, %s12336_s23  ;;  %v6168_v2 = vadd.f32 %v6167_v56, %v6138_v63 }
 0x482   :  { %v6380_v29 = vld [vmem:[#allocation2 + $0x210] sm:$0xff]  ;;  %v15179_v0 = vadd.f32 %v6168_v2, %v15008_v27  ;;  %v11689_v27 = vld [vmem:[%s18559_s4 + $0x18] sm:$0xff]  ;;  %v15213_v2 = vpop.f32.mrf.mxu2 }
 0x483   :  { %v15173_v48 = vpack.c.bf16 %v6380_v29, %v6378_v9  ;;  %v6381_v47 = vld [vmem:[#allocation2 + $0x218] sm:$0xff]  ;;  %6996 = vmatpush.bf16.msra.mxu1 %v11689_v27  ;;  %18802 = vst [vmem:[#allocation117_spill] sm:$0xff] %v15213_v2  ;;  %v15221_v29 = vld [vmem:[%s18557_s3] ss:$0 sm:$0xff]  ;;  %v15235_v27 = vadd.f32 %v14918_v30, %v13634_v54 }
 0x484   :  { %18797 = vst [vmem:[#allocation112_spill] sm:$0xff] %v15179_v0  ;;  %10572 = vmatmul.msk.bf16.gmra.mxu0 %vm359_vm13, %v15146_v1  ;;  %v15183_v53 = vpack.c.bf16 %v6381_v47, %v6379_v35  ;;  %v15189_v14 = vpop.f32.mrf.mxu0  ;;  %v11682_v35 = vld [vmem:[%s18561_s1 + $0x80] sm:$0xff]  ;;  %v15253_v30 = vadd.f32 %v15221_v29, %v13581_v15 }
 0x485   :  { %6516 = vmatmul.bf16.gmra.mxu3 %v15173_v48  ;;  %6626 = vmatmul.bf16.gmra.mxu1 %v15062_v60  ;;  %18798 = vst [vmem:[#allocation113_spill] sm:$0xff] %v15189_v14  ;;  %v11687_v60 = vld [vmem:[%s18559_s4 + $0x8] sm:$0xff]  ;;  %v11679_v54 = vld [vmem:[%s18560_s5 + $0xc0] sm:$0xff] }
 0x486   :  { %10614 = vmatmul.msk.bf16.gmra.mxu2 %vm359_vm13, %v15183_v53 }
 0x487   :  { %v15194_v21 = vpop.f32.mrf.mxu1  ;;  %6997 = vmatpush.bf16.msra.mxu1 %v11688_v59  ;;  %v11680_v59 = vld [vmem:[%s18560_s5 + $0xc8] sm:$0xff] }
 0x488   :  { %18799 = vst [vmem:[#allocation114_spill] sm:$0xff] %v15194_v21  ;;  %6779 = vmatpush.bf16.msrb.mxu3 %v11680_v59  ;;  %v11683_v59 = vld [vmem:[%s18561_s1 + $0x88] sm:$0xff] }
 0x48a   :  { %v15216_v9 = vpop.f32.mrf.mxu2 }
 0x48b   :  { %6998 = vmatpush.bf16.msra.mxu1 %v11687_v60  ;;  %18803 = vst [vmem:[#allocation118_spill] sm:$0xff] %v15216_v9 }
 0x48c   :  { %v6143_v46 = vpop.f32.mrf.mxu0  ;;  %6780 = vmatpush.bf16.msrb.mxu3 %v11679_v54 }
 0x48f   :  { %v6172_v19 = vpop.f32.mrf.mxu1  ;;  %6999 = vmatpush.bf16.msra.mxu1 %v11686_v7 }
 0x490   :  { %v6173_v63 = vadd.f32 %v6172_v19, %v6143_v46  ;;  %v2063_v46 = vand.u32 2147483647, %v15235_v27  ;;  %v15244_v19 = vadd.f32 %v15221_v29, %v13549_v57  ;;  %v11678_v57 = vld [vmem:[%s18560_s5 + $0xb8] sm:$0xff] }
 0x491   :  { %6781 = vmatpush.bf16.msrb.mxu3 %v11678_v57 }
 0x492   :  { %v15206_v56 = vadd.f32 %v6173_v63, %v15071_v41  ;;  %v15225_v41 = vadd.f32 %v15221_v29, %v13483_v23  ;;  %v15231_v50 = vpop.f32.mrf.mxu2  ;;  %v2071_v63 = vsub.f32 0.0, %v2063_v46 }
 0x493   :  { %18804 = vst [vmem:[#allocation119_spill] sm:$0xff] %v15231_v50 }
 0x494   :  { %18800 = vst [vmem:[#allocation115_spill] sm:$0xff] %v15206_v56  ;;  %10573 = vmatmul.msk.bf16.gmra.mxu0 %vm359_vm13, %v15183_v53  ;;  %v2527_v47 = vand.u32 2147483647, %v15225_v41  ;;  %v15303_v0 = vpop.f32.mrf.mxu0 }
 0x495   :  { %6631 = vmatmul.bf16.gmra.mxu1 %v15136_v20  ;;  %18810 = vst [vmem:[#allocation123_spill] sm:$0xff] %v15303_v0 }
 0x496   :  { %v2535_v23 = vsub.f32 0.0, %v2527_v47  ;;  %v2086_v47 = vmul.f32 1.442695, %v2071_v63 }
 0x497   :  { %v15307_v44 = vpop.f32.mrf.mxu1 }
 0x498   :  { %v2543_v60 = vmul.f32 1.442695, %v2535_v23  ;;  %v2529_v23 = vand.u32 2147483647, %v15253_v30  ;;  %18811 = vst [vmem:[#allocation124_spill] sm:$0xff] %v15307_v44 }
 0x49a   :  { %v15246_v7 = vpop.f32.mrf.mxu2  ;;  %12197 = vpow2.f32 %v2543_v60  ;;  %v11677_v60 = vld [vmem:[%s18560_s5 + $0xb0] sm:$0xff]  ;;  %v2537_v63 = vsub.f32 0.0, %v2529_v23  ;;  %v11674_v23 = vld [vmem:[%s18560_s5 + $0x98] sm:$0xff] }
 0x49b   :  { %18805 = vst [vmem:[#allocation120_spill] sm:$0xff] %v15246_v7  ;;  %12199 = vpow2.f32 %v2086_v47  ;;  %6782 = vmatpush.bf16.msrb.mxu3 %v11677_v60 }
 0x4a0   :  { %v12198_v15 = vpop.eup %12197 }
 0x4a1   :  { %v2559_v7 = vadd.f32 1.0, %v12198_v15  ;;  %v12200_v2 = vpop.eup %12199  ;;  %v2562_v47 = vmul.f32 -0.5, %v12198_v15 }
 0x4a2   :  { %v15268_v42 = vpop.f32.mrf.mxu2 }
 0x4a3   :  { %18806 = vst [vmem:[#allocation121_spill] sm:$0xff] %v15268_v42  ;;  %v2154_v42 = vmul.f32 -0.5, %v12200_v2 }
 0x4a5   :  { %6636 = vmatmul.bf16.gmra.mxu1 %v15173_v48 }
 0x4aa   :  { %v15280_v50 = vpop.f32.mrf.mxu2 }
 0x4ab   :  { %18807 = vst [vmem:[#allocation122_spill] sm:$0xff] %v15280_v50  ;;  %v11699_v50 = vld [vmem:[%s18560_s5 + $0x40] sm:$0xff] }
 0x4ac   :  { %7304 = vmatpush.bf16.msrb.mxu1 %v11699_v50 }
 0x4b5   :  { %10709 = vmatmul.msk.bf16.vlgmr.msra.gmra.mxu1 %vm103_vm1, %v11682_v35  ;;  %v2528_v35 = vand.u32 2147483647, %v15244_v19 }
 0x4b7   :  { %v2536_v43 = vsub.f32 0.0, %v2528_v35  ;;  %v11676_v35 = vld [vmem:[%s18560_s5 + $0xa8] sm:$0xff] }
 0x4b8   :  { %6783 = vmatpush.bf16.msrb.mxu3 %v11676_v35  ;;  %v2565_v35 = vand.u32 2147483647, %v12198_v15 }
 0x4b9   :  { %v2545_v54 = vmul.f32 1.442695, %v2536_v43  ;;  %v11675_v43 = vld [vmem:[%s18560_s5 + $0xa0] sm:$0xff] }
 0x4ba   :  { %vm15288_vm3 = vcmp.lt.f32.partialorder %v2565_v35, 0.0004427343  ;;  %v2157_v35 = vand.u32 2147483647, %v12200_v2 }
 0x4bb   :  { %12201 = vpow2.f32 %v2545_v54 }
 0x4bc   :  { %12203 = vlog2.f32 %v2559_v7  ;;  %6784 = vmatpush.bf16.msrb.mxu3 %v11675_v43  ;;  %v11684_v7 = vld [vmem:[%s18561_s1 + $0x90] sm:$0xff]  ;;  %vm15316_vm4 = vcmp.lt.f32.partialorder %v2157_v35, 0.0004427343 }
 0x4c0   :  { %6785 = vmatpush.bf16.msrb.mxu3 %v11674_v23  ;;  %v11673_v23 = vld [vmem:[%s18560_s5 + $0x90] sm:$0xff] }
 0x4c1   :  { %v12202_v60 = vpop.eup %12201 }
 0x4c2   :  { %v2306_v46 = vpop.permute.xlu2 %2305  ;;  %v12204_v54 = vpop.eup %12203  ;;  %v2568_v43 = vadd.f32 1.0, %v12202_v60  ;;  %v2571_v14 = vmul.f32 -0.5, %v12202_v60 }
 0x4c3   :  { %2331 = vst.msk [vmem:[#allocation2 + $0x220] sm:$0xff] %vm439_vm5, %v2306_v46  ;;  %v2547_v46 = vmul.f32 1.442695, %v2537_v63  ;;  %v2563_v63 = vadd.f32 1.0, %v2562_v47  ;;  %v2561_v9 = vmul.f32 0.6931472, %v12204_v54 }
 0x4c4   :  { %v2519_v54 = vmax.f32 %v15225_v41, 0.0  ;;  %6786 = vmatpush.bf16.msrb.mxu3 %v11673_v23  ;;  %v2574_v23 = vand.u32 2147483647, %v12202_v60 }
 0x4c5   :  { %10710 = vmatmul.msk.bf16.gmra.mxu1 %vm103_vm1, %v11683_v59  ;;  %12205 = vpow2.f32 %v2547_v46  ;;  %v2151_v59 = vadd.f32 1.0, %v12200_v2  ;;  %v2564_v13 = vmul.f32 %v12198_v15, %v2563_v63  ;;  %v2155_v63 = vadd.f32 1.0, %v2154_v42 }
 0x4c6   :  { %vm15329_vm11 = vcmp.lt.f32.partialorder %v2574_v23, 0.0004427343 }
 0x4c7   :  { %12207 = vlog2.f32 %v2151_v59  ;;  %v11681_v59 = vld [vmem:[%s18560_s5 + $0xd0] sm:$0xff]  ;;  %v2567_v21 = vsel %vm15288_vm3, %v2564_v13, %v2561_v9  ;;  %v2156_v41 = vmul.f32 %v12200_v2, %v2155_v63 }
 0x4c8   :  { %12209 = vlog2.f32 %v2568_v43  ;;  %6815 = vmatpush.bf16.msrb.mxu0 %v11681_v59  ;;  %v15310_v43 = vpop.f32.mrf.mxu2  ;;  %v15313_v50 = vadd.f32 %v2567_v21, %v2519_v54  ;;  %v2572_v59 = vadd.f32 1.0, %v2571_v14 }
 0x4c9   :  { %18812 = vst [vmem:[#allocation125_spill] sm:$0xff] %v15310_v43 }
 0x4ca   :  { %v2359_v57 = vpop.permute.xlu2 %2358  ;;  %v2639_v21 = vpack.c.bf16 %v15313_v50, %v15313_v50  ;;  %v2573_v43 = vmul.f32 %v12202_v60, %v2572_v59 }
 0x4cb   :  { %2386 = vst.msk [vmem:[#allocation2 + $0x238] sm:$0xff] %vm359_vm13, %v2359_v57  ;;  %v15285_v46 = vpop.eup %12205 }
 0x4cc   :  { %v2577_v15 = vadd.f32 1.0, %v15285_v46  ;;  %v2580_v47 = vmul.f32 -0.5, %v15285_v46 }
 0x4ce   :  { %12211 = vlog2.f32 %v2577_v15  ;;  %v2055_v15 = vmax.f32 %v15235_v27, 0.0  ;;  %v2581_v63 = vadd.f32 1.0, %v2580_v47  ;;  %v11685_v27 = vld [vmem:[%s18561_s1 + $0x98] sm:$0xff] }
 0x4d2   :  { %v11936_v9 = vpop.permute.xlu2 %11935 }
 0x4d3   :  { %v11937_v47 = vunpack.i.l.bf16 %v11936_v9 }
 0x4d5   :  { %10711 = vmatmul.msk.bf16.gmra.mxu1 %vm103_vm1, %v11684_v7  ;;  %v12208_v7 = vpop.eup %12207 }
 0x4d6   :  { %v2153_v42 = vmul.f32 0.6931472, %v12208_v7  ;;  %v12210_v2 = vpop.eup %12209  ;;  %v15327_v7 = vpop.f32.mrf.mxu3 }
 0x4d7   :  { %18815 = vst [vmem:[#allocation126_spill] sm:$0xff] %v15327_v7  ;;  %v12212_v54 = vpop.eup %12211  ;;  %v2570_v35 = vmul.f32 0.6931472, %v12210_v2  ;;  %v6411_v2 = vld [vmem:[#allocation2 + $0x238] sm:$0xff] }
 0x4d9   :  { %v2357_v10 = vpop.permute.xlu1 %2356  ;;  %v2308_v56 = vpop.permute.xlu0 %2307 }
 0x4da   :  { %2383 = vst.msk [vmem:[#allocation2 + $0x220] sm:$0xff] %vm496_vm6, %v2357_v10 }
 0x4db   :  { %2384 = vst.msk [vmem:[#allocation2 + $0x228] sm:$0xff] %vm359_vm13, %v2357_v10  ;;  %v2159_v10 = vsel %vm15316_vm4, %v2156_v41, %v2153_v42  ;;  %v2583_v42 = vand.u32 2147483647, %v15285_v46 }
 0x4dc   :  { %2332 = vst.msk [vmem:[#allocation2 + $0x230] sm:$0xff] %vm439_vm5, %v2308_v56  ;;  %v11938_v56 = vunpack.i.h.bf16 %v11936_v9  ;;  %v15337_v41 = vadd.f32 %v2159_v10, %v2055_v15  ;;  %v2579_v15 = vmul.f32 0.6931472, %v12212_v54  ;;  %v2582_v9 = vmul.f32 %v15285_v46, %v2581_v63 }
 0x4dd   :  { %2385 = vst.msk [vmem:[#allocation2 + $0x230] sm:$0xff] %vm496_vm6, %v2359_v57  ;;  %vm15365_vm3 = vcmp.lt.f32.partialorder %v2583_v42, 0.0004427343  ;;  %v18823_v42 = vrot.slane %v15065_v61, 1 }
 0x4e1   :  { %v6148_v57 = vpop.f32.mrf.mxu0  ;;  %v2209_v44 = vpop.permute.xlu1 %2208  ;;  %v6408_v0 = vld [vmem:[#allocation2 + $0x220] sm:$0xff] }
 0x4e2   :  { %v6177_v13 = vpop.f32.mrf.mxu1  ;;  %v2260_v60 = vsel %vm359_vm13, %v15115_v38, %v2209_v44  ;;  %v2207_v59 = vpop.permute.xlu0 %2206  ;;  %v6409_v23 = vld [vmem:[#allocation2 + $0x228] sm:$0xff] }
 0x4e3   :  { %v6178_v7 = vadd.f32 %v6177_v13, %v6148_v57  ;;  %v15342_v51 = vsel %vm368_vm14, %v2260_v60, %v11938_v56  ;;  %v2259_v39 = vsel %vm359_vm13, %v15109_v31, %v2207_v59  ;;  %v15346_v8 = vpack.c.bf16 %v6411_v2, %v6409_v23  ;;  %v15353_v57 = vpop.f32.mrf.mxu2 }
 0x4e4   :  { %2276 = vst.msk [vmem:[#allocation2 + $0x260] sm:$0xff] %vm377_vm15, %v15342_v51  ;;  %v2267_v38 = vsel %vm368_vm14, %v2259_v39, %v11937_v47  ;;  %v6410_v44 = vld [vmem:[#allocation2 + $0x230] sm:$0xff]  ;;  %v2295_v10 = vrot.slane %v15342_v51, 1  ;;  %v2520_v39 = vmax.f32 %v15244_v19, 0.0  ;;  %v2521_v60 = vmax.f32 %v15253_v30, 0.0 }
 0x4e5   :  { %18818 = vst [vmem:[#allocation127_spill] sm:$0xff] %v15353_v57  ;;  %v15356_v56 = vadd.f32 %v6178_v7, %v15139_v4  ;;  %10712 = vmatmul.msk.bf16.gmra.mxu1 %vm103_vm1, %v11685_v27  ;;  %10574 = vmatmul.msk.bf16.gmra.mxu0 %vm359_vm13, %v15346_v8  ;;  %v15362_v31 = vpack.c.bf16 %v6410_v44, %v6408_v0  ;;  %v2344_v46 = vrot.slane %v2267_v38, 2  ;;  %v2293_v63 = vrot.slane %v2267_v38, 1  ;;  %v11941_v7 = vpop.permute.xlu2 %11940 }
 0x4e6   :  { %2275 = vst.msk [vmem:[#allocation2 + $0x250] sm:$0xff] %vm377_vm15, %v2267_v38  ;;  %v2175_v4 = vpack.c.bf16 %v15337_v41, %v15337_v41  ;;  %v2576_v27 = vsel %vm15329_vm11, %v2573_v43, %v2570_v35  ;;  %v18822_v0 = vrot.slane %v15065_v61, 2  ;;  %v15386_v43 = vunpack.c.l.bf16 %v2639_v21 }
 0x4e7   :  { %18819 = vst [vmem:[#allocation128_spill] sm:$0xff] %v15356_v56  ;;  %6521 = vmatmul.bf16.gmra.mxu3 %v15362_v31  ;;  %v2296_v19 = vsel %vm394_vm0, %v2293_v63, %v2295_v10  ;;  %v2294_v13 = vsel %vm394_vm0, %v18823_v42, %v2293_v63  ;;  %v6507_v59 = vpop.f32.mrf.mxu3  ;;  %v2585_v35 = vsel %vm15365_vm3, %v2582_v9, %v2579_v15  ;;  %v11943_v14 = vunpack.i.h.bf16 %v11941_v7 }
 0x4e8   :  { %v2345_v47 = vsel %vm449_vm2, %v18822_v0, %v2344_v46  ;;  %2311 = vrot.lane.b32.xlu1 %v2296_v19, %s12337_s30  ;;  %2309 = vrot.lane.b32.xlu0 %v2294_v13, %s12337_s30  ;;  %v2632_v2 = vadd.f32 %v2576_v27, %v2520_v39  ;;  %v15393_v38 = vunpack.c.l.bf16 %v2175_v4  ;;  %v11942_v30 = vunpack.i.l.bf16 %v11941_v7 }
 0x4e9   :  { %2360 = vrot.lane.b32.xlu2 %v2345_v47, %s12338_s8  ;;  %v15391_v23 = vpop.f32.mrf.mxu0  ;;  %v2213_v61 = vpop.permute.xlu1 %2212  ;;  %v2633_v9 = vadd.f32 %v2585_v35, %v2521_v60  ;;  %v2346_v54 = vrot.slane %v15342_v51, 2 }
 0x4ea   :  { %18824 = vst [vmem:[#allocation129_spill] sm:$0xff] %v15391_v23  ;;  %v15395_v44 = vpop.f32.mrf.mxu1  ;;  %v2262_v63 = vsel %vm359_vm13, %v15132_v37, %v2213_v61  ;;  %v2211_v21 = vpop.permute.xlu0 %2210  ;;  %v2640_v4 = vpack.c.bf16 %v2632_v2, %v2632_v2  ;;  %v11944_v37 = vpack.i.bf16 %v15386_v43, %v15393_v38  ;;  %v2191_v7 = vsub.f32 %v15337_v41, %v15393_v38 }
 0x4eb   :  { %18825 = vst [vmem:[#allocation130_spill] sm:$0xff] %v15395_v44  ;;  %v15400_v0 = vsel %vm368_vm14, %v2262_v63, %v11943_v14  ;;  %v2261_v15 = vsel %vm359_vm13, %v15130_v52, %v2211_v21  ;;  %v15413_v27 = vpop.f32.mrf.mxu2  ;;  %v2641_v52 = vpack.c.bf16 %v2633_v9, %v2633_v9  ;;  %v2347_v47 = vsel %vm449_vm2, %v2344_v46, %v2346_v54 }
 0x4ec   :  { %2278 = vst.msk [vmem:[#allocation2 + $0x280] sm:$0xff] %vm377_vm15, %v15400_v0  ;;  %v2269_v39 = vsel %vm368_vm14, %v2261_v15, %v11942_v30  ;;  %v15419_v42 = vunpack.c.l.bf16 %v2640_v4 }
 0x4ed   :  { %2277 = vst.msk [vmem:[#allocation2 + $0x270] sm:$0xff] %vm377_vm15, %v2269_v39  ;;  %v15423_v14 = vunpack.c.l.bf16 %v2641_v52  ;;  %v2297_v21 = vrot.slane %v2269_v39, 1 }
 0x4ee   :  { %v2656_v61 = vsub.f32 %v2632_v2, %v15419_v42  ;;  %v18586_v2 = vrot.slane %v15400_v0, 1 }
 0x4ef   :  { %v15421_v35 = vpop.f32.mrf.mxu3  ;;  %v2657_v46 = vsub.f32 %v2633_v9, %v15423_v14  ;;  %v11949_v9 = vpack.i.bf16 %v15423_v14, %v15419_v42 }
 0x4f0   :  { %2214 = vrot.lane.b32.xlu1 %v2191_v7, %s12335_s22  ;;  %2362 = vrot.lane.b32.xlu0 %v2347_v47, %s12338_s8  ;;  %18826 = vst [vmem:[#allocation131_spill] sm:$0xff] %v15421_v35  ;;  %v18585_v47 = vrot.slane %v15400_v0, 2 }
 0x4f1   :  { %11945 = vrot.lane.b32.xlu2 %v11944_v37, %s12336_s23  ;;  %v6536_v19 = vpop.f32.mrf.mxu0 }
 0x4f2   :  { %v6537_v13 = vadd.f32 %v6536_v19, %v6507_v59  ;;  %v6622_v60 = vpop.f32.mrf.mxu1  ;;  %v2655_v59 = vsub.f32 %v15313_v50, %v15386_v43  ;;  %v2298_v50 = vsel %vm394_vm0, %v2295_v10, %v2297_v21  ;;  %v2348_v19 = vrot.slane %v2269_v39, 2 }
 0x4f3   :  { %v15438_v30 = vpop.f32.mrf.mxu2 }
 0x4f4   :  { %v15425_v41 = vadd.f32 %v6622_v60, %v6537_v13  ;;  %18827 = vst [vmem:[#allocation132_spill] sm:$0xff] %v15438_v30  ;;  %v2351_v60 = vsel %vm449_vm2, %v2348_v19, %v18585_v47 }
 0x4f5   :  { %10807 = vmatmul.msk.bf16.vlgmr.msrb.gmra.mxu1 %vm359_vm13, %v15346_v8  ;;  %10669 = vmatmul.msk.bf16.vlgmr.msrb.gmra.mxu0 %vm359_vm13, %v15146_v1 }
 0x4f7   :  { %6787 = vmatmul.bf16.vlgmr.msrb.gmra.mxu3 %v15136_v20  ;;  %v2300_v20 = vsel %vm394_vm0, %v2297_v21, %v18586_v2 }
 0x4f8   :  { %2673 = vrot.lane.b32.xlu1 %v2656_v61, %s12335_s22  ;;  %2671 = vrot.lane.b32.xlu0 %v2655_v59, %s12335_s22  ;;  %v6512_v15 = vpop.f32.mrf.mxu3 }
 0x4f9   :  { %2675 = vrot.lane.b32.xlu2 %v2657_v46, %s12335_s22  ;;  %v15441_v63 = vpop.f32.mrf.mxu0  ;;  %v2349_v46 = vsel %vm449_vm2, %v2346_v54, %v2348_v19  ;;  %v11707_v54 = vld [vmem:[%s18560_s5 + $0x80] sm:$0xff] }
 0x4fa   :  { %18828 = vst [vmem:[#allocation133_spill] sm:$0xff] %v15441_v63  ;;  %v15443_v1 = vpop.f32.mrf.mxu1  ;;  %7153 = vmatpush.bf16.msra.mxu2 %v11707_v54  ;;  %v11695_v54 = vld [vmem:[%s18560_s5 + $0x20] sm:$0xff] }
 0x4fb   :  { %18829 = vst [vmem:[#allocation134_spill] sm:$0xff] %v15443_v1  ;;  %v6656_v4 = vpop.f32.mrf.mxu2 }
 0x500   :  { %2313 = vrot.lane.b32.xlu1 %v2298_v50, %s12337_s30  ;;  %11950 = vrot.lane.b32.xlu0 %v11949_v9, %s12336_s23  ;;  %v15462_v10 = vpop.f32.mrf.mxu3 }
 0x501   :  { %2315 = vrot.lane.b32.xlu2 %v2300_v20, %s12337_s30  ;;  %v6541_v37 = vpop.f32.mrf.mxu0  ;;  %18830 = vst [vmem:[#allocation135_spill] sm:$0xff] %v15462_v10 }
 0x502   :  { %v6542_v7 = vadd.f32 %v6541_v37, %v6512_v15  ;;  %v6627_v52 = vpop.f32.mrf.mxu1  ;;  %v11705_v37 = vld [vmem:[%s18560_s5 + $0x70] sm:$0xff] }
 0x504   :  { %v6628_v13 = vadd.f32 %v6627_v52, %v6542_v7  ;;  %v11698_v7 = vld [vmem:[%s18560_s5 + $0x38] sm:$0xff]  ;;  %v11703_v52 = vld [vmem:[%s18560_s5 + $0x60] sm:$0xff] }
 0x505   :  { %10670 = vmatmul.msk.bf16.gmra.mxu0 %vm359_vm13, %v15183_v53  ;;  %v15475_v53 = vpop.f32.mrf.mxu2 }
 0x506   :  { %v15460_v51 = vadd.f32 %v6656_v4, %v6628_v13  ;;  %18833 = vst [vmem:[#allocation138_spill] sm:$0xff] %v15475_v53  ;;  %v11706_v4 = vld [vmem:[%s18560_s5 + $0x78] sm:$0xff]  ;;  %7268 = vmatpush.bf16.msra.mxu0 %v11698_v7  ;;  %v15503_v13 = vadd.f32 %v15221_v29, %v13605_v36  ;;  %v11696_v36 = vld [vmem:[%s18560_s5 + $0x28] sm:$0xff] }
 0x507   :  { %6792 = vmatmul.bf16.gmra.mxu3 %v15173_v48  ;;  %7154 = vmatpush.bf16.msra.mxu2 %v11706_v4  ;;  %v18834_v4 = vld [vmem:[#allocation16_spill] sm:$0xff] }
 0x508   :  { %2366 = vrot.lane.b32.xlu1 %v2351_v60, %s12338_s8  ;;  %2364 = vrot.lane.b32.xlu0 %v2349_v46, %s12338_s8  ;;  %v6517_v59 = vpop.f32.mrf.mxu3  ;;  %v11702_v60 = vld [vmem:[%s18560_s5 + $0x58] sm:$0xff]  ;;  %v11697_v46 = vld [vmem:[%s18560_s5 + $0x30] sm:$0xff] }
 0x509   :  { %v15471_v39 = vpop.f32.mrf.mxu0 }
 0x50a   :  { %18831 = vst [vmem:[#allocation136_spill] sm:$0xff] %v15471_v39  ;;  %v15473_v61 = vpop.f32.mrf.mxu1  ;;  %7269 = vmatpush.bf16.msra.mxu0 %v11697_v46  ;;  %v18835_v46 = vld [vmem:[#allocation19_spill] sm:$0xff] }
 0x50b   :  { %18832 = vst [vmem:[#allocation137_spill] sm:$0xff] %v15473_v61  ;;  %7155 = vmatpush.bf16.msra.mxu2 %v11705_v37  ;;  %v15532_v37 = vadd.f32 %v15221_v29, %v18834_v4 }
 0x50d   :  { %v6661_v50 = vpop.f32.mrf.mxu2 }
 0x50e   :  { %7270 = vmatpush.bf16.msra.mxu0 %v11696_v36 }
 0x511   :  { %v6546_v21 = vpop.f32.mrf.mxu0 }
 0x512   :  { %v6547_v15 = vadd.f32 %v6546_v21, %v6517_v59  ;;  %v6632_v48 = vpop.f32.mrf.mxu1  ;;  %v2530_v59 = vand.u32 2147483647, %v15503_v13  ;;  %v11701_v21 = vld [vmem:[%s18560_s5 + $0x50] sm:$0xff]  ;;  %7271 = vmatpush.bf16.msra.mxu0 %v11695_v54 }
 0x514   :  { %v6633_v20 = vadd.f32 %v6632_v48, %v6547_v15  ;;  %v2538_v48 = vsub.f32 0.0, %v2530_v59  ;;  %v15543_v59 = vadd.f32 %v15221_v29, %v18835_v46 }
 0x515   :  { %10671 = vmatmul.msk.bf16.gmra.mxu0 %vm359_vm13, %v15346_v8  ;;  %v11704_v8 = vld [vmem:[%s18560_s5 + $0x68] sm:$0xff] }
 0x516   :  { %v15479_v9 = vadd.f32 %v6661_v50, %v6633_v20  ;;  %7156 = vmatpush.bf16.msra.mxu2 %v11704_v8  ;;  %v15522_v20 = vadd.f32 %v15221_v29, %v13626_v28  ;;  %v11700_v50 = vld [vmem:[%s18560_s5 + $0x48] sm:$0xff]  ;;  %v2549_v8 = vmul.f32 1.442695, %v2538_v48  ;;  %v11694_v28 = vld [vmem:[%s18560_s5 + $0x18] sm:$0xff]  ;;  %v11693_v48 = vld [vmem:[%s18560_s5 + $0x10] sm:$0xff] }
 0x517   :  { %6797 = vmatmul.bf16.gmra.mxu3 %v15362_v31  ;;  %7272 = vmatpush.bf16.msra.mxu0 %v11694_v28 }
 0x518   :  { %v2531_v7 = vand.u32 2147483647, %v15522_v20  ;;  %12213 = vpow2.f32 %v2549_v8  ;;  %v11692_v8 = vld [vmem:[%s18560_s5 + $0x8] sm:$0xff] }
 0x519   :  { %v15551_v47 = vpop.f32.mrf.mxu0 }
 0x51a   :  { %7157 = vmatpush.bf16.msra.mxu2 %v11703_v52  ;;  %18836 = vst [vmem:[#allocation16_spill] sm:$0xff] %v15551_v47 }
 0x51b   :  { %7273 = vmatpush.bf16.msra.mxu0 %v11693_v48 }
 0x51e   :  { %7158 = vmatpush.bf16.msra.mxu2 %v11702_v60  ;;  %v2532_v60 = vand.u32 2147483647, %v15532_v37  ;;  %v15549_v54 = vpop.eup %12213 }
 0x51f   :  { %v2586_v46 = vadd.f32 1.0, %v15549_v54  ;;  %7274 = vmatpush.bf16.msra.mxu0 %v11692_v8  ;;  %v2589_v48 = vmul.f32 -0.5, %v15549_v54 }
 0x520   :  { %v2540_v36 = vsub.f32 0.0, %v2532_v60 }
 0x522   :  { %7159 = vmatpush.bf16.msra.mxu2 %v11701_v21  ;;  %v2539_v21 = vsub.f32 0.0, %v2531_v7  ;;  %v2553_v28 = vmul.f32 1.442695, %v2540_v36 }
 0x524   :  { %v2551_v4 = vmul.f32 1.442695, %v2539_v21  ;;  %v11708_v21 = vld [vmem:[%s18560_s5 + $0x88] sm:$0xff] }
 0x525   :  { %7189 = vmatpush.bf16.msra.mxu3 %v11708_v21  ;;  %v2590_v21 = vadd.f32 1.0, %v2589_v48 }
 0x526   :  { %7160 = vmatpush.bf16.msra.mxu2 %v11700_v50  ;;  %v2533_v50 = vand.u32 2147483647, %v15543_v59  ;;  %12215 = vpow2.f32 %v2551_v4 }
 0x527   :  { %12217 = vpow2.f32 %v2553_v28  ;;  %v2591_v48 = vmul.f32 %v15549_v54, %v2590_v21 }
 0x528   :  { %v2541_v57 = vsub.f32 0.0, %v2533_v50  ;;  %12219 = vlog2.f32 %v2586_v46  ;;  %v15568_v50 = vpop.f32.mrf.mxu3 }
 0x529   :  { %18837 = vst [vmem:[#allocation19_spill] sm:$0xff] %v15568_v50 }
 0x52a   :  { %v2555_v36 = vmul.f32 1.442695, %v2541_v57 }
 0x52c   :  { %12221 = vpow2.f32 %v2555_v36  ;;  %v2592_v36 = vand.u32 2147483647, %v15549_v54 }
 0x52e   :  { %vm15602_vm4 = vcmp.lt.f32.partialorder %v2592_v36, 0.0004427343 }
 0x543   :  { %v2361_v19 = vpop.permute.xlu2 %2360 }
 0x544   :  { %2388 = vst.msk [vmem:[#allocation2 + $0x248] sm:$0xff] %vm359_vm13, %v2361_v19 }
 0x54b   :  { %v15518_v15 = vpop.permute.xlu2 %11945 }
 0x54c   :  { %v11948_v30 = vunpack.i.h.bf16 %v15518_v15 }
 0x553   :  { %v15538_v52 = vpop.permute.xlu2 %2675 }
 0x55a   :  { %v2312_v7 = vpop.permute.xlu1 %2311  ;;  %v2310_v60 = vpop.permute.xlu0 %2309 }
 0x55b   :  { %v2316_v2 = vpop.permute.xlu2 %2315  ;;  %2334 = vst.msk [vmem:[#allocation2 + $0x250] sm:$0xff] %vm439_vm5, %v2312_v7  ;;  %v15571_v7 = vpop.eup %12215 }
 0x55c   :  { %2336 = vst.msk [vmem:[#allocation2 + $0x270] sm:$0xff] %vm439_vm5, %v2316_v2  ;;  %v11691_v2 = vld [vmem:[%s18560_s5] sm:$0xff]  ;;  %v15576_v46 = vpop.eup %12217  ;;  %v2595_v61 = vadd.f32 1.0, %v15571_v7  ;;  %v2598_v10 = vmul.f32 -0.5, %v15571_v7 }
 0x55d   :  { %2333 = vst.msk [vmem:[#allocation2 + $0x240] sm:$0xff] %vm439_vm5, %v2310_v60  ;;  %7275 = vmatpush.bf16.msra.mxu0 %v11691_v2  ;;  %v12220_v53 = vpop.eup %12219  ;;  %v2604_v39 = vadd.f32 1.0, %v15576_v46 }
 0x55e   :  { %2387 = vst.msk [vmem:[#allocation2 + $0x240] sm:$0xff] %vm496_vm6, %v2361_v19  ;;  %v11947_v19 = vunpack.i.l.bf16 %v15518_v15  ;;  %12223 = vlog2.f32 %v2595_v61  ;;  %v6684_v61 = vld [vmem:[#allocation2 + $0x248] sm:$0xff]  ;;  %v2607_v15 = vmul.f32 -0.5, %v15576_v46  ;;  %v2599_v36 = vadd.f32 1.0, %v2598_v10 }
 0x55f   :  { %12225 = vlog2.f32 %v2604_v39 }
 0x562   :  { %v6551_v4 = vpop.f32.mrf.mxu0  ;;  %v2215_v8 = vpop.permute.xlu1 %2214 }
 0x563   :  { %v2363_v28 = vpop.permute.xlu0 %2362  ;;  %v2263_v60 = vsel %vm359_vm13, %v15393_v38, %v2215_v8  ;;  %v18838_v38 = vrot.slane %v15400_v0, 1 }
 0x564   :  { %2389 = vst.msk [vmem:[#allocation2 + $0x250] sm:$0xff] %vm496_vm6, %v2363_v28  ;;  %v2271_v57 = vsel %vm368_vm14, %v2263_v60, %v11947_v19  ;;  %v2588_v19 = vmul.f32 0.6931472, %v12220_v53  ;;  %v15590_v60 = vpop.eup %12221 }
 0x565   :  { %2390 = vst.msk [vmem:[#allocation2 + $0x258] sm:$0xff] %vm359_vm13, %v2363_v28  ;;  %v2301_v2 = vrot.slane %v2271_v57, 1  ;;  %v2352_v50 = vrot.slane %v2271_v57, 2 }
 0x566   :  { %2279 = vst.msk [vmem:[#allocation2 + $0x290] sm:$0xff] %vm377_vm15, %v2271_v57  ;;  %v2613_v57 = vadd.f32 1.0, %v15590_v60 }
 0x567   :  { %2319 = vrot.lane.b32.xlu0 %v2301_v2, %s12337_s30  ;;  %v2302_v8 = vsel %vm394_vm0, %v18838_v38, %v2301_v2  ;;  %v6683_v2 = vld [vmem:[#allocation2 + $0x240] sm:$0xff] }
 0x568   :  { %2317 = vrot.lane.b32.xlu2 %v2302_v8, %s12337_s30  ;;  %12227 = vlog2.f32 %v2613_v57 }
 0x56a   :  { %v6522_v28 = vpop.f32.mrf.mxu3  ;;  %v2674_v1 = vpop.permute.xlu1 %2673 }
 0x56b   :  { %v15594_v56 = vadd.f32 %v6551_v4, %v6522_v28  ;;  %v2672_v47 = vpop.permute.xlu0 %2671  ;;  %v6685_v38 = vld [vmem:[#allocation2 + $0x250] sm:$0xff]  ;;  %v15598_v54 = vpop.f32.mrf.mxu0  ;;  %v2601_v28 = vand.u32 2147483647, %v15571_v7 }
 0x56c   :  { %v2727_v53 = vsel %vm359_vm13, %v15386_v43, %v2672_v47  ;;  %18839 = vst [vmem:[#allocation139_spill] sm:$0xff] %v15598_v54  ;;  %v15600_v21 = vpack.c.bf16 %v6685_v38, %v6683_v2  ;;  %v6686_v8 = vld [vmem:[#allocation2 + $0x258] sm:$0xff]  ;;  %v2522_v47 = vmax.f32 %v15503_v13, 0.0  ;;  %v2610_v2 = vand.u32 2147483647, %v15576_v46  ;;  %v12224_v38 = vpop.eup %12223 }
 0x56d   :  { %v15608_v4 = vsel %vm368_vm14, %v2727_v53, %v11948_v30  ;;  %v15610_v39 = vpack.c.bf16 %v6686_v8, %v6684_v61  ;;  %v2594_v30 = vsel %vm15602_vm4, %v2591_v48, %v2588_v19  ;;  %v18842_v13 = vrot.slane %v15400_v0, 2  ;;  %v12226_v61 = vpop.eup %12225 }
 0x56e   :  { %v2759_v43 = vrot.slane %v15608_v4, 1  ;;  %2743 = vst.msk [vmem:[#allocation2 + $0x2a0] sm:$0xff] %vm377_vm15, %v15608_v4  ;;  %6802 = vmatmul.bf16.gmra.mxu3 %v15600_v21  ;;  %7161 = vmatmul.bf16.vlgmr.msra.gmra.mxu2 %v15600_v21  ;;  %v2608_v53 = vadd.f32 1.0, %v2607_v15  ;;  %v2616_v8 = vmul.f32 -0.5, %v15590_v60  ;;  %v15636_v19 = vadd.f32 %v2594_v30, %v2522_v47 }
 0x56f   :  { %10672 = vmatmul.msk.bf16.gmra.mxu0 %vm359_vm13, %v15610_v39  ;;  %10808 = vmatmul.msk.bf16.gmra.mxu1 %vm359_vm13, %v15610_v39  ;;  %v2353_v10 = vsel %vm449_vm2, %v18842_v13, %v2352_v50  ;;  %v2600_v48 = vmul.f32 %v15571_v7, %v2599_v36  ;;  %vm15639_vm11 = vcmp.lt.f32.partialorder %v2601_v28, 0.0004427343  ;;  %v2597_v13 = vmul.f32 0.6931472, %v12224_v38 }
 0x570   :  { %2370 = vrot.lane.b32.xlu0 %v2352_v50, %s12338_s8  ;;  %2774 = vrot.lane.b32.xlu1 %v2759_v43, %s12337_s30  ;;  %vm15643_vm3 = vcmp.lt.f32.partialorder %v2610_v2, 0.0004427343  ;;  %v2606_v47 = vmul.f32 0.6931472, %v12226_v61  ;;  %v2609_v30 = vmul.f32 %v15576_v46, %v2608_v53  ;;  %v2729_v7 = vsel %vm359_vm13, %v15423_v14, %v15538_v52  ;;  %v12228_v53 = vpop.eup %12227 }
 0x571   :  { %2368 = vrot.lane.b32.xlu2 %v2353_v10, %s12338_s8  ;;  %v2728_v36 = vsel %vm359_vm13, %v15419_v42, %v2674_v1  ;;  %v2617_v28 = vadd.f32 1.0, %v2616_v8  ;;  %v2810_v2 = vrot.slane %v15608_v4, 2  ;;  %v2642_v14 = vpack.c.bf16 %v15636_v19, %v15636_v19 }
 0x572   :  { %v15634_v63 = vpop.f32.mrf.mxu3  ;;  %v2314_v0 = vpop.permute.xlu1 %2313  ;;  %v2523_v52 = vmax.f32 %v15522_v20, 0.0  ;;  %v2524_v42 = vmax.f32 %v15532_v37, 0.0  ;;  %v2619_v1 = vand.u32 2147483647, %v15590_v60  ;;  %v2603_v4 = vsel %vm15639_vm11, %v2600_v48, %v2597_v13 }
 0x573   :  { %18843 = vst [vmem:[#allocation140_spill] sm:$0xff] %v15634_v63  ;;  %v11951_v50 = vpop.permute.xlu0 %11950  ;;  %v6817_v63 = vpop.f32.mrf.mxu0  ;;  %v2612_v8 = vsel %vm15643_vm3, %v2609_v30, %v2606_v47  ;;  %v2618_v37 = vmul.f32 %v15590_v60, %v2617_v28  ;;  %v6652_v54 = vadd.f32 %v15413_v27, %v15425_v41  ;;  %v15682_v30 = vunpack.c.l.bf16 %v2642_v14 }
 0x574   :  { %2335 = vst.msk [vmem:[#allocation2 + $0x260] sm:$0xff] %vm439_vm5, %v2314_v0  ;;  %v11953_v57 = vunpack.i.h.bf16 %v11951_v50  ;;  %v11952_v10 = vunpack.i.l.bf16 %v11951_v50  ;;  %vm15684_vm4 = vcmp.lt.f32.partialorder %v2619_v1, 0.0004427343  ;;  %v2525_v41 = vmax.f32 %v15543_v59, 0.0 }
 0x575   :  { %v2658_v59 = vsub.f32 %v15636_v19, %v15682_v30  ;;  %vm18875_vm3 = vcmask 1048326  }
 0x576   :  { %v15656_v38 = vsel %vm368_vm14, %v2729_v7, %v11953_v57  ;;  %v2736_v0 = vsel %vm368_vm14, %v2728_v36, %v11952_v10  ;;  %v2615_v10 = vmul.f32 0.6931472, %v12228_v53  ;;  %v2635_v7 = vadd.f32 %v2603_v4, %v2523_v52 }
 0x577   :  { %2744 = vst.msk [vmem:[#allocation2 + $0x2b0] sm:$0xff] %vm377_vm15, %v2736_v0  ;;  %v2760_v61 = vrot.slane %v2736_v0, 1  ;;  %v18587_v46 = vrot.slane %v15656_v38, 1  ;;  %v2811_v47 = vrot.slane %v2736_v0, 2  ;;  %v2636_v36 = vadd.f32 %v2612_v8, %v2524_v42 }
 0x578   :  { %2745 = vst.msk [vmem:[#allocation2 + $0x2c0] sm:$0xff] %vm377_vm15, %v15656_v38  ;;  %2825 = vrot.lane.b32.xlu1 %v2810_v2, %s12338_s8  ;;  %v18588_v27 = vrot.slane %v15656_v38, 2 }
 0x579   :  { %v2763_v50 = vsel %vm394_vm0, %v2760_v61, %v18587_v46  ;;  %v2761_v20 = vsel %vm394_vm0, %v2759_v43, %v2760_v61  ;;  %v2812_v0 = vsel %vm449_vm2, %v2810_v2, %v2811_v47  ;;  %v2643_v61 = vpack.c.bf16 %v2635_v7, %v2635_v7 }
 0x57a   :  { %2778 = vrot.lane.b32.xlu0 %v2763_v50, %s12337_s30  ;;  %2776 = vrot.lane.b32.xlu2 %v2761_v20, %s12337_s30  ;;  %v6788_v57 = vpop.f32.mrf.mxu3  ;;  %v2367_v13 = vpop.permute.xlu1 %2366  ;;  %v2644_v53 = vpack.c.bf16 %v2636_v36, %v2636_v36 }
 0x57b   :  { %v6818_v48 = vadd.f32 %v6817_v63, %v6788_v57  ;;  %v2365_v15 = vpop.permute.xlu0 %2364  ;;  %2393 = vst.msk [vmem:[#allocation2 + $0x270] sm:$0xff] %vm496_vm6, %v2367_v13  ;;  %v15689_v60 = vpop.f32.mrf.mxu0  ;;  %v2621_v63 = vsel %vm15684_vm4, %v2618_v37, %v2615_v10  ;;  %v15714_v2 = vunpack.c.l.bf16 %v2643_v61 }
 0x57c   :  { %18850 = vst [vmem:[#allocation141_spill] sm:$0xff] %v15689_v60  ;;  %v2637_v14 = vadd.f32 %v2621_v63, %v2525_v41  ;;  %v15716_v42 = vunpack.c.l.bf16 %v2644_v53 }
 0x57d   :  { %v15691_v28 = vadd.f32 %v6818_v48, %v6652_v54  ;;  %2394 = vst.msk [vmem:[#allocation2 + $0x278] sm:$0xff] %vm359_vm13, %v2367_v13  ;;  %v2659_v19 = vsub.f32 %v2635_v7, %v15714_v2  ;;  %v11954_v54 = vpack.i.bf16 %v15714_v2, %v15682_v30 }
 0x57e   :  { %2391 = vst.msk [vmem:[#allocation2 + $0x260] sm:$0xff] %vm496_vm6, %v2365_v15  ;;  %10767 = vmatmul.msk.bf16.vlgmr.msra.gmra.mxu3 %vm359_vm13, %v15610_v39  ;;  %v2814_v39 = vsel %vm449_vm2, %v2811_v47, %v18588_v27  ;;  %v2645_v8 = vpack.c.bf16 %v2637_v14, %v2637_v14  ;;  %v2660_v10 = vsub.f32 %v2636_v36, %v15716_v42  ;;  %v11714_v27 = vld [vmem:[%s18560_s5 + $0xb8] sm:$0xff] }
 0x57f   :  { %18851 = vst [vmem:[#allocation142_spill] sm:$0xff] %v15691_v28  ;;  %7276 = vmatmul.bf16.vlgmr.msra.gmra.mxu0 %v15362_v31 }
 0x580   :  { %2392 = vst.msk [vmem:[#allocation2 + $0x268] sm:$0xff] %vm359_vm13, %v2365_v15  ;;  %2827 = vrot.lane.b32.xlu1 %v2812_v0, %s12338_s8  ;;  %v15730_v48 = vunpack.c.l.bf16 %v2645_v8  ;;  %v18862_v8 = vld [vmem:[#allocation23_spill] sm:$0xff] }
 0x582   :  { %2677 = vrot.lane.b32.xlu0 %v2658_v59, %s12335_s22  ;;  %2829 = vrot.lane.b32.xlu2 %v2814_v39, %s12338_s8  ;;  %v15712_v52 = vpop.f32.mrf.mxu3  ;;  %v7031_v31 = vld [vmem:[#allocation2 + $0x270] sm:$0xff]  ;;  %v2661_v47 = vsub.f32 %v2637_v14, %v15730_v48  ;;  %v11959_v43 = vpack.i.bf16 %v15730_v48, %v15716_v42  ;;  %v15764_v14 = vld [vmem:[%s18557_s3] ss:$0 sm:$0xff] }
 0x583   :  { %18852 = vst [vmem:[#allocation143_spill] sm:$0xff] %v15712_v52  ;;  %v6822_v50 = vpop.f32.mrf.mxu0 }
 0x584   :  { %v7032_v1 = vld [vmem:[#allocation2 + $0x278] sm:$0xff] }
 0x585   :  { %v7029_v4 = vld [vmem:[#allocation2 + $0x260] sm:$0xff] }
 0x586   :  { %v15719_v20 = vpack.c.bf16 %v7031_v31, %v7029_v4 }
 0x587   :  { %v7030_v37 = vld [vmem:[#allocation2 + $0x268] sm:$0xff] }
 0x588   :  { %v15721_v57 = vpack.c.bf16 %v7032_v1, %v7030_v37  ;;  %7166 = vmatmul.bf16.gmra.mxu2 %v15719_v20  ;;  %2679 = vrot.lane.b32.xlu1 %v2659_v19, %s12335_s22  ;;  %v18860_v1 = vld [vmem:[#allocation7_spill] sm:$0xff] }
 0x58a   :  { %10809 = vmatmul.msk.bf16.gmra.mxu1 %vm359_vm13, %v15721_v57  ;;  %2681 = vrot.lane.b32.xlu0 %v2660_v10, %s12335_s22  ;;  %v6793_v13 = vpop.f32.mrf.mxu3 }
 0x58b   :  { %11955 = vrot.lane.b32.xlu2 %v11954_v54, %s12336_s23  ;;  %v6823_v15 = vadd.f32 %v6822_v50, %v6793_v13  ;;  %v15741_v36 = vpop.f32.mrf.mxu0  ;;  %v15776_v50 = vadd.f32 %v15221_v29, %v18862_v8  ;;  %v18863_v13 = vld [vmem:[#allocation11_spill] sm:$0xff]  ;;  %v18864_v29 = vld [vmem:[#allocation9_spill] sm:$0xff] }
 0x58c   :  { %18854 = vst [vmem:[#allocation145_spill] sm:$0xff] %v15741_v36 }
 0x58d   :  { %v15736_v7 = vadd.f32 %v6823_v15, %v15460_v51  ;;  %v2534_v54 = vand.u32 2147483647, %v15776_v50  ;;  %v15783_v15 = vadd.f32 %v15764_v14, %v18863_v13 }
 0x58e   :  { %10768 = vmatmul.msk.bf16.gmra.mxu3 %vm359_vm13, %v15721_v57 }
 0x58f   :  { %18853 = vst [vmem:[#allocation144_spill] sm:$0xff] %v15736_v7  ;;  %7281 = vmatmul.bf16.gmra.mxu0 %v15600_v21  ;;  %v15753_v21 = vpop.f32.mrf.mxu1 }
 0x590   :  { %2683 = vrot.lane.b32.xlu1 %v2661_v47, %s12335_s22  ;;  %18857 = vst [vmem:[#allocation148_spill] sm:$0xff] %v15753_v21  ;;  %v7578_v47 = vld [vmem:[%s18559_s4 + $0x28] sm:$0x1] }
 0x592   :  { %v15747_v41 = vpop.f32.mrf.mxu3 }
 0x593   :  { %11960 = vrot.lane.b32.xlu2 %v11959_v43, %s12336_s23  ;;  %18855 = vst [vmem:[#allocation146_spill] sm:$0xff] %v15747_v41  ;;  %v6827_v63 = vpop.f32.mrf.mxu0 }
 0x597   :  { %v15755_v53 = vpop.f32.mrf.mxu1 }
 0x59a   :  { %v6798_v0 = vpop.f32.mrf.mxu3 }
 0x59b   :  { %v6828_v51 = vadd.f32 %v6827_v63, %v6798_v0  ;;  %v7620_v63 = vunpack.c.l.b16 %v7578_v47  ;;  %v15790_v0 = vadd.f32 %v15764_v14, %v18864_v29  ;;  %v11726_v47 = vld [vmem:[%s18559_s4 + $0x20] sm:$0xff] }
 0x59d   :  { %v15750_v61 = vadd.f32 %v6828_v51, %v15479_v9  ;;  %v15768_v9 = vadd.f32 %v15764_v14, %v18860_v1  ;;  %v2542_v51 = vsub.f32 0.0, %v2534_v54  ;;  %v3000_v1 = vand.u32 2147483647, %v15783_v15 }
 0x59e   :  { %v2999_v13 = vand.u32 2147483647, %v15790_v0 }
 0x59f   :  { %18856 = vst [vmem:[#allocation147_spill] sm:$0xff] %v15750_v61  ;;  %7286 = vmatmul.bf16.gmra.mxu0 %v15719_v20  ;;  %v15757_v59 = vpop.f32.mrf.mxu1  ;;  %v2998_v4 = vand.u32 2147483647, %v15768_v9  ;;  %v3008_v54 = vsub.f32 0.0, %v3000_v1 }
 0x5a0   :  { %18858 = vst [vmem:[#allocation149_spill] sm:$0xff] %v15757_v59 }
 0x5a1   :  { %v3006_v10 = vsub.f32 0.0, %v2998_v4 }
 0x5a2   :  { %v15858_v28 = vpop.f32.mrf.mxu3 }
 0x5a3   :  { %v3014_v43 = vmul.f32 1.442695, %v3006_v10  ;;  %v2557_v10 = vmul.f32 1.442695, %v2542_v51  ;;  %v11725_v51 = vld [vmem:[%s18559_s4 + $0x18] sm:$0xff]  ;;  %18871 = vst [vmem:[#allocation152_spill] sm:$0xff] %v15858_v28 }
 0x5a5   :  { %12229 = vpow2.f32 %v3014_v43  ;;  %v3007_v43 = vsub.f32 0.0, %v2999_v13  ;;  %v11715_v13 = vld [vmem:[%s18560_s5 + $0xc0] sm:$0xff] }
 0x5a6   :  { %12231 = vpow2.f32 %v2557_v10 }
 0x5a7   :  { %v15759_v39 = vpop.f32.mrf.mxu1  ;;  %v3016_v10 = vmul.f32 1.442695, %v3007_v43 }
 0x5a8   :  { %18859 = vst [vmem:[#allocation150_spill] sm:$0xff] %v15759_v39  ;;  %v15837_v39 = vpop.f32.mrf.mxu0 }
 0x5ab   :  { %v12230_v29 = vpop.eup %12229 }
 0x5ac   :  { %v3030_v1 = vadd.f32 1.0, %v12230_v29 }
 0x5af   :  { %v15772_v19 = vpop.f32.mrf.mxu1 }
 0x5b0   :  { %18861 = vst [vmem:[#allocation7_spill] sm:$0xff] %v15772_v19  ;;  %v15829_v19 = vpop.f32.mrf.mxu2 }
 0x5b1   :  { %18868 = vst [vmem:[#allocation9_spill] sm:$0xff] %v15829_v19 }
 0x5b7   :  { %v15793_v4 = vpop.f32.mrf.mxu1 }
 0x5b8   :  { %18865 = vst [vmem:[#allocation23_spill] sm:$0xff] %v15793_v4 }
 0x5c2   :  { %v2318_v31 = vpop.permute.xlu2 %2317 }
 0x5c3   :  { %2337 = vst.msk [vmem:[#allocation2 + $0x280] sm:$0xff] %vm439_vm5, %v2318_v31  ;;  %v7626_v31 = vpack.c.b16 %v7620_v63, %v7620_v63  ;;  %v11716_v63 = vld [vmem:[%s18560_s5 + $0xc8] sm:$0xff] }
 0x5c4   :  { %7434 = vmatpush.bf16.msrb.mxu2 %v11716_v63 }
 0x5c8   :  { %7435 = vmatpush.bf16.msrb.mxu2 %v11715_v13  ;;  %v3033_v13 = vmul.f32 -0.5, %v12230_v29 }
 0x5ca   :  { %v3034_v4 = vadd.f32 1.0, %v3033_v13 }
 0x5cb   :  { %v2369_v37 = vpop.permute.xlu2 %2368 }
 0x5cc   :  { %2395 = vst.msk [vmem:[#allocation2 + $0x280] sm:$0xff] %vm496_vm6, %v2369_v37  ;;  %7436 = vmatpush.bf16.msrb.mxu2 %v11714_v27  ;;  %v11722_v27 = vld [vmem:[%s18559_s4] sm:$0xff] }
 0x5cd   :  { %2396 = vst.msk [vmem:[#allocation2 + $0x288] sm:$0xff] %vm359_vm13, %v2369_v37  ;;  %v7645_v37 = vand.u32 %v7626_v31, %v12382_v3  ;;  %v3018_v31 = vmul.f32 1.442695, %v3008_v54  ;;  %v18867_v54 = vld [vmem:[#allocation13_spill] sm:$0xff] }
 0x5ce   :  { %v15824_v63 = vadd.f32 %v15764_v14, %v18867_v54  ;;  %18869 = vst [vmem:[#allocation13_spill] sm:$0xff] %v15837_v39  ;;  %v3035_v39 = vmul.f32 %v12230_v29, %v3034_v4 }
 0x5cf   :  { %7649 = vmatpush.bf16.msrb.mxu0 %v7645_v37  ;;  %v15810_v37 = vpop.f32.mrf.mxu1  ;;  %12233 = vpow2.f32 %v3018_v31  ;;  %v11723_v31 = vld [vmem:[%s18559_s4 + $0x8] sm:$0xff] }
 0x5d0   :  { %18866 = vst [vmem:[#allocation11_spill] sm:$0xff] %v15810_v37  ;;  %12235 = vlog2.f32 %v3030_v1  ;;  %v3001_v54 = vand.u32 2147483647, %v15824_v63 }
 0x5d1   :  { %12237 = vpow2.f32 %v3016_v10  ;;  %v11713_v10 = vld [vmem:[%s18560_s5 + $0xb0] sm:$0xff] }
 0x5d2   :  { %7437 = vmatpush.bf16.msrb.mxu2 %v11713_v10  ;;  %v3009_v41 = vsub.f32 0.0, %v3001_v54 }
 0x5d3   :  { %7650 = vmatpush.bf16.msrb.mxu0 %v11726_v47  ;;  %v11724_v47 = vld [vmem:[%s18559_s4 + $0x10] sm:$0xff] }
 0x5d4   :  { %v2777_v8 = vpop.permute.xlu2 %2776  ;;  %v3020_v54 = vmul.f32 1.442695, %v3009_v41  ;;  %v2990_v41 = vmax.f32 %v15768_v9, 0.0 }
 0x5d5   :  { %2802 = vst.msk [vmem:[#allocation2 + $0x2a0] sm:$0xff] %vm439_vm5, %v2777_v8 }
 0x5d7   :  { %7651 = vmatpush.bf16.msrb.mxu0 %v11725_v51  ;;  %v15849_v61 = vpop.f32.mrf.mxu1 }
 0x5d8   :  { %18870 = vst [vmem:[#allocation151_spill] sm:$0xff] %v15849_v61 }
 0x5d9   :  { %v2320_v46 = vpop.permute.xlu0 %2319 }
 0x5da   :  { %2338 = vst.msk [vmem:[#allocation2 + $0x290] sm:$0x7f] %vm447_vm7, %v2320_v46  ;;  %v15820_v46 = vpop.eup %12231 }
 0x5db   :  { %7652 = vmatpush.bf16.msrb.mxu0 %v11724_v47  ;;  %v2622_v37 = vadd.f32 1.0, %v15820_v46  ;;  %v15840_v1 = vpop.eup %12233  ;;  %v3036_v47 = vand.u32 2147483647, %v12230_v29  ;;  %v2628_v4 = vand.u32 2147483647, %v15820_v46 }
 0x5dc   :  { %v15808_v8 = vpop.permute.xlu2 %2829  ;;  %v3048_v36 = vadd.f32 1.0, %v15840_v1 }
 0x5dd   :  { %2857 = vst.msk [vmem:[#allocation2 + $0x2b8] sm:$0xff] %vm359_vm13, %v15808_v8  ;;  %12239 = vlog2.f32 %v2622_v37  ;;  %vm15860_vm11 = vcmp.lt.f32.partialorder %v3036_v47, 0.0004427343  ;;  %v18874_v37 = vld [vmem:[#allocation15_spill] sm:$0xff]  ;;  %v6666_v47 = vpop.f32.mrf.mxu2  ;;  %vm15892_vm4 = vcmp.lt.f32.partialorder %v2628_v4, 0.0004427343 }
 0x5de   :  { %v15866_v13 = vadd.f32 %v15764_v14, %v18874_v37  ;;  %12241 = vlog2.f32 %v3048_v36  ;;  %v11711_v37 = vld [vmem:[%s18560_s5 + $0xa0] sm:$0xff]  ;;  %v6638_v36 = vadd.f32 %v15755_v53, %v15594_v56  ;;  %v7034_v4 = vld [vmem:[#allocation2 + $0x288] sm:$0xff] }
 0x5df   :  { %7653 = vmatpush.bf16.msrb.mxu0 %v11723_v31  ;;  %v2625_v31 = vmul.f32 -0.5, %v15820_v46 }
 0x5e0   :  { %v6667_v21 = vadd.f32 %v6666_v47, %v6638_v36 }
 0x5e1   :  { %v2626_v28 = vadd.f32 1.0, %v2625_v31  ;;  %v11710_v31 = vld [vmem:[%s18560_s5 + $0x98] sm:$0xff] }
 0x5e2   :  { %v2775_v43 = vpop.permute.xlu1 %2774  ;;  %v2371_v51 = vpop.permute.xlu0 %2370 }
 0x5e3   :  { %2801 = vst.msk [vmem:[#allocation2 + $0x290] sm:$0x80] %vm437_vm10, %v2775_v43  ;;  %v12236_v43 = vpop.eup %12235  ;;  %7654 = vmatpush.bf16.msrb.mxu0 %v11722_v27  ;;  %v3051_v27 = vmul.f32 -0.5, %v15840_v1  ;;  %v2627_v53 = vmul.f32 %v15820_v46, %v2626_v28  ;;  %v2526_v46 = vmax.f32 %v15776_v50, 0.0  ;;  %v11709_v50 = vld [vmem:[%s18560_s5 + $0x90] sm:$0xff] }
 0x5e4   :  { %2397 = vst.msk [vmem:[#allocation2 + $0x290] sm:$0x3f] %vm511_vm8, %v2371_v51  ;;  %v15854_v59 = vpop.eup %12237  ;;  %v3032_v61 = vmul.f32 0.6931472, %v12236_v43  ;;  %v3002_v43 = vand.u32 2147483647, %v15866_v13 }
 0x5e5   :  { %2398 = vst.msk [vmem:[#allocation2 + $0x298] sm:$0x3f] %vm513_vm9, %v2371_v51  ;;  %v11712_v51 = vld [vmem:[%s18560_s5 + $0xa8] sm:$0xff]  ;;  %v3039_v60 = vadd.f32 1.0, %v15854_v59  ;;  %v12240_v7 = vpop.eup %12239  ;;  %v3052_v9 = vadd.f32 1.0, %v3051_v27 }
 0x5e6   :  { %7438 = vmatpush.bf16.msrb.mxu2 %v11712_v51  ;;  %v3038_v51 = vsel %vm15860_vm11, %v3035_v39, %v3032_v61  ;;  %v2624_v56 = vmul.f32 0.6931472, %v12240_v7  ;;  %v12242_v19 = vpop.eup %12241  ;;  %v7033_v7 = vld [vmem:[#allocation2 + $0x280] sm:$0xff]  ;;  %v15930_v61 = vpop.f32.mrf.mxu2 }
 0x5e7   :  { %12243 = vlog2.f32 %v3039_v60  ;;  %v15896_v60 = vpop.f32.mrf.mxu1  ;;  %v15899_v28 = vadd.f32 %v3038_v51, %v2990_v41  ;;  %v3050_v41 = vmul.f32 0.6931472, %v12242_v19  ;;  %v3053_v51 = vmul.f32 %v15840_v1, %v3052_v9  ;;  %18883 = vst [vmem:[#allocation155_spill] sm:$0xff] %v15930_v61 }
 0x5e8   :  { %12245 = vpow2.f32 %v3020_v54  ;;  %18878 = vst [vmem:[#allocation15_spill] sm:$0xff] %v15896_v60  ;;  %v3045_v9 = vand.u32 2147483647, %v15854_v59 }
 0x5e9   :  { %v3110_v19 = vpack.c.bf16 %v15899_v28, %v15899_v28 }
 0x5ea   :  { %v2826_v10 = vpop.permute.xlu1 %2825  ;;  %7439 = vmatpush.bf16.msrb.mxu2 %v11711_v37  ;;  %v3010_v37 = vsub.f32 0.0, %v3002_v43  ;;  %v2630_v43 = vsel %vm15892_vm4, %v2627_v53, %v2624_v56 }
 0x5eb   :  { %2852 = vst.msk [vmem:[#allocation2 + $0x290] sm:$0xc0] %vm18875_vm3, %v2826_v10  ;;  %vm15959_vm3 = vcmp.lt.f32.partialorder %v3045_v9, 0.0004427343  ;;  %v15971_v56 = vunpack.c.l.bf16 %v3110_v19 }
 0x5ec   :  { %2853 = vst.msk [vmem:[#allocation2 + $0x298] sm:$0xc0] %vm494_vm12, %v2826_v10  ;;  %v6832_v52 = vpop.f32.mrf.mxu0  ;;  %v2779_v29 = vpop.permute.xlu0 %2778  ;;  %v3042_v10 = vmul.f32 -0.5, %v15854_v59  ;;  %v3022_v53 = vmul.f32 1.442695, %v3010_v37 }
 0x5ed   :  { %2803 = vst.msk [vmem:[#allocation2 + $0x2b0] sm:$0xff] %vm439_vm5, %v2779_v29  ;;  %v15890_v29 = vpop.permute.xlu2 %11955  ;;  %v12244_v36 = vpop.eup %12243 }
 0x5ee   :  { %2856 = vst.msk [vmem:[#allocation2 + $0x2b0] sm:$0xff] %vm496_vm6, %v15808_v8  ;;  %v3054_v8 = vand.u32 2147483647, %v15840_v1  ;;  %7440 = vmatpush.bf16.msrb.mxu2 %v11710_v31  ;;  %v3043_v23 = vadd.f32 1.0, %v3042_v10  ;;  %v11957_v31 = vunpack.i.l.bf16 %v15890_v29  ;;  %v15924_v10 = vpop.eup %12245  ;;  %12247 = vpow2.f32 %v3022_v53 }
 0x5ef   :  { %v3060_v19 = vmul.f32 -0.5, %v15924_v10 }
 0x5f0   :  { %vm15926_vm11 = vcmp.lt.f32.partialorder %v3054_v8, 0.0004427343  ;;  %v3044_v8 = vmul.f32 %v15854_v59, %v3043_v23  ;;  %v18885_v23 = vrot.slane %v15656_v38, 2 }
 0x5f1   :  { %v6803_v39 = vpop.f32.mrf.mxu3 }
 0x5f2   :  { %v6833_v35 = vadd.f32 %v6832_v52, %v6803_v39  ;;  %v2828_v54 = vpop.permute.xlu1 %2827  ;;  %v7035_v44 = vld [vmem:[#allocation2 + $0x290] sm:$0xff]  ;;  %7441 = vmatpush.bf16.msrb.mxu2 %v11709_v50  ;;  %v11958_v50 = vunpack.i.h.bf16 %v15890_v29 }
 0x5f3   :  { %2854 = vst.msk [vmem:[#allocation2 + $0x2a0] sm:$0xff] %vm496_vm6, %v2828_v54  ;;  %v15903_v27 = vpack.c.bf16 %v7035_v44, %v7033_v7  ;;  %v7036_v60 = vld [vmem:[#allocation2 + $0x298] sm:$0xff]  ;;  %v11717_v44 = vld [vmem:[%s18560_s5 + $0xd0] sm:$0xff]  ;;  %v2992_v7 = vmax.f32 %v15783_v15, 0.0 }
 0x5f4   :  { %v15907_v47 = vadd.f32 %v6833_v35, %v6667_v21  ;;  %2855 = vst.msk [vmem:[#allocation2 + $0x2a8] sm:$0xff] %vm359_vm13, %v2828_v54  ;;  %v15910_v52 = vpack.c.bf16 %v7036_v60, %v7034_v4  ;;  %v15920_v35 = vpop.f32.mrf.mxu0  ;;  %v2678_v21 = vpop.permute.xlu0 %2677  ;;  %v15939_v60 = vadd.f32 %v2630_v43, %v2526_v46  ;;  %7470 = vmatpush.bf16.msrb.mxu3 %v11717_v44  ;;  %v3041_v54 = vmul.f32 0.6931472, %v12244_v36 }
 0x5f5   :  { %18880 = vst [vmem:[#allocation154_spill] sm:$0xff] %v15920_v35  ;;  %7171 = vmatmul.bf16.gmra.mxu2 %v15903_v27  ;;  %7291 = vmatmul.bf16.gmra.mxu0 %v15903_v27  ;;  %v2730_v1 = vsel %vm359_vm13, %v15682_v30, %v2678_v21  ;;  %v3056_v46 = vsel %vm15926_vm11, %v3053_v51, %v3050_v41  ;;  %v3057_v4 = vadd.f32 1.0, %v15924_v10  ;;  %v11961_v44 = vpop.permute.xlu2 %11960  ;;  %v18886_v36 = vrot.slane %v15656_v38, 1  ;;  %v15965_v51 = vpop.f32.mrf.mxu1 }
 0x5f6   :  { %18879 = vst [vmem:[#allocation153_spill] sm:$0xff] %v15907_v47  ;;  %10769 = vmatmul.msk.bf16.gmra.mxu3 %vm359_vm13, %v15910_v52  ;;  %10810 = vmatmul.msk.bf16.gmra.mxu1 %vm359_vm13, %v15910_v52  ;;  %v2738_v39 = vsel %vm368_vm14, %v2730_v1, %v11957_v31  ;;  %v2646_v41 = vpack.c.bf16 %v15939_v60, %v15939_v60  ;;  %v2991_v38 = vmax.f32 %v15790_v0, 0.0  ;;  %v11962_v9 = vunpack.i.l.bf16 %v11961_v44 }
 0x5f7   :  { %v2764_v30 = vrot.slane %v2738_v39, 1  ;;  %v2815_v37 = vrot.slane %v2738_v39, 2  ;;  %2746 = vst.msk [vmem:[#allocation2 + $0x2d0] sm:$0xff] %vm377_vm15, %v2738_v39  ;;  %v15977_v1 = vadd.f32 %v3056_v46, %v2992_v7  ;;  %12249 = vlog2.f32 %v3057_v4 }
 0x5f8   :  { %18889 = vst [vmem:[#allocation157_spill] sm:$0xff] %v15965_v51  ;;  %v15988_v46 = vunpack.c.l.bf16 %v2646_v41 }
 0x5f9   :  { %v15950_v43 = vpop.f32.mrf.mxu3  ;;  %v2816_v59 = vsel %vm449_vm2, %v18885_v23, %v2815_v37  ;;  %v2765_v15 = vsel %vm394_vm0, %v18886_v36, %v2764_v30  ;;  %v7162_v23 = vpop.f32.mrf.mxu2 }
 0x5fa   :  { %18884 = vst [vmem:[#allocation156_spill] sm:$0xff] %v15950_v43  ;;  %v2680_v31 = vpop.permute.xlu1 %2679  ;;  %2831 = vrot.lane.b32.xlu2 %v2816_v59, %s12338_s8  ;;  %2780 = vrot.lane.b32.xlu0 %v2765_v15, %s12337_s30  ;;  %v15996_v36 = vpop.eup %12247  ;;  %v11964_v21 = vpack.i.bf16 %v15971_v56, %v15988_v46 }
 0x5fb   :  { %v2731_v29 = vsel %vm359_vm13, %v15714_v2, %v2680_v31  ;;  %v3047_v31 = vsel %vm15959_vm3, %v3044_v8, %v3041_v54  ;;  %v7063_v8 = vld [vmem:[#allocation2 + $0x2a0] sm:$0xff]  ;;  %v7064_v41 = vld [vmem:[#allocation2 + $0x2a8] sm:$0xff]  ;;  %v3066_v51 = vadd.f32 1.0, %v15996_v36 }
 0x5fc   :  { %v15975_v53 = vsel %vm368_vm14, %v2731_v29, %v11958_v50  ;;  %v2682_v2 = vpop.permute.xlu0 %2681  ;;  %v7277_v4 = vpop.f32.mrf.mxu0  ;;  %v3103_v54 = vadd.f32 %v3047_v31, %v2991_v38  ;;  %v3061_v29 = vadd.f32 1.0, %v3060_v19  ;;  %v7065_v31 = vld [vmem:[#allocation2 + $0x2b0] sm:$0xff]  ;;  %v7066_v19 = vld [vmem:[#allocation2 + $0x2b8] sm:$0xff] }
 0x5fd   :  { %v18589_v39 = vrot.slane %v15975_v53, 1  ;;  %2747 = vst.msk [vmem:[#allocation2 + $0x2e0] sm:$0xff] %vm377_vm15, %v15975_v53  ;;  %v18590_v0 = vrot.slane %v15975_v53, 2  ;;  %v2732_v7 = vsel %vm359_vm13, %v15716_v42, %v2682_v2  ;;  %v3112_v42 = vpack.c.bf16 %v15977_v1, %v15977_v1 }
 0x5fe   :  { %v15991_v50 = vsel %vm368_vm14, %v2732_v7, %v11962_v9  ;;  %v11963_v9 = vunpack.i.h.bf16 %v11961_v44  ;;  %v16017_v44 = vpack.c.bf16 %v7065_v31, %v7063_v8  ;;  %12251 = vlog2.f32 %v3066_v51 }
 0x5ff   :  { %v2767_v59 = vsel %vm394_vm0, %v2764_v30, %v18589_v39  ;;  %2748 = vst.msk [vmem:[#allocation2 + $0x2f0] sm:$0xff] %vm377_vm15, %v15991_v50  ;;  %v11718_v30 = vld [vmem:[%s18561_s1 + $0xa0] sm:$0xff]  ;;  %v2818_v38 = vsel %vm449_vm2, %v2815_v37, %v18590_v0  ;;  %v3063_v39 = vand.u32 2147483647, %v15924_v10  ;;  %v16026_v0 = vpop.f32.mrf.mxu1 }
 0x600   :  { %2782 = vrot.lane.b32.xlu1 %v2767_v59, %s12337_s30  ;;  %v12250_v59 = vpop.eup %12249  ;;  %18890 = vst [vmem:[#allocation158_spill] sm:$0xff] %v16026_v0 }
 0x601   :  { %v7191_v15 = vpop.f32.mrf.mxu3  ;;  %v3059_v8 = vmul.f32 0.6931472, %v12250_v59  ;;  %vm16039_vm4 = vcmp.lt.f32.partialorder %v3063_v39, 0.0004427343 }
 0x602   :  { %v7192_v2 = vadd.f32 %v7191_v15, %v7162_v23  ;;  %v2684_v7 = vpop.permute.xlu1 %2683  ;;  %11965 = vrot.lane.b32.xlu2 %v11964_v21, %s12336_s23  ;;  %2833 = vrot.lane.b32.xlu0 %v2818_v38, %s12338_s8  ;;  %v16024_v15 = vpack.c.bf16 %v7066_v19, %v7064_v41  ;;  %v3062_v21 = vmul.f32 %v15924_v10, %v3061_v29 }
 0x603   :  { %v2733_v47 = vsel %vm359_vm13, %v15730_v48, %v2684_v7  ;;  %v3111_v48 = vpack.c.bf16 %v3103_v54, %v3103_v54  ;;  %v3126_v10 = vsub.f32 %v15899_v28, %v15971_v56 }
 0x604   :  { %v16019_v23 = vadd.f32 %v7277_v4, %v7192_v2  ;;  %v16022_v37 = vsel %vm368_vm14, %v2733_v47, %v11963_v9  ;;  %v2662_v47 = vsub.f32 %v15939_v60, %v15988_v46  ;;  %v16037_v4 = vunpack.c.l.bf16 %v3112_v42  ;;  %v16052_v42 = vpop.f32.mrf.mxu0  ;;  %v12252_v28 = vpop.eup %12251 }
 0x605   :  { %2749 = vst.msk [vmem:[#allocation2 + $0x300] sm:$0xff] %vm377_vm15, %v16022_v37  ;;  %7176 = vmatmul.bf16.gmra.mxu2 %v16017_v44  ;;  %10905 = vmatmul.msk.bf16.vlgmr.msrb.gmra.mxu0 %vm103_vm1, %v11718_v30  ;;  %v3069_v9 = vmul.f32 -0.5, %v15996_v36  ;;  %v16044_v30 = vpop.f32.mrf.mxu2  ;;  %v2993_v60 = vmax.f32 %v15824_v63, 0.0  ;;  %v16056_v2 = vunpack.c.l.bf16 %v3111_v48  ;;  %v3065_v51 = vsel %vm16039_vm4, %v3062_v21, %v3059_v8 }
 0x606   :  { %10770 = vmatmul.msk.bf16.gmra.mxu3 %vm359_vm13, %v16024_v15  ;;  %18893 = vst [vmem:[#allocation159_spill] sm:$0xff] %v16044_v30  ;;  %v3128_v29 = vsub.f32 %v15977_v1, %v16037_v4  ;;  %v3072_v1 = vand.u32 2147483647, %v15996_v36  ;;  %v18592_v63 = vrot.slane %v16022_v37, 2  ;;  %v3068_v19 = vmul.f32 0.6931472, %v12252_v28 }
 0x607   :  { %18894 = vst [vmem:[#allocation160_spill] sm:$0xff] %v16052_v42  ;;  %v3070_v7 = vadd.f32 1.0, %v3069_v9  ;;  %v3105_v38 = vadd.f32 %v3065_v51, %v2993_v60  ;;  %v3127_v31 = vsub.f32 %v3103_v54, %v16056_v2  ;;  %v16065_v59 = vpop.f32.mrf.mxu1  ;;  %v2819_v8 = vrot.slane %v15991_v50, 2  ;;  %v11719_v54 = vld [vmem:[%s18561_s1 + $0xa8] sm:$0xff] }
 0x608   :  { %2685 = vrot.lane.b32.xlu1 %v2662_v47, %s12335_s22  ;;  %vm16070_vm11 = vcmp.lt.f32.partialorder %v3072_v1, 0.0004427343  ;;  %v2994_v60 = vmax.f32 %v15866_v13, 0.0  ;;  %v11735_v13 = vld [vmem:[%s18560_s5 + $0x40] sm:$0xff]  ;;  %v18898_v47 = vrot.slane %v15975_v53, 2 }
 0x609   :  { %v16054_v39 = vpop.f32.mrf.mxu3  ;;  %v3071_v48 = vmul.f32 %v15996_v36, %v3070_v7  ;;  %v3113_v21 = vpack.c.bf16 %v3105_v38, %v3105_v38  ;;  %v2822_v36 = vsel %vm449_vm2, %v2819_v8, %v18592_v63  ;;  %7959 = vmatpush.bf16.msra.mxu0 %v11735_v13 }
 0x60a   :  { %18895 = vst [vmem:[#allocation161_spill] sm:$0xff] %v16054_v39  ;;  %3146 = vrot.lane.b32.xlu2 %v3128_v29, %s12335_s22  ;;  %3142 = vrot.lane.b32.xlu0 %v3126_v10, %s12335_s22  ;;  %v11969_v10 = vpack.i.bf16 %v16037_v4, %v16056_v2 }
 0x60b   :  { %v3074_v7 = vsel %vm16070_vm11, %v3071_v48, %v3068_v19  ;;  %v16087_v1 = vunpack.c.l.bf16 %v3113_v21  ;;  %v2820_v19 = vsel %vm449_vm2, %v18898_v47, %v2819_v8  ;;  %v18902_v47 = vld [vmem:[#allocation22_spill] sm:$0xff] }
 0x60c   :  { %v7282_v51 = vpop.f32.mrf.mxu0 }
 0x60d   :  { %v7167_v41 = vpop.f32.mrf.mxu2  ;;  %v3129_v48 = vsub.f32 %v3105_v38, %v16087_v1 }
 0x610   :  { %3144 = vrot.lane.b32.xlu1 %v3127_v31, %s12335_s22  ;;  %v2768_v31 = vrot.slane %v15991_v50, 1  ;;  %v18900_v50 = vrot.slane %v15975_v53, 1 }
 0x611   :  { %v7196_v9 = vpop.f32.mrf.mxu3 }
 0x612   :  { %v7197_v29 = vadd.f32 %v7196_v9, %v7167_v41  ;;  %2837 = vrot.lane.b32.xlu2 %v2822_v36, %s12338_s8  ;;  %11970 = vrot.lane.b32.xlu0 %v11969_v10, %s12336_s23  ;;  %v3106_v41 = vadd.f32 %v3074_v7, %v2994_v60  ;;  %v18591_v9 = vrot.slane %v16022_v37, 1  ;;  %v11721_v60 = vld [vmem:[%s18561_s1 + $0xb8] sm:$0xff]  ;;  %v11740_v7 = vld [vmem:[%s18560_s5 + $0x68] sm:$0xff] }
 0x614   :  { %v7283_v28 = vadd.f32 %v7282_v51, %v7197_v29  ;;  %v3114_v21 = vpack.c.bf16 %v3106_v41, %v3106_v41  ;;  %v2771_v8 = vsel %vm394_vm0, %v2768_v31, %v18591_v9  ;;  %v11741_v51 = vld [vmem:[%s18560_s5 + $0x70] sm:$0xff] }
 0x615   :  { %7442 = vmatmul.bf16.vlgmr.msrb.gmra.mxu2 %v15719_v20  ;;  %10906 = vmatmul.msk.bf16.gmra.mxu0 %vm103_vm1, %v11719_v54  ;;  %v16101_v20 = vpop.f32.mrf.mxu1  ;;  %v11720_v54 = vld [vmem:[%s18561_s1 + $0xb0] sm:$0xff] }
 0x616   :  { %10865 = vmatmul.msk.bf16.vlgmr.msrb.gmra.mxu3 %vm359_vm13, %v15721_v57  ;;  %18899 = vst [vmem:[#allocation162_spill] sm:$0xff] %v16101_v20  ;;  %v2769_v57 = vsel %vm394_vm0, %v18900_v50, %v2768_v31  ;;  %v16110_v10 = vunpack.c.l.bf16 %v3114_v21  ;;  %v18901_v31 = vld [vmem:[#allocation18_spill] sm:$0xff]  ;;  %v11733_v50 = vld [vmem:[%s18560_s5 + $0x30] sm:$0xff] }
 0x617   :  { %v16159_v13 = vadd.f32 %v15764_v14, %v18901_v31  ;;  %v18903_v31 = vld [vmem:[#allocation26_spill] sm:$0xff] }
 0x618   :  { %2835 = vrot.lane.b32.xlu1 %v2820_v19, %s12338_s8  ;;  %v3130_v38 = vsub.f32 %v3106_v41, %v16110_v10  ;;  %v11974_v36 = vpack.i.bf16 %v16110_v10, %v16087_v1  ;;  %v16163_v19 = vadd.f32 %v15764_v14, %v18902_v47  ;;  %v16200_v47 = vadd.f32 %v15764_v14, %v18903_v31  ;;  %v11728_v14 = vld [vmem:[%s18560_s5 + $0x8] sm:$0xff]  ;;  %v16218_v31 = vpop.f32.mrf.mxu0 }
 0x619   :  { %18905 = vst [vmem:[#allocation18_spill] sm:$0xff] %v16218_v31  ;;  %v16230_v9 = vpop.f32.mrf.mxu3 }
 0x61a   :  { %3148 = vrot.lane.b32.xlu2 %v3129_v48, %s12335_s22  ;;  %2784 = vrot.lane.b32.xlu0 %v2769_v57, %s12337_s30  ;;  %v11738_v48 = vld [vmem:[%s18560_s5 + $0x58] sm:$0xff]  ;;  %v3003_v57 = vand.u32 2147483647, %v16159_v13  ;;  %v3004_v21 = vand.u32 2147483647, %v16163_v19  ;;  %18907 = vst [vmem:[#allocation26_spill] sm:$0xff] %v16230_v9 }
 0x61d   :  { %v7311_v53 = vpop.f32.mrf.mxu1 }
 0x61e   :  { %v16120_v29 = vadd.f32 %v7311_v53, %v7283_v28  ;;  %v11734_v28 = vld [vmem:[%s18560_s5 + $0x38] sm:$0xff]  ;;  %v3011_v53 = vsub.f32 0.0, %v3003_v57  ;;  %v3005_v57 = vand.u32 2147483647, %v16200_v47 }
 0x61f   :  { %7923 = vmatpush.bf16.msra.mxu3 %v11734_v28  ;;  %v11730_v28 = vld [vmem:[%s18560_s5 + $0x18] sm:$0xff] }
 0x620   :  { %2786 = vrot.lane.b32.xlu1 %v2771_v8, %s12337_s30  ;;  %v11737_v8 = vld [vmem:[%s18560_s5 + $0x50] sm:$0xff]  ;;  %v16244_v61 = vpop.f32.mrf.mxu0 }
 0x622   :  { %3150 = vrot.lane.b32.xlu0 %v3130_v38, %s12335_s22  ;;  %v11732_v38 = vld [vmem:[%s18560_s5 + $0x28] sm:$0xff] }
 0x623   :  { %7924 = vmatpush.bf16.msra.mxu3 %v11733_v50 }
 0x625   :  { %7447 = vmatmul.bf16.gmra.mxu2 %v15903_v27  ;;  %10907 = vmatmul.msk.bf16.gmra.mxu0 %vm103_vm1, %v11720_v54  ;;  %v11743_v27 = vld [vmem:[%s18560_s5 + $0x80] sm:$0xff] }
 0x626   :  { %10866 = vmatmul.msk.bf16.gmra.mxu3 %vm359_vm13, %v15910_v52  ;;  %7808 = vmatpush.bf16.msra.mxu1 %v11743_v27  ;;  %v11742_v52 = vld [vmem:[%s18560_s5 + $0x78] sm:$0xff]  ;;  %v11731_v27 = vld [vmem:[%s18560_s5 + $0x20] sm:$0xff] }
 0x627   :  { %7925 = vmatpush.bf16.msra.mxu3 %v11732_v38 }
 0x628   :  { %11975 = vrot.lane.b32.xlu1 %v11974_v36, %s12336_s23  ;;  %v3012_v36 = vsub.f32 0.0, %v3004_v21  ;;  %v11729_v21 = vld [vmem:[%s18560_s5 + $0x10] sm:$0xff] }
 0x62a   :  { %7809 = vmatpush.bf16.msra.mxu1 %v11742_v52  ;;  %v3024_v52 = vmul.f32 1.442695, %v3011_v53 }
 0x62b   :  { %7926 = vmatpush.bf16.msra.mxu3 %v11731_v27 }
 0x62c   :  { %12253 = vpow2.f32 %v3024_v52  ;;  %v3013_v52 = vsub.f32 0.0, %v3005_v57  ;;  %v11727_v57 = vld [vmem:[%s18560_s5] sm:$0xff] }
 0x62e   :  { %7810 = vmatpush.bf16.msra.mxu1 %v11741_v51  ;;  %v3026_v51 = vmul.f32 1.442695, %v3012_v36 }
 0x62f   :  { %7927 = vmatpush.bf16.msra.mxu3 %v11730_v28 }
 0x630   :  { %12255 = vpow2.f32 %v3026_v51 }
 0x632   :  { %7811 = vmatpush.bf16.msra.mxu1 %v11740_v7  ;;  %v16191_v7 = vld [vmem:[%s18557_s3] ss:$0 sm:$0xff] }
 0x633   :  { %7928 = vmatpush.bf16.msra.mxu3 %v11729_v21  ;;  %v16224_v21 = vpop.f32.mrf.mxu2 }
 0x634   :  { %18906 = vst [vmem:[#allocation22_spill] sm:$0xff] %v16224_v21 }
 0x635   :  { %7452 = vmatmul.bf16.gmra.mxu2 %v16017_v44  ;;  %10908 = vmatmul.msk.bf16.gmra.mxu0 %vm103_vm1, %v11721_v60  ;;  %v11736_v60 = vld [vmem:[%s18560_s5 + $0x48] sm:$0xff] }
 0x636   :  { %10867 = vmatmul.msk.bf16.gmra.mxu3 %vm359_vm13, %v16024_v15 }
 0x637   :  { %7929 = vmatpush.bf16.msra.mxu3 %v11728_v14 }
 0x63b   :  { %7930 = vmatpush.bf16.msra.mxu3 %v11727_v57 }
 0x645   :  { %11003 = vmatmul.msk.bf16.vlgmr.msra.gmra.mxu0 %vm359_vm13, %v16024_v15  ;;  %v11739_v15 = vld [vmem:[%s18560_s5 + $0x60] sm:$0xff] }
 0x646   :  { %7812 = vmatpush.bf16.msra.mxu1 %v11739_v15 }
 0x64a   :  { %7813 = vmatpush.bf16.msra.mxu1 %v11738_v48  ;;  %v18904_v48 = vld [vmem:[#allocation4_spill] sm:$0xff] }
 0x64b   :  { %v16204_v50 = vadd.f32 %v16191_v7, %v18904_v48  ;;  %v11744_v48 = vld [vmem:[%s18560_s5 + $0x88] sm:$0xff] }
 0x64c   :  { %7844 = vmatpush.bf16.msra.mxu2 %v11744_v48  ;;  %v18909_v48 = vld [vmem:[#allocation6_spill] sm:$0xff] }
 0x64d   :  { %v3469_v38 = vand.u32 2147483647, %v16204_v50 }
 0x64e   :  { %7814 = vmatpush.bf16.msra.mxu1 %v11737_v8  ;;  %v12254_v8 = vpop.eup %12253 }
 0x64f   :  { %v12256_v53 = vpop.eup %12255  ;;  %v3075_v27 = vadd.f32 1.0, %v12254_v8  ;;  %v3477_v51 = vsub.f32 0.0, %v3469_v38  ;;  %v18908_v38 = vld [vmem:[#allocation5_spill] sm:$0xff]  ;;  %v3078_v42 = vmul.f32 -0.5, %v12254_v8 }
 0x650   :  { %v3084_v28 = vadd.f32 1.0, %v12256_v53  ;;  %v16234_v63 = vadd.f32 %v16191_v7, %v18908_v38  ;;  %v16241_v38 = vadd.f32 %v16191_v7, %v18909_v48  ;;  %v3090_v57 = vand.u32 2147483647, %v12256_v53 }
 0x651   :  { %12257 = vlog2.f32 %v3075_v27  ;;  %v3485_v20 = vmul.f32 1.442695, %v3477_v51  ;;  %v3079_v27 = vadd.f32 1.0, %v3078_v42 }
 0x652   :  { %7815 = vmatpush.bf16.msra.mxu1 %v11736_v60  ;;  %12259 = vlog2.f32 %v3084_v28  ;;  %v3470_v39 = vand.u32 2147483647, %v16234_v63  ;;  %v3471_v48 = vand.u32 2147483647, %v16241_v38  ;;  %vm16263_vm4 = vcmp.lt.f32.partialorder %v3090_v57, 0.0004427343 }
 0x653   :  { %v3080_v42 = vmul.f32 %v12254_v8, %v3079_v27 }
 0x654   :  { %v2832_v41 = vpop.permute.xlu2 %2831 }
 0x655   :  { %2859 = vst.msk [vmem:[#allocation2 + $0x2c8] sm:$0xff] %vm359_vm13, %v2832_v41 }
 0x657   :  { %v12258_v51 = vpop.eup %12257 }
 0x658   :  { %v12260_v30 = vpop.eup %12259  ;;  %v3077_v21 = vmul.f32 0.6931472, %v12258_v51 }
 0x659   :  { %v3086_v12 = vmul.f32 0.6931472, %v12260_v30 }
 0x65c   :  { %v16180_v54 = vpop.permute.xlu2 %11965  ;;  %v7339_v57 = vld [vmem:[#allocation2 + $0x2c8] sm:$0xff] }
 0x65d   :  { %v11967_v43 = vunpack.i.l.bf16 %v16180_v54  ;;  %v11968_v27 = vunpack.i.h.bf16 %v16180_v54 }
 0x664   :  { %v16196_v15 = vpop.permute.xlu2 %3146 }
 0x66c   :  { %v16214_v36 = vpop.permute.xlu2 %2837  ;;  %v2781_v60 = vpop.permute.xlu0 %2780 }
 0x66d   :  { %2865 = vst.msk [vmem:[#allocation2 + $0x2f8] sm:$0xff] %vm359_vm13, %v16214_v36 }
 0x66e   :  { %2804 = vst.msk [vmem:[#allocation2 + $0x2c0] sm:$0xff] %vm439_vm5, %v2781_v60  ;;  %v3028_v60 = vmul.f32 1.442695, %v3013_v52  ;;  %v3081_v52 = vand.u32 2147483647, %v12254_v8  ;;  %v16267_v8 = vpop.f32.mrf.mxu1 }
 0x66f   :  { %2858 = vst.msk [vmem:[#allocation2 + $0x2c0] sm:$0xff] %vm496_vm6, %v2832_v41  ;;  %v3087_v41 = vmul.f32 -0.5, %v12256_v53 }
 0x670   :  { %12261 = vpow2.f32 %v3028_v60  ;;  %v3478_v60 = vsub.f32 0.0, %v3470_v39  ;;  %vm16250_vm3 = vcmp.lt.f32.partialorder %v3081_v52, 0.0004427343  ;;  %18914 = vst [vmem:[#allocation4_spill] sm:$0xff] %v16267_v8  ;;  %v2996_v52 = vmax.f32 %v16163_v19, 0.0 }
 0x671   :  { %12263 = vpow2.f32 %v3485_v20  ;;  %v3088_v28 = vadd.f32 1.0, %v3087_v41 }
 0x672   :  { %v2783_v0 = vpop.permute.xlu1 %2782 }
 0x673   :  { %2805 = vst.msk [vmem:[#allocation2 + $0x2d0] sm:$0xff] %vm439_vm5, %v2783_v0  ;;  %v3089_v39 = vmul.f32 %v12256_v53, %v3088_v28 }
 0x674   :  { %v2834_v14 = vpop.permute.xlu0 %2833 }
 0x675   :  { %2860 = vst.msk [vmem:[#allocation2 + $0x2d0] sm:$0xff] %vm496_vm6, %v2834_v14 }
 0x676   :  { %2861 = vst.msk [vmem:[#allocation2 + $0x2d8] sm:$0xff] %vm359_vm13, %v2834_v14  ;;  %v16256_v14 = vpop.eup %12261  ;;  %v7338_v53 = vld [vmem:[#allocation2 + $0x2c0] sm:$0xff] }
 0x677   :  { %v3093_v54 = vadd.f32 1.0, %v16256_v14 }
 0x678   :  { %v7172_v0 = vpop.f32.mrf.mxu2 }
 0x679   :  { %v7201_v35 = vpop.f32.mrf.mxu3  ;;  %12265 = vlog2.f32 %v3093_v54 }
 0x67a   :  { %v16247_v20 = vadd.f32 %v7201_v35, %v7172_v0  ;;  %v2686_v31 = vpop.permute.xlu1 %2685  ;;  %v16261_v35 = vpop.eup %12263  ;;  %v3096_v0 = vmul.f32 -0.5, %v16256_v14 }
 0x67b   :  { %v2734_v41 = vsel %vm359_vm13, %v15988_v46, %v2686_v31  ;;  %v3501_v25 = vadd.f32 1.0, %v16261_v35 }
 0x67c   :  { %v16259_v26 = vsel %vm368_vm14, %v2734_v41, %v11967_v43  ;;  %v3143_v30 = vpop.permute.xlu0 %3142  ;;  %v7340_v31 = vld [vmem:[#allocation2 + $0x2d0] sm:$0xff]  ;;  %v2995_v43 = vmax.f32 %v16159_v13, 0.0  ;;  %v18915_v13 = vrot.slane %v16022_v37, 2 }
 0x67d   :  { %v2823_v46 = vrot.slane %v16259_v26, 2  ;;  %2750 = vst.msk [vmem:[#allocation2 + $0x310] sm:$0xff] %vm377_vm15, %v16259_v26  ;;  %v3198_v51 = vsel %vm359_vm13, %v15971_v56, %v3143_v30  ;;  %v16277_v28 = vpack.c.bf16 %v7340_v31, %v7338_v53  ;;  %v7341_v41 = vld [vmem:[#allocation2 + $0x2d8] sm:$0xff]  ;;  %v3083_v56 = vsel %vm16250_vm3, %v3080_v42, %v3077_v21 }
 0x67e   :  { %v16281_v8 = vsel %vm368_vm14, %v3198_v51, %v11968_v27  ;;  %v16284_v18 = vpack.c.bf16 %v7341_v41, %v7339_v57  ;;  %v3092_v30 = vsel %vm16263_vm4, %v3089_v39, %v3086_v12  ;;  %v3479_v12 = vsub.f32 0.0, %v3471_v48  ;;  %v16317_v48 = vpop.f32.mrf.mxu1 }
 0x67f   :  { %2841 = vrot.lane.b32.xlu0 %v2823_v46, %s12338_s8  ;;  %v2824_v19 = vsel %vm449_vm2, %v18915_v13, %v2823_v46  ;;  %v18593_v53 = vrot.slane %v16281_v8, 2  ;;  %3214 = vst.msk [vmem:[#allocation2 + $0x320] sm:$0xff] %vm377_vm15, %v16281_v8  ;;  %7457 = vmatmul.bf16.gmra.mxu2 %v16277_v28  ;;  %v3487_v46 = vmul.f32 1.442695, %v3478_v60  ;;  %v16311_v42 = vadd.f32 %v3083_v56, %v2995_v43  ;;  %v16313_v60 = vpop.f32.mrf.mxu0 }
 0x680   :  { %7816 = vmatmul.bf16.vlgmr.msra.gmra.mxu1 %v16277_v28  ;;  %v16299_v27 = vpop.f32.mrf.mxu2  ;;  %10868 = vmatmul.msk.bf16.gmra.mxu3 %vm359_vm13, %v16284_v18  ;;  %v3108_v39 = vadd.f32 %v3092_v30, %v2996_v52  ;;  %18918 = vst [vmem:[#allocation163_spill] sm:$0xff] %v16313_v60  ;;  %12267 = vlog2.f32 %v3501_v25  ;;  %v3504_v31 = vmul.f32 -0.5, %v16261_v35  ;;  %v2772_v51 = vrot.slane %v16259_v26, 1 }
 0x681   :  { %18916 = vst [vmem:[#allocation5_spill] sm:$0xff] %v16299_v27  ;;  %11004 = vmatmul.msk.bf16.gmra.mxu0 %vm359_vm13, %v16284_v18  ;;  %v16305_v9 = vpop.f32.mrf.mxu3  ;;  %2839 = vrot.lane.b32.xlu2 %v2824_v19, %s12338_s8  ;;  %12269 = vpow2.f32 %v3487_v46  ;;  %v3489_v41 = vmul.f32 1.442695, %v3479_v12  ;;  %v3115_v43 = vpack.c.bf16 %v16311_v42, %v16311_v42  ;;  %v3200_v25 = vsel %vm359_vm13, %v16037_v4, %v16196_v15 }
 0x682   :  { %18917 = vst [vmem:[#allocation6_spill] sm:$0xff] %v16305_v9  ;;  %3296 = vrot.lane.b32.xlu1 %v18593_v53, %s12338_s8  ;;  %v3145_v21 = vpop.permute.xlu1 %3144  ;;  %v3116_v52 = vpack.c.bf16 %v3108_v39, %v3108_v39  ;;  %v3097_v56 = vadd.f32 1.0, %v3096_v0  ;;  %v18594_v26 = vrot.slane %v16281_v8, 1  ;;  %v3505_v53 = vadd.f32 1.0, %v3504_v31 }
 0x683   :  { %v3199_v54 = vsel %vm359_vm13, %v16056_v2, %v3145_v21  ;;  %v3099_v60 = vand.u32 2147483647, %v16256_v14  ;;  %v18919_v4 = vrot.slane %v16022_v37, 1  ;;  %v3507_v0 = vand.u32 2147483647, %v16261_v35 }
 0x684   :  { %v11971_v57 = vpop.permute.xlu0 %11970  ;;  %12271 = vpow2.f32 %v3489_v41  ;;  %v16350_v37 = vunpack.c.l.bf16 %v3116_v52 }
 0x685   :  { %v11973_v13 = vunpack.i.h.bf16 %v11971_v57  ;;  %v11972_v19 = vunpack.i.l.bf16 %v11971_v57  ;;  %v12266_v57 = vpop.eup %12265  ;;  %v2773_v2 = vsel %vm394_vm0, %v18919_v4, %v2772_v51  ;;  %v3098_v4 = vmul.f32 %v16256_v14, %v3097_v56 }
 0x686   :  { %v12268_v21 = vpop.eup %12267  ;;  %vm16358_vm11 = vcmp.lt.f32.partialorder %v3099_v60, 0.0004427343  ;;  %vm16362_vm3 = vcmp.lt.f32.partialorder %v3507_v0, 0.0004427343  ;;  %v2997_v14 = vmax.f32 %v16200_v47, 0.0  ;;  %v16369_v56 = vpop.f32.mrf.mxu1 }
 0x687   :  { %2790 = vrot.lane.b32.xlu0 %v2772_v51, %s12337_s30  ;;  %v16330_v30 = vsel %vm368_vm14, %v3200_v25, %v11973_v13  ;;  %v16333_v46 = vsel %vm368_vm14, %v3199_v54, %v11972_v19  ;;  %v16348_v19 = vpop.eup %12269  ;;  %v7292_v51 = vpop.f32.mrf.mxu0  ;;  %v16353_v25 = vunpack.c.l.bf16 %v3115_v43  ;;  %v3095_v54 = vmul.f32 0.6931472, %v12266_v57  ;;  %18924 = vst [vmem:[#allocation164_spill] sm:$0xff] %v16369_v56 }
 0x688   :  { %v7177_v12 = vpop.f32.mrf.mxu2  ;;  %3215 = vst.msk [vmem:[#allocation2 + $0x330] sm:$0xff] %vm377_vm15, %v16333_v46  ;;  %v3510_v43 = vadd.f32 1.0, %v16348_v19  ;;  %v3282_v0 = vrot.slane %v16333_v46, 2 }
 0x689   :  { %v7206_v15 = vpop.f32.mrf.mxu3  ;;  %3216 = vst.msk [vmem:[#allocation2 + $0x340] sm:$0xff] %vm377_vm15, %v16330_v30  ;;  %2788 = vrot.lane.b32.xlu2 %v2773_v2, %s12337_s30  ;;  %v11979_v47 = vpack.i.bf16 %v16350_v37, %v16353_v25 }
 0x68a   :  { %v7207_v13 = vadd.f32 %v7206_v15, %v7177_v12  ;;  %3245 = vrot.lane.b32.xlu1 %v18594_v26, %s12337_s30  ;;  %v2836_v31 = vpop.permute.xlu1 %2835  ;;  %v3503_v12 = vmul.f32 0.6931472, %v12268_v21  ;;  %v3506_v15 = vmul.f32 %v16261_v35, %v3505_v53  ;;  %v3132_v26 = vsub.f32 %v3108_v39, %v16350_v37  ;;  %v16384_v57 = vpop.eup %12271  ;;  %v7687_v21 = vld [vmem:[#allocation2 + $0x2f8] sm:$0xff] }
 0x68b   :  { %2863 = vst.msk [vmem:[#allocation2 + $0x2e8] sm:$0xff] %vm359_vm13, %v2836_v31  ;;  %v3461_v35 = vmax.f32 %v16204_v50, 0.0  ;;  %v3101_v53 = vsel %vm16358_vm11, %v3098_v4, %v3095_v54  ;;  %v3131_v39 = vsub.f32 %v16311_v42, %v16353_v25  ;;  %12273 = vlog2.f32 %v3510_v43 }
 0x68c   :  { %v7293_v2 = vadd.f32 %v7292_v51, %v7207_v13  ;;  %v2785_v41 = vpop.permute.xlu0 %2784  ;;  %v18595_v13 = vrot.slane %v16330_v30, 2  ;;  %v3519_v54 = vadd.f32 1.0, %v16384_v57  ;;  %v3231_v4 = vrot.slane %v16333_v46, 1 }
 0x68d   :  { %2806 = vst.msk [vmem:[#allocation2 + $0x2e0] sm:$0xff] %vm439_vm5, %v2785_v41  ;;  %v18927_v46 = vrot.slane %v16281_v8, 2 }
 0x68e   :  { %2862 = vst.msk [vmem:[#allocation2 + $0x2e0] sm:$0xff] %vm496_vm6, %v2836_v31  ;;  %v3109_v31 = vadd.f32 %v3101_v53, %v2997_v14  ;;  %v7321_v52 = vpop.f32.mrf.mxu1  ;;  %v3516_v14 = vand.u32 2147483647, %v16348_v19  ;;  %12275 = vlog2.f32 %v3519_v54  ;;  %v7307_v54 = vadd.f32 %v16065_v59, %v16019_v23 }
 0x68f   :  { %3154 = vrot.lane.b32.xlu0 %v3132_v26, %s12335_s22  ;;  %10963 = vmatmul.msk.bf16.vlgmr.msra.gmra.mxu2 %vm359_vm13, %v16284_v18  ;;  %v3509_v26 = vsel %vm16362_vm3, %v3506_v15, %v3503_v12  ;;  %v3513_v18 = vmul.f32 -0.5, %v16348_v19  ;;  %v3285_v15 = vsel %vm449_vm2, %v3282_v0, %v18595_v13  ;;  %vm18948_vm3 = vcmask 1048326  }
 0x690   :  { %v16380_v60 = vpop.f32.mrf.mxu2  ;;  %7931 = vmatmul.bf16.vlgmr.msra.gmra.mxu3 %v16017_v44  ;;  %v16399_v51 = vadd.f32 %v3509_v26, %v3461_v35  ;;  %v3117_v41 = vpack.c.bf16 %v3109_v31, %v3109_v31  ;;  %v3149_v35 = vpop.permute.xlu2 %3148  ;;  %vm16446_vm4 = vcmp.lt.f32.partialorder %v3516_v14, 0.0004427343 }
 0x691   :  { %18925 = vst [vmem:[#allocation165_spill] sm:$0xff] %v16380_v60  ;;  %v16389_v50 = vpop.f32.mrf.mxu3  ;;  %3152 = vrot.lane.b32.xlu2 %v3131_v39, %s12335_s22  ;;  %v3514_v12 = vadd.f32 1.0, %v3513_v18  ;;  %v12274_v43 = vpop.eup %12273  ;;  %v18928_v18 = vrot.slane %v16281_v8, 1 }
 0x692   :  { %18926 = vst [vmem:[#allocation166_spill] sm:$0xff] %v16389_v50  ;;  %11980 = vrot.lane.b32.xlu1 %v11979_v47, %s12336_s23  ;;  %v2787_v9 = vpop.permute.xlu1 %2786  ;;  %v7685_v42 = vld [vmem:[#allocation2 + $0x2e8] sm:$0xff]  ;;  %v3283_v47 = vsel %vm449_vm2, %v18927_v46, %v3282_v0  ;;  %v3512_v46 = vmul.f32 0.6931472, %v12274_v43  ;;  %v16428_v50 = vunpack.c.l.bf16 %v3117_v41 }
 0x693   :  { %2807 = vst.msk [vmem:[#allocation2 + $0x2f0] sm:$0xff] %vm439_vm5, %v2787_v9  ;;  %v16397_v44 = vpack.c.bf16 %v7687_v21, %v7685_v42  ;;  %v3232_v9 = vsel %vm394_vm0, %v18928_v18, %v3231_v4  ;;  %v16420_v42 = vadd.f32 %v7321_v52, %v7293_v2  ;;  %v3515_v21 = vmul.f32 %v16348_v19, %v3514_v12 }
 0x694   :  { %2864 = vst.msk [vmem:[#allocation2 + $0x2f0] sm:$0xff] %vm496_vm6, %v16214_v36  ;;  %v3581_v36 = vpack.c.bf16 %v16399_v51, %v16399_v51  ;;  %v3151_v39 = vpop.permute.xlu0 %3150  ;;  %v3201_v19 = vsel %vm359_vm13, %v16087_v1, %v3149_v35  ;;  %v3133_v41 = vsub.f32 %v3109_v31, %v16428_v50  ;;  %v3525_v35 = vand.u32 2147483647, %v16384_v57 }
 0x695   :  { %11005 = vmatmul.msk.bf16.gmra.mxu0 %vm359_vm13, %v16397_v44  ;;  %v7684_v2 = vld [vmem:[#allocation2 + $0x2e0] sm:$0xff]  ;;  %v3202_v12 = vsel %vm359_vm13, %v16110_v10, %v3151_v39  ;;  %v3462_v31 = vmax.f32 %v16234_v63, 0.0  ;;  %v3518_v39 = vsel %vm16446_vm4, %v3515_v21, %v3512_v46 }
 0x696   :  { %vm3526_vm11 = vcmp.lt.f32.partialorder %v3525_v35, 0.0004427343  ;;  %v16654_v60 = vpop.f32.mrf.mxu1 }
 0x697   :  { %3300 = vrot.lane.b32.xlu0 %v3285_v15, %s12338_s8  ;;  %v3522_v15 = vmul.f32 -0.5, %v16384_v57 }
 0x698   :  { %v7443_v53 = vpop.f32.mrf.mxu2 }
 0x699   :  { %v7472_v26 = vpop.f32.mrf.mxu3  ;;  %3298 = vrot.lane.b32.xlu2 %v3283_v47, %s12338_s8  ;;  %v3523_v10 = vadd.f32 1.0, %v3522_v15 }
 0x69a   :  { %v7473_v13 = vadd.f32 %v7472_v26, %v7443_v53  ;;  %3247 = vrot.lane.b32.xlu1 %v3232_v9, %s12337_s30  ;;  %v11976_v0 = vpop.permute.xlu1 %11975  ;;  %v3233_v53 = vrot.slane %v16330_v30, 1  ;;  %v16444_v26 = vunpack.c.l.bf16 %v3581_v36 }
 0x69b   :  { %v11978_v8 = vunpack.i.h.bf16 %v11976_v0  ;;  %v11977_v18 = vunpack.i.l.bf16 %v11976_v0  ;;  %v7686_v52 = vld [vmem:[#allocation2 + $0x2f0] sm:$0xff]  ;;  %v3524_v63 = vmul.f32 %v16384_v57, %v3523_v10 }
 0x69c   :  { %v16434_v47 = vadd.f32 %v7473_v13, %v7307_v54  ;;  %v16436_v23 = vpack.c.bf16 %v7686_v52, %v7684_v2  ;;  %v12276_v13 = vpop.eup %12275  ;;  %v11984_v14 = vpack.i.bf16 %v16444_v26, %v16428_v50  ;;  %v3234_v9 = vsel %vm394_vm0, %v3231_v4, %v3233_v53 }
 0x69d   :  { %v3209_v59 = vsel %vm368_vm14, %v3201_v19, %v11977_v18  ;;  %v16440_v43 = vsel %vm368_vm14, %v3202_v12, %v11978_v8  ;;  %v3521_v54 = vmul.f32 0.6931472, %v12276_v13  ;;  %v3574_v8 = vadd.f32 %v3518_v39, %v3462_v31 }
 0x69e   :  { %3217 = vst.msk [vmem:[#allocation2 + $0x350] sm:$0xff] %vm377_vm15, %v3209_v59  ;;  %7821 = vmatmul.bf16.gmra.mxu1 %v16436_v23  ;;  %v3235_v0 = vrot.slane %v3209_v59, 1  ;;  %v3463_v18 = vmax.f32 %v16241_v38, 0.0  ;;  %v18596_v21 = vrot.slane %v16440_v43, 1  ;;  %v3597_v4 = vsub.f32 %v16399_v51, %v16444_v26 }
 0x69f   :  { %3218 = vst.msk [vmem:[#allocation2 + $0x360] sm:$0xff] %vm377_vm15, %v16440_v43  ;;  %3156 = vrot.lane.b32.xlu0 %v3133_v41, %s12335_s22  ;;  %10964 = vmatmul.msk.bf16.gmra.mxu2 %vm359_vm13, %v16397_v44  ;;  %v3527_v46 = vsel %vm3526_vm11, %v3524_v63, %v3521_v54  ;;  %v3582_v57 = vpack.c.bf16 %v3574_v8, %v3574_v8  ;;  %v3286_v41 = vrot.slane %v3209_v59, 2  ;;  %v18934_v59 = vrot.slane %v16330_v30, 2 }
 0x6a0   :  { %v16459_v36 = vpop.f32.mrf.mxu2  ;;  %7936 = vmatmul.bf16.gmra.mxu3 %v16277_v28  ;;  %v3236_v28 = vsel %vm394_vm0, %v3233_v53, %v3235_v0  ;;  %v3575_v52 = vadd.f32 %v3527_v46, %v3463_v18  ;;  %v3238_v12 = vsel %vm394_vm0, %v3235_v0, %v18596_v21  ;;  %v18597_v53 = vrot.slane %v16440_v43, 2  ;;  %v16514_v46 = vpop.f32.mrf.mxu0 }
 0x6a1   :  { %18931 = vst [vmem:[#allocation167_spill] sm:$0xff] %v16459_v36  ;;  %v16467_v15 = vpop.f32.mrf.mxu3  ;;  %3249 = vrot.lane.b32.xlu2 %v3234_v9, %s12337_s30  ;;  %v16484_v1 = vunpack.c.l.bf16 %v3582_v57  ;;  %v7288_v54 = vadd.f32 %v16244_v61, %v16247_v20 }
 0x6a2   :  { %18932 = vst [vmem:[#allocation168_spill] sm:$0xff] %v16467_v15  ;;  %11985 = vrot.lane.b32.xlu1 %v11984_v14, %s12336_s23  ;;  %v3583_v10 = vpack.c.bf16 %v3575_v52, %v3575_v52  ;;  %v3289_v13 = vsel %vm449_vm2, %v3286_v41, %v18597_v53  ;;  %v11748_v53 = vld [vmem:[%s18560_s5 + $0xa8] sm:$0xff] }
 0x6a3   :  { %v3598_v31 = vsub.f32 %v3574_v8, %v16484_v1  ;;  %v7317_v8 = vadd.f32 %v16317_v48, %v7288_v54  ;;  %18936 = vst [vmem:[#allocation171_spill] sm:$0xff] %v16514_v46  ;;  %v11760_v54 = vld [vmem:[%s18559_s4 + $0x10] sm:$0xff] }
 0x6a4   :  { %v16496_v14 = vunpack.c.l.bf16 %v3583_v10  ;;  %v11752_v10 = vld [vmem:[%s18560_s5 + $0xc8] sm:$0xff] }
 0x6a5   :  { %8089 = vmatpush.bf16.msrb.mxu1 %v11752_v10  ;;  %v11758_v10 = vld [vmem:[%s18559_s4] sm:$0xff] }
 0x6a6   :  { %v11989_v9 = vpack.i.bf16 %v16496_v14, %v16484_v1  ;;  %v3599_v63 = vsub.f32 %v3575_v52, %v16496_v14 }
 0x6a7   :  { %3251 = vrot.lane.b32.xlu0 %v3236_v28, %s12337_s30 }
 0x6a8   :  { %v7448_v2 = vpop.f32.mrf.mxu2 }
 0x6a9   :  { %v7477_v19 = vpop.f32.mrf.mxu3  ;;  %3613 = vrot.lane.b32.xlu2 %v3597_v4, %s12335_s22  ;;  %v16518_v4 = vpop.f32.mrf.mxu0 }
 0x6aa   :  { %v7478_v38 = vadd.f32 %v7477_v19, %v7448_v2  ;;  %3253 = vrot.lane.b32.xlu1 %v3238_v12, %s12337_s30  ;;  %18938 = vst [vmem:[#allocation173_spill] sm:$0xff] %v16518_v4  ;;  %v8233_v2 = vld [vmem:[%s18559_s4 + $0x28] sm:$0x1] }
 0x6ab   :  { %v8275_v52 = vunpack.c.l.b16 %v8233_v2  ;;  %v18943_v2 = vld [vmem:[#allocation8_spill] sm:$0xff] }
 0x6ac   :  { %v16487_v51 = vadd.f32 %v7478_v38, %v16120_v29  ;;  %v3287_v29 = vsel %vm449_vm2, %v18934_v59, %v3286_v41  ;;  %v11762_v41 = vld [vmem:[%s18559_s4 + $0x20] sm:$0xff] }
 0x6ad   :  { %v8281_v19 = vpack.c.b16 %v8275_v52, %v8275_v52  ;;  %v16569_v52 = vadd.f32 %v16191_v7, %v18943_v2 }
 0x6ae   :  { %18933 = vst [vmem:[#allocation169_spill] sm:$0xff] %v16487_v51 }
 0x6af   :  { %3304 = vrot.lane.b32.xlu0 %v3289_v13, %s12338_s8  ;;  %v8300_v38 = vand.u32 %v8281_v19, %v12382_v3 }
 0x6b0   :  { %v16493_v35 = vpop.f32.mrf.mxu2  ;;  %7941 = vmatmul.bf16.gmra.mxu3 %v16436_v23 }
 0x6b1   :  { %v16502_v39 = vpop.f32.mrf.mxu3  ;;  %3302 = vrot.lane.b32.xlu2 %v3287_v29, %s12338_s8  ;;  %v16520_v57 = vpop.f32.mrf.mxu0  ;;  %8304 = vmatpush.bf16.msrb.mxu3 %v8300_v38  ;;  %v11751_v29 = vld [vmem:[%s18560_s5 + $0xc0] sm:$0xff] }
 0x6b2   :  { %18935 = vst [vmem:[#allocation170_spill] sm:$0xff] %v16502_v39  ;;  %3615 = vrot.lane.b32.xlu1 %v3598_v31, %s12335_s22  ;;  %v11761_v31 = vld [vmem:[%s18559_s4 + $0x18] sm:$0xff]  ;;  %8090 = vmatpush.bf16.msrb.mxu1 %v11751_v29 }
 0x6b3   :  { %18939 = vst [vmem:[#allocation174_spill] sm:$0xff] %v16520_v57 }
 0x6b5   :  { %8305 = vmatpush.bf16.msrb.mxu3 %v11762_v41  ;;  %v11749_v41 = vld [vmem:[%s18560_s5 + $0xb0] sm:$0xff] }
 0x6b7   :  { %11990 = vrot.lane.b32.xlu0 %v11989_v9, %s12336_s23  ;;  %v11779_v9 = vld [vmem:[%s18560_s5 + $0x80] sm:$0xff] }
 0x6b8   :  { %v7453_v0 = vpop.f32.mrf.mxu2  ;;  %8463 = vmatpush.bf16.msrb.mxu0 %v11779_v9 }
 0x6b9   :  { %v7482_v30 = vpop.f32.mrf.mxu3  ;;  %3617 = vrot.lane.b32.xlu2 %v3599_v63, %s12335_s22  ;;  %v16522_v61 = vpop.f32.mrf.mxu0  ;;  %8306 = vmatpush.bf16.msrb.mxu3 %v11761_v31  ;;  %v11777_v31 = vld [vmem:[%s18560_s5 + $0x70] sm:$0xff] }
 0x6ba   :  { %v7483_v18 = vadd.f32 %v7482_v30, %v7453_v0  ;;  %18940 = vst [vmem:[#allocation175_spill] sm:$0xff] %v16522_v61  ;;  %v11750_v0 = vld [vmem:[%s18560_s5 + $0xb8] sm:$0xff] }
 0x6bb   :  { %v11778_v30 = vld [vmem:[%s18560_s5 + $0x78] sm:$0xff]  ;;  %8091 = vmatpush.bf16.msrb.mxu1 %v11750_v0 }
 0x6bc   :  { %v16516_v28 = vadd.f32 %v7483_v18, %v7317_v8  ;;  %8464 = vmatpush.bf16.msrb.mxu0 %v11778_v30 }
 0x6bd   :  { %8307 = vmatpush.bf16.msrb.mxu3 %v11760_v54  ;;  %v18947_v54 = vld [vmem:[#allocation10_spill] sm:$0xff] }
 0x6be   :  { %18937 = vst [vmem:[#allocation172_spill] sm:$0xff] %v16516_v28  ;;  %v16594_v0 = vadd.f32 %v16191_v7, %v18947_v54 }
 0x6bf   :  { %8092 = vmatpush.bf16.msrb.mxu1 %v11749_v41 }
 0x6c0   :  { %v16587_v29 = vpop.f32.mrf.mxu2  ;;  %8465 = vmatpush.bf16.msrb.mxu0 %v11777_v31 }
 0x6c1   :  { %v16528_v48 = vpop.f32.mrf.mxu0  ;;  %18945 = vst [vmem:[#allocation178_spill] sm:$0xff] %v16587_v29  ;;  %v16589_v9 = vpop.f32.mrf.mxu3 }
 0x6c2   :  { %18941 = vst [vmem:[#allocation176_spill] sm:$0xff] %v16528_v48  ;;  %v18951_v48 = vld [vmem:[#allocation14_spill] sm:$0xff] }
 0x6c3   :  { %18946 = vst [vmem:[#allocation179_spill] sm:$0xff] %v16589_v9  ;;  %8093 = vmatpush.bf16.msrb.mxu1 %v11748_v53 }
 0x6c4   :  { %18953 = vst [vmem:[#allocation14_spill] sm:$0xff] %v16654_v60  ;;  %v18959_v60 = vld [vmem:[#allocation17_spill] sm:$0xff] }
 0x6c9   :  { %v16544_v59 = vpop.f32.mrf.mxu0 }
 0x6ca   :  { %18942 = vst [vmem:[#allocation177_spill] sm:$0xff] %v16544_v59 }
 0x6d1   :  { %v16574_v19 = vpop.f32.mrf.mxu0 }
 0x6d2   :  { %18944 = vst [vmem:[#allocation8_spill] sm:$0xff] %v16574_v19 }
 0x6db   :  { %v2840_v20 = vpop.permute.xlu2 %2839 }
 0x6dc   :  { %2867 = vst.msk [vmem:[#allocation2 + $0x308] sm:$0xff] %vm359_vm13, %v2840_v20 }
 0x6e3   :  { %v2789_v12 = vpop.permute.xlu2 %2788  ;;  %v7689_v2 = vld [vmem:[#allocation2 + $0x308] sm:$0xff] }
 0x6e4   :  { %2808 = vst.msk [vmem:[#allocation2 + $0x300] sm:$0xff] %vm439_vm5, %v2789_v12  ;;  %v3472_v12 = vand.u32 2147483647, %v16569_v52 }
 0x6e5   :  { %2866 = vst.msk [vmem:[#allocation2 + $0x300] sm:$0xff] %vm496_vm6, %v2840_v20  ;;  %v11759_v20 = vld [vmem:[%s18559_s4 + $0x8] sm:$0xff] }
 0x6e6   :  { %8308 = vmatpush.bf16.msrb.mxu3 %v11759_v20 }
 0x6ea   :  { %8309 = vmatpush.bf16.msrb.mxu3 %v11758_v10  ;;  %v16612_v10 = vpop.f32.mrf.mxu0 }
 0x6eb   :  { %v16539_v13 = vpop.permute.xlu2 %3152  ;;  %18949 = vst [vmem:[#allocation10_spill] sm:$0xff] %v16612_v10 }
 0x6ec   :  { %v7688_v10 = vld [vmem:[#allocation2 + $0x300] sm:$0xff] }
 0x6f1   :  { %v2842_v63 = vpop.permute.xlu0 %2841 }
 0x6f2   :  { %2869 = vst.msk [vmem:[#allocation2 + $0x318] sm:$0x3f] %vm513_vm9, %v2842_v63 }
 0x6f3   :  { %v16562_v8 = vpop.permute.xlu2 %3298 }
 0x6f4   :  { %v3297_v18 = vpop.permute.xlu1 %3296  ;;  %3326 = vst.msk [vmem:[#allocation2 + $0x328] sm:$0xff] %vm359_vm13, %v16562_v8 }
 0x6f5   :  { %3324 = vst.msk [vmem:[#allocation2 + $0x318] sm:$0xc0] %vm494_vm12, %v3297_v18 }
 0x6f9   :  { %v2791_v38 = vpop.permute.xlu0 %2790 }
 0x6fa   :  { %2809 = vst.msk [vmem:[#allocation2 + $0x310] sm:$0x7f] %vm447_vm7, %v2791_v38  ;;  %v3480_v38 = vsub.f32 0.0, %v3472_v12  ;;  %v3473_v12 = vand.u32 2147483647, %v16594_v0 }
 0x6fb   :  { %2868 = vst.msk [vmem:[#allocation2 + $0x310] sm:$0x3f] %vm511_vm8, %v2842_v63  ;;  %v3250_v30 = vpop.permute.xlu2 %3249  ;;  %v11776_v63 = vld [vmem:[%s18560_s5 + $0x68] sm:$0xff] }
 0x6fc   :  { %v3246_v20 = vpop.permute.xlu1 %3245  ;;  %3274 = vst.msk [vmem:[#allocation2 + $0x330] sm:$0xff] %vm439_vm5, %v3250_v30  ;;  %v7691_v21 = vld [vmem:[#allocation2 + $0x318] sm:$0xff]  ;;  %v3491_v41 = vmul.f32 1.442695, %v3480_v38  ;;  %8466 = vmatpush.bf16.msrb.mxu0 %v11776_v63  ;;  %v18950_v30 = vld [vmem:[#allocation12_spill] sm:$0xff]  ;;  %v11753_v38 = vld [vmem:[%s18560_s5 + $0xd0] sm:$0xff] }
 0x6fd   :  { %3272 = vst.msk [vmem:[#allocation2 + $0x310] sm:$0x80] %vm437_vm10, %v3246_v20  ;;  %v16604_v54 = vpack.c.bf16 %v7691_v21, %v7689_v2  ;;  %v11747_v21 = vld [vmem:[%s18560_s5 + $0xa0] sm:$0xff]  ;;  %v16622_v20 = vadd.f32 %v16191_v7, %v18950_v30  ;;  %v3481_v19 = vsub.f32 0.0, %v3473_v12  ;;  %v16632_v30 = vadd.f32 %v16191_v7, %v18951_v48  ;;  %v11746_v12 = vld [vmem:[%s18560_s5 + $0x98] sm:$0xff]  ;;  %8125 = vmatpush.bf16.msrb.mxu2 %v11753_v38 }
 0x6fe   :  { %3323 = vst.msk [vmem:[#allocation2 + $0x310] sm:$0xc0] %vm18948_vm3, %v3297_v18  ;;  %v11775_v18 = vld [vmem:[%s18560_s5 + $0x60] sm:$0xff]  ;;  %12277 = vpow2.f32 %v3491_v41  ;;  %8094 = vmatpush.bf16.msrb.mxu1 %v11747_v21  ;;  %v11774_v41 = vld [vmem:[%s18560_s5 + $0x58] sm:$0xff]  ;;  %v3203_v21 = vsel %vm359_vm13, %v16353_v25, %v16539_v13 }
 0x6ff   :  { %10965 = vmatmul.msk.bf16.gmra.mxu2 %vm359_vm13, %v16604_v54  ;;  %11006 = vmatmul.msk.bf16.gmra.mxu0 %vm359_vm13, %v16604_v54  ;;  %v3474_v57 = vand.u32 2147483647, %v16622_v20 }
 0x700   :  { %8467 = vmatpush.bf16.msrb.mxu0 %v11775_v18 }
 0x701   :  { %v3155_v31 = vpop.permute.xlu0 %3154 }
 0x702   :  { %v7458_v2 = vpop.f32.mrf.mxu2  ;;  %v3204_v48 = vsel %vm359_vm13, %v16350_v37, %v3155_v31  ;;  %8095 = vmatpush.bf16.msrb.mxu1 %v11746_v12  ;;  %v16676_v31 = vpop.f32.mrf.mxu0  ;;  %v18955_v12 = vrot.slane %v16440_v43, 2 }
 0x703   :  { %v16627_v53 = vpop.permute.xlu2 %3613  ;;  %v7487_v63 = vpop.f32.mrf.mxu3  ;;  %18954 = vst [vmem:[#allocation180_spill] sm:$0xff] %v16676_v31 }
 0x704   :  { %v7488_v61 = vadd.f32 %v7487_v63, %v7458_v2  ;;  %v11981_v59 = vpop.permute.xlu1 %11980  ;;  %v3493_v2 = vmul.f32 1.442695, %v3481_v19  ;;  %8468 = vmatpush.bf16.msrb.mxu0 %v11774_v41  ;;  %v16669_v13 = vpop.eup %12277  ;;  %v3482_v19 = vsub.f32 0.0, %v3474_v57 }
 0x705   :  { %v11983_v4 = vunpack.i.h.bf16 %v11981_v59  ;;  %v11982_v28 = vunpack.i.l.bf16 %v11981_v59  ;;  %v7690_v46 = vld [vmem:[#allocation2 + $0x310] sm:$0xff] }
 0x706   :  { %v16646_v18 = vadd.f32 %v7488_v61, %v16420_v42  ;;  %v16648_v59 = vpack.c.bf16 %v7690_v46, %v7688_v10  ;;  %v3475_v61 = vand.u32 2147483647, %v16632_v30  ;;  %v16674_v10 = vld [vmem:[%s18557_s3] ss:$0 sm:$0xff]  ;;  %12279 = vpow2.f32 %v3493_v2 }
 0x707   :  { %v3211_v63 = vsel %vm368_vm14, %v3203_v21, %v11982_v28  ;;  %v16652_v38 = vsel %vm368_vm14, %v3204_v48, %v11983_v4  ;;  %v11745_v28 = vld [vmem:[%s18560_s5 + $0x90] sm:$0xff]  ;;  %v18956_v48 = vrot.slane %v16440_v43, 1 }
 0x708   :  { %18952 = vst [vmem:[#allocation12_spill] sm:$0xff] %v16646_v18  ;;  %7826 = vmatmul.bf16.gmra.mxu1 %v16648_v59  ;;  %7946 = vmatmul.bf16.gmra.mxu3 %v16648_v59  ;;  %v3290_v25 = vrot.slane %v3211_v63, 2  ;;  %v3239_v42 = vrot.slane %v3211_v63, 1  ;;  %v18598_v46 = vrot.slane %v16652_v38, 1  ;;  %v11773_v4 = vld [vmem:[%s18560_s5 + $0x50] sm:$0xff]  ;;  %v3483_v2 = vsub.f32 0.0, %v3475_v61 }
 0x709   :  { %3219 = vst.msk [vmem:[#allocation2 + $0x370] sm:$0xff] %vm377_vm15, %v3211_v63  ;;  %v3301_v37 = vpop.permute.xlu0 %3300  ;;  %8096 = vmatpush.bf16.msrb.mxu1 %v11745_v28  ;;  %8469 = vmatpush.bf16.msrb.mxu0 %v11773_v4  ;;  %v18599_v61 = vrot.slane %v16652_v38, 2  ;;  %v7817_v28 = vpop.f32.mrf.mxu1 }
 0x70a   :  { %3220 = vst.msk [vmem:[#allocation2 + $0x380] sm:$0xff] %vm377_vm15, %v16652_v38  ;;  %v3291_v41 = vsel %vm449_vm2, %v18955_v12, %v3290_v25  ;;  %v3242_v21 = vsel %vm394_vm0, %v3239_v42, %v18598_v46  ;;  %v3240_v57 = vsel %vm394_vm0, %v18956_v48, %v3239_v42  ;;  %v16688_v63 = vpop.f32.mrf.mxu2  ;;  %v16699_v46 = vadd.f32 %v16191_v7, %v18959_v60  ;;  %v16727_v51 = vpop.f32.mrf.mxu0 }
 0x70b   :  { %3327 = vst.msk [vmem:[#allocation2 + $0x330] sm:$0xff] %vm496_vm6, %v3301_v37  ;;  %3306 = vrot.lane.b32.xlu0 %v3291_v41, %s12338_s8  ;;  %3257 = vrot.lane.b32.xlu2 %v3242_v21, %s12337_s30  ;;  %v16693_v31 = vpop.permute.xlu2 %3302  ;;  %v16695_v12 = vpop.f32.mrf.mxu3  ;;  %v3495_v42 = vmul.f32 1.442695, %v3482_v19  ;;  %v18960_v41 = vld [vmem:[#allocation20_spill] sm:$0xff]  ;;  %v3528_v60 = vadd.f32 1.0, %v16669_v13  ;;  %v3531_v19 = vmul.f32 -0.5, %v16669_v13 }
 0x70c   :  { %18957 = vst [vmem:[#allocation181_spill] sm:$0xff] %v16688_v63  ;;  %3255 = vrot.lane.b32.xlu1 %v3240_v57, %s12337_s30  ;;  %v3248_v43 = vpop.permute.xlu1 %3247  ;;  %v16710_v7 = vadd.f32 %v16674_v10, %v18960_v41  ;;  %v3476_v21 = vand.u32 2147483647, %v16699_v46  ;;  %v16717_v48 = vpop.eup %12279  ;;  %v3497_v57 = vmul.f32 1.442695, %v3483_v2  ;;  %v3293_v63 = vsel %vm449_vm2, %v3290_v25, %v18599_v61 }
 0x70d   :  { %3328 = vst.msk [vmem:[#allocation2 + $0x338] sm:$0xff] %vm359_vm13, %v3301_v37  ;;  %v11772_v37 = vld [vmem:[%s18560_s5 + $0x48] sm:$0xff]  ;;  %12281 = vpow2.f32 %v3495_v42  ;;  %v3537_v2 = vadd.f32 1.0, %v16717_v48 }
 0x70e   :  { %18958 = vst [vmem:[#allocation182_spill] sm:$0xff] %v16695_v12  ;;  %8470 = vmatpush.bf16.msrb.mxu0 %v11772_v37  ;;  %v7719_v12 = vld [vmem:[#allocation2 + $0x328] sm:$0xff]  ;;  %12283 = vlog2.f32 %v3528_v60  ;;  %v3484_v37 = vsub.f32 0.0, %v3476_v21  ;;  %v11754_v60 = vld [vmem:[%s18561_s1 + $0xc0] sm:$0xff] }
 0x70f   :  { %3330 = vst.msk [vmem:[#allocation2 + $0x348] sm:$0xff] %vm359_vm13, %v16693_v31  ;;  %12285 = vpow2.f32 %v3497_v57  ;;  %v3532_v57 = vadd.f32 1.0, %v3531_v19  ;;  %v3534_v19 = vand.u32 2147483647, %v16669_v13 }
 0x710   :  { %3273 = vst.msk [vmem:[#allocation2 + $0x320] sm:$0xff] %vm439_vm5, %v3248_v43  ;;  %v3940_v43 = vand.u32 2147483647, %v16710_v7  ;;  %12287 = vlog2.f32 %v3537_v2  ;;  %v3499_v27 = vmul.f32 1.442695, %v3484_v37 }
 0x711   :  { %3325 = vst.msk [vmem:[#allocation2 + $0x320] sm:$0xff] %vm496_vm6, %v16562_v8  ;;  %v3157_v4 = vpop.permute.xlu0 %3156  ;;  %v16758_v37 = vpop.f32.mrf.mxu1  ;;  %vm16779_vm4 = vcmp.lt.f32.partialorder %v3534_v19, 0.0004427343 }
 0x712   :  { %v7846_v41 = vpop.f32.mrf.mxu2  ;;  %v3948_v21 = vsub.f32 0.0, %v3940_v43  ;;  %v3540_v43 = vmul.f32 -0.5, %v16717_v48  ;;  %18961 = vst [vmem:[#allocation17_spill] sm:$0xff] %v16758_v37  ;;  %12289 = vpow2.f32 %v3499_v27 }
 0x713   :  { %v7847_v56 = vadd.f32 %v7846_v41, %v7817_v28  ;;  %v7932_v9 = vpop.f32.mrf.mxu3  ;;  %v7720_v41 = vld [vmem:[#allocation2 + $0x330] sm:$0xff] }
 0x714   :  { %v7721_v8 = vld [vmem:[#allocation2 + $0x338] sm:$0xff]  ;;  %3308 = vrot.lane.b32.xlu1 %v3293_v63, %s12338_s8  ;;  %v11986_v42 = vpop.permute.xlu1 %11985  ;;  %v3669_v63 = vsel %vm359_vm13, %v16444_v26, %v16627_v53  ;;  %v3956_v2 = vmul.f32 1.442695, %v3948_v21 }
 0x715   :  { %v16724_v29 = vpack.c.bf16 %v7721_v8, %v7719_v12  ;;  %v16733_v18 = vadd.f32 %v7932_v9, %v7847_v56  ;;  %v11988_v25 = vunpack.i.h.bf16 %v11986_v42  ;;  %v11987_v28 = vunpack.i.l.bf16 %v11986_v42  ;;  %v16748_v42 = vpop.eup %12281 }
 0x716   :  { %v3205_v8 = vsel %vm359_vm13, %v16428_v50, %v3157_v4  ;;  %v12284_v4 = vpop.eup %12283  ;;  %12291 = vpow2.f32 %v3956_v2 }
 0x717   :  { %10966 = vmatmul.msk.bf16.gmra.mxu2 %vm359_vm13, %v16724_v29  ;;  %v16745_v56 = vsel %vm368_vm14, %v3669_v63, %v11988_v25  ;;  %v3213_v9 = vsel %vm368_vm14, %v3205_v8, %v11987_v28  ;;  %v3530_v63 = vmul.f32 0.6931472, %v12284_v4  ;;  %v3533_v8 = vmul.f32 %v16669_v13, %v3532_v57  ;;  %v16786_v13 = vpop.f32.mrf.mxu0 }
 0x718   :  { %v7718_v12 = vld [vmem:[#allocation2 + $0x320] sm:$0xff]  ;;  %3221 = vst.msk [vmem:[#allocation2 + $0x390] sm:$0xff] %vm377_vm15, %v3213_v9  ;;  %11101 = vmatmul.msk.bf16.vlgmr.msrb.gmra.mxu3 %vm103_vm1, %v11754_v60  ;;  %v3243_v50 = vrot.slane %v3213_v9, 1  ;;  %v18600_v53 = vrot.slane %v16745_v56, 1  ;;  %v18962_v60 = vrot.slane %v16652_v38, 1  ;;  %v3294_v27 = vrot.slane %v3213_v9, 2 }
 0x719   :  { %v16742_v61 = vpack.c.bf16 %v7720_v41, %v7718_v12  ;;  %v3252_v26 = vpop.permute.xlu0 %3251  ;;  %3685 = vst.msk [vmem:[#allocation2 + $0x3a0] sm:$0xff] %vm377_vm15, %v16745_v56  ;;  %v16767_v12 = vpop.eup %12285  ;;  %v3546_v41 = vadd.f32 1.0, %v16748_v42  ;;  %v3464_v57 = vmax.f32 %v16569_v52, 0.0  ;;  %v3536_v19 = vsel %vm16779_vm4, %v3533_v8, %v3530_v63 }
 0x71a   :  { %3275 = vst.msk [vmem:[#allocation2 + $0x340] sm:$0xff] %vm439_vm5, %v3252_v26  ;;  %3261 = vrot.lane.b32.xlu0 %v3243_v50, %s12337_s30  ;;  %v3244_v25 = vsel %vm394_vm0, %v18962_v60, %v3243_v50  ;;  %v16765_v28 = vpop.f32.mrf.mxu2  ;;  %v3541_v60 = vadd.f32 1.0, %v3540_v43  ;;  %v3555_v4 = vadd.f32 1.0, %v16767_v12  ;;  %v3558_v52 = vmul.f32 -0.5, %v16767_v12 }
 0x71b   :  { %7831 = vmatmul.bf16.gmra.mxu1 %v16742_v61  ;;  %18963 = vst [vmem:[#allocation20_spill] sm:$0xff] %v16765_v28  ;;  %3259 = vrot.lane.b32.xlu2 %v3244_v25, %s12337_s30  ;;  %v16773_v21 = vpop.f32.mrf.mxu3  ;;  %v12288_v25 = vpop.eup %12287  ;;  %12293 = vlog2.f32 %v3546_v41  ;;  %v18601_v41 = vrot.slane %v16745_v56, 2  ;;  %v16807_v50 = vadd.f32 %v3536_v19, %v3464_v57  ;;  %v3561_v37 = vand.u32 2147483647, %v16767_v12 }
 0x71c   :  { %3329 = vst.msk [vmem:[#allocation2 + $0x340] sm:$0xff] %vm496_vm6, %v16693_v31  ;;  %3716 = vrot.lane.b32.xlu1 %v18600_v53, %s12337_s30  ;;  %v3254_v26 = vpop.permute.xlu1 %3253  ;;  %v3543_v31 = vand.u32 2147483647, %v16717_v48  ;;  %v3549_v53 = vmul.f32 -0.5, %v16748_v42  ;;  %v3542_v28 = vmul.f32 %v16717_v48, %v3541_v60  ;;  %v16798_v2 = vpop.eup %12289  ;;  %12295 = vlog2.f32 %v3555_v4 }
 0x71d   :  { %18964 = vst [vmem:[#allocation183_spill] sm:$0xff] %v16773_v21  ;;  %v3539_v21 = vmul.f32 0.6931472, %v12288_v25  ;;  %v7822_v9 = vpop.f32.mrf.mxu1  ;;  %v18970_v48 = vrot.slane %v16652_v38, 2  ;;  %v3552_v60 = vand.u32 2147483647, %v16748_v42  ;;  %v16811_v25 = vpop.eup %12291 }
 0x71e   :  { %3276 = vst.msk [vmem:[#allocation2 + $0x350] sm:$0xff] %vm439_vm5, %v3254_v26  ;;  %vm16793_vm11 = vcmp.lt.f32.partialorder %v3543_v31, 0.0004427343  ;;  %v3465_v4 = vmax.f32 %v16594_v0, 0.0  ;;  %v11770_v0 = vld [vmem:[%s18560_s5 + $0x38] sm:$0xff] }
 0x71f   :  { %18967 = vst [vmem:[#allocation184_spill] sm:$0xff] %v16786_v13  ;;  %v3295_v63 = vsel %vm449_vm2, %v18970_v48, %v3294_v27  ;;  %v3545_v19 = vsel %vm16793_vm11, %v3542_v28, %v3539_v21  ;;  %vm16830_vm3 = vcmp.lt.f32.partialorder %v3552_v60, 0.0004427343  ;;  %v3972_v28 = vadd.f32 1.0, %v16811_v25  ;;  %v3618_v21 = vpop.permute.xlu2 %3617  ;;  %8578 = vmatpush.bf16.msra.mxu2 %v11770_v0 }
 0x720   :  { %vm16870_vm4 = vcmp.lt.f32.partialorder %v3561_v37, 0.0004427343 }
 0x721   :  { %v3305_v43 = vpop.permute.xlu0 %3304  ;;  %v12294_v57 = vpop.eup %12293 }
 0x722   :  { %3331 = vst.msk [vmem:[#allocation2 + $0x350] sm:$0xff] %vm496_vm6, %v3305_v43  ;;  %3312 = vrot.lane.b32.xlu0 %v3294_v27, %s12338_s8  ;;  %v7851_v8 = vpop.f32.mrf.mxu2  ;;  %v11755_v27 = vld [vmem:[%s18561_s1 + $0xc8] sm:$0xff]  ;;  %v3548_v13 = vmul.f32 0.6931472, %v12294_v57 }
 0x723   :  { %3332 = vst.msk [vmem:[#allocation2 + $0x358] sm:$0xff] %vm359_vm13, %v3305_v43  ;;  %3310 = vrot.lane.b32.xlu2 %v3295_v63, %s12338_s8  ;;  %v7852_v31 = vadd.f32 %v7851_v8, %v7822_v9  ;;  %v3550_v43 = vadd.f32 1.0, %v3549_v53  ;;  %v7937_v38 = vpop.f32.mrf.mxu3  ;;  %v3564_v9 = vadd.f32 1.0, %v16798_v2  ;;  %v3559_v53 = vadd.f32 1.0, %v3558_v52  ;;  %v7966_v63 = vpop.f32.mrf.mxu0  ;;  %v8335_v15 = vld [vmem:[#allocation2 + $0x340] sm:$0xff] }
 0x724   :  { %3767 = vrot.lane.b32.xlu1 %v18601_v41, %s12338_s8  ;;  %v3584_v8 = vpack.c.bf16 %v16807_v50, %v16807_v50  ;;  %v3467_v41 = vmax.f32 %v16632_v30, 0.0  ;;  %v11767_v30 = vld [vmem:[%s18560_s5 + $0x20] sm:$0xff] }
 0x725   :  { %v7938_v48 = vadd.f32 %v7937_v38, %v7852_v31  ;;  %v3616_v31 = vpop.permute.xlu1 %3615  ;;  %v16837_v38 = vadd.f32 %v3545_v19, %v3465_v4  ;;  %v3551_v52 = vmul.f32 %v16748_v42, %v3550_v43  ;;  %12297 = vlog2.f32 %v3564_v9  ;;  %v11769_v4 = vld [vmem:[%s18560_s5 + $0x30] sm:$0xff] }
 0x726   :  { %v3560_v42 = vmul.f32 %v16767_v12, %v3559_v53  ;;  %v3567_v43 = vmul.f32 -0.5, %v16798_v2  ;;  %12299 = vlog2.f32 %v3972_v28  ;;  %8579 = vmatpush.bf16.msra.mxu2 %v11769_v4  ;;  %v3466_v53 = vmax.f32 %v16622_v20, 0.0 }
 0x727   :  { %11061 = vmatmul.msk.bf16.vlgmr.msrb.gmra.mxu2 %vm359_vm13, %v16397_v44  ;;  %v16835_v26 = vadd.f32 %v7966_v63, %v7938_v48  ;;  %v12296_v44 = vpop.eup %12295  ;;  %v3585_v0 = vpack.c.bf16 %v16837_v38, %v16837_v38  ;;  %v3554_v28 = vsel %vm16830_vm3, %v3551_v52, %v3548_v13  ;;  %v18976_v20 = vrot.slane %v16745_v56, 1 }
 0x728   :  { %11102 = vmatmul.msk.bf16.gmra.mxu3 %vm103_vm1, %v11755_v27  ;;  %v3670_v27 = vsel %vm359_vm13, %v16484_v1, %v3616_v31  ;;  %v3557_v57 = vmul.f32 0.6931472, %v12296_v44  ;;  %v11768_v1 = vld [vmem:[%s18560_s5 + $0x28] sm:$0xff]  ;;  %v3568_v31 = vadd.f32 1.0, %v3567_v43  ;;  %v18975_v44 = vrot.slane %v16745_v56, 2 }
 0x729   :  { %v11991_v60 = vpop.permute.xlu0 %11990  ;;  %v8337_v36 = vld [vmem:[#allocation2 + $0x350] sm:$0xff]  ;;  %v3570_v52 = vand.u32 2147483647, %v16798_v2  ;;  %v16892_v56 = vunpack.c.l.bf16 %v3584_v8 }
 0x72a   :  { %v11993_v48 = vunpack.i.h.bf16 %v11991_v60  ;;  %v11992_v63 = vunpack.i.l.bf16 %v11991_v60  ;;  %v16843_v39 = vpack.c.bf16 %v8337_v36, %v8335_v15  ;;  %v3975_v15 = vmul.f32 -0.5, %v16811_v25  ;;  %8580 = vmatpush.bf16.msra.mxu2 %v11768_v1 }
 0x72b   :  { %8097 = vmatmul.bf16.vlgmr.msrb.gmra.mxu1 %v16436_v23  ;;  %v3671_v23 = vsel %vm359_vm13, %v16496_v14, %v3618_v21  ;;  %v12298_v37 = vpop.eup %12297  ;;  %v3569_v21 = vmul.f32 %v16798_v2, %v3568_v31  ;;  %vm16901_vm11 = vcmp.lt.f32.partialorder %v3570_v52, 0.0004427343  ;;  %v3468_v2 = vmax.f32 %v16699_v46, 0.0  ;;  %v11766_v46 = vld [vmem:[%s18560_s5 + $0x18] sm:$0xff]  ;;  %v16992_v31 = vpop.f32.mrf.mxu3 }
 0x72c   :  { %v3678_v19 = vsel %vm368_vm14, %v3670_v27, %v11992_v63  ;;  %v16856_v36 = vsel %vm368_vm14, %v3671_v23, %v11993_v48  ;;  %8471 = vmatmul.bf16.vlgmr.msrb.gmra.mxu0 %v16843_v39  ;;  %v3563_v63 = vsel %vm16870_vm4, %v3560_v42, %v3557_v57  ;;  %v3976_v4 = vadd.f32 1.0, %v3975_v15  ;;  %v12300_v43 = vpop.eup %12299  ;;  %v11780_v57 = vld [vmem:[%s18560_s5 + $0x88] sm:$0xff]  ;;  %18981 = vst [vmem:[#allocation185_spill] sm:$0xff] %v16992_v31 }
 0x72d   :  { %3686 = vst.msk [vmem:[#allocation2 + $0x3b0] sm:$0xff] %vm377_vm15, %v3678_v19  ;;  %v3753_v12 = vrot.slane %v3678_v19, 2  ;;  %v3702_v9 = vrot.slane %v3678_v19, 1  ;;  %v18602_v14 = vrot.slane %v16856_v36, 1  ;;  %v3578_v23 = vadd.f32 %v3554_v28, %v3466_v53  ;;  %v11756_v53 = vld [vmem:[%s18561_s1 + $0xd0] sm:$0xff]  ;;  %8499 = vmatpush.bf16.msra.mxu1 %v11780_v57 }
 0x72e   :  { %3687 = vst.msk [vmem:[#allocation2 + $0x3c0] sm:$0xff] %vm377_vm15, %v16856_v36  ;;  %v3978_v27 = vand.u32 2147483647, %v16811_v25  ;;  %v16898_v19 = vunpack.c.l.bf16 %v3585_v0  ;;  %v3579_v42 = vadd.f32 %v3563_v63, %v3467_v41  ;;  %v3974_v15 = vmul.f32 0.6931472, %v12300_v43  ;;  %8581 = vmatpush.bf16.msra.mxu2 %v11767_v30 }
 0x72f   :  { %v3754_v60 = vsel %vm449_vm2, %v18975_v44, %v3753_v12  ;;  %v3705_v48 = vsel %vm394_vm0, %v3702_v9, %v18602_v14  ;;  %v3703_v13 = vsel %vm394_vm0, %v18976_v20, %v3702_v9  ;;  %v3566_v9 = vmul.f32 0.6931472, %v12298_v37 }
 0x730   :  { %3769 = vrot.lane.b32.xlu1 %v3754_v60, %s12338_s8  ;;  %3720 = vrot.lane.b32.xlu0 %v3705_v48, %s12337_s30  ;;  %v3601_v8 = vsub.f32 %v16837_v38, %v16898_v19  ;;  %v3977_v1 = vmul.f32 %v16811_v25, %v3976_v4  ;;  %v18603_v0 = vrot.slane %v16856_v36, 2  ;;  %v3586_v28 = vpack.c.bf16 %v3578_v23, %v3578_v23  ;;  %v11771_v38 = vld [vmem:[%s18560_s5 + $0x40] sm:$0xff] }
 0x731   :  { %3718 = vrot.lane.b32.xlu2 %v3703_v13, %s12337_s30  ;;  %vm16913_vm3 = vcmp.lt.f32.partialorder %v3978_v27, 0.0004427343  ;;  %v3600_v25 = vsub.f32 %v16807_v50, %v16892_v56  ;;  %v3572_v44 = vsel %vm16901_vm11, %v3569_v21, %v3566_v9  ;;  %v3587_v60 = vpack.c.bf16 %v3579_v42, %v3579_v42  ;;  %8614 = vmatpush.bf16.msra.mxu3 %v11771_v38  ;;  %v11757_v9 = vld [vmem:[%s18561_s1 + $0xd8] sm:$0xff] }
 0x732   :  { %v3932_v48 = vmax.f32 %v16710_v7, 0.0  ;;  %v3756_v50 = vsel %vm449_vm2, %v3753_v12, %v18603_v0  ;;  %v16939_v20 = vunpack.c.l.bf16 %v3586_v28  ;;  %v3580_v13 = vadd.f32 %v3572_v44, %v3468_v2  ;;  %8582 = vmatpush.bf16.msra.mxu2 %v11766_v46  ;;  %v11765_v7 = vld [vmem:[%s18560_s5 + $0x10] sm:$0xff]  ;;  %v11764_v12 = vld [vmem:[%s18560_s5 + $0x8] sm:$0xff]  ;;  %v17005_v46 = vpop.f32.mrf.mxu1 }
 0x733   :  { %v16945_v37 = vunpack.c.l.bf16 %v3587_v60  ;;  %v11994_v43 = vpack.i.bf16 %v16898_v19, %v16892_v56  ;;  %v16996_v38 = vpop.f32.mrf.mxu3  ;;  %v18982_v44 = vld [vmem:[#allocation24_spill] sm:$0xff]  ;;  %vm18989_vm4 = vcmask 1048326  }
 0x734   :  { %v3588_v52 = vpack.c.bf16 %v3580_v13, %v3580_v13  ;;  %v3602_v63 = vsub.f32 %v3578_v23, %v16939_v20  ;;  %v11763_v23 = vld [vmem:[%s18560_s5] sm:$0xff] }
 0x735   :  { %v3603_v41 = vsub.f32 %v3579_v42, %v16945_v37 }
 0x736   :  { %8583 = vmatpush.bf16.msra.mxu2 %v11765_v7  ;;  %v16956_v27 = vunpack.c.l.bf16 %v3588_v52 }
 0x737   :  { %11062 = vmatmul.msk.bf16.gmra.mxu2 %vm359_vm13, %v16604_v54  ;;  %v3980_v54 = vsel %vm16913_vm3, %v3977_v1, %v3974_v15  ;;  %v7996_v1 = vld [vmem:[#allocation2 + $0x358] sm:$0xff] }
 0x738   :  { %3621 = vrot.lane.b32.xlu1 %v3601_v8, %s12335_s22  ;;  %3619 = vrot.lane.b32.xlu0 %v3600_v25, %s12335_s22  ;;  %v3604_v42 = vsub.f32 %v3580_v13, %v16956_v27  ;;  %v11999_v8 = vpack.i.bf16 %v16945_v37, %v16939_v20 }
 0x739   :  { %11103 = vmatmul.msk.bf16.gmra.mxu3 %vm103_vm1, %v11756_v53  ;;  %3771 = vrot.lane.b32.xlu2 %v3756_v50, %s12338_s8  ;;  %v7994_v53 = vld [vmem:[#allocation2 + $0x348] sm:$0xff]  ;;  %v18983_v50 = vld [vmem:[#allocation27_spill] sm:$0xff] }
 0x73a   :  { %8584 = vmatpush.bf16.msra.mxu2 %v11764_v12  ;;  %v8004_v28 = vpack.c.bf16 %v7996_v1, %v7994_v53 }
 0x73b   :  { %8102 = vmatmul.bf16.gmra.mxu1 %v16648_v59  ;;  %v4044_v59 = vadd.f32 %v3980_v54, %v3932_v48  ;;  %v17007_v48 = vpop.f32.mrf.mxu2 }
 0x73d   :  { %v4052_v4 = vpack.c.bf16 %v4044_v59, %v4044_v59 }
 0x73e   :  { %8585 = vmatpush.bf16.msra.mxu2 %v11763_v23 }
 0x73f   :  { %v16962_v30 = vunpack.c.l.bf16 %v4052_v4  ;;  %v17024_v4 = vpop.f32.mrf.mxu3 }
 0x740   :  { %3625 = vrot.lane.b32.xlu1 %v3603_v41, %s12335_s22  ;;  %3623 = vrot.lane.b32.xlu0 %v3602_v63, %s12335_s22  ;;  %18984 = vst [vmem:[#allocation24_spill] sm:$0xff] %v17024_v4 }
 0x741   :  { %11995 = vrot.lane.b32.xlu2 %v11994_v43, %s12336_s23  ;;  %v12004_v21 = vpack.i.bf16 %v16962_v30, %v16956_v27  ;;  %v4068_v15 = vsub.f32 %v4044_v59, %v16962_v30  ;;  %v11788_v43 = vld [vmem:[%s18560_s5 + $0xc8] sm:$0xff] }
 0x742   :  { %8744 = vmatpush.bf16.msra.mxu0 %v11788_v43 }
 0x747   :  { %11063 = vmatmul.msk.bf16.gmra.mxu2 %vm359_vm13, %v16724_v29 }
 0x748   :  { %12005 = vrot.lane.b32.xlu1 %v12004_v21, %s12336_s23  ;;  %3627 = vrot.lane.b32.xlu0 %v3604_v42, %s12335_s22 }
 0x749   :  { %11104 = vmatmul.msk.bf16.gmra.mxu3 %vm103_vm1, %v11757_v9  ;;  %12000 = vrot.lane.b32.xlu2 %v11999_v8, %s12336_s23  ;;  %v11787_v9 = vld [vmem:[%s18560_s5 + $0xc0] sm:$0xff]  ;;  %v11797_v8 = vld [vmem:[%s18559_s4 + $0x18] sm:$0xff] }
 0x74a   :  { %8745 = vmatpush.bf16.msra.mxu0 %v11787_v9  ;;  %v11794_v9 = vld [vmem:[%s18559_s4] sm:$0xff] }
 0x74b   :  { %8107 = vmatmul.bf16.gmra.mxu1 %v16742_v61 }
 0x751   :  { %4084 = vrot.lane.b32.xlu2 %v4068_v15, %s12335_s22 }
 0x757   :  { %11064 = vmatmul.msk.bf16.gmra.mxu2 %vm359_vm13, %v8004_v28 }
 0x759   :  { %11199 = vmatmul.msk.bf16.vlgmr.msra.gmra.mxu3 %vm359_vm13, %v16724_v29  ;;  %v17000_v29 = vadd.f32 %v16674_v10, %v18982_v44  ;;  %v17046_v44 = vpop.f32.mrf.mxu0 }
 0x75a   :  { %18985 = vst [vmem:[#allocation27_spill] sm:$0xff] %v17046_v44 }
 0x75b   :  { %8112 = vmatmul.bf16.gmra.mxu1 %v16843_v39  ;;  %v3941_v41 = vand.u32 2147483647, %v17000_v29 }
 0x75d   :  { %v3949_v12 = vsub.f32 0.0, %v3941_v41 }
 0x75f   :  { %v3958_v15 = vmul.f32 1.442695, %v3949_v12 }
 0x761   :  { %12301 = vpow2.f32 %v3958_v15  ;;  %v17082_v15 = vpop.f32.mrf.mxu0 }
 0x765   :  { %v3258_v2 = vpop.permute.xlu2 %3257 }
 0x766   :  { %3278 = vst.msk [vmem:[#allocation2 + $0x370] sm:$0xff] %vm439_vm5, %v3258_v2 }
 0x767   :  { %8586 = vmatmul.bf16.vlgmr.msra.gmra.mxu2 %v16742_v61  ;;  %v8888_v61 = vld [vmem:[%s18559_s4 + $0x28] sm:$0x1]  ;;  %v12302_v43 = vpop.eup %12301 }
 0x768   :  { %v8930_v60 = vunpack.c.l.b16 %v8888_v61 }
 0x769   :  { %11200 = vmatmul.msk.bf16.gmra.mxu3 %vm359_vm13, %v8004_v28 }
 0x76a   :  { %v8936_v59 = vpack.c.b16 %v8930_v60, %v8930_v60 }
 0x76b   :  { %11159 = vmatmul.msk.bf16.vlgmr.msra.gmra.mxu1 %vm359_vm13, %v8004_v28  ;;  %v11796_v28 = vld [vmem:[%s18559_s4 + $0x10] sm:$0xff] }
 0x76c   :  { %v8955_v52 = vand.u32 %v8936_v59, %v12382_v3 }
 0x76e   :  { %8959 = vmatpush.bf16.msrb.mxu2 %v8955_v52  ;;  %v11795_v52 = vld [vmem:[%s18559_s4 + $0x8] sm:$0xff] }
 0x775   :  { %v3260_v25 = vpop.permute.xlu2 %3259 }
 0x776   :  { %3279 = vst.msk [vmem:[#allocation2 + $0x380] sm:$0xff] %vm439_vm5, %v3260_v25  ;;  %v11786_v25 = vld [vmem:[%s18560_s5 + $0xb8] sm:$0xff] }
 0x777   :  { %8591 = vmatmul.bf16.gmra.mxu2 %v16843_v39  ;;  %v17011_v39 = vadd.f32 %v16674_v10, %v18983_v50  ;;  %v11798_v10 = vld [vmem:[%s18559_s4 + $0x20] sm:$0xff]  ;;  %8746 = vmatpush.bf16.msra.mxu0 %v11786_v25 }
 0x778   :  { %8960 = vmatpush.bf16.msrb.mxu2 %v11798_v10 }
 0x779   :  { %v3942_v63 = vand.u32 2147483647, %v17011_v39 }
 0x77b   :  { %v3950_v21 = vsub.f32 0.0, %v3942_v63  ;;  %v11785_v63 = vld [vmem:[%s18560_s5 + $0xb0] sm:$0xff] }
 0x77c   :  { %8961 = vmatpush.bf16.msrb.mxu2 %v11797_v8  ;;  %8747 = vmatpush.bf16.msra.mxu0 %v11785_v63  ;;  %v3981_v8 = vadd.f32 1.0, %v12302_v43 }
 0x77d   :  { %v3307_v54 = vpop.permute.xlu0 %3306  ;;  %v3311_v7 = vpop.permute.xlu2 %3310  ;;  %v3960_v1 = vmul.f32 1.442695, %v3950_v21  ;;  %v11784_v21 = vld [vmem:[%s18560_s5 + $0xa8] sm:$0xff] }
 0x77e   :  { %3334 = vst.msk [vmem:[#allocation2 + $0x368] sm:$0xff] %vm359_vm13, %v3307_v54  ;;  %v3256_v13 = vpop.permute.xlu1 %3255 }
 0x77f   :  { %3277 = vst.msk [vmem:[#allocation2 + $0x360] sm:$0xff] %vm439_vm5, %v3256_v13  ;;  %12303 = vpow2.f32 %v3960_v1 }
 0x780   :  { %3333 = vst.msk [vmem:[#allocation2 + $0x360] sm:$0xff] %vm496_vm6, %v3307_v54  ;;  %8962 = vmatpush.bf16.msrb.mxu2 %v11796_v28  ;;  %8748 = vmatpush.bf16.msra.mxu0 %v11784_v21  ;;  %12305 = vlog2.f32 %v3981_v8 }
 0x781   :  { %3337 = vst.msk [vmem:[#allocation2 + $0x380] sm:$0xff] %vm496_vm6, %v3311_v7 }
 0x782   :  { %3338 = vst.msk [vmem:[#allocation2 + $0x388] sm:$0xff] %vm359_vm13, %v3311_v7  ;;  %v7856_v23 = vpop.f32.mrf.mxu2 }
 0x784   :  { %8963 = vmatpush.bf16.msrb.mxu2 %v11795_v52  ;;  %v11782_v52 = vld [vmem:[%s18560_s5 + $0x98] sm:$0xff] }
 0x785   :  { %v7827_v3 = vpop.f32.mrf.mxu1  ;;  %v8340_v7 = vld [vmem:[#allocation2 + $0x368] sm:$0xff] }
 0x786   :  { %v3309_v42 = vpop.permute.xlu1 %3308  ;;  %v17032_v57 = vadd.f32 %v7856_v23, %v7827_v3 }
 0x787   :  { %3335 = vst.msk [vmem:[#allocation2 + $0x370] sm:$0xff] %vm496_vm6, %v3309_v42  ;;  %v8339_v50 = vld [vmem:[#allocation2 + $0x360] sm:$0xff] }
 0x788   :  { %3336 = vst.msk [vmem:[#allocation2 + $0x378] sm:$0xff] %vm359_vm13, %v3309_v42  ;;  %v17080_v42 = vpop.eup %12303  ;;  %8964 = vmatpush.bf16.msrb.mxu2 %v11794_v9  ;;  %v8343_v14 = vld [vmem:[#allocation2 + $0x380] sm:$0xff] }
 0x789   :  { %v3990_v25 = vadd.f32 1.0, %v17080_v42  ;;  %v3993_v63 = vmul.f32 -0.5, %v17080_v42  ;;  %v12306_v8 = vpop.eup %12305 }
 0x78a   :  { %v17060_v10 = vpop.f32.mrf.mxu2  ;;  %v3983_v4 = vmul.f32 0.6931472, %v12306_v8 }
 0x78b   :  { %v3719_v53 = vpop.permute.xlu2 %3718  ;;  %v7947_v2 = vpop.f32.mrf.mxu3  ;;  %18987 = vst [vmem:[#allocation187_spill] sm:$0xff] %v17060_v10  ;;  %12307 = vlog2.f32 %v3990_v25 }
 0x78c   :  { %3744 = vst.msk [vmem:[#allocation2 + $0x3a0] sm:$0xff] %vm439_vm5, %v3719_v53  ;;  %v3262_v61 = vpop.permute.xlu0 %3261 }
 0x78d   :  { %3280 = vst.msk [vmem:[#allocation2 + $0x390] sm:$0x7f] %vm447_vm7, %v3262_v61  ;;  %v17049_v60 = vpop.f32.mrf.mxu1  ;;  %v11783_v61 = vld [vmem:[%s18560_s5 + $0xa0] sm:$0xff] }
 0x78e   :  { %18986 = vst [vmem:[#allocation186_spill] sm:$0xff] %v17049_v60  ;;  %v3717_v54 = vpop.permute.xlu1 %3716  ;;  %v8341_v13 = vld [vmem:[#allocation2 + $0x370] sm:$0xff]  ;;  %8749 = vmatpush.bf16.msra.mxu0 %v11783_v61  ;;  %v8344_v61 = vld [vmem:[#allocation2 + $0x388] sm:$0xff]  ;;  %v3996_v60 = vand.u32 2147483647, %v17080_v42 }
 0x78f   :  { %3743 = vst.msk [vmem:[#allocation2 + $0x390] sm:$0x80] %vm437_vm10, %v3717_v54  ;;  %v17052_v59 = vpack.c.bf16 %v8341_v13, %v8339_v50  ;;  %v8342_v41 = vld [vmem:[#allocation2 + $0x378] sm:$0xff]  ;;  %v3984_v50 = vmul.f32 -0.5, %v12302_v43 }
 0x790   :  { %v17062_v12 = vpack.c.bf16 %v8342_v41, %v8340_v7  ;;  %vm17136_vm3 = vcmp.lt.f32.partialorder %v3996_v60, 0.0004427343 }
 0x791   :  { %8476 = vmatmul.bf16.gmra.mxu0 %v17052_v59  ;;  %8596 = vmatmul.bf16.gmra.mxu2 %v17052_v59  ;;  %v3985_v9 = vadd.f32 1.0, %v3984_v50  ;;  %v11781_v50 = vld [vmem:[%s18560_s5 + $0x90] sm:$0xff] }
 0x792   :  { %11160 = vmatmul.msk.bf16.gmra.mxu1 %vm359_vm13, %v17062_v12  ;;  %11201 = vmatmul.msk.bf16.gmra.mxu3 %vm359_vm13, %v17062_v12 }
 0x793   :  { %v17070_v23 = vpop.permute.xlu2 %3771  ;;  %v17072_v3 = vpop.f32.mrf.mxu3  ;;  %8750 = vmatpush.bf16.msra.mxu0 %v11782_v52  ;;  %v3986_v10 = vmul.f32 %v12302_v43, %v3985_v9 }
 0x794   :  { %18988 = vst [vmem:[#allocation188_spill] sm:$0xff] %v17072_v3  ;;  %v3313_v1 = vpop.permute.xlu0 %3312 }
 0x795   :  { %3799 = vst.msk [vmem:[#allocation2 + $0x3b8] sm:$0xff] %vm359_vm13, %v17070_v23 }
 0x796   :  { %3339 = vst.msk [vmem:[#allocation2 + $0x390] sm:$0x3f] %vm511_vm8, %v3313_v1  ;;  %v3768_v28 = vpop.permute.xlu1 %3767 }
 0x797   :  { %3340 = vst.msk [vmem:[#allocation2 + $0x398] sm:$0x3f] %vm513_vm9, %v3313_v1  ;;  %v3987_v1 = vand.u32 2147483647, %v12302_v43  ;;  %8751 = vmatpush.bf16.msra.mxu0 %v11781_v50 }
 0x798   :  { %v7832_v53 = vpop.f32.mrf.mxu1  ;;  %3794 = vst.msk [vmem:[#allocation2 + $0x390] sm:$0xc0] %vm18989_vm4, %v3768_v28 }
 0x799   :  { %3795 = vst.msk [vmem:[#allocation2 + $0x398] sm:$0xc0] %vm494_vm12, %v3768_v28  ;;  %v17102_v28 = vpop.f32.mrf.mxu0  ;;  %vm17119_vm11 = vcmp.lt.f32.partialorder %v3987_v1, 0.0004427343 }
 0x79a   :  { %v7861_v54 = vpop.f32.mrf.mxu2  ;;  %18992 = vst [vmem:[#allocation191_spill] sm:$0xff] %v17102_v28  ;;  %v12308_v28 = vpop.eup %12307 }
 0x79b   :  { %v7862_v13 = vadd.f32 %v7861_v54, %v7832_v53  ;;  %v17094_v41 = vpop.f32.mrf.mxu3  ;;  %v3992_v9 = vmul.f32 0.6931472, %v12308_v28  ;;  %v11996_v1 = vpop.permute.xlu2 %11995 }
 0x79c   :  { %18990 = vst [vmem:[#allocation189_spill] sm:$0xff] %v17094_v41  ;;  %v11998_v60 = vunpack.i.h.bf16 %v11996_v1 }
 0x79d   :  { %v7948_v7 = vadd.f32 %v7947_v2, %v7862_v13  ;;  %v11789_v2 = vld [vmem:[%s18560_s5 + $0xd0] sm:$0xff]  ;;  %v3994_v13 = vadd.f32 1.0, %v3993_v63  ;;  %v3933_v63 = vmax.f32 %v17000_v29, 0.0  ;;  %v3934_v29 = vmax.f32 %v17011_v39, 0.0 }
 0x79e   :  { %8780 = vmatpush.bf16.msrb.mxu1 %v11789_v2  ;;  %v3989_v2 = vsel %vm17119_vm11, %v3986_v10, %v3983_v4  ;;  %v7962_v4 = vadd.f32 %v16727_v51, %v16733_v18  ;;  %v11997_v10 = vunpack.i.l.bf16 %v11996_v1 }
 0x79f   :  { %v8345_v53 = vld [vmem:[#allocation2 + $0x390] sm:$0xff]  ;;  %v3995_v8 = vmul.f32 %v17080_v42, %v3994_v13  ;;  %v4045_v42 = vadd.f32 %v3989_v2, %v3933_v63 }
 0x7a0   :  { %v17100_v21 = vpop.f32.mrf.mxu1  ;;  %v17107_v25 = vpack.c.bf16 %v8345_v53, %v8343_v14  ;;  %v8346_v54 = vld [vmem:[#allocation2 + $0x398] sm:$0xff] }
 0x7a1   :  { %18991 = vst [vmem:[#allocation190_spill] sm:$0xff] %v17100_v21  ;;  %v17114_v41 = vpack.c.bf16 %v8346_v54, %v8344_v61  ;;  %v7976_v50 = vpop.f32.mrf.mxu0  ;;  %v3998_v13 = vsel %vm17136_vm3, %v3995_v8, %v3992_v9 }
 0x7a2   :  { %v17112_v0 = vpop.f32.mrf.mxu2  ;;  %8481 = vmatmul.bf16.gmra.mxu0 %v17107_v25  ;;  %8601 = vmatmul.bf16.gmra.mxu2 %v17107_v25  ;;  %v3770_v14 = vpop.permute.xlu1 %3769  ;;  %v17143_v28 = vadd.f32 %v7976_v50, %v7948_v7  ;;  %v4046_v63 = vadd.f32 %v3998_v13, %v3934_v29  ;;  %v11790_v29 = vld [vmem:[%s18561_s1 + $0xe0] sm:$0xff] }
 0x7a3   :  { %18993 = vst [vmem:[#allocation192_spill] sm:$0xff] %v17112_v0  ;;  %v3721_v52 = vpop.permute.xlu0 %3720  ;;  %11161 = vmatmul.msk.bf16.gmra.mxu1 %vm359_vm13, %v17114_v41  ;;  %11202 = vmatmul.msk.bf16.gmra.mxu3 %vm359_vm13, %v17114_v41  ;;  %v17129_v43 = vpop.f32.mrf.mxu3 }
 0x7a4   :  { %3796 = vst.msk [vmem:[#allocation2 + $0x3a0] sm:$0xff] %vm496_vm6, %v3770_v14  ;;  %v12001_v13 = vpop.permute.xlu2 %12000 }
 0x7a5   :  { %3797 = vst.msk [vmem:[#allocation2 + $0x3a8] sm:$0xff] %vm359_vm13, %v3770_v14 }
 0x7a6   :  { %18996 = vst [vmem:[#allocation193_spill] sm:$0xff] %v17129_v43 }
 0x7a7   :  { %3745 = vst.msk [vmem:[#allocation2 + $0x3b0] sm:$0xff] %vm439_vm5, %v3721_v52 }
 0x7a8   :  { %3798 = vst.msk [vmem:[#allocation2 + $0x3b0] sm:$0xff] %vm496_vm6, %v17070_v23  ;;  %v8098_v54 = vpop.f32.mrf.mxu1 }
 0x7aa   :  { %v8127_v14 = vpop.f32.mrf.mxu2  ;;  %v3622_v53 = vpop.permute.xlu1 %3621 }
 0x7ab   :  { %v8128_v52 = vadd.f32 %v8127_v14, %v8098_v54  ;;  %v3620_v43 = vpop.permute.xlu0 %3619  ;;  %v3673_v23 = vsel %vm359_vm13, %v16898_v19, %v3622_v53  ;;  %v8373_v7 = vld [vmem:[#allocation2 + $0x3a0] sm:$0xff]  ;;  %v17162_v19 = vpop.f32.mrf.mxu3  ;;  %v19001_v14 = vrot.slane %v16856_v36, 2  ;;  %v4054_v53 = vpack.c.bf16 %v4046_v63, %v4046_v63 }
 0x7ac   :  { %v3672_v39 = vsel %vm359_vm13, %v16892_v56, %v3620_v43  ;;  %v17156_v9 = vsel %vm368_vm14, %v3673_v23, %v11998_v60  ;;  %19000 = vst [vmem:[#allocation195_spill] sm:$0xff] %v17162_v19  ;;  %v4053_v56 = vpack.c.bf16 %v4045_v42, %v4045_v42  ;;  %v8374_v50 = vld [vmem:[#allocation2 + $0x3a8] sm:$0xff]  ;;  %v8376_v23 = vld [vmem:[#allocation2 + $0x3b8] sm:$0xff]  ;;  %v19021_v19 = vld [vmem:[#allocation35_spill] sm:$0xff] }
 0x7ad   :  { %v17153_v2 = vadd.f32 %v8128_v52, %v7962_v4  ;;  %v3680_v51 = vsel %vm368_vm14, %v3672_v39, %v11997_v10  ;;  %v18604_v18 = vrot.slane %v17156_v9, 1  ;;  %3689 = vst.msk [vmem:[#allocation2 + $0x3e0] sm:$0xff] %vm377_vm15, %v17156_v9  ;;  %v19002_v10 = vrot.slane %v16856_v36, 1 }
 0x7ae   :  { %v3706_v8 = vrot.slane %v3680_v51, 1  ;;  %v3757_v1 = vrot.slane %v3680_v51, 2  ;;  %3688 = vst.msk [vmem:[#allocation2 + $0x3d0] sm:$0xff] %vm377_vm15, %v3680_v51  ;;  %v17188_v51 = vunpack.c.l.bf16 %v4053_v56  ;;  %v3759_v56 = vrot.slane %v17156_v9, 2 }
 0x7af   :  { %18999 = vst [vmem:[#allocation194_spill] sm:$0xff] %v17153_v2  ;;  %v8375_v61 = vld [vmem:[#allocation2 + $0x3b0] sm:$0xff] }
 0x7b0   :  { %v17165_v43 = vpop.f32.mrf.mxu1  ;;  %v17167_v54 = vpack.c.bf16 %v8375_v61, %v8373_v7  ;;  %v3758_v4 = vsel %vm449_vm2, %v19001_v14, %v3757_v1  ;;  %v3709_v60 = vsel %vm394_vm0, %v3706_v8, %v18604_v18  ;;  %v3707_v52 = vsel %vm394_vm0, %v19002_v10, %v3706_v8 }
 0x7b1   :  { %3773 = vrot.lane.b32.xlu2 %v3758_v4, %s12338_s8  ;;  %3724 = vrot.lane.b32.xlu1 %v3709_v60, %s12337_s30  ;;  %v17185_v7 = vpack.c.bf16 %v8376_v23, %v8374_v50  ;;  %v12003_v61 = vunpack.i.h.bf16 %v12001_v13  ;;  %v12002_v14 = vunpack.i.l.bf16 %v12001_v13  ;;  %v17198_v60 = vunpack.c.l.bf16 %v4054_v53  ;;  %v4085_v23 = vpop.permute.xlu2 %4084 }
 0x7b2   :  { %v17183_v39 = vpop.f32.mrf.mxu2  ;;  %3722 = vrot.lane.b32.xlu0 %v3707_v52, %s12337_s30  ;;  %8486 = vmatmul.bf16.gmra.mxu0 %v17167_v54  ;;  %v3626_v36 = vpop.permute.xlu1 %3625  ;;  %v4069_v52 = vsub.f32 %v4045_v42, %v17188_v51  ;;  %v3760_v53 = vsel %vm449_vm2, %v3757_v1, %v3759_v56 }
 0x7b3   :  { %11297 = vmatmul.msk.bf16.vlgmr.msrb.gmra.mxu2 %vm103_vm1, %v11790_v29  ;;  %v3624_v8 = vpop.permute.xlu0 %3623  ;;  %11162 = vmatmul.msk.bf16.gmra.mxu1 %vm359_vm13, %v17185_v7  ;;  %v3675_v4 = vsel %vm359_vm13, %v16945_v37, %v3626_v36  ;;  %v4070_v10 = vsub.f32 %v4046_v63, %v17198_v60 }
 0x7b4   :  { %v3674_v50 = vsel %vm359_vm13, %v16939_v20, %v3624_v8  ;;  %v17202_v13 = vsel %vm368_vm14, %v3675_v4, %v12003_v61  ;;  %v17210_v20 = vpop.f32.mrf.mxu3 }
 0x7b5   :  { %v3682_v29 = vsel %vm368_vm14, %v3674_v50, %v12002_v14  ;;  %3691 = vst.msk [vmem:[#allocation2 + $0x400] sm:$0xff] %vm377_vm15, %v17202_v13  ;;  %v3712_v14 = vrot.slane %v17202_v13, 1 }
 0x7b6   :  { %3690 = vst.msk [vmem:[#allocation2 + $0x3f0] sm:$0xff] %vm377_vm15, %v3682_v29  ;;  %v3710_v4 = vrot.slane %v3682_v29, 1 }
 0x7b7   :  { %19003 = vst [vmem:[#allocation196_spill] sm:$0xff] %v17210_v20 }
 0x7b8   :  { %v8103_v37 = vpop.f32.mrf.mxu1 }
 0x7b9   :  { %4088 = vrot.lane.b32.xlu2 %v4070_v10, %s12335_s22  ;;  %4086 = vrot.lane.b32.xlu1 %v4069_v52, %s12335_s22  ;;  %v4140_v10 = vsel %vm359_vm13, %v16962_v30, %v4085_v23  ;;  %v3713_v30 = vsel %vm394_vm0, %v3710_v4, %v3712_v14 }
 0x7ba   :  { %v8132_v61 = vpop.f32.mrf.mxu2  ;;  %3775 = vrot.lane.b32.xlu0 %v3760_v53, %s12338_s8  ;;  %v12006_v36 = vpop.permute.xlu1 %12005 }
 0x7bb   :  { %v8133_v63 = vadd.f32 %v8132_v61, %v8103_v37  ;;  %v3628_v8 = vpop.permute.xlu0 %3627  ;;  %v12008_v50 = vunpack.i.h.bf16 %v12006_v36  ;;  %v12007_v42 = vunpack.i.l.bf16 %v12006_v36  ;;  %v3761_v36 = vrot.slane %v3682_v29, 2 }
 0x7bc   :  { %v3676_v18 = vsel %vm359_vm13, %v16956_v27, %v3628_v8  ;;  %v11791_v27 = vld [vmem:[%s18561_s1 + $0xe8] sm:$0xff]  ;;  %v17244_v61 = vpop.f32.mrf.mxu3 }
 0x7bd   :  { %v17222_v1 = vadd.f32 %v8133_v63, %v16835_v26  ;;  %v17225_v52 = vsel %vm368_vm14, %v4140_v10, %v12008_v50  ;;  %v3684_v53 = vsel %vm368_vm14, %v3676_v18, %v12007_v42  ;;  %v19006_v26 = vrot.slane %v17156_v9, 1  ;;  %19007 = vst [vmem:[#allocation199_spill] sm:$0xff] %v17244_v61 }
 0x7be   :  { %4156 = vst.msk [vmem:[#allocation2 + $0x420] sm:$0xff] %vm377_vm15, %v17225_v52  ;;  %v12009_v18 = vpack.i.bf16 %v17198_v60, %v17188_v51  ;;  %v3763_v9 = vrot.slane %v17202_v13, 2  ;;  %v3714_v8 = vrot.slane %v3684_v53, 1 }
 0x7bf   :  { %19004 = vst [vmem:[#allocation197_spill] sm:$0xff] %v17222_v1  ;;  %v3711_v23 = vsel %vm394_vm0, %v19006_v26, %v3710_v4  ;;  %v7943_v4 = vadd.f32 %v16996_v38, %v17032_v57  ;;  %v18605_v26 = vrot.slane %v17225_v52, 1 }
 0x7c0   :  { %v17230_v37 = vpop.f32.mrf.mxu1  ;;  %3692 = vst.msk [vmem:[#allocation2 + $0x410] sm:$0xff] %vm377_vm15, %v3684_v53  ;;  %v3715_v42 = vsel %vm394_vm0, %v3712_v14, %v3714_v8  ;;  %v3764_v10 = vsel %vm449_vm2, %v3761_v36, %v3763_v9  ;;  %v11792_v14 = vld [vmem:[%s18561_s1 + $0xf0] sm:$0xff] }
 0x7c1   :  { %19005 = vst [vmem:[#allocation198_spill] sm:$0xff] %v17230_v37  ;;  %3728 = vrot.lane.b32.xlu2 %v3713_v30, %s12337_s30  ;;  %3726 = vrot.lane.b32.xlu1 %v3711_v23, %s12337_s30  ;;  %v7972_v29 = vadd.f32 %v17082_v15, %v7943_v4  ;;  %v11807_v15 = vld [vmem:[%s18560_s5 + $0x40] sm:$0xff]  ;;  %v17295_v4 = vpop.f32.mrf.mxu0 }
 0x7c2   :  { %v17246_v63 = vpop.f32.mrf.mxu2  ;;  %12010 = vrot.lane.b32.xlu0 %v12009_v18, %s12336_s23  ;;  %8752 = vmatmul.bf16.vlgmr.msra.gmra.mxu0 %v17052_v59  ;;  %v3762_v59 = vsel %vm449_vm2, %v3759_v56, %v3761_v36  ;;  %19014 = vst [vmem:[#allocation206_spill] sm:$0xff] %v17295_v4 }
 0x7c3   :  { %19008 = vst [vmem:[#allocation200_spill] sm:$0xff] %v17246_v63  ;;  %11298 = vmatmul.msk.bf16.gmra.mxu2 %vm103_vm1, %v11791_v27  ;;  %11257 = vmatmul.msk.bf16.vlgmr.msrb.gmra.mxu1 %vm359_vm13, %v17062_v12  ;;  %v3765_v27 = vrot.slane %v3684_v53, 2 }
 0x7c4   :  { %v17263_v30 = vpop.f32.mrf.mxu3  ;;  %9269 = vmatpush.bf16.msra.mxu2 %v11807_v15 }
 0x7c5   :  { %19009 = vst [vmem:[#allocation201_spill] sm:$0xff] %v17263_v30  ;;  %v3766_v56 = vsel %vm449_vm2, %v3763_v9, %v3765_v27  ;;  %v18606_v9 = vrot.slane %v17225_v52, 2 }
 0x7c8   :  { %v8108_v50 = vpop.f32.mrf.mxu1 }
 0x7c9   :  { %3730 = vrot.lane.b32.xlu2 %v3715_v42, %s12337_s30  ;;  %3779 = vrot.lane.b32.xlu1 %v3764_v10, %s12338_s8 }
 0x7ca   :  { %v8137_v13 = vpop.f32.mrf.mxu2  ;;  %3777 = vrot.lane.b32.xlu0 %v3762_v59, %s12338_s8  ;;  %v8472_v59 = vpop.f32.mrf.mxu0 }
 0x7cb   :  { %v8138_v12 = vadd.f32 %v8137_v13, %v8108_v50 }
 0x7cc   :  { %v17288_v23 = vpop.f32.mrf.mxu3 }
 0x7cd   :  { %v17265_v38 = vadd.f32 %v8138_v12, %v7972_v29  ;;  %19013 = vst [vmem:[#allocation205_spill] sm:$0xff] %v17288_v23 }
 0x7cf   :  { %19010 = vst [vmem:[#allocation202_spill] sm:$0xff] %v17265_v38 }
 0x7d0   :  { %v17267_v57 = vpop.f32.mrf.mxu1 }
 0x7d1   :  { %19011 = vst [vmem:[#allocation203_spill] sm:$0xff] %v17267_v57  ;;  %3781 = vrot.lane.b32.xlu2 %v3766_v56, %s12338_s8  ;;  %4187 = vrot.lane.b32.xlu1 %v18605_v26, %s12337_s30  ;;  %v11802_v57 = vld [vmem:[%s18560_s5 + $0x18] sm:$0xff] }
 0x7d2   :  { %v17281_v53 = vpop.f32.mrf.mxu2  ;;  %3732 = vrot.lane.b32.xlu0 %v3714_v8, %s12337_s30  ;;  %8757 = vmatmul.bf16.gmra.mxu0 %v17107_v25  ;;  %v8474_v56 = vpop.f32.mrf.mxu0 }
 0x7d3   :  { %19012 = vst [vmem:[#allocation204_spill] sm:$0xff] %v17281_v53  ;;  %11299 = vmatmul.msk.bf16.gmra.mxu2 %vm103_vm1, %v11792_v14  ;;  %11258 = vmatmul.msk.bf16.gmra.mxu1 %vm359_vm13, %v17114_v41  ;;  %v11793_v41 = vld [vmem:[%s18561_s1 + $0xf8] sm:$0xff] }
 0x7d4   :  { %v17305_v42 = vpop.f32.mrf.mxu3 }
 0x7d5   :  { %19017 = vst [vmem:[#allocation209_spill] sm:$0xff] %v17305_v42 }
 0x7d8   :  { %v8113_v18 = vpop.f32.mrf.mxu1 }
 0x7d9   :  { %4238 = vrot.lane.b32.xlu1 %v18606_v9, %s12338_s8 }
 0x7da   :  { %v8142_v36 = vpop.f32.mrf.mxu2  ;;  %3783 = vrot.lane.b32.xlu0 %v3765_v27, %s12338_s8 }
 0x7db   :  { %v8143_v8 = vadd.f32 %v8142_v36, %v8113_v18 }
 0x7dc   :  { %v8616_v29 = vpop.f32.mrf.mxu3 }
 0x7dd   :  { %v17298_v25 = vadd.f32 %v8143_v8, %v17143_v28 }
 0x7df   :  { %19015 = vst [vmem:[#allocation207_spill] sm:$0xff] %v17298_v25 }
 0x7e0   :  { %v17300_v50 = vpop.f32.mrf.mxu1 }
 0x7e1   :  { %19016 = vst [vmem:[#allocation208_spill] sm:$0xff] %v17300_v50 }
 0x7e2   :  { %v17307_v10 = vpop.f32.mrf.mxu2  ;;  %8762 = vmatmul.bf16.gmra.mxu0 %v17167_v54 }
 0x7e3   :  { %19018 = vst [vmem:[#allocation210_spill] sm:$0xff] %v17307_v10  ;;  %11300 = vmatmul.msk.bf16.gmra.mxu2 %vm103_vm1, %v11793_v41  ;;  %11259 = vmatmul.msk.bf16.gmra.mxu1 %vm359_vm13, %v17185_v7 }
 0x7e4   :  { %v8618_v41 = vpop.f32.mrf.mxu3 }
 0x7e8   :  { %v8501_v28 = vpop.f32.mrf.mxu1 }
 0x7e9   :  { %v8502_v13 = vadd.f32 %v8501_v28, %v8472_v59  ;;  %v11815_v59 = vld [vmem:[%s18560_s5 + $0x80] sm:$0xff]  ;;  %v11814_v28 = vld [vmem:[%s18560_s5 + $0x78] sm:$0xff] }
 0x7ea   :  { %v8587_v12 = vpop.f32.mrf.mxu2  ;;  %9118 = vmatpush.bf16.msrb.mxu3 %v11815_v59  ;;  %v11806_v59 = vld [vmem:[%s18560_s5 + $0x38] sm:$0xff] }
 0x7eb   :  { %v8588_v27 = vadd.f32 %v8587_v12, %v8502_v13  ;;  %v11813_v13 = vld [vmem:[%s18560_s5 + $0x70] sm:$0xff]  ;;  %9233 = vmatpush.bf16.msra.mxu1 %v11806_v59  ;;  %v11804_v59 = vld [vmem:[%s18560_s5 + $0x28] sm:$0xff] }
 0x7ed   :  { %v17313_v14 = vadd.f32 %v8616_v29, %v8588_v27  ;;  %v19019_v29 = vld [vmem:[#allocation29_spill] sm:$0xff]  ;;  %v11812_v27 = vld [vmem:[%s18560_s5 + $0x68] sm:$0xff] }
 0x7ee   :  { %9119 = vmatpush.bf16.msrb.mxu3 %v11814_v28 }
 0x7f0   :  { %v8503_v15 = vpop.f32.mrf.mxu1 }
 0x7f1   :  { %v8504_v18 = vadd.f32 %v8503_v15, %v8474_v56  ;;  %v19020_v15 = vld [vmem:[#allocation31_spill] sm:$0xff] }
 0x7f2   :  { %v8589_v36 = vpop.f32.mrf.mxu2  ;;  %9120 = vmatpush.bf16.msrb.mxu3 %v11813_v13 }
 0x7f3   :  { %v8590_v8 = vadd.f32 %v8589_v36, %v8504_v18  ;;  %11395 = vmatmul.msk.bf16.vlgmr.msra.gmra.mxu2 %vm359_vm13, %v17185_v7  ;;  %v12333_v7 = vld [vmem:[%s18557_s3] ss:$0 sm:$0xff] }
 0x7f4   :  { %v17332_v12 = vadd.f32 %v12333_v7, %v19019_v29  ;;  %v17339_v18 = vadd.f32 %v12333_v7, %v19020_v15  ;;  %v11810_v29 = vld [vmem:[%s18560_s5 + $0x58] sm:$0xff]  ;;  %v17367_v61 = vadd.f32 %v12333_v7, %v19021_v19  ;;  %v11808_v19 = vld [vmem:[%s18560_s5 + $0x48] sm:$0xff] }
 0x7f5   :  { %v17317_v26 = vadd.f32 %v8618_v41, %v8590_v8  ;;  %v11811_v41 = vld [vmem:[%s18560_s5 + $0x60] sm:$0xff] }
 0x7f6   :  { %v3943_v56 = vand.u32 2147483647, %v17332_v12  ;;  %9121 = vmatpush.bf16.msrb.mxu3 %v11812_v27  ;;  %v3944_v13 = vand.u32 2147483647, %v17339_v18  ;;  %v11805_v27 = vld [vmem:[%s18560_s5 + $0x30] sm:$0xff]  ;;  %v3936_v38 = vmax.f32 %v17339_v18, 0.0 }
 0x7f7   :  { %9234 = vmatpush.bf16.msra.mxu1 %v11805_v27 }
 0x7f8   :  { %v3951_v28 = vsub.f32 0.0, %v3943_v56  ;;  %v3952_v20 = vsub.f32 0.0, %v3944_v13 }
 0x7fa   :  { %v8592_v36 = vpop.f32.mrf.mxu2  ;;  %9122 = vmatpush.bf16.msrb.mxu3 %v11811_v41  ;;  %v3962_v23 = vmul.f32 1.442695, %v3951_v28  ;;  %v11809_v41 = vld [vmem:[%s18560_s5 + $0x50] sm:$0xff]  ;;  %v3964_v28 = vmul.f32 1.442695, %v3952_v20  ;;  %v11803_v20 = vld [vmem:[%s18560_s5 + $0x20] sm:$0xff] }
 0x7fb   :  { %9235 = vmatpush.bf16.msra.mxu1 %v11804_v59 }
 0x7fc   :  { %12309 = vpow2.f32 %v3962_v23 }
 0x7fd   :  { %12311 = vpow2.f32 %v3964_v28 }
 0x7fe   :  { %9123 = vmatpush.bf16.msrb.mxu3 %v11810_v29 }
 0x7ff   :  { %9236 = vmatpush.bf16.msra.mxu1 %v11803_v20 }
 0x802   :  { %v8594_v25 = vpop.f32.mrf.mxu2  ;;  %9124 = vmatpush.bf16.msrb.mxu3 %v11809_v41 }
 0x803   :  { %9237 = vmatpush.bf16.msra.mxu1 %v11802_v57 }
 0x806   :  { %9125 = vmatpush.bf16.msrb.mxu3 %v11808_v19 }
 0x80b   :  { %v17341_v8 = vpop.permute.xlu2 %3773 }
 0x80c   :  { %3801 = vst.msk [vmem:[#allocation2 + $0x3c8] sm:$0xff] %vm359_vm13, %v17341_v8 }
 0x80e   :  { %v8477_v15 = vpop.f32.mrf.mxu0 }
 0x80f   :  { %v8506_v9 = vpop.f32.mrf.mxu1 }
 0x810   :  { %v8507_v30 = vadd.f32 %v8506_v9, %v8477_v15  ;;  %v19022_v9 = vld [vmem:[#allocation37_spill] sm:$0xff]  ;;  %v3945_v15 = vand.u32 2147483647, %v17367_v61 }
 0x811   :  { %v17370_v13 = vadd.f32 %v12333_v7, %v19022_v9 }
 0x812   :  { %v8593_v42 = vadd.f32 %v8592_v36, %v8507_v30  ;;  %v8621_v30 = vpop.f32.mrf.mxu3  ;;  %v19023_v36 = vld [vmem:[#allocation39_spill] sm:$0xff]  ;;  %v3953_v1 = vsub.f32 0.0, %v3945_v15 }
 0x813   :  { %v17358_v56 = vpop.permute.xlu2 %4088  ;;  %v17373_v29 = vadd.f32 %v12333_v7, %v19023_v36  ;;  %v3946_v23 = vand.u32 2147483647, %v17370_v13  ;;  %v17383_v7 = vpop.eup %12309 }
 0x814   :  { %v8597_v4 = vpop.f32.mrf.mxu2  ;;  %v17390_v44 = vadd.f32 %v8621_v30, %v8593_v42  ;;  %v17396_v19 = vpop.eup %12311  ;;  %v4002_v57 = vmul.f32 -0.5, %v17383_v7 }
 0x815   :  { %v3947_v9 = vand.u32 2147483647, %v17373_v29  ;;  %v3954_v28 = vsub.f32 0.0, %v3946_v23  ;;  %v4008_v42 = vadd.f32 1.0, %v17396_v19 }
 0x816   :  { %v8479_v27 = vpop.f32.mrf.mxu0 }
 0x817   :  { %v8508_v53 = vpop.f32.mrf.mxu1  ;;  %v3968_v50 = vmul.f32 1.442695, %v3954_v28  ;;  %v11799_v28 = vld [vmem:[%s18560_s5] sm:$0xff] }
 0x818   :  { %v8509_v41 = vadd.f32 %v8508_v53, %v8479_v27  ;;  %v3999_v53 = vadd.f32 1.0, %v17383_v7  ;;  %v11801_v27 = vld [vmem:[%s18560_s5 + $0x10] sm:$0xff] }
 0x819   :  { %9238 = vmatpush.bf16.msra.mxu1 %v11801_v27 }
 0x81a   :  { %v8595_v36 = vadd.f32 %v8594_v25, %v8509_v41  ;;  %v3955_v25 = vsub.f32 0.0, %v3947_v9  ;;  %v3966_v41 = vmul.f32 1.442695, %v3953_v1  ;;  %12313 = vlog2.f32 %v3999_v53  ;;  %v11800_v1 = vld [vmem:[%s18560_s5 + $0x8] sm:$0xff] }
 0x81b   :  { %v3729_v59 = vpop.permute.xlu2 %3728  ;;  %v4003_v53 = vadd.f32 1.0, %v4002_v57 }
 0x81c   :  { %3749 = vst.msk [vmem:[#allocation2 + $0x3f0] sm:$0xff] %vm439_vm5, %v3729_v59  ;;  %v8623_v59 = vpop.f32.mrf.mxu3  ;;  %v3970_v63 = vmul.f32 1.442695, %v3955_v25  ;;  %12315 = vpow2.f32 %v3966_v41 }
 0x81d   :  { %12317 = vpow2.f32 %v3968_v50  ;;  %v17409_v9 = vadd.f32 %v8623_v59, %v8595_v36  ;;  %9239 = vmatpush.bf16.msra.mxu1 %v11800_v1  ;;  %v4011_v50 = vmul.f32 -0.5, %v17396_v19  ;;  %v4005_v36 = vand.u32 2147483647, %v17383_v7 }
 0x81e   :  { %12319 = vlog2.f32 %v4008_v42 }
 0x81f   :  { %v8482_v20 = vpop.f32.mrf.mxu0  ;;  %12321 = vpow2.f32 %v3970_v63  ;;  %v4012_v57 = vadd.f32 1.0, %v4011_v50  ;;  %vm17424_vm1 = vcmp.lt.f32.partialorder %v4005_v36, 0.0004427343 }
 0x820   :  { %v8511_v10 = vpop.f32.mrf.mxu1  ;;  %v12314_v27 = vpop.eup %12313 }
 0x821   :  { %v8512_v15 = vadd.f32 %v8511_v10, %v8482_v20  ;;  %v11816_v10 = vld [vmem:[%s18560_s5 + $0x88] sm:$0xff]  ;;  %9240 = vmatpush.bf16.msra.mxu1 %v11799_v28  ;;  %v4013_v36 = vmul.f32 %v17396_v19, %v4012_v57 }
 0x822   :  { %9154 = vmatpush.bf16.msrb.mxu0 %v11816_v10  ;;  %v17418_v59 = vpop.eup %12315 }
 0x823   :  { %v3731_v30 = vpop.permute.xlu2 %3730  ;;  %v3725_v23 = vpop.permute.xlu1 %3724  ;;  %v8598_v37 = vadd.f32 %v8597_v4, %v8512_v15  ;;  %v4020_v57 = vmul.f32 -0.5, %v17418_v59 }
 0x824   :  { %3750 = vst.msk [vmem:[#allocation2 + $0x400] sm:$0xff] %vm439_vm5, %v3731_v30  ;;  %v3723_v2 = vpop.permute.xlu0 %3722  ;;  %v8599_v4 = vpop.f32.mrf.mxu2  ;;  %v4001_v30 = vmul.f32 0.6931472, %v12314_v27 }
 0x825   :  { %3747 = vst.msk [vmem:[#allocation2 + $0x3d0] sm:$0xff] %vm439_vm5, %v3725_v23  ;;  %v8626_v25 = vpop.f32.mrf.mxu3  ;;  %v17420_v42 = vpop.eup %12317  ;;  %v4004_v23 = vmul.f32 %v17383_v7, %v4003_v53  ;;  %v3935_v7 = vmax.f32 %v17332_v12, 0.0 }
 0x826   :  { %3746 = vst.msk [vmem:[#allocation2 + $0x3c0] sm:$0xff] %vm439_vm5, %v3723_v2  ;;  %v12320_v10 = vpop.eup %12319  ;;  %v17433_v27 = vadd.f32 %v8626_v25, %v8598_v37 }
 0x827   :  { %3800 = vst.msk [vmem:[#allocation2 + $0x3c0] sm:$0xff] %vm496_vm6, %v17341_v8  ;;  %v8484_v2 = vpop.f32.mrf.mxu0  ;;  %v17430_v28 = vpop.eup %12321  ;;  %v4007_v53 = vsel %vm17424_vm1, %v4004_v23, %v4001_v30  ;;  %v4010_v50 = vmul.f32 0.6931472, %v12320_v10 }
 0x828   :  { %v8513_v20 = vpop.f32.mrf.mxu1  ;;  %v4035_v37 = vadd.f32 1.0, %v17430_v28  ;;  %v17447_v31 = vadd.f32 %v4007_v53, %v3935_v7 }
 0x829   :  { %v8514_v41 = vadd.f32 %v8513_v20, %v8484_v2  ;;  %v4014_v2 = vand.u32 2147483647, %v17396_v19  ;;  %v4026_v20 = vadd.f32 1.0, %v17420_v42 }
 0x82b   :  { %v3782_v8 = vpop.permute.xlu2 %3781  ;;  %v4087_v15 = vpop.permute.xlu1 %4086  ;;  %v8600_v63 = vadd.f32 %v8599_v4, %v8514_v41  ;;  %v4017_v4 = vadd.f32 1.0, %v17418_v59  ;;  %vm17442_vm4 = vcmp.lt.f32.partialorder %v4014_v2, 0.0004427343  ;;  %v4038_v2 = vmul.f32 -0.5, %v17430_v28 }
 0x82c   :  { %3808 = vst.msk [vmem:[#allocation2 + $0x400] sm:$0xff] %vm496_vm6, %v3782_v8  ;;  %v3776_v1 = vpop.permute.xlu0 %3775  ;;  %v8602_v12 = vpop.f32.mrf.mxu2  ;;  %v4016_v19 = vsel %vm17442_vm4, %v4013_v36, %v4010_v50  ;;  %v4141_v50 = vsel %vm359_vm13, %v17188_v51, %v4087_v15 }
 0x82d   :  { %3809 = vst.msk [vmem:[#allocation2 + $0x408] sm:$0xff] %vm359_vm13, %v3782_v8  ;;  %12323 = vlog2.f32 %v4017_v4  ;;  %v8628_v30 = vpop.f32.mrf.mxu3  ;;  %v4142_v4 = vsel %vm359_vm13, %v17198_v60, %v17358_v56  ;;  %v4029_v60 = vmul.f32 -0.5, %v17420_v42 }
 0x82e   :  { %3802 = vst.msk [vmem:[#allocation2 + $0x3d0] sm:$0xff] %vm496_vm6, %v3776_v1  ;;  %12325 = vlog2.f32 %v4026_v20  ;;  %v17462_v8 = vadd.f32 %v8628_v30, %v8600_v63  ;;  %v4055_v30 = vpack.c.bf16 %v17447_v31, %v17447_v31 }
 0x82f   :  { %3803 = vst.msk [vmem:[#allocation2 + $0x3d8] sm:$0xff] %vm359_vm13, %v3776_v1  ;;  %v8487_v41 = vpop.f32.mrf.mxu0  ;;  %12327 = vlog2.f32 %v4035_v37  ;;  %v17464_v37 = vadd.f32 %v4016_v19, %v3936_v38  ;;  %v4021_v19 = vadd.f32 1.0, %v4020_v57 }
 0x830   :  { %v8516_v25 = vpop.f32.mrf.mxu1  ;;  %19028 = vst [vmem:[#allocation29_spill] sm:$0xff] %v17462_v8 }
 0x831   :  { %v8517_v3 = vadd.f32 %v8516_v25, %v8487_v41  ;;  %v8648_v41 = vld [vmem:[#allocation2 + $0x3c0] sm:$0xff] }
 0x833   :  { %v3727_v23 = vpop.permute.xlu1 %3726  ;;  %v8603_v1 = vadd.f32 %v8602_v12, %v8517_v3  ;;  %v8649_v3 = vld [vmem:[#allocation2 + $0x3c8] sm:$0xff]  ;;  %v12324_v38 = vpop.eup %12323 }
 0x834   :  { %3748 = vst.msk [vmem:[#allocation2 + $0x3e0] sm:$0xff] %vm439_vm5, %v3727_v23  ;;  %v12011_v10 = vpop.permute.xlu0 %12010  ;;  %v8604_v8 = vpop.f32.mrf.mxu2 }
 0x835   :  { %v12013_v7 = vunpack.i.h.bf16 %v12011_v10  ;;  %v12012_v53 = vunpack.i.l.bf16 %v12011_v10  ;;  %v8650_v18 = vld [vmem:[#allocation2 + $0x3d0] sm:$0xff]  ;;  %v4039_v10 = vadd.f32 1.0, %v4038_v2  ;;  %v19030_v2 = vrot.slane %v17225_v52, 1  ;;  %v8631_v0 = vpop.f32.mrf.mxu3 }
 0x836   :  { %v17460_v36 = vpack.c.bf16 %v8650_v18, %v8648_v41  ;;  %v8651_v20 = vld [vmem:[#allocation2 + $0x3d8] sm:$0xff]  ;;  %v19029_v18 = vrot.slane %v17225_v52, 2 }
 0x837   :  { %v17467_v12 = vsel %vm368_vm14, %v4142_v4, %v12013_v7  ;;  %v17470_v25 = vsel %vm368_vm14, %v4141_v50, %v12012_v53  ;;  %v17472_v23 = vpack.c.bf16 %v8651_v20, %v8649_v3  ;;  %v8489_v51 = vpop.f32.mrf.mxu0  ;;  %v12326_v53 = vpop.eup %12325  ;;  %v4056_v20 = vpack.c.bf16 %v17464_v37, %v17464_v37 }
 0x838   :  { %4157 = vst.msk [vmem:[#allocation2 + $0x430] sm:$0xff] %vm377_vm15, %v17470_v25  ;;  %8767 = vmatmul.bf16.gmra.mxu0 %v17460_v36  ;;  %9126 = vmatmul.bf16.vlgmr.msrb.gmra.mxu3 %v17460_v36  ;;  %v4224_v56 = vrot.slane %v17470_v25, 2  ;;  %v4173_v15 = vrot.slane %v17470_v25, 1  ;;  %v18607_v63 = vrot.slane %v17467_v12, 1  ;;  %v8518_v7 = vpop.f32.mrf.mxu1  ;;  %v12328_v3 = vpop.eup %12327  ;;  %v4041_v25 = vand.u32 2147483647, %v17430_v28 }
 0x839   :  { %4158 = vst.msk [vmem:[#allocation2 + $0x440] sm:$0xff] %vm377_vm15, %v17467_v12  ;;  %11260 = vmatmul.msk.bf16.gmra.mxu1 %vm359_vm13, %v17472_v23  ;;  %11396 = vmatmul.msk.bf16.gmra.mxu2 %vm359_vm13, %v17472_v23  ;;  %v8519_v41 = vadd.f32 %v8518_v7, %v8489_v51  ;;  %v4023_v7 = vand.u32 2147483647, %v17418_v59  ;;  %v4040_v21 = vmul.f32 %v17430_v28, %v4039_v10  ;;  %v4028_v28 = vmul.f32 0.6931472, %v12326_v53 }
 0x83a   :  { %v4225_v4 = vsel %vm449_vm2, %v19029_v18, %v4224_v56  ;;  %v4176_v57 = vsel %vm394_vm0, %v4173_v15, %v18607_v63  ;;  %v4174_v50 = vsel %vm394_vm0, %v19030_v2, %v4173_v15  ;;  %v4030_v18 = vadd.f32 1.0, %v4029_v60 }
 0x83b   :  { %4240 = vrot.lane.b32.xlu1 %v4225_v4, %s12338_s8  ;;  %4191 = vrot.lane.b32.xlu0 %v4176_v57, %s12337_s30  ;;  %v3780_v51 = vpop.permute.xlu1 %3779  ;;  %v17505_v63 = vadd.f32 %v8604_v8, %v8519_v41  ;;  %v17509_v15 = vunpack.c.l.bf16 %v4055_v30  ;;  %v4032_v2 = vand.u32 2147483647, %v17420_v42  ;;  %v4022_v4 = vmul.f32 %v17418_v59, %v4021_v19 }
 0x83c   :  { %4189 = vrot.lane.b32.xlu2 %v4174_v50, %s12337_s30  ;;  %3806 = vst.msk [vmem:[#allocation2 + $0x3f0] sm:$0xff] %vm496_vm6, %v3780_v51  ;;  %v3778_v52 = vpop.permute.xlu0 %3777  ;;  %v4037_v57 = vmul.f32 0.6931472, %v12328_v3  ;;  %v17516_v8 = vadd.f32 %v8631_v0, %v8603_v1  ;;  %v17518_v60 = vunpack.c.l.bf16 %v4056_v20  ;;  %v4019_v41 = vmul.f32 0.6931472, %v12324_v38 }
 0x83d   :  { %3807 = vst.msk [vmem:[#allocation2 + $0x3f8] sm:$0xff] %vm359_vm13, %v3780_v51  ;;  %vm17520_vm11 = vcmp.lt.f32.partialorder %v4041_v25, 0.0004427343  ;;  %v4226_v50 = vrot.slane %v17467_v12, 2  ;;  %vm17526_vm3 = vcmp.lt.f32.partialorder %v4023_v7, 0.0004427343  ;;  %v4031_v19 = vmul.f32 %v17420_v42, %v4030_v18 }
 0x83e   :  { %3804 = vst.msk [vmem:[#allocation2 + $0x3e0] sm:$0xff] %vm496_vm6, %v3778_v52  ;;  %v4072_v1 = vsub.f32 %v17464_v37, %v17518_v60  ;;  %vm17533_vm1 = vcmp.lt.f32.partialorder %v4032_v2, 0.0004427343  ;;  %v3939_v10 = vmax.f32 %v17373_v29, 0.0  ;;  %v4071_v20 = vsub.f32 %v17447_v31, %v17509_v15 }
 0x83f   :  { %3805 = vst.msk [vmem:[#allocation2 + $0x3e8] sm:$0xff] %vm359_vm13, %v3778_v52  ;;  %v8753_v0 = vpop.f32.mrf.mxu0  ;;  %v3937_v25 = vmax.f32 %v17367_v61, 0.0  ;;  %v4043_v53 = vsel %vm17520_vm11, %v4040_v21, %v4037_v57  ;;  %v4025_v51 = vsel %vm17526_vm3, %v4022_v4, %v4019_v41  ;;  %v3938_v37 = vmax.f32 %v17370_v13, 0.0 }
 0x840   :  { %v8782_v3 = vpop.f32.mrf.mxu1  ;;  %v4227_v29 = vsel %vm449_vm2, %v4224_v56, %v4226_v50  ;;  %v4034_v61 = vsel %vm17533_vm1, %v4031_v19, %v4028_v28  ;;  %v4051_v52 = vadd.f32 %v4043_v53, %v3939_v10  ;;  %v19037_v10 = vld [vmem:[#allocation3_spill] sm:$0xff] }
 0x841   :  { %v8783_v42 = vadd.f32 %v8782_v3, %v8753_v0  ;;  %v4049_v4 = vadd.f32 %v4025_v51, %v3937_v25  ;;  %v4050_v41 = vadd.f32 %v4034_v61, %v3938_v37  ;;  %v19038_v3 = vrot.slane %v19037_v10, 2 }
 0x843   :  { %4092 = vrot.lane.b32.xlu1 %v4072_v1, %s12335_s22  ;;  %4090 = vrot.lane.b32.xlu0 %v4071_v20, %s12335_s22  ;;  %v4188_v31 = vpop.permute.xlu1 %4187  ;;  %v8996_v7 = vld [vmem:[#allocation2 + $0x3f0] sm:$0xff]  ;;  %v17554_v21 = vadd.f32 %v8783_v42, %v17313_v14  ;;  %v4059_v14 = vpack.c.bf16 %v4051_v52, %v4051_v52  ;;  %v4057_v19 = vpack.c.bf16 %v4049_v4, %v4049_v4 }
 0x844   :  { %4242 = vrot.lane.b32.xlu2 %v4227_v29, %s12338_s8  ;;  %4214 = vst.msk [vmem:[#allocation2 + $0x410] sm:$0x80] %vm437_vm10, %v4188_v31  ;;  %v3733_v13 = vpop.permute.xlu0 %3732  ;;  %v8997_v18 = vld [vmem:[#allocation2 + $0x3f8] sm:$0xff]  ;;  %v12014_v1 = vpack.i.bf16 %v17518_v60, %v17509_v15  ;;  %v4058_v38 = vpack.c.bf16 %v4050_v41, %v4050_v41 }
 0x845   :  { %3751 = vst.msk [vmem:[#allocation2 + $0x410] sm:$0x7f] %vm447_vm7, %v3733_v13  ;;  %v8994_v2 = vld [vmem:[#allocation2 + $0x3e0] sm:$0xff]  ;;  %vm19040_vm7 = vcmask 1048326   ;;  %v17582_v53 = vunpack.c.l.bf16 %v4059_v14  ;;  %v17585_v42 = vunpack.c.l.bf16 %v4057_v19 }
 0x846   :  { %v17559_v56 = vpack.c.bf16 %v8996_v7, %v8994_v2  ;;  %v8995_v57 = vld [vmem:[#allocation2 + $0x3e8] sm:$0xff]  ;;  %v17588_v51 = vunpack.c.l.bf16 %v4058_v38 }
 0x847   :  { %v17561_v30 = vpack.c.bf16 %v8997_v18, %v8995_v57  ;;  %v8755_v59 = vpop.f32.mrf.mxu0  ;;  %v4075_v31 = vsub.f32 %v4051_v52, %v17582_v53  ;;  %v4073_v61 = vsub.f32 %v4049_v4, %v17585_v42  ;;  %v8998_v18 = vld [vmem:[#allocation2 + $0x400] sm:$0xff] }
 0x848   :  { %9131 = vmatmul.bf16.gmra.mxu3 %v17559_v56  ;;  %11355 = vmatmul.msk.bf16.vlgmr.msrb.gmra.mxu0 %vm359_vm13, %v17472_v23  ;;  %v8784_v28 = vpop.f32.mrf.mxu1  ;;  %v19039_v23 = vrot.slane %v19037_v10, 1 }
 0x849   :  { %9241 = vmatmul.bf16.vlgmr.msra.gmra.mxu1 %v17167_v54  ;;  %11397 = vmatmul.msk.bf16.gmra.mxu2 %vm359_vm13, %v17561_v30  ;;  %v8785_v0 = vadd.f32 %v8784_v28, %v8755_v59  ;;  %v12019_v28 = vpack.i.bf16 %v17588_v51, %v17585_v42 }
 0x84b   :  { %465 = vrot.lane.b32.xlu1 %v19038_v3, %s12338_s8  ;;  %410 = vrot.lane.b32.xlu0 %v19039_v23, %s12337_s30  ;;  %v4239_v20 = vpop.permute.xlu1 %4238  ;;  %v17578_v54 = vadd.f32 %v8785_v0, %v17317_v26  ;;  %v4074_v26 = vsub.f32 %v4050_v41, %v17588_v51  ;;  %v8999_v41 = vld [vmem:[#allocation2 + $0x408] sm:$0xff]  ;;  %v11821_v23 = vld [vmem:[%s18560_s5 + $0xb0] sm:$0xff] }
 0x84c   :  { %12015 = vrot.lane.b32.xlu2 %v12014_v1, %s12336_s23  ;;  %4265 = vst.msk [vmem:[#allocation2 + $0x410] sm:$0xc0] %vm19040_vm7, %v4239_v20  ;;  %v3784_v25 = vpop.permute.xlu0 %3783 }
 0x84d   :  { %4266 = vst.msk [vmem:[#allocation2 + $0x418] sm:$0xc0] %vm494_vm12, %v4239_v20 }
 0x84e   :  { %3810 = vst.msk [vmem:[#allocation2 + $0x410] sm:$0x3f] %vm511_vm8, %v3784_v25 }
 0x84f   :  { %3811 = vst.msk [vmem:[#allocation2 + $0x418] sm:$0x3f] %vm513_vm9, %v3784_v25  ;;  %v8758_v37 = vpop.f32.mrf.mxu0  ;;  %v11820_v25 = vld [vmem:[%s18560_s5 + $0xa8] sm:$0xff] }
 0x850   :  { %v8787_v29 = vpop.f32.mrf.mxu1 }
 0x851   :  { %v8788_v7 = vadd.f32 %v8787_v29, %v8758_v37  ;;  %v11819_v37 = vld [vmem:[%s18560_s5 + $0xa0] sm:$0xff]  ;;  %v11818_v29 = vld [vmem:[%s18560_s5 + $0x98] sm:$0xff] }
 0x853   :  { %4098 = vrot.lane.b32.xlu1 %v4075_v31, %s12335_s22  ;;  %4096 = vrot.lane.b32.xlu0 %v4074_v26, %s12335_s22  ;;  %v17597_v13 = vadd.f32 %v8788_v7, %v17390_v44  ;;  %v11825_v31 = vld [vmem:[%s18560_s5 + $0xd0] sm:$0xff] }
 0x854   :  { %4094 = vrot.lane.b32.xlu2 %v4073_v61, %s12335_s22  ;;  %v11817_v7 = vld [vmem:[%s18560_s5 + $0x90] sm:$0xff]  ;;  %9435 = vmatpush.bf16.msra.mxu0 %v11825_v31 }
 0x855   :  { %v9000_v2 = vld [vmem:[#allocation2 + $0x410] sm:$0xff] }
 0x856   :  { %v17600_v57 = vpack.c.bf16 %v9000_v2, %v8998_v18  ;;  %v9001_v59 = vld [vmem:[#allocation2 + $0x418] sm:$0xff] }
 0x857   :  { %v17602_v14 = vpack.c.bf16 %v9001_v59, %v8999_v41  ;;  %v8760_v52 = vpop.f32.mrf.mxu0 }
 0x858   :  { %9136 = vmatmul.bf16.gmra.mxu3 %v17600_v57  ;;  %11356 = vmatmul.msk.bf16.gmra.mxu0 %vm359_vm13, %v17561_v30  ;;  %v8789_v4 = vpop.f32.mrf.mxu1 }
 0x859   :  { %9246 = vmatmul.bf16.gmra.mxu1 %v17460_v36  ;;  %11398 = vmatmul.msk.bf16.gmra.mxu2 %vm359_vm13, %v17602_v14  ;;  %v8790_v44 = vadd.f32 %v8789_v4, %v8760_v52  ;;  %v11823_v36 = vld [vmem:[%s18560_s5 + $0xc0] sm:$0xff]  ;;  %v8633_v52 = vpop.f32.mrf.mxu3 }
 0x85b   :  { %v17613_v19 = vadd.f32 %v8790_v44, %v17409_v9  ;;  %v11824_v9 = vld [vmem:[%s18560_s5 + $0xc8] sm:$0xff] }
 0x85c   :  { %12020 = vrot.lane.b32.xlu2 %v12019_v28, %s12336_s23  ;;  %9399 = vmatpush.bf16.msra.mxu3 %v11824_v9 }
 0x85f   :  { %v8763_v0 = vpop.f32.mrf.mxu0 }
 0x860   :  { %v8792_v1 = vpop.f32.mrf.mxu1  ;;  %9400 = vmatpush.bf16.msra.mxu3 %v11823_v36 }
 0x861   :  { %v8793_v38 = vadd.f32 %v8792_v1, %v8763_v0 }
 0x863   :  { %v17617_v10 = vadd.f32 %v8793_v38, %v17433_v27  ;;  %v11822_v27 = vld [vmem:[%s18560_s5 + $0xb8] sm:$0xff] }
 0x864   :  { %9401 = vmatpush.bf16.msra.mxu3 %v11822_v27 }
 0x867   :  { %v17652_v61 = vpop.f32.mrf.mxu0 }
 0x868   :  { %11357 = vmatmul.msk.bf16.gmra.mxu0 %vm359_vm13, %v17602_v14  ;;  %9402 = vmatpush.bf16.msra.mxu3 %v11821_v23  ;;  %v17654_v41 = vpop.f32.mrf.mxu1 }
 0x869   :  { %9251 = vmatmul.bf16.gmra.mxu1 %v17559_v56 }
 0x86c   :  { %9403 = vmatpush.bf16.msra.mxu3 %v11820_v25 }
 0x870   :  { %9404 = vmatpush.bf16.msra.mxu3 %v11819_v37 }
 0x874   :  { %9405 = vmatpush.bf16.msra.mxu3 %v11818_v29 }
 0x878   :  { %9406 = vmatpush.bf16.msra.mxu3 %v11817_v7 }
 0x879   :  { %9256 = vmatmul.bf16.gmra.mxu1 %v17600_v57 }
 0x896   :  { %v4190_v3 = vpop.permute.xlu2 %4189 }
 0x897   :  { %4215 = vst.msk [vmem:[#allocation2 + $0x420] sm:$0xff] %vm439_vm5, %v4190_v3 }
 0x89e   :  { %v4243_v20 = vpop.permute.xlu2 %4242 }
 0x89f   :  { %4270 = vst.msk [vmem:[#allocation2 + $0x438] sm:$0xff] %vm359_vm13, %v4243_v20 }
 0x8a6   :  { %v12016_v26 = vpop.permute.xlu2 %12015  ;;  %v9031_v27 = vld [vmem:[#allocation2 + $0x438] sm:$0xff] }
 0x8a7   :  { %v12018_v4 = vunpack.i.h.bf16 %v12016_v26  ;;  %v12017_v0 = vunpack.i.l.bf16 %v12016_v26 }
 0x8ad   :  { %v4241_v18 = vpop.permute.xlu1 %4240  ;;  %v4192_v2 = vpop.permute.xlu0 %4191 }
 0x8ae   :  { %4267 = vst.msk [vmem:[#allocation2 + $0x420] sm:$0xff] %vm496_vm6, %v4241_v18  ;;  %v4095_v59 = vpop.permute.xlu2 %4094 }
 0x8af   :  { %4268 = vst.msk [vmem:[#allocation2 + $0x428] sm:$0xff] %vm359_vm13, %v4241_v18 }
 0x8b0   :  { %4216 = vst.msk [vmem:[#allocation2 + $0x430] sm:$0xff] %vm439_vm5, %v4192_v2 }
 0x8b1   :  { %4269 = vst.msk [vmem:[#allocation2 + $0x430] sm:$0xff] %vm496_vm6, %v4243_v20 }
 0x8b5   :  { %v8768_v44 = vpop.f32.mrf.mxu0  ;;  %v4093_v28 = vpop.permute.xlu1 %4092  ;;  %v9028_v29 = vld [vmem:[#allocation2 + $0x420] sm:$0xff] }
 0x8b6   :  { %v8797_v1 = vpop.f32.mrf.mxu1  ;;  %v4144_v38 = vsel %vm359_vm13, %v17518_v60, %v4093_v28  ;;  %v4091_v9 = vpop.permute.xlu0 %4090  ;;  %v9029_v36 = vld [vmem:[#allocation2 + $0x428] sm:$0xff] }
 0x8b7   :  { %v8798_v3 = vadd.f32 %v8797_v1, %v8768_v44  ;;  %v4152_v23 = vsel %vm368_vm14, %v4144_v38, %v12018_v4  ;;  %v4143_v25 = vsel %vm359_vm13, %v17509_v15, %v4091_v9  ;;  %v12021_v37 = vpop.permute.xlu2 %12020  ;;  %v17665_v20 = vpack.c.bf16 %v9031_v27, %v9029_v36 }
 0x8b8   :  { %v4179_v31 = vrot.slane %v4152_v23, 1  ;;  %v4151_v26 = vsel %vm368_vm14, %v4143_v25, %v12017_v0  ;;  %v9030_v7 = vld [vmem:[#allocation2 + $0x430] sm:$0xff]  ;;  %v12022_v44 = vunpack.i.l.bf16 %v12021_v37  ;;  %v4145_v15 = vsel %vm359_vm13, %v17585_v42, %v4095_v59 }
 0x8b9   :  { %v17669_v18 = vadd.f32 %v8798_v3, %v17516_v8  ;;  %v4177_v60 = vrot.slane %v4151_v26, 1  ;;  %v4228_v2 = vrot.slane %v4151_v26, 2  ;;  %4159 = vst.msk [vmem:[#allocation2 + $0x450] sm:$0xff] %vm377_vm15, %v4151_v26  ;;  %11358 = vmatmul.msk.bf16.gmra.mxu0 %vm359_vm13, %v17665_v20  ;;  %v9032_v4 = vpack.c.bf16 %v9030_v7, %v9028_v29 }
 0x8ba   :  { %v4153_v28 = vsel %vm368_vm14, %v4145_v15, %v12022_v44  ;;  %v19041_v1 = vrot.slane %v17467_v12, 1  ;;  %v4230_v29 = vrot.slane %v4152_v23, 2  ;;  %v12023_v44 = vunpack.i.h.bf16 %v12021_v37 }
 0x8bb   :  { %v4229_v0 = vsel %vm449_vm2, %v4226_v50, %v4228_v2  ;;  %v4180_v8 = vsel %vm394_vm0, %v4177_v60, %v4179_v31  ;;  %9141 = vmatmul.bf16.gmra.mxu3 %v9032_v4  ;;  %v9127_v9 = vpop.f32.mrf.mxu3  ;;  %v8634_v50 = vadd.f32 %v8633_v52, %v17505_v63  ;;  %v4181_v25 = vrot.slane %v4153_v28, 1 }
 0x8bc   :  { %v4178_v38 = vsel %vm394_vm0, %v19041_v1, %v4177_v60  ;;  %4244 = vrot.lane.b32.xlu2 %v4229_v0, %s12338_s8  ;;  %4195 = vrot.lane.b32.xlu1 %v4180_v8, %s12337_s30  ;;  %v4231_v7 = vsel %vm449_vm2, %v4228_v2, %v4230_v29  ;;  %v4232_v1 = vrot.slane %v4153_v28, 2 }
 0x8bd   :  { %4193 = vrot.lane.b32.xlu0 %v4178_v38, %s12337_s30  ;;  %v8770_v42 = vpop.f32.mrf.mxu0  ;;  %v466_v59 = vpop.permute.xlu1 %465  ;;  %v4182_v26 = vsel %vm394_vm0, %v4179_v31, %v4181_v25 }
 0x8be   :  { %v8799_v36 = vpop.f32.mrf.mxu1  ;;  %v411_v27 = vpop.permute.xlu0 %410 }
 0x8bf   :  { %v8800_v3 = vadd.f32 %v8799_v36, %v8770_v42 }
 0x8c1   :  { %v17688_v12 = vadd.f32 %v8800_v3, %v8634_v50 }
 0x8c3   :  { %v9129_v52 = vpop.f32.mrf.mxu3 }
 0x8c4   :  { %4197 = vrot.lane.b32.xlu2 %v4182_v26, %s12337_s30  ;;  %4130 = vrot.lane.b32.xlu1 %v17582_v53, %s12336_s23 }
 0x8c5   :  { %4246 = vrot.lane.b32.xlu0 %v4231_v7, %s12338_s8  ;;  %v9156_v60 = vpop.f32.mrf.mxu0  ;;  %v4099_v26 = vpop.permute.xlu1 %4098 }
 0x8c6   :  { %v17696_v15 = vadd.f32 %v9156_v60, %v9127_v9  ;;  %v4097_v63 = vpop.permute.xlu0 %4096  ;;  %v4233_v9 = vsel %vm449_vm2, %v4230_v29, %v4232_v1 }
 0x8c7   :  { %v4146_v23 = vsel %vm359_vm13, %v17588_v51, %v4097_v63 }
 0x8c8   :  { %v17701_v31 = vsel %vm368_vm14, %v4146_v23, %v12023_v44 }
 0x8c9   :  { %v4183_v0 = vrot.slane %v17701_v31, 1  ;;  %11453 = vmatmul.msk.bf16.vlgmr.msra.gmra.mxu0 %vm359_vm13, %v17561_v30  ;;  %v4234_v51 = vrot.slane %v17701_v31, 2 }
 0x8cb   :  { %v4184_v2 = vsel %vm394_vm0, %v4181_v25, %v4183_v0  ;;  %9407 = vmatmul.bf16.vlgmr.msra.gmra.mxu3 %v17559_v56  ;;  %v9132_v38 = vpop.f32.mrf.mxu3  ;;  %v4235_v30 = vsel %vm449_vm2, %v4232_v1, %v4234_v51 }
 0x8cd   :  { %4199 = vrot.lane.b32.xlu0 %v4184_v2, %s12337_s30  ;;  %v9158_v37 = vpop.f32.mrf.mxu0 }
 0x8ce   :  { %v17709_v8 = vadd.f32 %v9158_v37, %v9129_v52 }
 0x8d3   :  { %v9134_v56 = vpop.f32.mrf.mxu3 }
 0x8d5   :  { %4248 = vrot.lane.b32.xlu0 %v4233_v9, %s12338_s8  ;;  %v9161_v42 = vpop.f32.mrf.mxu0 }
 0x8d6   :  { %v17715_v59 = vadd.f32 %v9161_v42, %v9132_v38  ;;  %v19042_v42 = vld [vmem:[#allocation34_spill] sm:$0xff] }
 0x8d9   :  { %11454 = vmatmul.msk.bf16.gmra.mxu0 %vm359_vm13, %v17602_v14 }
 0x8db   :  { %9412 = vmatmul.bf16.gmra.mxu3 %v17600_v57  ;;  %v9137_v27 = vpop.f32.mrf.mxu3 }
 0x8dd   :  { %v9163_v36 = vpop.f32.mrf.mxu0 }
 0x8de   :  { %v17720_v28 = vadd.f32 %v9163_v36, %v9134_v56  ;;  %v19043_v56 = vld [vmem:[#allocation33_spill] sm:$0xff] }
 0x8df   :  { %v4573_v36 = vadd.f32 %v19043_v56, %v19042_v42  ;;  %v19049_v42 = vld [vmem:[#allocation41_spill] sm:$0xff]  ;;  %v19050_v56 = vld [vmem:[#allocation40_spill] sm:$0xff] }
 0x8e3   :  { %v17732_v60 = vpop.f32.mrf.mxu3 }
 0x8e5   :  { %v9166_v50 = vpop.f32.mrf.mxu0 }
 0x8e6   :  { %v17722_v3 = vadd.f32 %v9166_v50, %v9137_v27  ;;  %v19044_v27 = vld [vmem:[#allocation43_spill] sm:$0xff]  ;;  %v19045_v50 = vld [vmem:[#allocation44_spill] sm:$0xff] }
 0x8e9   :  { %11455 = vmatmul.msk.bf16.gmra.mxu0 %vm359_vm13, %v17665_v20  ;;  %v4147_v20 = vsel %vm359_vm13, %v17582_v53, %v4099_v26 }
 0x8eb   :  { %9417 = vmatmul.bf16.gmra.mxu3 %v9032_v4 }
 0x8ed   :  { %v17730_v57 = vpop.f32.mrf.mxu0 }
 0x916   :  { %v4245_v25 = vpop.permute.xlu2 %4244 }
 0x917   :  { %4272 = vst.msk [vmem:[#allocation2 + $0x448] sm:$0xff] %vm359_vm13, %v4245_v25 }
 0x91e   :  { %v4198_v29 = vpop.permute.xlu2 %4197 }
 0x91f   :  { %v9304_v29 = vld [vmem:[#allocation2 + $0x448] sm:$0xff] }
 0x92e   :  { %v4196_v14 = vpop.permute.xlu1 %4195 }
 0x92f   :  { %v4194_v7 = vpop.permute.xlu0 %4193  ;;  %4218 = vst.msk [vmem:[#allocation2 + $0x450] sm:$0xff] %vm439_vm5, %v4196_v14 }
 0x930   :  { %4217 = vst.msk [vmem:[#allocation2 + $0x440] sm:$0xff] %vm439_vm5, %v4194_v7  ;;  %v19046_v7 = vld [vmem:[#allocation45_spill] sm:$0xff] }
 0x931   :  { %4271 = vst.msk [vmem:[#allocation2 + $0x440] sm:$0xff] %vm496_vm6, %v4245_v25  ;;  %v4583_v25 = vadd.f32 %v19045_v50, %v19044_v27  ;;  %v5234_v27 = vadd.f32 %v14594_v5, %v14603_v49  ;;  %v19054_v50 = vld [vmem:[#allocation50_spill] sm:$0xff]  ;;  %v19059_v5 = vld [vmem:[#allocation60_spill] sm:$0xff] }
 0x936   :  { %v4131_v4 = vpop.permute.xlu1 %4130  ;;  %v17742_v2 = vpop.f32.mrf.mxu0 }
 0x937   :  { %v4247_v44 = vpop.permute.xlu0 %4246  ;;  %v4155_v63 = vsel %vm368_vm14, %v4147_v20, %v4131_v4  ;;  %v4659_v20 = vadd.f32 %v19046_v7, %v4573_v36  ;;  %v4669_v4 = vadd.f32 %v13966_v55, %v4583_v25  ;;  %v17781_v7 = vpop.f32.mrf.mxu2 }
 0x938   :  { %4273 = vst.msk [vmem:[#allocation2 + $0x450] sm:$0xff] %vm496_vm6, %v4247_v44  ;;  %v4185_v52 = vrot.slane %v4155_v63, 1  ;;  %v4236_v23 = vrot.slane %v4155_v63, 2  ;;  %v9303_v1 = vld [vmem:[#allocation2 + $0x440] sm:$0xff] }
 0x939   :  { %4274 = vst.msk [vmem:[#allocation2 + $0x458] sm:$0xff] %vm359_vm13, %v4247_v44  ;;  %v19047_v44 = vld [vmem:[#allocation51_spill] sm:$0xff]  ;;  %v4698_v55 = vadd.f32 %v13975_v58, %v4669_v4  ;;  %v19053_v58 = vld [vmem:[#allocation53_spill] sm:$0xff]  ;;  %v5320_v4 = vadd.f32 %v14592_v16, %v5234_v27  ;;  %v19063_v16 = vld [vmem:[#allocation68_spill] sm:$0xff] }
 0x93a   :  { %4203 = vrot.lane.b32.xlu2 %v4185_v52, %s12337_s30  ;;  %4254 = vrot.lane.b32.xlu0 %v4236_v23, %s12338_s8  ;;  %v4186_v31 = vsel %vm394_vm0, %v4183_v0, %v4185_v52  ;;  %v4237_v14 = vsel %vm449_vm2, %v4234_v51, %v4236_v23  ;;  %v4855_v63 = vadd.f32 %v19047_v44, %v13938_v17  ;;  %v19048_v23 = vld [vmem:[#allocation46_spill] sm:$0xff]  ;;  %v19051_v17 = vld [vmem:[#allocation49_spill] sm:$0xff] }
 0x93b   :  { %4201 = vrot.lane.b32.xlu1 %v4186_v31, %s12337_s30  ;;  %v4865_v52 = vadd.f32 %v14102_v34, %v14104_v22  ;;  %v4688_v31 = vadd.f32 %v19048_v23, %v4659_v20  ;;  %v19052_v22 = vld [vmem:[#allocation52_spill] sm:$0xff]  ;;  %v4860_v36 = vadd.f32 %v19053_v58, %v14021_v33  ;;  %v19057_v44 = vld [vmem:[#allocation54_spill] sm:$0xff]  ;;  %v19061_v23 = vld [vmem:[#allocation71_spill] sm:$0xff] }
 0x93c   :  { %v19058_v33 = vld [vmem:[#allocation56_spill] sm:$0xff]  ;;  %v19070_v58 = vld [vmem:[#allocation70_spill] sm:$0xff] }
 0x93d   :  { %v4870_v49 = vadd.f32 %v19059_v5, %v19058_v33 }
 0x93e   :  { %v17745_v53 = vpop.f32.mrf.mxu3  ;;  %v9173_v51 = vpop.f32.mrf.mxu0 }
 0x93f   :  { %v4200_v37 = vpop.permute.xlu0 %4199  ;;  %v9305_v38 = vld [vmem:[#allocation2 + $0x450] sm:$0xff] }
 0x940   :  { %v9313_v9 = vpack.c.bf16 %v9305_v38, %v9303_v1  ;;  %v9306_v26 = vld [vmem:[#allocation2 + $0x458] sm:$0xff] }
 0x941   :  { %v9314_v0 = vpack.c.bf16 %v9306_v26, %v9304_v29  ;;  %v19055_v29 = vld [vmem:[#allocation47_spill] sm:$0xff]  ;;  %v19056_v26 = vld [vmem:[#allocation48_spill] sm:$0xff] }
 0x942   :  { %9422 = vmatmul.bf16.gmra.mxu3 %v9313_v9  ;;  %4252 = vrot.lane.b32.xlu2 %v4237_v14, %s12338_s8  ;;  %v4877_v9 = vadd.f32 %v4865_v52, %v4698_v55  ;;  %v19060_v52 = vld [vmem:[#allocation59_spill] sm:$0xff] }
 0x943   :  { %4892 = vrot.lane.b32.xlu0 %v14018_v11, %s12335_s22  ;;  %11456 = vmatmul.msk.bf16.gmra.mxu0 %vm359_vm13, %v9314_v0  ;;  %v4873_v11 = vadd.f32 %v4855_v63, %v4688_v31  ;;  %v4588_v0 = vadd.f32 %v19056_v26, %v19055_v29  ;;  %v5515_v63 = vadd.f32 %v14832_v62, %v14834_v40  ;;  %v19062_v31 = vld [vmem:[#allocation69_spill] sm:$0xff]  ;;  %v19066_v40 = vld [vmem:[#allocation74_spill] sm:$0xff]  ;;  %v19072_v29 = vld [vmem:[#allocation95_spill] sm:$0xff] }
 0x944   :  { %4250 = vrot.lane.b32.xlu1 %v4235_v30, %s12338_s8  ;;  %v4578_v30 = vadd.f32 %v19050_v56, %v19049_v42  ;;  %v5229_v55 = vadd.f32 %v19063_v16, %v19062_v31  ;;  %v19065_v42 = vld [vmem:[#allocation55_spill] sm:$0xff]  ;;  %v5510_v62 = vadd.f32 %v14767_v24, %v14776_v32  ;;  %v19067_v56 = vld [vmem:[#allocation73_spill] sm:$0xff]  ;;  %v19075_v24 = vld [vmem:[#allocation86_spill] sm:$0xff] }
 0x945   :  { %v4674_v20 = vadd.f32 %v14427_v45, %v4588_v0  ;;  %v5349_v45 = vadd.f32 %v19061_v23, %v5320_v4  ;;  %v19073_v0 = vld [vmem:[#allocation88_spill] sm:$0xff]  ;;  %v19076_v32 = vld [vmem:[#allocation85_spill] sm:$0xff]  ;;  %v19077_v4 = vld [vmem:[#allocation110_spill] sm:$0xff] }
 0x946   :  { %v9144_v37 = vpop.f32.mrf.mxu3  ;;  %v4664_v34 = vadd.f32 %v19051_v17, %v4578_v30  ;;  %v5239_v30 = vadd.f32 %v19067_v56, %v19066_v40  ;;  %v19068_v17 = vld [vmem:[#allocation96_spill] sm:$0xff]  ;;  %v19081_v23 = vld [vmem:[#allocation78_spill] sm:$0xff]  ;;  %v19087_v40 = vld [vmem:[#allocation99_spill] sm:$0xff] }
 0x947   :  { %v4249_v1 = vpop.permute.xlu0 %4248  ;;  %v17765_v38 = vadd.f32 %v9173_v51, %v9144_v37  ;;  %v4703_v51 = vadd.f32 %v19060_v52, %v4674_v20  ;;  %v5520_v20 = vadd.f32 %v19076_v32, %v19075_v24  ;;  %v19080_v52 = vld [vmem:[#allocation98_spill] sm:$0xff]  ;;  %v19088_v56 = vld [vmem:[#allocation101_spill] sm:$0xff] }
 0x948   :  { %v4693_v25 = vadd.f32 %v19054_v50, %v4664_v34  ;;  %v5530_v1 = vadd.f32 %v5515_v63, %v5349_v45  ;;  %v19069_v34 = vld [vmem:[#allocation97_spill] sm:$0xff]  ;;  %v19071_v50 = vld [vmem:[#allocation72_spill] sm:$0xff] }
 0x949   :  { %v4879_v37 = vadd.f32 %v4870_v49, %v4703_v51  ;;  %v19079_v49 = vld [vmem:[#allocation75_spill] sm:$0xff]  ;;  %v19082_v45 = vld [vmem:[#allocation76_spill] sm:$0xff]  ;;  %v19095_v24 = vld [vmem:[#allocation109_spill] sm:$0xff] }
 0x94a   :  { %4890 = vrot.lane.b32.xlu2 %v4873_v11, %s12335_s22  ;;  %v4875_v14 = vadd.f32 %v4860_v36, %v4693_v25  ;;  %v5325_v25 = vadd.f32 %v19071_v50, %v5239_v30  ;;  %v5244_v31 = vadd.f32 %v19082_v45, %v19081_v23  ;;  %v5889_v30 = vadd.f32 %v19088_v56, %v19087_v40  ;;  %v19096_v32 = vld [vmem:[#allocation113_spill] sm:$0xff]  ;;  %v19102_v45 = vld [vmem:[#allocation103_spill] sm:$0xff]  ;;  %v19107_v40 = vld [vmem:[#allocation124_spill] sm:$0xff] }
 0x94b   :  { %4898 = vrot.lane.b32.xlu0 %v4877_v9, %s12335_s22  ;;  %v17801_v9 = vpop.f32.mrf.mxu2 }
 0x94c   :  { %4888 = vrot.lane.b32.xlu1 %v19052_v22, %s12335_s22  ;;  %v5884_v22 = vadd.f32 %v19069_v34, %v19068_v17  ;;  %v5354_v63 = vadd.f32 %v19079_v49, %v5325_v25  ;;  %v19089_v17 = vld [vmem:[#allocation107_spill] sm:$0xff]  ;;  %v19090_v34 = vld [vmem:[#allocation108_spill] sm:$0xff] }
 0x94d   :  { %v19092_v25 = vld [vmem:[#allocation100_spill] sm:$0xff] }
 0x94e   :  { %v5970_v26 = vadd.f32 %v19072_v29, %v5884_v22  ;;  %v5532_v16 = vadd.f32 %v5520_v20, %v5354_v63  ;;  %v5899_v22 = vadd.f32 %v19090_v34, %v19089_v17  ;;  %v5975_v29 = vadd.f32 %v19092_v25, %v5889_v30  ;;  %v19097_v20 = vld [vmem:[#allocation114_spill] sm:$0xff]  ;;  %v19108_v30 = vld [vmem:[#allocation131_spill] sm:$0xff]  ;;  %v19109_v17 = vld [vmem:[#allocation133_spill] sm:$0xff] }
 0x94f   :  { %v19100_v63 = vld [vmem:[#allocation102_spill] sm:$0xff]  ;;  %v6539_v34 = vadd.f32 %v19109_v17, %v19108_v30  ;;  %v19128_v17 = vld [vmem:[#allocation145_spill] sm:$0xff] }
 0x950   :  { %v5999_v51 = vadd.f32 %v19080_v52, %v5970_v26  ;;  %v19093_v26 = vld [vmem:[#allocation116_spill] sm:$0xff]  ;;  %v6004_v52 = vadd.f32 %v19100_v63, %v5975_v29  ;;  %v19127_v30 = vld [vmem:[#allocation146_spill] sm:$0xff] }
 0x951   :  { %v19119_v63 = vld [vmem:[#allocation152_spill] sm:$0xff] }
 0x952   :  { %4896 = vrot.lane.b32.xlu2 %v19057_v44, %s12335_s22  ;;  %v19078_v44 = vld [vmem:[#allocation111_spill] sm:$0xff] }
 0x953   :  { %5543 = vrot.lane.b32.xlu0 %v14745_v6, %s12335_s22  ;;  %v19064_v6 = vld [vmem:[#allocation67_spill] sm:$0xff]  ;;  %v6165_v33 = vadd.f32 %v19078_v44, %v19077_v4  ;;  %v17823_v5 = vpop.f32.mrf.mxu2  ;;  %v6170_v4 = vadd.f32 %v19097_v20, %v19096_v32  ;;  %v19098_v44 = vld [vmem:[#allocation129_spill] sm:$0xff]  ;;  %v19115_v32 = vld [vmem:[#allocation144_spill] sm:$0xff] }
 0x954   :  { %4894 = vrot.lane.b32.xlu1 %v4875_v14, %s12335_s22  ;;  %v5315_v11 = vadd.f32 %v19064_v6, %v5229_v55  ;;  %v19074_v14 = vld [vmem:[#allocation81_spill] sm:$0xff]  ;;  %v19084_v6 = vld [vmem:[#allocation84_spill] sm:$0xff] }
 0x955   :  { %v6183_v55 = vadd.f32 %v6165_v33, %v5999_v51  ;;  %v19099_v33 = vld [vmem:[#allocation130_spill] sm:$0xff]  ;;  %v19116_v20 = vld [vmem:[#allocation128_spill] sm:$0xff] }
 0x956   :  { %v5344_v36 = vadd.f32 %v19070_v58, %v5315_v11  ;;  %v19085_v11 = vld [vmem:[#allocation92_spill] sm:$0xff]  ;;  %v19091_v58 = vld [vmem:[#allocation90_spill] sm:$0xff]  ;;  %v6180_v49 = vadd.f32 %v19099_v33, %v19098_v44  ;;  %v19117_v44 = vld [vmem:[#allocation143_spill] sm:$0xff] }
 0x957   :  { %v19101_v51 = vld [vmem:[#allocation126_spill] sm:$0xff]  ;;  %v19118_v33 = vld [vmem:[#allocation141_spill] sm:$0xff] }
 0x958   :  { %v5528_v27 = vadd.f32 %v5510_v62, %v5344_v36 }
 0x95a   :  { %4902 = vrot.lane.b32.xlu2 %v4879_v37, %s12335_s22  ;;  %v19083_v37 = vld [vmem:[#allocation77_spill] sm:$0xff] }
 0x95b   :  { %5549 = vrot.lane.b32.xlu0 %v5530_v1, %s12335_s22  ;;  %v5330_v1 = vadd.f32 %v19083_v37, %v5244_v31  ;;  %v19103_v31 = vld [vmem:[#allocation105_spill] sm:$0xff] }
 0x95c   :  { %4900 = vrot.lane.b32.xlu1 %v19065_v42, %s12335_s22  ;;  %v19086_v42 = vld [vmem:[#allocation91_spill] sm:$0xff] }
 0x95d   :  { %v5525_v62 = vadd.f32 %v19086_v42, %v19085_v11  ;;  %v5359_v36 = vadd.f32 %v19091_v58, %v5330_v1  ;;  %v19105_v42 = vld [vmem:[#allocation112_spill] sm:$0xff] }
 0x95e   :  { %v19111_v58 = vld [vmem:[#allocation16_spill] sm:$0xff] }
 0x95f   :  { %v5534_v50 = vadd.f32 %v5525_v62, %v5359_v36  ;;  %v19106_v62 = vld [vmem:[#allocation123_spill] sm:$0xff] }
 0x960   :  { %v6175_v56 = vadd.f32 %v19107_v40, %v19106_v62  ;;  %v19125_v62 = vld [vmem:[#allocation137_spill] sm:$0xff] }
 0x962   :  { %5547 = vrot.lane.b32.xlu2 %v19074_v14, %s12335_s22  ;;  %v19094_v14 = vld [vmem:[#allocation115_spill] sm:$0xff] }
 0x963   :  { %5555 = vrot.lane.b32.xlu0 %v19073_v0, %s12335_s22  ;;  %v5985_v0 = vadd.f32 %v19093_v26, %v5899_v22  ;;  %v19110_v22 = vld [vmem:[#allocation19_spill] sm:$0xff]  ;;  %v19113_v26 = vld [vmem:[#allocation134_spill] sm:$0xff] }
 0x964   :  { %5545 = vrot.lane.b32.xlu1 %v5528_v27, %s12335_s22  ;;  %v17841_v27 = vpop.f32.mrf.mxu2  ;;  %v6549_v36 = vadd.f32 %v19111_v58, %v19110_v22  ;;  %v19129_v58 = vld [vmem:[#allocation140_spill] sm:$0xff] }
 0x965   :  { %v6014_v23 = vadd.f32 %v19101_v51, %v5985_v0  ;;  %v6625_v0 = vadd.f32 %v19113_v26, %v6539_v34  ;;  %v6825_v34 = vadd.f32 %v19128_v17, %v19127_v30  ;;  %v19144_v30 = vld [vmem:[#allocation160_spill] sm:$0xff] }
 0x967   :  { %v6189_v37 = vadd.f32 %v6180_v49, %v6014_v23  ;;  %v6820_v49 = vadd.f32 %v19118_v33, %v19117_v44  ;;  %v19121_v23 = vld [vmem:[#allocation132_spill] sm:$0xff]  ;;  %v19135_v44 = vld [vmem:[#allocation18_spill] sm:$0xff] }
 0x96a   :  { %5553 = vrot.lane.b32.xlu2 %v5532_v16, %s12335_s22  ;;  %v5894_v16 = vadd.f32 %v19103_v31, %v19102_v45  ;;  %v6654_v45 = vadd.f32 %v19121_v23, %v6625_v0  ;;  %v19122_v31 = vld [vmem:[#allocation9_spill] sm:$0xff]  ;;  %v19133_v0 = vld [vmem:[#allocation138_spill] sm:$0xff] }
 0x96b   :  { %6200 = vrot.lane.b32.xlu0 %v6183_v55, %s12335_s22  ;;  %v6185_v55 = vadd.f32 %v6170_v4, %v6004_v52  ;;  %v19120_v52 = vld [vmem:[#allocation13_spill] sm:$0xff]  ;;  %v19139_v23 = vld [vmem:[#allocation170_spill] sm:$0xff] }
 0x96c   :  { %5551 = vrot.lane.b32.xlu1 %v19084_v6, %s12335_s22  ;;  %v17858_v1 = vpop.f32.mrf.mxu2  ;;  %v19104_v6 = vld [vmem:[#allocation104_spill] sm:$0xff]  ;;  %v6830_v51 = vadd.f32 %v19120_v52, %v19119_v63  ;;  %v19138_v52 = vld [vmem:[#allocation154_spill] sm:$0xff] }
 0x96d   :  { %v5980_v11 = vadd.f32 %v19104_v6, %v5894_v16  ;;  %v19137_v63 = vld [vmem:[#allocation156_spill] sm:$0xff] }
 0x972   :  { %6198 = vrot.lane.b32.xlu2 %v19095_v24, %s12335_s22 }
 0x973   :  { %6206 = vrot.lane.b32.xlu0 %v19094_v14, %s12335_s22  ;;  %v19114_v14 = vld [vmem:[#allocation148_spill] sm:$0xff] }
 0x974   :  { %5557 = vrot.lane.b32.xlu1 %v5534_v50, %s12335_s22  ;;  %v19112_v50 = vld [vmem:[#allocation106_spill] sm:$0xff]  ;;  %v6635_v24 = vadd.f32 %v19114_v14, %v6549_v36  ;;  %v17878_v4 = vpop.f32.mrf.mxu2  ;;  %v19130_v36 = vld [vmem:[#allocation139_spill] sm:$0xff] }
 0x975   :  { %v6009_v25 = vadd.f32 %v19112_v50, %v5980_v11  ;;  %v6838_v11 = vadd.f32 %v6820_v49, %v6654_v45  ;;  %v6554_v50 = vadd.f32 %v19130_v36, %v19129_v58  ;;  %v19136_v49 = vld [vmem:[#allocation147_spill] sm:$0xff]  ;;  %v7480_v45 = vadd.f32 %v19139_v23, %v16493_v35  ;;  %v19145_v35 = vld [vmem:[#allocation153_spill] sm:$0xff] }
 0x976   :  { %v6664_v16 = vadd.f32 %v19122_v31, %v6635_v24  ;;  %v19146_v36 = vld [vmem:[#allocation167_spill] sm:$0xff] }
 0x977   :  { %v6187_v29 = vadd.f32 %v6175_v56, %v6009_v25  ;;  %v19126_v56 = vld [vmem:[#allocation142_spill] sm:$0xff] }
 0x978   :  { %v19131_v25 = vld [vmem:[#allocation22_spill] sm:$0xff] }
 0x97a   :  { %6204 = vrot.lane.b32.xlu2 %v6185_v55, %s12335_s22  ;;  %v19123_v55 = vld [vmem:[#allocation135_spill] sm:$0xff] }
 0x97b   :  { %6212 = vrot.lane.b32.xlu0 %v6189_v37, %s12335_s22  ;;  %v19124_v37 = vld [vmem:[#allocation136_spill] sm:$0xff] }
 0x97c   :  { %6202 = vrot.lane.b32.xlu1 %v19105_v42, %s12335_s22  ;;  %v6544_v6 = vadd.f32 %v19124_v37, %v19123_v55  ;;  %v6842_v42 = vadd.f32 %v6830_v51, %v6664_v16  ;;  %v17896_v22 = vpop.f32.mrf.mxu2  ;;  %v6835_v51 = vadd.f32 %v19138_v52, %v19137_v63  ;;  %v19140_v16 = vld [vmem:[#allocation155_spill] sm:$0xff]  ;;  %v19141_v37 = vld [vmem:[#allocation4_spill] sm:$0xff]  ;;  %v17938_v52 = vpop.f32.mrf.mxu0 }
 0x97e   :  { %v6630_v40 = vadd.f32 %v19125_v62, %v6544_v6 }
 0x980   :  { %v6659_v14 = vadd.f32 %v19133_v0, %v6630_v40 }
 0x982   :  { %6210 = vrot.lane.b32.xlu2 %v19116_v20, %s12335_s22  ;;  %v6840_v24 = vadd.f32 %v6825_v34, %v6659_v14  ;;  %v17925_v34 = vpop.f32.mrf.mxu1  ;;  %v19150_v14 = vld [vmem:[#allocation17_spill] sm:$0xff] }
 0x983   :  { %6857 = vrot.lane.b32.xlu0 %v19115_v32, %s12335_s22  ;;  %v19134_v32 = vld [vmem:[#allocation149_spill] sm:$0xff] }
 0x984   :  { %6208 = vrot.lane.b32.xlu1 %v6187_v29, %s12335_s22  ;;  %v19132_v29 = vld [vmem:[#allocation26_spill] sm:$0xff]  ;;  %v6640_v20 = vadd.f32 %v19134_v32, %v6554_v50  ;;  %v19147_v50 = vld [vmem:[#allocation168_spill] sm:$0xff] }
 0x985   :  { %v7199_v26 = vadd.f32 %v19132_v29, %v19131_v25  ;;  %v7475_v25 = vadd.f32 %v19147_v50, %v19146_v36  ;;  %v19148_v29 = vld [vmem:[#allocation5_spill] sm:$0xff] }
 0x986   :  { %v6669_v55 = vadd.f32 %v19140_v16, %v6640_v20  ;;  %v19152_v20 = vld [vmem:[#allocation162_spill] sm:$0xff]  ;;  %v19155_v16 = vld [vmem:[#allocation12_spill] sm:$0xff] }
 0x987   :  { %v7285_v33 = vadd.f32 %v19135_v44, %v7199_v26  ;;  %v19149_v26 = vld [vmem:[#allocation6_spill] sm:$0xff] }
 0x988   :  { %v6844_v40 = vadd.f32 %v6835_v51, %v6669_v55  ;;  %v7204_v0 = vadd.f32 %v19149_v26, %v19148_v29  ;;  %v19153_v51 = vld [vmem:[#allocation163_spill] sm:$0xff]  ;;  %v19156_v55 = vld [vmem:[#allocation169_spill] sm:$0xff]  ;;  %v19163_v26 = vld [vmem:[#allocation166_spill] sm:$0xff] }
 0x989   :  { %v7314_v6 = vadd.f32 %v19141_v37, %v7285_v33  ;;  %v17934_v33 = vpop.f32.mrf.mxu3  ;;  %v17949_v37 = vld [vmem:[%s18562_s6] ss:$0 sm:$0xff]  ;;  %v19162_v29 = vld [vmem:[#allocation165_spill] sm:$0xff] }
 0x98a   :  { %6855 = vrot.lane.b32.xlu2 %v6838_v11, %s12335_s22  ;;  %v19142_v11 = vld [vmem:[#allocation159_spill] sm:$0xff]  ;;  %v7290_v23 = vadd.f32 %v19153_v51, %v7204_v0  ;;  %v17960_v50 = vpop.f32.mrf.mxu1  ;;  %v7209_v0 = vadd.f32 %v19163_v26, %v19162_v29  ;;  %v19173_v26 = vld [vmem:[#allocation188_spill] sm:$0xff] }
 0x98b   :  { %6863 = vrot.lane.b32.xlu0 %v6842_v42, %s12335_s22  ;;  %v19143_v42 = vld [vmem:[#allocation161_spill] sm:$0xff] }
 0x98c   :  { %6853 = vrot.lane.b32.xlu1 %v19126_v56, %s12335_s22  ;;  %v7194_v62 = vadd.f32 %v19143_v42, %v19142_v11  ;;  %v7495_v56 = vadd.f32 %v7480_v45, %v7314_v6  ;;  %v19154_v45 = vld [vmem:[#allocation183_spill] sm:$0xff]  ;;  %v19157_v6 = vld [vmem:[#allocation178_spill] sm:$0xff] }
 0x98d   :  { %v19158_v11 = vld [vmem:[#allocation179_spill] sm:$0xff] }
 0x98e   :  { %v7280_v17 = vadd.f32 %v19144_v30, %v7194_v62  ;;  %v7485_v42 = vadd.f32 %v19158_v11, %v19157_v6  ;;  %v8130_v62 = vadd.f32 %v17183_v39, %v17165_v43  ;;  %v19164_v39 = vld [vmem:[#allocation171_spill] sm:$0xff] }
 0x990   :  { %v7309_v44 = vadd.f32 %v19152_v20, %v7280_v17  ;;  %v19160_v17 = vld [vmem:[#allocation164_spill] sm:$0xff] }
 0x991   :  { %v17969_v43 = vpop.f32.mrf.mxu3 }
 0x992   :  { %6861 = vrot.lane.b32.xlu2 %v19136_v49, %s12335_s22  ;;  %v7493_v49 = vadd.f32 %v7475_v25, %v7309_v44  ;;  %v17976_v44 = vpop.f32.mrf.mxu0 }
 0x993   :  { %7508 = vrot.lane.b32.xlu0 %v16434_v47, %s12335_s22  ;;  %v17918_v47 = vpop.f32.mrf.mxu2 }
 0x994   :  { %6859 = vrot.lane.b32.xlu1 %v6840_v24, %s12335_s22  ;;  %v4204_v31 = vpop.permute.xlu2 %4203  ;;  %v19151_v24 = vld [vmem:[#allocation20_spill] sm:$0xff] }
 0x995   :  { %v7849_v32 = vadd.f32 %v19151_v24, %v19150_v14 }
 0x997   :  { %v7935_v31 = vadd.f32 %v19154_v45, %v7849_v32  ;;  %v7295_v32 = vadd.f32 %v19164_v39, %v7209_v0  ;;  %v19166_v45 = vld [vmem:[#allocation181_spill] sm:$0xff]  ;;  %v19176_v39 = vld [vmem:[#allocation198_spill] sm:$0xff] }
 0x99a   :  { %6867 = vrot.lane.b32.xlu2 %v6844_v40, %s12335_s22 }
 0x99b   :  { %7514 = vrot.lane.b32.xlu0 %v7495_v56, %s12335_s22  ;;  %v17936_v63 = vpop.f32.mrf.mxu2  ;;  %v19159_v56 = vld [vmem:[#allocation30_spill] sm:$0xff] }
 0x99c   :  { %6865 = vrot.lane.b32.xlu1 %v19145_v35, %s12335_s22  ;;  %v4253_v58 = vpop.permute.xlu2 %4252  ;;  %v7319_v35 = vadd.f32 %v19160_v17, %v7290_v23  ;;  %v19171_v17 = vld [vmem:[#allocation14_spill] sm:$0xff] }
 0x99d   :  { %v19161_v58 = vld [vmem:[#allocation184_spill] sm:$0xff] }
 0x99e   :  { %v7964_v36 = vadd.f32 %v19161_v58, %v7935_v31  ;;  %v7497_v14 = vadd.f32 %v7485_v42, %v7319_v35  ;;  %v19167_v31 = vld [vmem:[#allocation182_spill] sm:$0xff]  ;;  %v7854_v42 = vadd.f32 %v17007_v48, %v17005_v46  ;;  %v7324_v35 = vadd.f32 %v19171_v17, %v7295_v32  ;;  %v17990_v58 = vpop.f32.mrf.mxu1  ;;  %v19177_v32 = vld [vmem:[#allocation200_spill] sm:$0xff] }
 0x99f   :  { %v19174_v46 = vld [vmem:[#allocation202_spill] sm:$0xff] }
 0x9a0   :  { %v8148_v24 = vadd.f32 %v8130_v62, %v7964_v36  ;;  %v19169_v62 = vld [vmem:[#allocation190_spill] sm:$0xff] }
 0x9a1   :  { %v19175_v48 = vld [vmem:[#allocation194_spill] sm:$0xff] }
 0x9a2   :  { %7512 = vrot.lane.b32.xlu2 %v19156_v55, %s12335_s22  ;;  %v19168_v55 = vld [vmem:[#allocation38_spill] sm:$0xff] }
 0x9a3   :  { %7520 = vrot.lane.b32.xlu0 %v19155_v16, %s12335_s22  ;;  %v17974_v20 = vpop.f32.mrf.mxu2  ;;  %v7490_v16 = vadd.f32 %v19167_v31, %v19166_v45  ;;  %v19183_v17 = vld [vmem:[#allocation206_spill] sm:$0xff] }
 0x9a4   :  { %7510 = vrot.lane.b32.xlu1 %v7493_v49, %s12335_s22  ;;  %v4891_v40 = vpop.permute.xlu2 %4890  ;;  %v19165_v49 = vld [vmem:[#allocation172_spill] sm:$0xff] }
 0x9a5   :  { %v4913_v30 = vsel %vm359_vm13, %v19159_v56, %v4891_v40  ;;  %v19170_v40 = vld [vmem:[#allocation192_spill] sm:$0xff]  ;;  %v7499_v36 = vadd.f32 %v7490_v16, %v7324_v35 }
 0x9a6   :  { %v4925_v25 = vadd.f32 %v17949_v37, %v4913_v30  ;;  %v7864_v56 = vadd.f32 %v19170_v40, %v19169_v62 }
 0x9a8   :  { %4933 = vst.msk [vmem:[%s18563_s7 + $0x8] sm:$0xff] %vm368_vm14, %v4925_v25  ;;  %v19172_v25 = vld [vmem:[#allocation185_spill] sm:$0xff]  ;;  %v7950_v0 = vadd.f32 %v19173_v26, %v7864_v56  ;;  %v19182_v56 = vld [vmem:[#allocation27_spill] sm:$0xff]  ;;  %v19184_v26 = vld [vmem:[#allocation186_spill] sm:$0xff] }
 0x9a9   :  { %v7940_v29 = vadd.f32 %v19172_v25, %v7854_v42  ;;  %v19181_v42 = vld [vmem:[#allocation25_spill] sm:$0xff] }
 0x9aa   :  { %7518 = vrot.lane.b32.xlu2 %v7497_v14, %s12335_s22  ;;  %v7979_v35 = vadd.f32 %v19183_v17, %v7950_v0  ;;  %v18038_v0 = vld [vmem:[%s18562_s6] ss:$0 sm:$0xff] }
 0x9ab   :  { %8165 = vrot.lane.b32.xlu0 %v8148_v24, %s12335_s22  ;;  %v18002_v14 = vpop.f32.mrf.mxu2  ;;  %v18004_v24 = vpop.f32.mrf.mxu3 }
 0x9ac   :  { %7516 = vrot.lane.b32.xlu1 %v19165_v49, %s12335_s22  ;;  %v4897_v51 = vpop.permute.xlu2 %4896  ;;  %v4255_v23 = vpop.permute.xlu0 %4254  ;;  %v8135_v49 = vadd.f32 %v19177_v32, %v19176_v39 }
 0x9ad   :  { %v4916_v6 = vsel %vm359_vm13, %v19168_v55, %v4897_v51  ;;  %v4202_v11 = vpop.permute.xlu1 %4201  ;;  %v19178_v51 = vld [vmem:[#allocation208_spill] sm:$0xff]  ;;  %v19179_v23 = vld [vmem:[#allocation210_spill] sm:$0xff]  ;;  %v18011_v55 = vpop.f32.mrf.mxu0 }
 0x9ae   :  { %v4928_v30 = vadd.f32 %v17949_v37, %v4916_v6  ;;  %v8145_v45 = vadd.f32 %v19179_v23, %v19178_v51  ;;  %v19180_v6 = vld [vmem:[#allocation32_spill] sm:$0xff]  ;;  %v19187_v23 = vld [vmem:[#allocation197_spill] sm:$0xff] }
 0x9b0   :  { %4936 = vst.msk [vmem:[%s18563_s7 + $0x20] sm:$0xff] %vm368_vm14, %v4928_v30  ;;  %v7969_v30 = vadd.f32 %v19182_v56, %v7940_v29  ;;  %v8154_v32 = vadd.f32 %v8145_v45, %v7979_v35  ;;  %v18031_v29 = vpop.f32.mrf.mxu1  ;;  %v19191_v56 = vld [vmem:[#allocation63_spill] sm:$0xff] }
 0x9b2   :  { %8163 = vrot.lane.b32.xlu2 %v19175_v48, %s12335_s22  ;;  %v8150_v39 = vadd.f32 %v8135_v49, %v7969_v30  ;;  %v19186_v49 = vld [vmem:[#allocation24_spill] sm:$0xff] }
 0x9b3   :  { %8171 = vrot.lane.b32.xlu0 %v19174_v46, %s12335_s22  ;;  %v19185_v46 = vld [vmem:[#allocation187_spill] sm:$0xff]  ;;  %v9278_v35 = vpop.f32.mrf.mxu2 }
 0x9b4   :  { %7522 = vrot.lane.b32.xlu1 %v7499_v36, %s12335_s22  ;;  %v4903_v16 = vpop.permute.xlu2 %4902  ;;  %v7859_v48 = vadd.f32 %v19185_v46, %v19184_v26  ;;  %v19192_v26 = vld [vmem:[#allocation28_spill] sm:$0xff] }
 0x9b5   :  { %v4893_v31 = vpop.permute.xlu0 %4892  ;;  %v4919_v62 = vsel %vm359_vm13, %v19181_v42, %v4903_v16  ;;  %v19188_v16 = vld [vmem:[#allocation203_spill] sm:$0xff]  ;;  %v18045_v42 = vpop.f32.mrf.mxu3 }
 0x9b6   :  { %v4914_v11 = vsel %vm359_vm13, %v19180_v6, %v4893_v31  ;;  %v4251_v40 = vpop.permute.xlu1 %4250  ;;  %v4931_v25 = vadd.f32 %v17949_v37, %v4919_v62  ;;  %v7945_v51 = vadd.f32 %v19186_v49, %v7859_v48  ;;  %v19189_v6 = vld [vmem:[#allocation204_spill] sm:$0xff]  ;;  %v19190_v62 = vld [vmem:[#allocation42_spill] sm:$0xff]  ;;  %v19193_v48 = vld [vmem:[#allocation191_spill] sm:$0xff] }
 0x9b7   :  { %v4926_v36 = vadd.f32 %v17949_v37, %v4914_v11  ;;  %v8140_v11 = vadd.f32 %v19189_v6, %v19188_v16  ;;  %v19195_v6 = vld [vmem:[#allocation61_spill] sm:$0xff] }
 0x9b8   :  { %4939 = vst.msk [vmem:[%s18563_s7 + $0x38] sm:$0xff] %vm368_vm14, %v4931_v25 }
 0x9b9   :  { %4934 = vst.msk [vmem:[%s18563_s7 + $0x10] sm:$0xff] %vm368_vm14, %v4926_v36 }
 0x9ba   :  { %8169 = vrot.lane.b32.xlu2 %v8150_v39, %s12335_s22  ;;  %v7974_v39 = vadd.f32 %v19193_v48, %v7945_v51  ;;  %v19194_v51 = vld [vmem:[#allocation207_spill] sm:$0xff] }
 0x9bb   :  { %8177 = vrot.lane.b32.xlu0 %v8154_v32, %s12335_s22  ;;  %v9444_v32 = vpop.f32.mrf.mxu0  ;;  %v18090_v48 = vpop.f32.mrf.mxu2 }
 0x9bc   :  { %8167 = vrot.lane.b32.xlu1 %v19187_v23, %s12335_s22  ;;  %v5548_v31 = vpop.permute.xlu2 %5547  ;;  %v8152_v23 = vadd.f32 %v8140_v11, %v7974_v39 }
 0x9bd   :  { %v4899_v45 = vpop.permute.xlu0 %4898  ;;  %v5569_v30 = vsel %vm359_vm13, %v19191_v56, %v5548_v31  ;;  %v18076_v31 = vpop.f32.mrf.mxu1 }
 0x9be   :  { %v4917_v40 = vsel %vm359_vm13, %v19190_v62, %v4899_v45  ;;  %v4889_v17 = vpop.permute.xlu1 %4888  ;;  %v5581_v25 = vadd.f32 %v18038_v0, %v5569_v30  ;;  %v8795_v45 = vadd.f32 %v17654_v41, %v17652_v61  ;;  %v19196_v30 = vld [vmem:[#allocation66_spill] sm:$0xff] }
 0x9bf   :  { %v4929_v36 = vadd.f32 %v17949_v37, %v4917_v40  ;;  %v4912_v46 = vsel %vm359_vm13, %v19192_v26, %v4889_v17  ;;  %v19197_v17 = vld [vmem:[#allocation36_spill] sm:$0xff]  ;;  %v19198_v26 = vld [vmem:[#allocation29_spill] sm:$0xff] }
 0x9c0   :  { %v4924_v49 = vadd.f32 %v17949_v37, %v4912_v46  ;;  %5589 = vst.msk [vmem:[%s18563_s7 + $0x50] sm:$0xff] %vm368_vm14, %v5581_v25  ;;  %v18085_v25 = vpop.f32.mrf.mxu3  ;;  %v8807_v46 = vadd.f32 %v8795_v45, %v19198_v26 }
 0x9c1   :  { %4937 = vst.msk [vmem:[%s18563_s7 + $0x28] sm:$0xff] %vm368_vm14, %v4929_v36 }
 0x9c2   :  { %4932 = vst.msk [vmem:[%s18563_s7] sm:$0xff] %vm368_vm14, %v4924_v49  ;;  %8175 = vrot.lane.b32.xlu2 %v19194_v51, %s12335_s22  ;;  %v9243_v49 = vadd.f32 %v17925_v34, %v17696_v15  ;;  %v9438_v15 = vadd.f32 %v17938_v52, %v17934_v33  ;;  %v19199_v51 = vld [vmem:[#allocation64_spill] sm:$0xff] }
 0x9c3   :  { %8822 = vrot.lane.b32.xlu0 %v17597_v13, %s12335_s22  ;;  %v18096_v39 = vpop.f32.mrf.mxu0 }
 0x9c4   :  { %8173 = vrot.lane.b32.xlu1 %v8152_v23, %s12335_s22  ;;  %v5554_v62 = vpop.permute.xlu2 %5553  ;;  %v18116_v23 = vld [vmem:[%s18562_s6] ss:$0 sm:$0xff] }
 0x9c5   :  { %v5544_v16 = vpop.permute.xlu0 %5543  ;;  %v5572_v13 = vsel %vm359_vm13, %v19196_v30, %v5554_v62  ;;  %v19200_v62 = vld [vmem:[#allocation79_spill] sm:$0xff]  ;;  %v9254_v30 = vpop.f32.mrf.mxu1 }
 0x9c6   :  { %v5567_v11 = vsel %vm359_vm13, %v19195_v6, %v5544_v16  ;;  %v4895_v40 = vpop.permute.xlu1 %4894  ;;  %v5584_v61 = vadd.f32 %v18038_v0, %v5572_v13 }
 0x9c7   :  { %v5579_v56 = vadd.f32 %v18038_v0, %v5567_v11  ;;  %v4915_v36 = vsel %vm359_vm13, %v19197_v17, %v4895_v40  ;;  %v9272_v11 = vadd.f32 %v17936_v63, %v9243_v49  ;;  %v19201_v40 = vld [vmem:[#allocation21_spill] sm:$0xff]  ;;  %v9250_v63 = vadd.f32 %v18031_v29, %v17720_v28 }
 0x9c8   :  { %v4927_v41 = vadd.f32 %v17949_v37, %v4915_v36  ;;  %5592 = vst.msk [vmem:[%s18563_s7 + $0x68] sm:$0xff] %vm368_vm14, %v5584_v61  ;;  %v9420_v17 = vpop.f32.mrf.mxu3  ;;  %v18140_v36 = vpop.f32.mrf.mxu2  ;;  %v9445_v28 = vadd.f32 %v9444_v32, %v18045_v42 }
 0x9c9   :  { %5587 = vst.msk [vmem:[%s18563_s7 + $0x40] sm:$0xff] %vm368_vm14, %v5579_v56  ;;  %v9457_v52 = vadd.f32 %v9438_v15, %v9272_v11  ;;  %v9279_v61 = vadd.f32 %v9278_v35, %v9250_v63  ;;  %v9172_v15 = vadd.f32 %v17742_v2, %v17745_v53  ;;  %v9248_v2 = vadd.f32 %v17990_v58, %v17715_v59  ;;  %v19206_v63 = vld [vmem:[#allocation93_spill] sm:$0xff] }
 0x9ca   :  { %4935 = vst.msk [vmem:[%s18563_s7 + $0x18] sm:$0xff] %vm368_vm14, %v4927_v41  ;;  %8820 = vrot.lane.b32.xlu2 %v17578_v54, %s12335_s22  ;;  %v19202_v41 = vld [vmem:[#allocation57_spill] sm:$0xff]  ;;  %v9245_v59 = vadd.f32 %v17960_v50, %v17709_v8 }
 0x9cb   :  { %8828 = vrot.lane.b32.xlu0 %v8807_v46, %s12335_s22  ;;  %v9460_v32 = vadd.f32 %v9445_v28, %v9279_v61 }
 0x9cc   :  { %8818 = vrot.lane.b32.xlu1 %v17554_v21, %s12335_s22  ;;  %v6199_v16 = vpop.permute.xlu2 %6198  ;;  %v9274_v28 = vadd.f32 %v17974_v20, %v9245_v59  ;;  %v9253_v20 = vadd.f32 %v18076_v31, %v17722_v3  ;;  %v19209_v31 = vld [vmem:[#allocation118_spill] sm:$0xff] }
 0x9cd   :  { %v5550_v34 = vpop.permute.xlu0 %5549  ;;  %v6222_v21 = vsel %vm359_vm13, %v19200_v62, %v6199_v16  ;;  %v9257_v53 = vpop.f32.mrf.mxu1 }
 0x9ce   :  { %v5570_v45 = vsel %vm359_vm13, %v19199_v51, %v5550_v34  ;;  %v4901_v6 = vpop.permute.xlu1 %4900  ;;  %v6234_v13 = vadd.f32 %v18116_v23, %v6222_v21  ;;  %v19203_v51 = vld [vmem:[#allocation83_spill] sm:$0xff] }
 0x9cf   :  { %v5582_v54 = vadd.f32 %v18038_v0, %v5570_v45  ;;  %v4918_v56 = vsel %vm359_vm13, %v19201_v40, %v4901_v6  ;;  %v19204_v45 = vld [vmem:[#allocation62_spill] sm:$0xff]  ;;  %v9258_v6 = vadd.f32 %v9257_v53, %v9172_v15  ;;  %v9277_v40 = vadd.f32 %v18002_v14, %v9248_v2 }
 0x9d0   :  { %v4930_v33 = vadd.f32 %v17949_v37, %v4918_v56  ;;  %6242 = vst.msk [vmem:[%s18563_s7 + $0x80] sm:$0xff] %vm368_vm14, %v6234_v13  ;;  %v9449_v37 = vpop.f32.mrf.mxu0  ;;  %v9423_v16 = vpop.f32.mrf.mxu3  ;;  %v9169_v56 = vadd.f32 %v17730_v57, %v17732_v60  ;;  %v19205_v13 = vld [vmem:[#allocation80_spill] sm:$0xff] }
 0x9d1   :  { %5590 = vst.msk [vmem:[%s18563_s7 + $0x58] sm:$0xff] %vm368_vm14, %v5582_v54  ;;  %v9286_v11 = vpop.f32.mrf.mxu2  ;;  %v9443_v54 = vadd.f32 %v18011_v55, %v18004_v24  ;;  %v19207_v55 = vld [vmem:[#allocation65_spill] sm:$0xff] }
 0x9d2   :  { %4938 = vst.msk [vmem:[%s18563_s7 + $0x30] sm:$0xff] %vm368_vm14, %v4930_v33  ;;  %8826 = vrot.lane.b32.xlu2 %v17617_v10, %s12335_s22  ;;  %v9255_v61 = vadd.f32 %v9254_v30, %v9169_v56  ;;  %v9450_v30 = vadd.f32 %v9449_v37, %v9420_v17  ;;  %v9282_v17 = vadd.f32 %v18090_v48, %v9253_v20 }
 0x9d3   :  { %9473 = vrot.lane.b32.xlu0 %v9457_v52, %s12335_s22 }
 0x9d4   :  { %8824 = vrot.lane.b32.xlu1 %v17613_v19, %s12335_s22  ;;  %v6205_v46 = vpop.permute.xlu2 %6204 }
 0x9d5   :  { %v5556_v29 = vpop.permute.xlu0 %5555  ;;  %v6225_v10 = vsel %vm359_vm13, %v19203_v51, %v6205_v46  ;;  %v9448_v46 = vadd.f32 %v18096_v39, %v18085_v25 }
 0x9d6   :  { %v5573_v26 = vsel %vm359_vm13, %v19202_v41, %v5556_v29  ;;  %v5546_v49 = vpop.permute.xlu1 %5545  ;;  %v6237_v42 = vadd.f32 %v18116_v23, %v6225_v10  ;;  %v18221_v41 = vld [vmem:[%s18562_s6] ss:$0 sm:$0xff]  ;;  %v9284_v10 = vadd.f32 %v18140_v36, %v9255_v61 }
 0x9d7   :  { %v5585_v34 = vadd.f32 %v18038_v0, %v5573_v26  ;;  %v5568_v19 = vsel %vm359_vm13, %v19204_v45, %v5546_v49  ;;  %v19208_v49 = vld [vmem:[#allocation87_spill] sm:$0xff]  ;;  %v9461_v36 = vadd.f32 %v9448_v46, %v9282_v17 }
 0x9d8   :  { %v5580_v35 = vadd.f32 %v18038_v0, %v5568_v19  ;;  %6245 = vst.msk [vmem:[%s18563_s7 + $0x98] sm:$0xff] %vm368_vm14, %v6237_v42  ;;  %v9452_v58 = vpop.f32.mrf.mxu0  ;;  %v19210_v19 = vld [vmem:[#allocation58_spill] sm:$0xff]  ;;  %v9462_v39 = vadd.f32 %v9450_v30, %v9284_v10  ;;  %v19218_v46 = vld [vmem:[#allocation23_spill] sm:$0xff] }
 0x9d9   :  { %5593 = vst.msk [vmem:[%s18563_s7 + $0x70] sm:$0xff] %vm368_vm14, %v5585_v34  ;;  %v9453_v62 = vadd.f32 %v9452_v58, %v9423_v16  ;;  %v19211_v16 = vld [vmem:[#allocation94_spill] sm:$0xff] }
 0x9da   :  { %5588 = vst.msk [vmem:[%s18563_s7 + $0x48] sm:$0xff] %vm368_vm14, %v5580_v35  ;;  %8832 = vrot.lane.b32.xlu2 %v17688_v12, %s12335_s22  ;;  %v9440_v12 = vadd.f32 %v17976_v44, %v17969_v43  ;;  %v9459_v43 = vadd.f32 %v9443_v54, %v9277_v40  ;;  %v9259_v35 = vpop.f32.mrf.mxu1  ;;  %v19213_v40 = vld [vmem:[#allocation82_spill] sm:$0xff] }
 0x9db   :  { %9479 = vrot.lane.b32.xlu0 %v9460_v32, %s12335_s22  ;;  %v9425_v32 = vpop.f32.mrf.mxu3 }
 0x9dc   :  { %8830 = vrot.lane.b32.xlu1 %v17669_v18, %s12335_s22  ;;  %v6211_v50 = vpop.permute.xlu2 %6210  ;;  %v9287_v18 = vadd.f32 %v9286_v11, %v9258_v6  ;;  %v9458_v29 = vadd.f32 %v9440_v12, %v9274_v28  ;;  %v9288_v11 = vpop.f32.mrf.mxu2  ;;  %v19216_v28 = vld [vmem:[#allocation89_spill] sm:$0xff] }
 0x9dd   :  { %v6201_v21 = vpop.permute.xlu0 %6200  ;;  %v6228_v24 = vsel %vm359_vm13, %v19206_v63, %v6211_v50 }
 0x9de   :  { %v6223_v8 = vsel %vm359_vm13, %v19205_v13, %v6201_v21  ;;  %v5552_v33 = vpop.permute.xlu1 %5551  ;;  %v6240_v57 = vadd.f32 %v18116_v23, %v6228_v24  ;;  %v9463_v44 = vadd.f32 %v9453_v62, %v9287_v18  ;;  %v19212_v62 = vld [vmem:[#allocation121_spill] sm:$0xff] }
 0x9df   :  { %v6235_v52 = vadd.f32 %v18116_v23, %v6223_v8  ;;  %v5571_v14 = vsel %vm359_vm13, %v19207_v55, %v5552_v33  ;;  %v19214_v33 = vld [vmem:[#allocation119_spill] sm:$0xff] }
 0x9e0   :  { %v5583_v60 = vadd.f32 %v18038_v0, %v5571_v14  ;;  %6248 = vst.msk [vmem:[%s18563_s7 + $0xb0] sm:$0xff] %vm368_vm14, %v6240_v57  ;;  %v9454_v48 = vpop.f32.mrf.mxu0  ;;  %v19215_v55 = vld [vmem:[#allocation127_spill] sm:$0xff] }
 0x9e1   :  { %6243 = vst.msk [vmem:[%s18563_s7 + $0x88] sm:$0xff] %vm368_vm14, %v6235_v52  ;;  %v9455_v53 = vadd.f32 %v9454_v48, %v9425_v32 }
 0x9e2   :  { %5591 = vst.msk [vmem:[%s18563_s7 + $0x60] sm:$0xff] %vm368_vm14, %v5583_v60  ;;  %9477 = vrot.lane.b32.xlu2 %v9459_v43, %s12335_s22 }
 0x9e3   :  { %9485 = vrot.lane.b32.xlu0 %v9463_v44, %s12335_s22  ;;  %v18297_v44 = vld [vmem:[%s18562_s6] ss:$0 sm:$0xff] }
 0x9e4   :  { %9475 = vrot.lane.b32.xlu1 %v9458_v29, %s12335_s22  ;;  %v6856_v34 = vpop.permute.xlu2 %6855  ;;  %v19217_v29 = vld [vmem:[#allocation122_spill] sm:$0xff] }
 0x9e5   :  { %v6207_v26 = vpop.permute.xlu0 %6206  ;;  %v6878_v45 = vsel %vm359_vm13, %v19209_v31, %v6856_v34  ;;  %v19220_v31 = vld [vmem:[#allocation150_spill] sm:$0xff] }
 0x9e6   :  { %v6226_v15 = vsel %vm359_vm13, %v19208_v49, %v6207_v26  ;;  %v5558_v51 = vpop.permute.xlu1 %5557  ;;  %v6890_v37 = vadd.f32 %v18221_v41, %v6878_v45 }
 0x9e7   :  { %v6238_v3 = vadd.f32 %v18116_v23, %v6226_v15  ;;  %v5574_v42 = vsel %vm359_vm13, %v19210_v19, %v5558_v51  ;;  %v19219_v15 = vld [vmem:[#allocation117_spill] sm:$0xff] }
 0x9e8   :  { %v5586_v25 = vadd.f32 %v18038_v0, %v5574_v42  ;;  %6898 = vst.msk [vmem:[%s18563_s7 + $0xc8] sm:$0xff] %vm368_vm14, %v6890_v37  ;;  %v9260_v0 = vadd.f32 %v9259_v35, %v17765_v38  ;;  %v19221_v37 = vld [vmem:[#allocation15_spill] sm:$0xff] }
 0x9e9   :  { %6246 = vst.msk [vmem:[%s18563_s7 + $0xa0] sm:$0xff] %vm368_vm14, %v6238_v3 }
 0x9ea   :  { %5594 = vst.msk [vmem:[%s18563_s7 + $0x78] sm:$0xff] %vm368_vm14, %v5586_v25  ;;  %9483 = vrot.lane.b32.xlu2 %v9462_v39, %s12335_s22  ;;  %v9289_v38 = vadd.f32 %v9288_v11, %v9260_v0  ;;  %v19222_v39 = vld [vmem:[#allocation120_spill] sm:$0xff]  ;;  %v18344_v0 = vld [vmem:[%s18562_s6] ss:$0 sm:$0xff] }
 0x9ec   :  { %9481 = vrot.lane.b32.xlu1 %v9461_v36, %s12335_s22  ;;  %v6862_v59 = vpop.permute.xlu2 %6861  ;;  %v9464_v8 = vadd.f32 %v9455_v53, %v9289_v38  ;;  %v19226_v38 = vld [vmem:[#allocation157_spill] sm:$0xff] }
 0x9ed   :  { %v6213_v2 = vpop.permute.xlu0 %6212  ;;  %v6881_v21 = vsel %vm359_vm13, %v19212_v62, %v6862_v59 }
 0x9ee   :  { %v6229_v6 = vsel %vm359_vm13, %v19211_v16, %v6213_v2  ;;  %v6203_v58 = vpop.permute.xlu1 %6202  ;;  %v6893_v12 = vadd.f32 %v18221_v41, %v6881_v21  ;;  %v19223_v2 = vld [vmem:[#allocation11_spill] sm:$0xff] }
 0x9ef   :  { %v6241_v54 = vadd.f32 %v18116_v23, %v6229_v6  ;;  %v6224_v56 = vsel %vm359_vm13, %v19213_v40, %v6203_v58  ;;  %v19224_v58 = vld [vmem:[#allocation173_spill] sm:$0xff] }
 0x9f0   :  { %v6236_v13 = vadd.f32 %v18116_v23, %v6224_v56  ;;  %6901 = vst.msk [vmem:[%s18563_s7 + $0xe0] sm:$0xff] %vm368_vm14, %v6893_v12 }
 0x9f1   :  { %6249 = vst.msk [vmem:[%s18563_s7 + $0xb8] sm:$0xff] %vm368_vm14, %v6241_v54  ;;  %v19225_v54 = vld [vmem:[#allocation125_spill] sm:$0xff] }
 0x9f2   :  { %6244 = vst.msk [vmem:[%s18563_s7 + $0x90] sm:$0xff] %vm368_vm14, %v6236_v13 }
 0x9f4   :  { %9487 = vrot.lane.b32.xlu1 %v9464_v8, %s12335_s22  ;;  %v6868_v52 = vpop.permute.xlu2 %6867 }
 0x9f5   :  { %v6858_v50 = vpop.permute.xlu0 %6857  ;;  %v6884_v14 = vsel %vm359_vm13, %v19215_v55, %v6868_v52 }
 0x9f6   :  { %v6879_v18 = vsel %vm359_vm13, %v19214_v33, %v6858_v50  ;;  %v6209_v63 = vpop.permute.xlu1 %6208  ;;  %v6896_v60 = vadd.f32 %v18221_v41, %v6884_v14  ;;  %v19227_v50 = vld [vmem:[#allocation176_spill] sm:$0xff]  ;;  %v19229_v14 = vld [vmem:[#allocation174_spill] sm:$0xff] }
 0x9f7   :  { %v6891_v24 = vadd.f32 %v18221_v41, %v6879_v18  ;;  %v6227_v57 = vsel %vm359_vm13, %v19216_v28, %v6209_v63  ;;  %v19228_v18 = vld [vmem:[#allocation7_spill] sm:$0xff] }
 0x9f8   :  { %v6239_v43 = vadd.f32 %v18116_v23, %v6227_v57  ;;  %6904 = vst.msk [vmem:[%s18563_s7 + $0xf8] sm:$0xff] %vm368_vm14, %v6896_v60 }
 0x9f9   :  { %6899 = vst.msk [vmem:[%s18563_s7 + $0xd0] sm:$0xff] %vm368_vm14, %v6891_v24 }
 0x9fa   :  { %6247 = vst.msk [vmem:[%s18563_s7 + $0xa8] sm:$0xff] %vm368_vm14, %v6239_v43 }
 0x9fc   :  { %v7513_v20 = vpop.permute.xlu2 %7512 }
 0x9fd   :  { %v6864_v23 = vpop.permute.xlu0 %6863  ;;  %v7534_v49 = vsel %vm359_vm13, %v19218_v46, %v7513_v20  ;;  %v18412_v46 = vld [vmem:[%s18562_s6] ss:$0 sm:$0xff] }
 0x9fe   :  { %v6882_v61 = vsel %vm359_vm13, %v19217_v29, %v6864_v23  ;;  %v6854_v30 = vpop.permute.xlu1 %6853  ;;  %v7546_v51 = vadd.f32 %v18297_v44, %v7534_v49  ;;  %v19230_v23 = vld [vmem:[#allocation10_spill] sm:$0xff] }
 0x9ff   :  { %v6894_v26 = vadd.f32 %v18221_v41, %v6882_v61  ;;  %v6877_v34 = vsel %vm359_vm13, %v19219_v15, %v6854_v30  ;;  %v19231_v61 = vld [vmem:[#allocation151_spill] sm:$0xff]  ;;  %v19232_v15 = vld [vmem:[#allocation177_spill] sm:$0xff] }
 0xa00   :  { %v6889_v10 = vadd.f32 %v18221_v41, %v6877_v34  ;;  %7554 = vst.msk [vmem:[%s18563_s7 + $0x110] sm:$0xff] %vm368_vm14, %v7546_v51 }
 0xa01   :  { %6902 = vst.msk [vmem:[%s18563_s7 + $0xe8] sm:$0xff] %vm368_vm14, %v6894_v26 }
 0xa02   :  { %6897 = vst.msk [vmem:[%s18563_s7 + $0xc0] sm:$0xff] %vm368_vm14, %v6889_v10 }
 0xa04   :  { %v7519_v19 = vpop.permute.xlu2 %7518 }
 0xa05   :  { %v7509_v3 = vpop.permute.xlu0 %7508  ;;  %v7537_v25 = vsel %vm359_vm13, %v19221_v37, %v7519_v19  ;;  %v19234_v19 = vld [vmem:[#allocation158_spill] sm:$0xff] }
 0xa06   :  { %v7532_v45 = vsel %vm359_vm13, %v19220_v31, %v7509_v3  ;;  %v6860_v42 = vpop.permute.xlu1 %6859  ;;  %v7549_v35 = vadd.f32 %v18297_v44, %v7537_v25  ;;  %v19233_v31 = vld [vmem:[#allocation193_spill] sm:$0xff] }
 0xa07   :  { %v7544_v17 = vadd.f32 %v18297_v44, %v7532_v45  ;;  %v6880_v36 = vsel %vm359_vm13, %v19222_v39, %v6860_v42  ;;  %v19235_v39 = vld [vmem:[#allocation180_spill] sm:$0xff] }
 0xa08   :  { %v6892_v32 = vadd.f32 %v18221_v41, %v6880_v36  ;;  %7557 = vst.msk [vmem:[%s18563_s7 + $0x128] sm:$0xff] %vm368_vm14, %v7549_v35 }
 0xa09   :  { %7552 = vst.msk [vmem:[%s18563_s7 + $0x100] sm:$0xff] %vm368_vm14, %v7544_v17 }
 0xa0a   :  { %6900 = vst.msk [vmem:[%s18563_s7 + $0xd8] sm:$0xff] %vm368_vm14, %v6892_v32 }
 0xa0c   :  { %v8164_v16 = vpop.permute.xlu2 %8163 }
 0xa0d   :  { %v7515_v48 = vpop.permute.xlu0 %7514  ;;  %v8187_v11 = vsel %vm359_vm13, %v19224_v58, %v8164_v16 }
 0xa0e   :  { %v7535_v53 = vsel %vm359_vm13, %v19223_v2, %v7515_v48  ;;  %v6866_v6 = vpop.permute.xlu1 %6865  ;;  %v8199_v21 = vadd.f32 %v18344_v0, %v8187_v11  ;;  %v19236_v48 = vld [vmem:[#allocation199_spill] sm:$0xff] }
 0xa0f   :  { %v7547_v59 = vadd.f32 %v18297_v44, %v7535_v53  ;;  %v6883_v62 = vsel %vm359_vm13, %v19225_v54, %v6866_v6  ;;  %v19237_v53 = vld [vmem:[#allocation175_spill] sm:$0xff] }
 0xa10   :  { %v6895_v40 = vadd.f32 %v18221_v41, %v6883_v62  ;;  %8207 = vst.msk [vmem:[%s18563_s7 + $0x140] sm:$0xff] %vm368_vm14, %v8199_v21  ;;  %v19238_v11 = vld [vmem:[#allocation195_spill] sm:$0xff] }
 0xa11   :  { %7555 = vst.msk [vmem:[%s18563_s7 + $0x118] sm:$0xff] %vm368_vm14, %v7547_v59 }
 0xa12   :  { %6903 = vst.msk [vmem:[%s18563_s7 + $0xf0] sm:$0xff] %vm368_vm14, %v6895_v40 }
 0xa14   :  { %v8170_v41 = vpop.permute.xlu2 %8169 }
 0xa15   :  { %v7521_v56 = vpop.permute.xlu0 %7520  ;;  %v8190_v33 = vsel %vm359_vm13, %v19227_v50, %v8170_v41  ;;  %v12040_v50 = vld [vmem:[%s18562_s6] ss:$0 sm:$0xff] }
 0xa16   :  { %v7538_v12 = vsel %vm359_vm13, %v19226_v38, %v7521_v56  ;;  %v7511_v13 = vpop.permute.xlu1 %7510  ;;  %v8202_v63 = vadd.f32 %v18344_v0, %v8190_v33  ;;  %v19239_v56 = vld [vmem:[#allocation209_spill] sm:$0xff] }
 0xa17   :  { %v7550_v8 = vadd.f32 %v18297_v44, %v7538_v12  ;;  %v7533_v52 = vsel %vm359_vm13, %v19228_v18, %v7511_v13  ;;  %v19240_v12 = vld [vmem:[#allocation8_spill] sm:$0xff]  ;;  %v19241_v33 = vld [vmem:[#allocation201_spill] sm:$0xff] }
 0xa18   :  { %v7545_v24 = vadd.f32 %v18297_v44, %v7533_v52  ;;  %8210 = vst.msk [vmem:[%s18563_s7 + $0x158] sm:$0xff] %vm368_vm14, %v8202_v63 }
 0xa19   :  { %7558 = vst.msk [vmem:[%s18563_s7 + $0x130] sm:$0xff] %vm368_vm14, %v7550_v8 }
 0xa1a   :  { %7553 = vst.msk [vmem:[%s18563_s7 + $0x108] sm:$0xff] %vm368_vm14, %v7545_v24 }
 0xa1c   :  { %v8176_v57 = vpop.permute.xlu2 %8175 }
 0xa1d   :  { %v8166_v55 = vpop.permute.xlu0 %8165  ;;  %v8193_v29 = vsel %vm359_vm13, %v19230_v23, %v8176_v57 }
 0xa1e   :  { %v8188_v28 = vsel %vm359_vm13, %v19229_v14, %v8166_v55  ;;  %v7517_v60 = vpop.permute.xlu1 %7516  ;;  %v8205_v30 = vadd.f32 %v18344_v0, %v8193_v29  ;;  %v19242_v14 = vld [vmem:[#allocation189_spill] sm:$0xff] }
 0xa1f   :  { %v8200_v43 = vadd.f32 %v18344_v0, %v8188_v28  ;;  %v7536_v20 = vsel %vm359_vm13, %v19231_v61, %v7517_v60 }
 0xa20   :  { %v7548_v26 = vadd.f32 %v18297_v44, %v7536_v20  ;;  %8213 = vst.msk [vmem:[%s18563_s7 + $0x170] sm:$0xff] %vm368_vm14, %v8205_v30  ;;  %v19243_v30 = vld [vmem:[#allocation196_spill] sm:$0xff] }
 0xa21   :  { %8208 = vst.msk [vmem:[%s18563_s7 + $0x148] sm:$0xff] %vm368_vm14, %v8200_v43 }
 0xa22   :  { %7556 = vst.msk [vmem:[%s18563_s7 + $0x120] sm:$0xff] %vm368_vm14, %v7548_v26 }
 0xa24   :  { %v8821_v51 = vpop.permute.xlu2 %8820 }
 0xa25   :  { %v8172_v49 = vpop.permute.xlu0 %8171  ;;  %v8843_v45 = vsel %vm359_vm13, %v19233_v31, %v8821_v51 }
 0xa26   :  { %v8191_v34 = vsel %vm359_vm13, %v19232_v15, %v8172_v49  ;;  %v7523_v10 = vpop.permute.xlu1 %7522  ;;  %v8855_v17 = vadd.f32 %v18412_v46, %v8843_v45 }
 0xa27   :  { %v8203_v3 = vadd.f32 %v18344_v0, %v8191_v34  ;;  %v7539_v42 = vsel %vm359_vm13, %v19234_v19, %v7523_v10  ;;  %v19244_v10 = vld [vmem:[#allocation205_spill] sm:$0xff] }
 0xa28   :  { %v7551_v37 = vadd.f32 %v18297_v44, %v7539_v42  ;;  %8863 = vst.msk [vmem:[%s18563_s7 + $0x188] sm:$0xff] %vm368_vm14, %v8855_v17 }
 0xa29   :  { %8211 = vst.msk [vmem:[%s18563_s7 + $0x160] sm:$0xff] %vm368_vm14, %v8203_v3 }
 0xa2a   :  { %7559 = vst.msk [vmem:[%s18563_s7 + $0x138] sm:$0xff] %vm368_vm14, %v7551_v37 }
 0xa2c   :  { %v8827_v44 = vpop.permute.xlu2 %8826 }
 0xa2d   :  { %v8178_v25 = vpop.permute.xlu0 %8177  ;;  %v8846_v2 = vsel %vm359_vm13, %v19236_v48, %v8827_v44 }
 0xa2e   :  { %v8194_v36 = vsel %vm359_vm13, %v19235_v39, %v8178_v25  ;;  %v8168_v35 = vpop.permute.xlu1 %8167  ;;  %v8858_v6 = vadd.f32 %v18412_v46, %v8846_v2 }
 0xa2f   :  { %v8206_v32 = vadd.f32 %v18344_v0, %v8194_v36  ;;  %v8189_v16 = vsel %vm359_vm13, %v19237_v53, %v8168_v35 }
 0xa30   :  { %v8201_v59 = vadd.f32 %v18344_v0, %v8189_v16  ;;  %8866 = vst.msk [vmem:[%s18563_s7 + $0x1a0] sm:$0xff] %vm368_vm14, %v8858_v6 }
 0xa31   :  { %8214 = vst.msk [vmem:[%s18563_s7 + $0x178] sm:$0xff] %vm368_vm14, %v8206_v32 }
 0xa32   :  { %8209 = vst.msk [vmem:[%s18563_s7 + $0x150] sm:$0xff] %vm368_vm14, %v8201_v59 }
 0xa34   :  { %v8833_v62 = vpop.permute.xlu2 %8832 }
 0xa35   :  { %v8823_v58 = vpop.permute.xlu0 %8822  ;;  %v8849_v38 = vsel %vm359_vm13, %v19239_v56, %v8833_v62 }
 0xa36   :  { %v8844_v54 = vsel %vm359_vm13, %v19238_v11, %v8823_v58  ;;  %v8174_v21 = vpop.permute.xlu1 %8173  ;;  %v8861_v13 = vadd.f32 %v18412_v46, %v8849_v38 }
 0xa37   :  { %v8856_v40 = vadd.f32 %v18412_v46, %v8844_v54  ;;  %v8192_v41 = vsel %vm359_vm13, %v19240_v12, %v8174_v21 }
 0xa38   :  { %v8204_v8 = vadd.f32 %v18344_v0, %v8192_v41  ;;  %8869 = vst.msk [vmem:[%s18563_s7 + $0x1b8] sm:$0xff] %vm368_vm14, %v8861_v13 }
 0xa39   :  { %8864 = vst.msk [vmem:[%s18563_s7 + $0x190] sm:$0xff] %vm368_vm14, %v8856_v40 }
 0xa3a   :  { %8212 = vst.msk [vmem:[%s18563_s7 + $0x168] sm:$0xff] %vm368_vm14, %v8204_v8 }
 0xa3c   :  { %v9478_v52 = vpop.permute.xlu2 %9477 }
 0xa3d   :  { %v8829_v0 = vpop.permute.xlu0 %8828  ;;  %v9499_v55 = vsel %vm359_vm13, %v17823_v5, %v9478_v52 }
 0xa3e   :  { %v8847_v18 = vsel %vm359_vm13, %v19241_v33, %v8829_v0  ;;  %v8819_v63 = vpop.permute.xlu1 %8818  ;;  %v9511_v57 = vadd.f32 %v12040_v50, %v9499_v55 }
 0xa3f   :  { %v8859_v24 = vadd.f32 %v18412_v46, %v8847_v18  ;;  %v8842_v28 = vsel %vm359_vm13, %v19242_v14, %v8819_v63 }
 0xa40   :  { %v8854_v60 = vadd.f32 %v18412_v46, %v8842_v28  ;;  %9519 = vst.msk [vmem:[%s18563_s7 + $0x1d0] sm:$0xff] %vm368_vm14, %v9511_v57 }
 0xa41   :  { %8867 = vst.msk [vmem:[%s18563_s7 + $0x1a8] sm:$0xff] %vm368_vm14, %v8859_v24 }
 0xa42   :  { %8862 = vst.msk [vmem:[%s18563_s7 + $0x180] sm:$0xff] %vm368_vm14, %v8854_v60 }
 0xa44   :  { %v9484_v23 = vpop.permute.xlu2 %9483 }
 0xa45   :  { %v9474_v5 = vpop.permute.xlu0 %9473  ;;  %v9502_v20 = vsel %vm359_vm13, %v17878_v4, %v9484_v23 }
 0xa46   :  { %v9497_v43 = vsel %vm359_vm13, %v17781_v7, %v9474_v5  ;;  %v8825_v29 = vpop.permute.xlu1 %8824  ;;  %v9514_v49 = vadd.f32 %v12040_v50, %v9502_v20 }
 0xa47   :  { %v9509_v61 = vadd.f32 %v12040_v50, %v9497_v43  ;;  %v8845_v26 = vsel %vm359_vm13, %v19243_v30, %v8825_v29 }
 0xa48   :  { %v8857_v15 = vadd.f32 %v18412_v46, %v8845_v26  ;;  %9522 = vst.msk [vmem:[%s18563_s7 + $0x1e8] sm:$0xff] %vm368_vm14, %v9514_v49 }
 0xa49   :  { %9517 = vst.msk [vmem:[%s18563_s7 + $0x1c0] sm:$0xff] %vm368_vm14, %v9509_v61 }
 0xa4a   :  { %8865 = vst.msk [vmem:[%s18563_s7 + $0x198] sm:$0xff] %vm368_vm14, %v8857_v15 }
 0xa4d   :  { %v9480_v7 = vpop.permute.xlu0 %9479 }
 0xa4e   :  { %v9500_v4 = vsel %vm359_vm13, %v17841_v27, %v9480_v7  ;;  %v8831_v34 = vpop.permute.xlu1 %8830 }
 0xa4f   :  { %v9512_v51 = vadd.f32 %v12040_v50, %v9500_v4  ;;  %v8848_v3 = vsel %vm359_vm13, %v19244_v10, %v8831_v34 }
 0xa50   :  { %v8860_v31 = vadd.f32 %v18412_v46, %v8848_v3 }
 0xa51   :  { %9520 = vst.msk [vmem:[%s18563_s7 + $0x1d8] sm:$0xff] %vm368_vm14, %v9512_v51 }
 0xa52   :  { %8868 = vst.msk [vmem:[%s18563_s7 + $0x1b0] sm:$0xff] %vm368_vm14, %v8860_v31 }
 0xa55   :  { %v9486_v45 = vpop.permute.xlu0 %9485 }
 0xa56   :  { %v9503_v27 = vsel %vm359_vm13, %v17896_v22, %v9486_v45  ;;  %v9476_v19 = vpop.permute.xlu1 %9475 }
 0xa57   :  { %v9515_v42 = vadd.f32 %v12040_v50, %v9503_v27  ;;  %v9498_v17 = vsel %vm359_vm13, %v17801_v9, %v9476_v19 }
 0xa58   :  { %v9510_v46 = vadd.f32 %v12040_v50, %v9498_v17 }
 0xa59   :  { %9523 = vst.msk [vmem:[%s18563_s7 + $0x1f0] sm:$0xff] %vm368_vm14, %v9515_v42 }
 0xa5a   :  { %9518 = vst.msk [vmem:[%s18563_s7 + $0x1c8] sm:$0xff] %vm368_vm14, %v9510_v46 }
 0xa5e   :  { %v9482_v37 = vpop.permute.xlu1 %9481 }
 0xa5f   :  { %v9501_v22 = vsel %vm359_vm13, %v17858_v1, %v9482_v37 }
 0xa60   :  { %v9513_v25 = vadd.f32 %v12040_v50, %v9501_v22 }
 0xa62   :  { %9521 = vst.msk [vmem:[%s18563_s7 + $0x1e0] sm:$0xff] %vm368_vm14, %v9513_v25 }
 0xa66   :  { %v9488_v9 = vpop.permute.xlu1 %9487 }
 0xa67   :  { %v9504_v39 = vsel %vm359_vm13, %v17918_v47, %v9488_v9 }
 0xa68   :  { %v9516_v36 = vadd.f32 %v12040_v50, %v9504_v39 }
 0xa6a   :  { %9524 = vst.msk [vmem:[%s18563_s7 + $0x1f8] sm:$0xff] %vm368_vm14, %v9516_v36 }

</bundles_post_ra>
